<compile_context>
chip_gen: v7x
topology: tpu7x:2x2x1
jax: 0.10.0
libtpu: 0.0.40
codegen_flags: <defaults>
</compile_context>

<pallas_src>
import math

import jax
import jax.numpy as jnp
from jax.experimental import pallas as pl
from jax.experimental.pallas import tpu as pltpu


def _relu(x):
    return jnp.maximum(x, 0.0)


def pointnet_embedding_kernel(
    x_ref,                                        # [TB, N, 3]  f32 xyz points
    t_cw1, t_cb1, t_cw2, t_cb2, t_cw3, t_cb3,     # TNet pointwise convs
    t_fw1, t_fb1, t_fw2, t_fb2, t_fw3, t_fb3,     # TNet FC head (fb3 has +I folded)
    cw1, cb1, cw2, cb2, cw3, cb3,                 # embedding convs (eval-BN folded)
    o_ref,                                        # [TB, Dout] f32
):
    TB, N, _ = x_ref.shape

    def mm(a, w_ref, b_ref):
        # bf16 MXU operands (f32 for the accuracy-critical t_fw3), f32 accumulation.
        w = w_ref[...]
        acc = jnp.dot(a.astype(w.dtype), w, preferred_element_type=jnp.float32)
        return acc + b_ref[...]

    x3 = x_ref[...]                                    # [TB, N, 3] f32
    flat = x3.reshape(TB * N, 3)

    # ---- TNet trunk. K=3 first layer as 3 broadcast-FMAs (VPU) instead of a
    #      lane-sparse K=3 MXU matmul. ----
    w = t_cw1[...]                                     # [3, 64] f32
    h = _relu(flat[:, 0:1] * w[0:1, :] + flat[:, 1:2] * w[1:2, :]
              + flat[:, 2:3] * w[2:3, :] + t_cb1[...])            # [TB*N, 64]
    h = _relu(mm(h, t_cw2, t_cb2))                     # [TB*N, 128]
    # Widest intermediate is only max-pooled (monotone) -> keep it in bf16.
    h = _relu(mm(h, t_cw3, t_cb3)).astype(jnp.bfloat16)           # [TB*N, 1024]
    pooled = jnp.max(h.reshape(TB, N, h.shape[-1]), axis=1)       # [TB, 1024]

    # ---- TNet FC head (rows == TB, tiny; t_fw3 kept in f32 for t9 accuracy) ----
    f = _relu(mm(pooled, t_fw1, t_fb1))                # [TB, 512]
    f = _relu(mm(f, t_fw2, t_fb2))                     # [TB, 256]
    t9 = mm(f, t_fw3, t_fb3)                           # [TB, 9]  (identity folded)

    # ---- fuse the learned 3x3 transform into the first embedding conv:
    #      per batch W_b = T_b @ cw1 (3x64, tiny), then 3 broadcast-FMAs give the
    #      64-wide activation directly (no xt materialization, no K=3 matmul). ----
    c1 = cw1[...]                                      # [3, 64] f32 (BN folded)
    w0 = t9[:, 0:1] * c1[0:1, :] + t9[:, 1:2] * c1[1:2, :] + t9[:, 2:3] * c1[2:3, :]
    w1 = t9[:, 3:4] * c1[0:1, :] + t9[:, 4:5] * c1[1:2, :] + t9[:, 5:6] * c1[2:3, :]
    w2 = t9[:, 6:7] * c1[0:1, :] + t9[:, 7:8] * c1[1:2, :] + t9[:, 8:9] * c1[2:3, :]
    g = _relu(x3[:, :, 0:1] * w0[:, None, :]
              + x3[:, :, 1:2] * w1[:, None, :]
              + x3[:, :, 2:3] * w2[:, None, :] + cb1[...])        # [TB, N, 64]

    g = _relu(mm(g.reshape(TB * N, 64), cw2, cb2))     # [TB*N, 128]
    g = _relu(mm(g, cw3, cb3))                         # [TB*N, Dout]

    # ---- global max-pool over points; sublane/lane-dense 2-D [TB, Dout] store ----
    o_ref[...] = jnp.max(g.reshape(TB, N, g.shape[-1]), axis=1).astype(o_ref.dtype)


def _tpu_vmem_budget():
    """Returns (vmem_limit_bytes, force_multi_step) sized per TPU generation."""
    phys = 128 * 1024 * 1024
    try:
        phys = int(getattr(pltpu.get_tpu_info(), "vmem_capacity_bytes", phys))
    except Exception:
        pass
    if phys <= 64 * 1024 * 1024:
        # v7x-class: 64 MiB per TensorCore, 2 TCs/chip -> keep >= 2 parallel grid
        # steps (megacore) and leave headroom under the 64 MiB physical cap.
        return max(min(phys - 20 * 1024 * 1024, 44 * 1024 * 1024), 16 * 1024 * 1024), True
    # v5e/v6e: single TensorCore, 128 MiB physical -> big slabs, grid=1 is fine.
    return 64 * 1024 * 1024, False


def _choose_block_batch(B, N, out_dim, vmem_budget, force_multi_step):
    divisors = [d for d in range(1, B + 1) if B % d == 0]
    cands = divisors
    if force_multi_step:
        cands = [d for d in divisors if B // d >= 2] or divisors
    # Per-row live-set estimate: bf16 1024-wide h, f32 64/128/Dout activations,
    # double-buffered f32 input block; plus resident weights + compiler scratch.
    per_row = 1024 * 2 + (64 + 64 + 128 + 128) * 4 + out_dim * 4 + 2 * 3 * 4
    fixed = 6 * 1024 * 1024
    fitting = [d for d in cands if d * N * per_row + fixed <= vmem_budget] or [min(cands)]
    # Target 1024-2048 rows per grid step (feed the MXU, amortize ~0.35us/step).
    target = [d for d in fitting if d * N <= 2048]
    return max(target) if target else min(fitting)


def robust_pointnet_embedding(x, params, *, block_batch=None, eps=1e-5):
    """Forward of RobustPointNetEmbeddingLayer.  x: [B, C>=3, N] -> [B, output_dim]."""
    B, C, N = x.shape
    assert C >= 3, "need at least 3 input channels (xyz)"
    assert N % 8 == 0, "point count must be a multiple of 8 (sublane tile)"
    out_dim = params["cw3"].shape[1]
    assert out_dim % 128 == 0, "output_dim should be a multiple of 128 (lane-dense store)"

    # Layout plumbing: xyz channels only, points on rows / channels on lanes.
    pts = jnp.transpose(x[:, :3, :], (0, 2, 1)).astype(jnp.float32)   # [B, N, 3]

    # TODO(synk): BatchNorm is folded in eval mode (running stats); a training-mode
    # forward using batch statistics would need a cross-batch reduction pass.
    def fold_bn(w, b, tag):
        scale = params[tag + "_g"] / jnp.sqrt(params[tag + "_v"] + eps)
        shift = params[tag + "_b"] - params[tag + "_m"] * scale
        return w * scale[None, :], b * scale + shift

    cw1, cb1 = fold_bn(params["cw1"], params["cb1"], "bn1")
    cw2, cb2 = fold_bn(params["cw2"], params["cb2"], "bn2")
    cw3, cb3 = fold_bn(params["cw3"], params["cb3"], "bn3")
    # Fold the "+ identity" of TNet.forward into the fc3 bias.
    t_fb3 = params["t_fb3"] + jnp.eye(3, dtype=jnp.float32).reshape(-1)

    bf = lambda a: a.astype(jnp.bfloat16)                 # bf16 MXU operands
    f32 = lambda a: a.astype(jnp.float32)                 # VPU-used / accuracy-critical
    b_ = lambda a: a.reshape(1, -1).astype(jnp.float32)   # f32 bias rows

    operands = (
        pts,
        f32(params["t_cw1"]), b_(params["t_cb1"]),        # K=3: VPU broadcast-FMAs
        bf(params["t_cw2"]), b_(params["t_cb2"]),
        bf(params["t_cw3"]), b_(params["t_cb3"]),
        bf(params["t_fw1"]), b_(params["t_fb1"]),
        bf(params["t_fw2"]), b_(params["t_fb2"]),
        f32(params["t_fw3"]), b_(t_fb3),                  # f32: t9 feeds every point
        f32(cw1), b_(cb1),                                # fused with t9 on the VPU
        bf(cw2), b_(cb2),
        bf(cw3), b_(cb3),
    )

    vmem_budget, force_multi_step = _tpu_vmem_budget()
    if block_batch is None:
        block_batch = _choose_block_batch(B, N, out_dim, vmem_budget, force_multi_step)
    assert B % block_batch == 0

    flops = (2 * B * N * (3 * 64 + 64 * 128 + 128 * 1024
                          + 9 * 64 + 64 * 128 + 128 * out_dim)
             + 2 * B * (1024 * 512 + 512 * 256 + 256 * 9))
    bytes_accessed = (int(pts.size) * 4 + B * out_dim * 4
                      + sum(int(a.size) * a.dtype.itemsize for a in operands[1:]))
    cost = pl.CostEstimate(flops=int(flops), transcendentals=0,
                           bytes_accessed=int(bytes_accessed))

    def build_and_run(single_buffer_weights):
        def resident(arr):
            # Whole-array block, constant index map -> stays resident in VMEM.
            shp = arr.shape
            idx = lambda b, _n=len(shp): (0,) * _n
            if single_buffer_weights:
                # Constant index map already avoids re-DMA; single-buffering also
                # halves the resident-weight VMEM footprint.
                return pl.BlockSpec(shp, idx, pipeline_mode=pl.Buffered(1))
            return pl.BlockSpec(shp, idx)

        in_specs = [pl.BlockSpec((block_batch, N, 3), lambda b: (b, 0, 0))]
        in_specs += [resident(a) for a in operands[1:]]

        return pl.pallas_call(
            pointnet_embedding_kernel,
            out_shape=jax.ShapeDtypeStruct((B, out_dim), jnp.float32),
            grid_spec=pltpu.PrefetchScalarGridSpec(
                num_scalar_prefetch=0,
                grid=(B // block_batch,),
                in_specs=in_specs,
                out_specs=pl.BlockSpec((block_batch, out_dim), lambda b: (b, 0)),
            ),
            compiler_params=pltpu.CompilerParams(
                dimension_semantics=("parallel",),
                vmem_limit_bytes=int(vmem_budget),
            ),
            cost_estimate=cost,
        )(*operands)

    # TODO(synk): for very large N on v7x (64 MiB VMEM), restructure to a chunked-
    # over-N two-pass inner pipeline with running-max accumulators.
    try:
        return build_and_run(single_buffer_weights=True)
    except Exception:
        # Fallback for jax versions without BlockSpec(pipeline_mode=pl.Buffered(1)).
        return build_and_run(single_buffer_weights=False)


def _reference(x, params, eps=1e-5):
    """Pure-JAX reference reproducing the PyTorch forward (eval-mode BN)."""
    relu = jax.nn.relu
    pts = jnp.transpose(x[:, :3, :], (0, 2, 1))                       # [B, N, 3]

    # TNet
    h = relu(pts @ params["t_cw1"] + params["t_cb1"])
    h = relu(h @ params["t_cw2"] + params["t_cb2"])
    h = relu(h @ params["t_cw3"] + params["t_cb3"])
    pooled = jnp.max(h, axis=1)                                       # [B, 1024]
    f = relu(pooled @ params["t_fw1"] + params["t_fb1"])
    f = relu(f @ params["t_fw2"] + params["t_fb2"])
    t9 = f @ params["t_fw3"] + params["t_fb3"] + jnp.eye(3, dtype=jnp.float32).reshape(-1)
    trans = t9.reshape(-1, 3, 3)
    xt = jnp.einsum("bni,bij->bnj", pts, trans)                       # [B, N, 3]

    def bn(z, tag):
        scale = params[tag + "_g"] / jnp.sqrt(params[tag + "_v"] + eps)
        return (z - params[tag + "_m"]) * scale + params[tag + "_b"]

    g = relu(bn(xt @ params["cw1"] + params["cb1"], "bn1"))
    g = relu(bn(g @ params["cw2"] + params["cb2"], "bn2"))
    g = relu(bn(g @ params["cw3"] + params["cb3"], "bn3"))
    return jnp.max(g, axis=1)                                         # [B, Dout]


def make_params(key, output_dim):
    ks = iter(jax.random.split(key, 30))

    def linear(fan_in, fan_out):
        bound = 1.0 / math.sqrt(fan_in)
        # stored pre-transposed [in, out] so the kernel computes rows @ w + b
        w = jax.random.uniform(next(ks), (fan_in, fan_out), jnp.float32, -bound, bound)
        b = jax.random.uniform(next(ks), (fan_out,), jnp.float32, -bound, bound)
        return w, b

    p = {}
    p["t_cw1"], p["t_cb1"] = linear(3, 64)
    p["t_cw2"], p["t_cb2"] = linear(64, 128)
    p["t_cw3"], p["t_cb3"] = linear(128, 1024)
    p["t_fw1"], p["t_fb1"] = linear(1024, 512)
    p["t_fw2"], p["t_fb2"] = linear(512, 256)
    p["t_fw3"], p["t_fb3"] = linear(256, 9)   # random fc3 to exercise the full path
    p["cw1"], p["cb1"] = linear(3, 64)
    p["cw2"], p["cb2"] = linear(64, 128)
    p["cw3"], p["cb3"] = linear(128, output_dim)
    for tag, c in (("bn1", 64), ("bn2", 128), ("bn3", output_dim)):
        p[tag + "_g"] = 1.0 + 0.1 * jax.random.normal(next(ks), (c,), jnp.float32)
        p[tag + "_b"] = 0.1 * jax.random.normal(next(ks), (c,), jnp.float32)
        p[tag + "_m"] = 0.1 * jax.random.normal(next(ks), (c,), jnp.float32)
        p[tag + "_v"] = 1.0 + 0.1 * jax.random.uniform(next(ks), (c,), jnp.float32)
    return p


if __name__ == "__main__":
    B, C, N, output_dim = 2, 4, 64, 128

    key = jax.random.PRNGKey(0)
    kx, kp = jax.random.split(key)
    x = jax.random.normal(kx, (B, C, N), jnp.float32)   # [batch, channels, points]
    params = make_params(kp, output_dim)

    out = robust_pointnet_embedding(x, params)
    out = jax.block_until_ready(out)

    ref = _reference(x, params)
    assert out.shape == (B, output_dim)
    assert bool(jnp.all(jnp.isfinite(out)))
    max_err = float(jnp.max(jnp.abs(out - ref)))
    # bf16 MXU operands / bf16 pre-pool intermediate vs pure-f32 reference.
    assert bool(jnp.allclose(out, ref, atol=2e-2, rtol=2e-2)), f"mismatch vs ref: {max_err}"
    print("KERNEL_OK")
</pallas_src>

<mosaic_0001>
module attributes {stable_mosaic.version = 11 : i64} {
  func.func @pointnet_embedding_kernel(%arg0: i32, %arg1: memref<2x64x3xf32, #tpu.memory_space<vmem>>, %arg2: memref<3x64xf32, #tpu.memory_space<vmem>>, %arg3: memref<1x64xf32, #tpu.memory_space<vmem>>, %arg4: memref<64x128xbf16, #tpu.memory_space<vmem>>, %arg5: memref<1x128xf32, #tpu.memory_space<vmem>>, %arg6: memref<128x1024xbf16, #tpu.memory_space<vmem>>, %arg7: memref<1x1024xf32, #tpu.memory_space<vmem>>, %arg8: memref<1024x512xbf16, #tpu.memory_space<vmem>>, %arg9: memref<1x512xf32, #tpu.memory_space<vmem>>, %arg10: memref<512x256xbf16, #tpu.memory_space<vmem>>, %arg11: memref<1x256xf32, #tpu.memory_space<vmem>>, %arg12: memref<256x9xf32, #tpu.memory_space<vmem>>, %arg13: memref<1x9xf32, #tpu.memory_space<vmem>>, %arg14: memref<3x64xf32, #tpu.memory_space<vmem>>, %arg15: memref<1x64xf32, #tpu.memory_space<vmem>>, %arg16: memref<64x128xbf16, #tpu.memory_space<vmem>>, %arg17: memref<1x128xf32, #tpu.memory_space<vmem>>, %arg18: memref<128x128xbf16, #tpu.memory_space<vmem>>, %arg19: memref<1x128xf32, #tpu.memory_space<vmem>>, %arg20: memref<2x128xf32, #tpu.memory_space<vmem>>) attributes {dimension_semantics = [#tpu.dimension_semantics<parallel>], iteration_bounds = array<i64: 1>, scalar_prefetch = 0 : i64, scratch_operands = 0 : i64, tpu.core_type = #tpu.core_type<tc>, window_params = [{transform_indices = @transform_0, window_bounds = array<i64: 2, 64, 3>}, {pipeline_mode = #tpu.pipeline_mode<synchronous>, transform_indices = @transform_1, window_bounds = array<i64: 3, 64>}, {pipeline_mode = #tpu.pipeline_mode<synchronous>, transform_indices = @transform_2, window_bounds = array<i64: 1, 64>}, {pipeline_mode = #tpu.pipeline_mode<synchronous>, transform_indices = @transform_3, window_bounds = array<i64: 64, 128>}, {pipeline_mode = #tpu.pipeline_mode<synchronous>, transform_indices = @transform_4, window_bounds = array<i64: 1, 128>}, {pipeline_mode = #tpu.pipeline_mode<synchronous>, transform_indices = @transform_5, window_bounds = array<i64: 128, 1024>}, {pipeline_mode = #tpu.pipeline_mode<synchronous>, transform_indices = @transform_6, window_bounds = array<i64: 1, 1024>}, {pipeline_mode = #tpu.pipeline_mode<synchronous>, transform_indices = @transform_7, window_bounds = array<i64: 1024, 512>}, {pipeline_mode = #tpu.pipeline_mode<synchronous>, transform_indices = @transform_8, window_bounds = array<i64: 1, 512>}, {pipeline_mode = #tpu.pipeline_mode<synchronous>, transform_indices = @transform_9, window_bounds = array<i64: 512, 256>}, {pipeline_mode = #tpu.pipeline_mode<synchronous>, transform_indices = @transform_10, window_bounds = array<i64: 1, 256>}, {pipeline_mode = #tpu.pipeline_mode<synchronous>, transform_indices = @transform_11, window_bounds = array<i64: 256, 9>}, {pipeline_mode = #tpu.pipeline_mode<synchronous>, transform_indices = @transform_12, window_bounds = array<i64: 1, 9>}, {pipeline_mode = #tpu.pipeline_mode<synchronous>, transform_indices = @transform_13, window_bounds = array<i64: 3, 64>}, {pipeline_mode = #tpu.pipeline_mode<synchronous>, transform_indices = @transform_14, window_bounds = array<i64: 1, 64>}, {pipeline_mode = #tpu.pipeline_mode<synchronous>, transform_indices = @transform_15, window_bounds = array<i64: 64, 128>}, {pipeline_mode = #tpu.pipeline_mode<synchronous>, transform_indices = @transform_16, window_bounds = array<i64: 1, 128>}, {pipeline_mode = #tpu.pipeline_mode<synchronous>, transform_indices = @transform_17, window_bounds = array<i64: 128, 128>}, {pipeline_mode = #tpu.pipeline_mode<synchronous>, transform_indices = @transform_18, window_bounds = array<i64: 1, 128>}, {transform_indices = @transform_19, window_bounds = array<i64: 2, 128>}]} {
    %c0 = arith.constant 0 : index
    %c0_0 = arith.constant 0 : index
    %c0_1 = arith.constant 0 : index
    %0 = vector.load %arg1[%c0, %c0_0, %c0_1] : memref<2x64x3xf32, #tpu.memory_space<vmem>>, vector<2x64x3xf32>
    %1 = vector.shape_cast %0 : vector<2x64x3xf32> to vector<128x3xf32>
    %c0_2 = arith.constant 0 : index
    %c0_3 = arith.constant 0 : index
    %2 = vector.load %arg2[%c0_2, %c0_3] : memref<3x64xf32, #tpu.memory_space<vmem>>, vector<3x64xf32>
    %3 = vector.extract_strided_slice %1 {offsets = [0, 0], sizes = [128, 1], strides = [1, 1]} : vector<128x3xf32> to vector<128x1xf32>
    %4 = vector.extract_strided_slice %2 {offsets = [0, 0], sizes = [1, 64], strides = [1, 1]} : vector<3x64xf32> to vector<1x64xf32>
    %5 = vector.broadcast %3 : vector<128x1xf32> to vector<128x64xf32>
    %6 = vector.broadcast %4 : vector<1x64xf32> to vector<128x64xf32>
    %7 = arith.mulf %5, %6 : vector<128x64xf32>
    %8 = vector.extract_strided_slice %1 {offsets = [0, 1], sizes = [128, 1], strides = [1, 1]} : vector<128x3xf32> to vector<128x1xf32>
    %9 = vector.extract_strided_slice %2 {offsets = [1, 0], sizes = [1, 64], strides = [1, 1]} : vector<3x64xf32> to vector<1x64xf32>
    %10 = vector.broadcast %8 : vector<128x1xf32> to vector<128x64xf32>
    %11 = vector.broadcast %9 : vector<1x64xf32> to vector<128x64xf32>
    %12 = arith.mulf %10, %11 : vector<128x64xf32>
    %13 = arith.addf %7, %12 : vector<128x64xf32>
    %14 = vector.extract_strided_slice %1 {offsets = [0, 2], sizes = [128, 1], strides = [1, 1]} : vector<128x3xf32> to vector<128x1xf32>
    %15 = vector.extract_strided_slice %2 {offsets = [2, 0], sizes = [1, 64], strides = [1, 1]} : vector<3x64xf32> to vector<1x64xf32>
    %16 = vector.broadcast %14 : vector<128x1xf32> to vector<128x64xf32>
    %17 = vector.broadcast %15 : vector<1x64xf32> to vector<128x64xf32>
    %18 = arith.mulf %16, %17 : vector<128x64xf32>
    %19 = arith.addf %13, %18 : vector<128x64xf32>
    %c0_4 = arith.constant 0 : index
    %c0_5 = arith.constant 0 : index
    %20 = vector.load %arg3[%c0_4, %c0_5] : memref<1x64xf32, #tpu.memory_space<vmem>>, vector<1x64xf32>
    %21 = vector.broadcast %20 : vector<1x64xf32> to vector<128x64xf32>
    %22 = arith.addf %19, %21 : vector<128x64xf32>
    %cst = arith.constant 0.000000e+00 : f32
    %23 = vector.broadcast %cst : f32 to vector<128x64xf32>
    %24 = arith.maximumf %22, %23 : vector<128x64xf32>
    %c0_6 = arith.constant 0 : index
    %c0_7 = arith.constant 0 : index
    %25 = vector.load %arg4[%c0_6, %c0_7] : memref<64x128xbf16, #tpu.memory_space<vmem>>, vector<64x128xbf16>
    %26 = arith.truncf %24 : vector<128x64xf32> to vector<128x64xbf16>
    %cst_8 = arith.constant dense<0.000000e+00> : vector<128x128xf32>
    %27 = tpu.matmul %26, %25, %cst_8 {dimension_numbers = #tpu.dot_dimension_numbers<[1], [0], [0], [1], [0, 0, 1, 1], [], []>} : vector<128x64xbf16>, vector<64x128xbf16>, vector<128x128xf32> -> vector<128x128xf32>
    %c0_9 = arith.constant 0 : index
    %c0_10 = arith.constant 0 : index
    %28 = vector.load %arg5[%c0_9, %c0_10] : memref<1x128xf32, #tpu.memory_space<vmem>>, vector<1x128xf32>
    %29 = vector.broadcast %28 : vector<1x128xf32> to vector<128x128xf32>
    %30 = arith.addf %27, %29 : vector<128x128xf32>
    %cst_11 = arith.constant 0.000000e+00 : f32
    %31 = vector.broadcast %cst_11 : f32 to vector<128x128xf32>
    %32 = arith.maximumf %30, %31 : vector<128x128xf32>
    %c0_12 = arith.constant 0 : index
    %c0_13 = arith.constant 0 : index
    %33 = vector.load %arg6[%c0_12, %c0_13] : memref<128x1024xbf16, #tpu.memory_space<vmem>>, vector<128x1024xbf16>
    %34 = arith.truncf %32 : vector<128x128xf32> to vector<128x128xbf16>
    %cst_14 = arith.constant dense<0.000000e+00> : vector<128x1024xf32>
    %35 = tpu.matmul %34, %33, %cst_14 {dimension_numbers = #tpu.dot_dimension_numbers<[1], [0], [0], [1], [0, 0, 1, 1], [], []>} : vector<128x128xbf16>, vector<128x1024xbf16>, vector<128x1024xf32> -> vector<128x1024xf32>
    %c0_15 = arith.constant 0 : index
    %c0_16 = arith.constant 0 : index
    %36 = vector.load %arg7[%c0_15, %c0_16] : memref<1x1024xf32, #tpu.memory_space<vmem>>, vector<1x1024xf32>
    %37 = vector.broadcast %36 : vector<1x1024xf32> to vector<128x1024xf32>
    %38 = arith.addf %35, %37 : vector<128x1024xf32>
    %cst_17 = arith.constant 0.000000e+00 : f32
    %39 = vector.broadcast %cst_17 : f32 to vector<128x1024xf32>
    %40 = arith.maximumf %38, %39 : vector<128x1024xf32>
    %41 = arith.truncf %40 : vector<128x1024xf32> to vector<128x1024xbf16>
    %42 = vector.shape_cast %41 : vector<128x1024xbf16> to vector<2x64x1024xbf16>
    %cst_18 = arith.constant dense<0xFF80> : vector<2x1024xbf16>
    %43 = vector.multi_reduction <maximumf>, %42, %cst_18 [1] : vector<2x64x1024xbf16> to vector<2x1024xbf16>
    %c0_19 = arith.constant 0 : index
    %c0_20 = arith.constant 0 : index
    %44 = vector.load %arg8[%c0_19, %c0_20] : memref<1024x512xbf16, #tpu.memory_space<vmem>>, vector<1024x512xbf16>
    %cst_21 = arith.constant dense<0.000000e+00> : vector<2x512xf32>
    %45 = tpu.matmul %43, %44, %cst_21 {dimension_numbers = #tpu.dot_dimension_numbers<[1], [0], [0], [1], [0, 0, 1, 1], [], []>} : vector<2x1024xbf16>, vector<1024x512xbf16>, vector<2x512xf32> -> vector<2x512xf32>
    %c0_22 = arith.constant 0 : index
    %c0_23 = arith.constant 0 : index
    %46 = vector.load %arg9[%c0_22, %c0_23] : memref<1x512xf32, #tpu.memory_space<vmem>>, vector<1x512xf32>
    %47 = vector.broadcast %46 : vector<1x512xf32> to vector<2x512xf32>
    %48 = arith.addf %45, %47 : vector<2x512xf32>
    %cst_24 = arith.constant 0.000000e+00 : f32
    %49 = vector.broadcast %cst_24 : f32 to vector<2x512xf32>
    %50 = arith.maximumf %48, %49 : vector<2x512xf32>
    %c0_25 = arith.constant 0 : index
    %c0_26 = arith.constant 0 : index
    %51 = vector.load %arg10[%c0_25, %c0_26] : memref<512x256xbf16, #tpu.memory_space<vmem>>, vector<512x256xbf16>
    %52 = arith.truncf %50 : vector<2x512xf32> to vector<2x512xbf16>
    %cst_27 = arith.constant dense<0.000000e+00> : vector<2x256xf32>
    %53 = tpu.matmul %52, %51, %cst_27 {dimension_numbers = #tpu.dot_dimension_numbers<[1], [0], [0], [1], [0, 0, 1, 1], [], []>} : vector<2x512xbf16>, vector<512x256xbf16>, vector<2x256xf32> -> vector<2x256xf32>
    %c0_28 = arith.constant 0 : index
    %c0_29 = arith.constant 0 : index
    %54 = vector.load %arg11[%c0_28, %c0_29] : memref<1x256xf32, #tpu.memory_space<vmem>>, vector<1x256xf32>
    %55 = vector.broadcast %54 : vector<1x256xf32> to vector<2x256xf32>
    %56 = arith.addf %53, %55 : vector<2x256xf32>
    %cst_30 = arith.constant 0.000000e+00 : f32
    %57 = vector.broadcast %cst_30 : f32 to vector<2x256xf32>
    %58 = arith.maximumf %56, %57 : vector<2x256xf32>
    %c0_31 = arith.constant 0 : index
    %c0_32 = arith.constant 0 : index
    %59 = vector.load %arg12[%c0_31, %c0_32] : memref<256x9xf32, #tpu.memory_space<vmem>>, vector<256x9xf32>
    %cst_33 = arith.constant dense<0.000000e+00> : vector<2x9xf32>
    %60 = tpu.matmul %58, %59, %cst_33 {dimension_numbers = #tpu.dot_dimension_numbers<[1], [0], [0], [1], [0, 0, 1, 1], [], []>} : vector<2x256xf32>, vector<256x9xf32>, vector<2x9xf32> -> vector<2x9xf32>
    %c0_34 = arith.constant 0 : index
    %c0_35 = arith.constant 0 : index
    %61 = vector.load %arg13[%c0_34, %c0_35] : memref<1x9xf32, #tpu.memory_space<vmem>>, vector<1x9xf32>
    %62 = vector.broadcast %61 : vector<1x9xf32> to vector<2x9xf32>
    %63 = arith.addf %60, %62 : vector<2x9xf32>
    %c0_36 = arith.constant 0 : index
    %c0_37 = arith.constant 0 : index
    %64 = vector.load %arg14[%c0_36, %c0_37] : memref<3x64xf32, #tpu.memory_space<vmem>>, vector<3x64xf32>
    %65 = vector.extract_strided_slice %63 {offsets = [0, 0], sizes = [2, 1], strides = [1, 1]} : vector<2x9xf32> to vector<2x1xf32>
    %66 = vector.extract_strided_slice %64 {offsets = [0, 0], sizes = [1, 64], strides = [1, 1]} : vector<3x64xf32> to vector<1x64xf32>
    %67 = vector.broadcast %65 : vector<2x1xf32> to vector<2x64xf32>
    %68 = vector.broadcast %66 : vector<1x64xf32> to vector<2x64xf32>
    %69 = arith.mulf %67, %68 : vector<2x64xf32>
    %70 = vector.extract_strided_slice %63 {offsets = [0, 1], sizes = [2, 1], strides = [1, 1]} : vector<2x9xf32> to vector<2x1xf32>
    %71 = vector.extract_strided_slice %64 {offsets = [1, 0], sizes = [1, 64], strides = [1, 1]} : vector<3x64xf32> to vector<1x64xf32>
    %72 = vector.broadcast %70 : vector<2x1xf32> to vector<2x64xf32>
    %73 = vector.broadcast %71 : vector<1x64xf32> to vector<2x64xf32>
    %74 = arith.mulf %72, %73 : vector<2x64xf32>
    %75 = arith.addf %69, %74 : vector<2x64xf32>
    %76 = vector.extract_strided_slice %63 {offsets = [0, 2], sizes = [2, 1], strides = [1, 1]} : vector<2x9xf32> to vector<2x1xf32>
    %77 = vector.extract_strided_slice %64 {offsets = [2, 0], sizes = [1, 64], strides = [1, 1]} : vector<3x64xf32> to vector<1x64xf32>
    %78 = vector.broadcast %76 : vector<2x1xf32> to vector<2x64xf32>
    %79 = vector.broadcast %77 : vector<1x64xf32> to vector<2x64xf32>
    %80 = arith.mulf %78, %79 : vector<2x64xf32>
    %81 = arith.addf %75, %80 : vector<2x64xf32>
    %82 = vector.extract_strided_slice %63 {offsets = [0, 3], sizes = [2, 1], strides = [1, 1]} : vector<2x9xf32> to vector<2x1xf32>
    %83 = vector.extract_strided_slice %64 {offsets = [0, 0], sizes = [1, 64], strides = [1, 1]} : vector<3x64xf32> to vector<1x64xf32>
    %84 = vector.broadcast %82 : vector<2x1xf32> to vector<2x64xf32>
    %85 = vector.broadcast %83 : vector<1x64xf32> to vector<2x64xf32>
    %86 = arith.mulf %84, %85 : vector<2x64xf32>
    %87 = vector.extract_strided_slice %63 {offsets = [0, 4], sizes = [2, 1], strides = [1, 1]} : vector<2x9xf32> to vector<2x1xf32>
    %88 = vector.extract_strided_slice %64 {offsets = [1, 0], sizes = [1, 64], strides = [1, 1]} : vector<3x64xf32> to vector<1x64xf32>
    %89 = vector.broadcast %87 : vector<2x1xf32> to vector<2x64xf32>
    %90 = vector.broadcast %88 : vector<1x64xf32> to vector<2x64xf32>
    %91 = arith.mulf %89, %90 : vector<2x64xf32>
    %92 = arith.addf %86, %91 : vector<2x64xf32>
    %93 = vector.extract_strided_slice %63 {offsets = [0, 5], sizes = [2, 1], strides = [1, 1]} : vector<2x9xf32> to vector<2x1xf32>
    %94 = vector.extract_strided_slice %64 {offsets = [2, 0], sizes = [1, 64], strides = [1, 1]} : vector<3x64xf32> to vector<1x64xf32>
    %95 = vector.broadcast %93 : vector<2x1xf32> to vector<2x64xf32>
    %96 = vector.broadcast %94 : vector<1x64xf32> to vector<2x64xf32>
    %97 = arith.mulf %95, %96 : vector<2x64xf32>
    %98 = arith.addf %92, %97 : vector<2x64xf32>
    %99 = vector.extract_strided_slice %63 {offsets = [0, 6], sizes = [2, 1], strides = [1, 1]} : vector<2x9xf32> to vector<2x1xf32>
    %100 = vector.extract_strided_slice %64 {offsets = [0, 0], sizes = [1, 64], strides = [1, 1]} : vector<3x64xf32> to vector<1x64xf32>
    %101 = vector.broadcast %99 : vector<2x1xf32> to vector<2x64xf32>
    %102 = vector.broadcast %100 : vector<1x64xf32> to vector<2x64xf32>
    %103 = arith.mulf %101, %102 : vector<2x64xf32>
    %104 = vector.extract_strided_slice %63 {offsets = [0, 7], sizes = [2, 1], strides = [1, 1]} : vector<2x9xf32> to vector<2x1xf32>
    %105 = vector.extract_strided_slice %64 {offsets = [1, 0], sizes = [1, 64], strides = [1, 1]} : vector<3x64xf32> to vector<1x64xf32>
    %106 = vector.broadcast %104 : vector<2x1xf32> to vector<2x64xf32>
    %107 = vector.broadcast %105 : vector<1x64xf32> to vector<2x64xf32>
    %108 = arith.mulf %106, %107 : vector<2x64xf32>
    %109 = arith.addf %103, %108 : vector<2x64xf32>
    %110 = vector.extract_strided_slice %63 {offsets = [0, 8], sizes = [2, 1], strides = [1, 1]} : vector<2x9xf32> to vector<2x1xf32>
    %111 = vector.extract_strided_slice %64 {offsets = [2, 0], sizes = [1, 64], strides = [1, 1]} : vector<3x64xf32> to vector<1x64xf32>
    %112 = vector.broadcast %110 : vector<2x1xf32> to vector<2x64xf32>
    %113 = vector.broadcast %111 : vector<1x64xf32> to vector<2x64xf32>
    %114 = arith.mulf %112, %113 : vector<2x64xf32>
    %115 = arith.addf %109, %114 : vector<2x64xf32>
    %116 = vector.extract_strided_slice %0 {offsets = [0, 0, 0], sizes = [2, 64, 1], strides = [1, 1, 1]} : vector<2x64x3xf32> to vector<2x64x1xf32>
    %117 = vector.shape_cast %81 : vector<2x64xf32> to vector<2x1x64xf32>
    %118 = vector.broadcast %116 : vector<2x64x1xf32> to vector<2x64x64xf32>
    %119 = vector.broadcast %117 : vector<2x1x64xf32> to vector<2x64x64xf32>
    %120 = arith.mulf %118, %119 : vector<2x64x64xf32>
    %121 = vector.extract_strided_slice %0 {offsets = [0, 0, 1], sizes = [2, 64, 1], strides = [1, 1, 1]} : vector<2x64x3xf32> to vector<2x64x1xf32>
    %122 = vector.shape_cast %98 : vector<2x64xf32> to vector<2x1x64xf32>
    %123 = vector.broadcast %121 : vector<2x64x1xf32> to vector<2x64x64xf32>
    %124 = vector.broadcast %122 : vector<2x1x64xf32> to vector<2x64x64xf32>
    %125 = arith.mulf %123, %124 : vector<2x64x64xf32>
    %126 = arith.addf %120, %125 : vector<2x64x64xf32>
    %127 = vector.extract_strided_slice %0 {offsets = [0, 0, 2], sizes = [2, 64, 1], strides = [1, 1, 1]} : vector<2x64x3xf32> to vector<2x64x1xf32>
    %128 = vector.shape_cast %115 : vector<2x64xf32> to vector<2x1x64xf32>
    %129 = vector.broadcast %127 : vector<2x64x1xf32> to vector<2x64x64xf32>
    %130 = vector.broadcast %128 : vector<2x1x64xf32> to vector<2x64x64xf32>
    %131 = arith.mulf %129, %130 : vector<2x64x64xf32>
    %132 = arith.addf %126, %131 : vector<2x64x64xf32>
    %c0_38 = arith.constant 0 : index
    %c0_39 = arith.constant 0 : index
    %133 = vector.load %arg15[%c0_38, %c0_39] : memref<1x64xf32, #tpu.memory_space<vmem>>, vector<1x64xf32>
    %134 = vector.shape_cast %133 : vector<1x64xf32> to vector<1x1x64xf32>
    %135 = vector.broadcast %134 : vector<1x1x64xf32> to vector<2x64x64xf32>
    %136 = arith.addf %132, %135 : vector<2x64x64xf32>
    %cst_40 = arith.constant 0.000000e+00 : f32
    %137 = vector.broadcast %cst_40 : f32 to vector<2x64x64xf32>
    %138 = arith.maximumf %136, %137 : vector<2x64x64xf32>
    %139 = vector.shape_cast %138 : vector<2x64x64xf32> to vector<128x64xf32>
    %c0_41 = arith.constant 0 : index
    %c0_42 = arith.constant 0 : index
    %140 = vector.load %arg16[%c0_41, %c0_42] : memref<64x128xbf16, #tpu.memory_space<vmem>>, vector<64x128xbf16>
    %141 = arith.truncf %139 : vector<128x64xf32> to vector<128x64xbf16>
    %cst_43 = arith.constant dense<0.000000e+00> : vector<128x128xf32>
    %142 = tpu.matmul %141, %140, %cst_43 {dimension_numbers = #tpu.dot_dimension_numbers<[1], [0], [0], [1], [0, 0, 1, 1], [], []>} : vector<128x64xbf16>, vector<64x128xbf16>, vector<128x128xf32> -> vector<128x128xf32>
    %c0_44 = arith.constant 0 : index
    %c0_45 = arith.constant 0 : index
    %143 = vector.load %arg17[%c0_44, %c0_45] : memref<1x128xf32, #tpu.memory_space<vmem>>, vector<1x128xf32>
    %144 = vector.broadcast %143 : vector<1x128xf32> to vector<128x128xf32>
    %145 = arith.addf %142, %144 : vector<128x128xf32>
    %cst_46 = arith.constant 0.000000e+00 : f32
    %146 = vector.broadcast %cst_46 : f32 to vector<128x128xf32>
    %147 = arith.maximumf %145, %146 : vector<128x128xf32>
    %c0_47 = arith.constant 0 : index
    %c0_48 = arith.constant 0 : index
    %148 = vector.load %arg18[%c0_47, %c0_48] : memref<128x128xbf16, #tpu.memory_space<vmem>>, vector<128x128xbf16>
    %149 = arith.truncf %147 : vector<128x128xf32> to vector<128x128xbf16>
    %cst_49 = arith.constant dense<0.000000e+00> : vector<128x128xf32>
    %150 = tpu.matmul %149, %148, %cst_49 {dimension_numbers = #tpu.dot_dimension_numbers<[1], [0], [0], [1], [0, 0, 1, 1], [], []>} : vector<128x128xbf16>, vector<128x128xbf16>, vector<128x128xf32> -> vector<128x128xf32>
    %c0_50 = arith.constant 0 : index
    %c0_51 = arith.constant 0 : index
    %151 = vector.load %arg19[%c0_50, %c0_51] : memref<1x128xf32, #tpu.memory_space<vmem>>, vector<1x128xf32>
    %152 = vector.broadcast %151 : vector<1x128xf32> to vector<128x128xf32>
    %153 = arith.addf %150, %152 : vector<128x128xf32>
    %cst_52 = arith.constant 0.000000e+00 : f32
    %154 = vector.broadcast %cst_52 : f32 to vector<128x128xf32>
    %155 = arith.maximumf %153, %154 : vector<128x128xf32>
    %156 = vector.shape_cast %155 : vector<128x128xf32> to vector<2x64x128xf32>
    %cst_53 = arith.constant dense<0xFF800000> : vector<2x128xf32>
    %157 = vector.multi_reduction <maximumf>, %156, %cst_53 [1] : vector<2x64x128xf32> to vector<2x128xf32>
    %c0_54 = arith.constant 0 : index
    %c0_55 = arith.constant 0 : index
    %158 = vector.load %arg20[%c0_54, %c0_55] : memref<2x128xf32, #tpu.memory_space<vmem>>, vector<2x128xf32>
    tpu.vector_store %arg20[%c0_54, %c0_55], %157 {strides = array<i32>} : memref<2x128xf32, #tpu.memory_space<vmem>>, vector<2x128xf32>,
    return
  }
  func.func @transform_0(%arg0: i32) -> (i32, i32, i32) {
    %c0_i32 = arith.constant 0 : i32
    %c0_i32_0 = arith.constant 0 : i32
    %c0_i32_1 = arith.constant 0 : i32
    return %arg0, %c0_i32, %c0_i32_0 : i32, i32, i32
  }
  func.func @transform_1(%arg0: i32) -> (i32, i32) {
    %c0_i32 = arith.constant 0 : i32
    %c0_i32_0 = arith.constant 0 : i32
    %c0_i32_1 = arith.constant 0 : i32
    return %c0_i32, %c0_i32_0 : i32, i32
  }
  func.func @transform_2(%arg0: i32) -> (i32, i32) {
    %c0_i32 = arith.constant 0 : i32
    %c0_i32_0 = arith.constant 0 : i32
    %c0_i32_1 = arith.constant 0 : i32
    return %c0_i32, %c0_i32_0 : i32, i32
  }
  func.func @transform_3(%arg0: i32) -> (i32, i32) {
    %c0_i32 = arith.constant 0 : i32
    %c0_i32_0 = arith.constant 0 : i32
    %c0_i32_1 = arith.constant 0 : i32
    return %c0_i32, %c0_i32_0 : i32, i32
  }
  func.func @transform_4(%arg0: i32) -> (i32, i32) {
    %c0_i32 = arith.constant 0 : i32
    %c0_i32_0 = arith.constant 0 : i32
    %c0_i32_1 = arith.constant 0 : i32
    return %c0_i32, %c0_i32_0 : i32, i32
  }
  func.func @transform_5(%arg0: i32) -> (i32, i32) {
    %c0_i32 = arith.constant 0 : i32
    %c0_i32_0 = arith.constant 0 : i32
    %c0_i32_1 = arith.constant 0 : i32
    return %c0_i32, %c0_i32_0 : i32, i32
  }
  func.func @transform_6(%arg0: i32) -> (i32, i32) {
    %c0_i32 = arith.constant 0 : i32
    %c0_i32_0 = arith.constant 0 : i32
    %c0_i32_1 = arith.constant 0 : i32
    return %c0_i32, %c0_i32_0 : i32, i32
  }
  func.func @transform_7(%arg0: i32) -> (i32, i32) {
    %c0_i32 = arith.constant 0 : i32
    %c0_i32_0 = arith.constant 0 : i32
    %c0_i32_1 = arith.constant 0 : i32
    return %c0_i32, %c0_i32_0 : i32, i32
  }
  func.func @transform_8(%arg0: i32) -> (i32, i32) {
    %c0_i32 = arith.constant 0 : i32
    %c0_i32_0 = arith.constant 0 : i32
    %c0_i32_1 = arith.constant 0 : i32
    return %c0_i32, %c0_i32_0 : i32, i32
  }
  func.func @transform_9(%arg0: i32) -> (i32, i32) {
    %c0_i32 = arith.constant 0 : i32
    %c0_i32_0 = arith.constant 0 : i32
    %c0_i32_1 = arith.constant 0 : i32
    return %c0_i32, %c0_i32_0 : i32, i32
  }
  func.func @transform_10(%arg0: i32) -> (i32, i32) {
    %c0_i32 = arith.constant 0 : i32
    %c0_i32_0 = arith.constant 0 : i32
    %c0_i32_1 = arith.constant 0 : i32
    return %c0_i32, %c0_i32_0 : i32, i32
  }
  func.func @transform_11(%arg0: i32) -> (i32, i32) {
    %c0_i32 = arith.constant 0 : i32
    %c0_i32_0 = arith.constant 0 : i32
    %c0_i32_1 = arith.constant 0 : i32
    return %c0_i32, %c0_i32_0 : i32, i32
  }
  func.func @transform_12(%arg0: i32) -> (i32, i32) {
    %c0_i32 = arith.constant 0 : i32
    %c0_i32_0 = arith.constant 0 : i32
    %c0_i32_1 = arith.constant 0 : i32
    return %c0_i32, %c0_i32_0 : i32, i32
  }
  func.func @transform_13(%arg0: i32) -> (i32, i32) {
    %c0_i32 = arith.constant 0 : i32
    %c0_i32_0 = arith.constant 0 : i32
    %c0_i32_1 = arith.constant 0 : i32
    return %c0_i32, %c0_i32_0 : i32, i32
  }
  func.func @transform_14(%arg0: i32) -> (i32, i32) {
    %c0_i32 = arith.constant 0 : i32
    %c0_i32_0 = arith.constant 0 : i32
    %c0_i32_1 = arith.constant 0 : i32
    return %c0_i32, %c0_i32_0 : i32, i32
  }
  func.func @transform_15(%arg0: i32) -> (i32, i32) {
    %c0_i32 = arith.constant 0 : i32
    %c0_i32_0 = arith.constant 0 : i32
    %c0_i32_1 = arith.constant 0 : i32
    return %c0_i32, %c0_i32_0 : i32, i32
  }
  func.func @transform_16(%arg0: i32) -> (i32, i32) {
    %c0_i32 = arith.constant 0 : i32
    %c0_i32_0 = arith.constant 0 : i32
    %c0_i32_1 = arith.constant 0 : i32
    return %c0_i32, %c0_i32_0 : i32, i32
  }
  func.func @transform_17(%arg0: i32) -> (i32, i32) {
    %c0_i32 = arith.constant 0 : i32
    %c0_i32_0 = arith.constant 0 : i32
    %c0_i32_1 = arith.constant 0 : i32
    return %c0_i32, %c0_i32_0 : i32, i32
  }
  func.func @transform_18(%arg0: i32) -> (i32, i32) {
    %c0_i32 = arith.constant 0 : i32
    %c0_i32_0 = arith.constant 0 : i32
    %c0_i32_1 = arith.constant 0 : i32
    return %c0_i32, %c0_i32_0 : i32, i32
  }
  func.func @transform_19(%arg0: i32) -> (i32, i32) {
    %c0_i32 = arith.constant 0 : i32
    %c0_i32_0 = arith.constant 0 : i32
    return %arg0, %c0_i32 : i32, i32
  }
}

module attributes {stable_mosaic.version = 11 : i64} {
  func.func @pointnet_embedding_kernel(%arg0: i32, %arg1: memref<2x64x3xf32, #tpu.memory_space<vmem>>, %arg2: memref<3x64xf32, #tpu.memory_space<vmem>>, %arg3: memref<1x64xf32, #tpu.memory_space<vmem>>, %arg4: memref<64x128xbf16, #tpu.memory_space<vmem>>, %arg5: memref<1x128xf32, #tpu.memory_space<vmem>>, %arg6: memref<128x1024xbf16, #tpu.memory_space<vmem>>, %arg7: memref<1x1024xf32, #tpu.memory_space<vmem>>, %arg8: memref<1024x512xbf16, #tpu.memory_space<vmem>>, %arg9: memref<1x512xf32, #tpu.memory_space<vmem>>, %arg10: memref<512x256xbf16, #tpu.memory_space<vmem>>, %arg11: memref<1x256xf32, #tpu.memory_space<vmem>>, %arg12: memref<256x9xf32, #tpu.memory_space<vmem>>, %arg13: memref<1x9xf32, #tpu.memory_space<vmem>>, %arg14: memref<3x64xf32, #tpu.memory_space<vmem>>, %arg15: memref<1x64xf32, #tpu.memory_space<vmem>>, %arg16: memref<64x128xbf16, #tpu.memory_space<vmem>>, %arg17: memref<1x128xf32, #tpu.memory_space<vmem>>, %arg18: memref<128x128xbf16, #tpu.memory_space<vmem>>, %arg19: memref<1x128xf32, #tpu.memory_space<vmem>>, %arg20: memref<2x128xf32, #tpu.memory_space<vmem>>) attributes {dimension_semantics = [#tpu.dimension_semantics<parallel>], iteration_bounds = array<i64: 1>, scalar_prefetch = 0 : i64, scratch_operands = 0 : i64, tpu.core_type = #tpu.core_type<tc>, window_params = [{transform_indices = @transform_0, window_bounds = array<i64: 2, 64, 3>}, {pipeline_mode = #tpu.pipeline_mode<synchronous>, transform_indices = @transform_1, window_bounds = array<i64: 3, 64>}, {pipeline_mode = #tpu.pipeline_mode<synchronous>, transform_indices = @transform_2, window_bounds = array<i64: 1, 64>}, {pipeline_mode = #tpu.pipeline_mode<synchronous>, transform_indices = @transform_3, window_bounds = array<i64: 64, 128>}, {pipeline_mode = #tpu.pipeline_mode<synchronous>, transform_indices = @transform_4, window_bounds = array<i64: 1, 128>}, {pipeline_mode = #tpu.pipeline_mode<synchronous>, transform_indices = @transform_5, window_bounds = array<i64: 128, 1024>}, {pipeline_mode = #tpu.pipeline_mode<synchronous>, transform_indices = @transform_6, window_bounds = array<i64: 1, 1024>}, {pipeline_mode = #tpu.pipeline_mode<synchronous>, transform_indices = @transform_7, window_bounds = array<i64: 1024, 512>}, {pipeline_mode = #tpu.pipeline_mode<synchronous>, transform_indices = @transform_8, window_bounds = array<i64: 1, 512>}, {pipeline_mode = #tpu.pipeline_mode<synchronous>, transform_indices = @transform_9, window_bounds = array<i64: 512, 256>}, {pipeline_mode = #tpu.pipeline_mode<synchronous>, transform_indices = @transform_10, window_bounds = array<i64: 1, 256>}, {pipeline_mode = #tpu.pipeline_mode<synchronous>, transform_indices = @transform_11, window_bounds = array<i64: 256, 9>}, {pipeline_mode = #tpu.pipeline_mode<synchronous>, transform_indices = @transform_12, window_bounds = array<i64: 1, 9>}, {pipeline_mode = #tpu.pipeline_mode<synchronous>, transform_indices = @transform_13, window_bounds = array<i64: 3, 64>}, {pipeline_mode = #tpu.pipeline_mode<synchronous>, transform_indices = @transform_14, window_bounds = array<i64: 1, 64>}, {pipeline_mode = #tpu.pipeline_mode<synchronous>, transform_indices = @transform_15, window_bounds = array<i64: 64, 128>}, {pipeline_mode = #tpu.pipeline_mode<synchronous>, transform_indices = @transform_16, window_bounds = array<i64: 1, 128>}, {pipeline_mode = #tpu.pipeline_mode<synchronous>, transform_indices = @transform_17, window_bounds = array<i64: 128, 128>}, {pipeline_mode = #tpu.pipeline_mode<synchronous>, transform_indices = @transform_18, window_bounds = array<i64: 1, 128>}, {transform_indices = @transform_19, window_bounds = array<i64: 2, 128>}]} {
    %c0 = arith.constant 0 : index
    %c0_0 = arith.constant 0 : index
    %c0_1 = arith.constant 0 : index
    %0 = vector.load %arg1[%c0, %c0_0, %c0_1] : memref<2x64x3xf32, #tpu.memory_space<vmem>>, vector<2x64x3xf32>
    %1 = vector.shape_cast %0 : vector<2x64x3xf32> to vector<128x3xf32>
    %c0_2 = arith.constant 0 : index
    %c0_3 = arith.constant 0 : index
    %2 = vector.load %arg2[%c0_2, %c0_3] : memref<3x64xf32, #tpu.memory_space<vmem>>, vector<3x64xf32>
    %3 = vector.extract_strided_slice %1 {offsets = [0, 0], sizes = [128, 1], strides = [1, 1]} : vector<128x3xf32> to vector<128x1xf32>
    %4 = vector.extract_strided_slice %2 {offsets = [0, 0], sizes = [1, 64], strides = [1, 1]} : vector<3x64xf32> to vector<1x64xf32>
    %5 = vector.broadcast %3 : vector<128x1xf32> to vector<128x64xf32>
    %6 = vector.broadcast %4 : vector<1x64xf32> to vector<128x64xf32>
    %7 = arith.mulf %5, %6 : vector<128x64xf32>
    %8 = vector.extract_strided_slice %1 {offsets = [0, 1], sizes = [128, 1], strides = [1, 1]} : vector<128x3xf32> to vector<128x1xf32>
    %9 = vector.extract_strided_slice %2 {offsets = [1, 0], sizes = [1, 64], strides = [1, 1]} : vector<3x64xf32> to vector<1x64xf32>
    %10 = vector.broadcast %8 : vector<128x1xf32> to vector<128x64xf32>
    %11 = vector.broadcast %9 : vector<1x64xf32> to vector<128x64xf32>
    %12 = arith.mulf %10, %11 : vector<128x64xf32>
    %13 = arith.addf %7, %12 : vector<128x64xf32>
    %14 = vector.extract_strided_slice %1 {offsets = [0, 2], sizes = [128, 1], strides = [1, 1]} : vector<128x3xf32> to vector<128x1xf32>
    %15 = vector.extract_strided_slice %2 {offsets = [2, 0], sizes = [1, 64], strides = [1, 1]} : vector<3x64xf32> to vector<1x64xf32>
    %16 = vector.broadcast %14 : vector<128x1xf32> to vector<128x64xf32>
    %17 = vector.broadcast %15 : vector<1x64xf32> to vector<128x64xf32>
    %18 = arith.mulf %16, %17 : vector<128x64xf32>
    %19 = arith.addf %13, %18 : vector<128x64xf32>
    %c0_4 = arith.constant 0 : index
    %c0_5 = arith.constant 0 : index
    %20 = vector.load %arg3[%c0_4, %c0_5] : memref<1x64xf32, #tpu.memory_space<vmem>>, vector<1x64xf32>
    %21 = vector.broadcast %20 : vector<1x64xf32> to vector<128x64xf32>
    %22 = arith.addf %19, %21 : vector<128x64xf32>
    %cst = arith.constant 0.000000e+00 : f32
    %23 = vector.broadcast %cst : f32 to vector<128x64xf32>
    %24 = arith.maximumf %22, %23 : vector<128x64xf32>
    %c0_6 = arith.constant 0 : index
    %c0_7 = arith.constant 0 : index
    %25 = vector.load %arg4[%c0_6, %c0_7] : memref<64x128xbf16, #tpu.memory_space<vmem>>, vector<64x128xbf16>
    %26 = arith.truncf %24 : vector<128x64xf32> to vector<128x64xbf16>
    %cst_8 = arith.constant dense<0.000000e+00> : vector<128x128xf32>
    %27 = tpu.matmul %26, %25, %cst_8 {dimension_numbers = #tpu.dot_dimension_numbers<[1], [0], [0], [1], [0, 0, 1, 1], [], []>} : vector<128x64xbf16>, vector<64x128xbf16>, vector<128x128xf32> -> vector<128x128xf32>
    %c0_9 = arith.constant 0 : index
    %c0_10 = arith.constant 0 : index
    %28 = vector.load %arg5[%c0_9, %c0_10] : memref<1x128xf32, #tpu.memory_space<vmem>>, vector<1x128xf32>
    %29 = vector.broadcast %28 : vector<1x128xf32> to vector<128x128xf32>
    %30 = arith.addf %27, %29 : vector<128x128xf32>
    %cst_11 = arith.constant 0.000000e+00 : f32
    %31 = vector.broadcast %cst_11 : f32 to vector<128x128xf32>
    %32 = arith.maximumf %30, %31 : vector<128x128xf32>
    %c0_12 = arith.constant 0 : index
    %c0_13 = arith.constant 0 : index
    %33 = vector.load %arg6[%c0_12, %c0_13] : memref<128x1024xbf16, #tpu.memory_space<vmem>>, vector<128x1024xbf16>
    %34 = arith.truncf %32 : vector<128x128xf32> to vector<128x128xbf16>
    %cst_14 = arith.constant dense<0.000000e+00> : vector<128x1024xf32>
    %35 = tpu.matmul %34, %33, %cst_14 {dimension_numbers = #tpu.dot_dimension_numbers<[1], [0], [0], [1], [0, 0, 1, 1], [], []>} : vector<128x128xbf16>, vector<128x1024xbf16>, vector<128x1024xf32> -> vector<128x1024xf32>
    %c0_15 = arith.constant 0 : index
    %c0_16 = arith.constant 0 : index
    %36 = vector.load %arg7[%c0_15, %c0_16] : memref<1x1024xf32, #tpu.memory_space<vmem>>, vector<1x1024xf32>
    %37 = vector.broadcast %36 : vector<1x1024xf32> to vector<128x1024xf32>
    %38 = arith.addf %35, %37 : vector<128x1024xf32>
    %cst_17 = arith.constant 0.000000e+00 : f32
    %39 = vector.broadcast %cst_17 : f32 to vector<128x1024xf32>
    %40 = arith.maximumf %38, %39 : vector<128x1024xf32>
    %41 = arith.truncf %40 : vector<128x1024xf32> to vector<128x1024xbf16>
    %42 = vector.shape_cast %41 : vector<128x1024xbf16> to vector<2x64x1024xbf16>
    %cst_18 = arith.constant dense<0xFF80> : vector<2x1024xbf16>
    %43 = vector.multi_reduction <maximumf>, %42, %cst_18 [1] : vector<2x64x1024xbf16> to vector<2x1024xbf16>
    %c0_19 = arith.constant 0 : index
    %c0_20 = arith.constant 0 : index
    %44 = vector.load %arg8[%c0_19, %c0_20] : memref<1024x512xbf16, #tpu.memory_space<vmem>>, vector<1024x512xbf16>
    %cst_21 = arith.constant dense<0.000000e+00> : vector<2x512xf32>
    %45 = tpu.matmul %43, %44, %cst_21 {dimension_numbers = #tpu.dot_dimension_numbers<[1], [0], [0], [1], [0, 0, 1, 1], [], []>} : vector<2x1024xbf16>, vector<1024x512xbf16>, vector<2x512xf32> -> vector<2x512xf32>
    %c0_22 = arith.constant 0 : index
    %c0_23 = arith.constant 0 : index
    %46 = vector.load %arg9[%c0_22, %c0_23] : memref<1x512xf32, #tpu.memory_space<vmem>>, vector<1x512xf32>
    %47 = vector.broadcast %46 : vector<1x512xf32> to vector<2x512xf32>
    %48 = arith.addf %45, %47 : vector<2x512xf32>
    %cst_24 = arith.constant 0.000000e+00 : f32
    %49 = vector.broadcast %cst_24 : f32 to vector<2x512xf32>
    %50 = arith.maximumf %48, %49 : vector<2x512xf32>
    %c0_25 = arith.constant 0 : index
    %c0_26 = arith.constant 0 : index
    %51 = vector.load %arg10[%c0_25, %c0_26] : memref<512x256xbf16, #tpu.memory_space<vmem>>, vector<512x256xbf16>
    %52 = arith.truncf %50 : vector<2x512xf32> to vector<2x512xbf16>
    %cst_27 = arith.constant dense<0.000000e+00> : vector<2x256xf32>
    %53 = tpu.matmul %52, %51, %cst_27 {dimension_numbers = #tpu.dot_dimension_numbers<[1], [0], [0], [1], [0, 0, 1, 1], [], []>} : vector<2x512xbf16>, vector<512x256xbf16>, vector<2x256xf32> -> vector<2x256xf32>
    %c0_28 = arith.constant 0 : index
    %c0_29 = arith.constant 0 : index
    %54 = vector.load %arg11[%c0_28, %c0_29] : memref<1x256xf32, #tpu.memory_space<vmem>>, vector<1x256xf32>
    %55 = vector.broadcast %54 : vector<1x256xf32> to vector<2x256xf32>
    %56 = arith.addf %53, %55 : vector<2x256xf32>
    %cst_30 = arith.constant 0.000000e+00 : f32
    %57 = vector.broadcast %cst_30 : f32 to vector<2x256xf32>
    %58 = arith.maximumf %56, %57 : vector<2x256xf32>
    %c0_31 = arith.constant 0 : index
    %c0_32 = arith.constant 0 : index
    %59 = vector.load %arg12[%c0_31, %c0_32] : memref<256x9xf32, #tpu.memory_space<vmem>>, vector<256x9xf32>
    %cst_33 = arith.constant dense<0.000000e+00> : vector<2x9xf32>
    %60 = tpu.matmul %58, %59, %cst_33 {dimension_numbers = #tpu.dot_dimension_numbers<[1], [0], [0], [1], [0, 0, 1, 1], [], []>} : vector<2x256xf32>, vector<256x9xf32>, vector<2x9xf32> -> vector<2x9xf32>
    %c0_34 = arith.constant 0 : index
    %c0_35 = arith.constant 0 : index
    %61 = vector.load %arg13[%c0_34, %c0_35] : memref<1x9xf32, #tpu.memory_space<vmem>>, vector<1x9xf32>
    %62 = vector.broadcast %61 : vector<1x9xf32> to vector<2x9xf32>
    %63 = arith.addf %60, %62 : vector<2x9xf32>
    %c0_36 = arith.constant 0 : index
    %c0_37 = arith.constant 0 : index
    %64 = vector.load %arg14[%c0_36, %c0_37] : memref<3x64xf32, #tpu.memory_space<vmem>>, vector<3x64xf32>
    %65 = vector.extract_strided_slice %63 {offsets = [0, 0], sizes = [2, 1], strides = [1, 1]} : vector<2x9xf32> to vector<2x1xf32>
    %66 = vector.extract_strided_slice %64 {offsets = [0, 0], sizes = [1, 64], strides = [1, 1]} : vector<3x64xf32> to vector<1x64xf32>
    %67 = vector.broadcast %65 : vector<2x1xf32> to vector<2x64xf32>
    %68 = vector.broadcast %66 : vector<1x64xf32> to vector<2x64xf32>
    %69 = arith.mulf %67, %68 : vector<2x64xf32>
    %70 = vector.extract_strided_slice %63 {offsets = [0, 1], sizes = [2, 1], strides = [1, 1]} : vector<2x9xf32> to vector<2x1xf32>
    %71 = vector.extract_strided_slice %64 {offsets = [1, 0], sizes = [1, 64], strides = [1, 1]} : vector<3x64xf32> to vector<1x64xf32>
    %72 = vector.broadcast %70 : vector<2x1xf32> to vector<2x64xf32>
    %73 = vector.broadcast %71 : vector<1x64xf32> to vector<2x64xf32>
    %74 = arith.mulf %72, %73 : vector<2x64xf32>
    %75 = arith.addf %69, %74 : vector<2x64xf32>
    %76 = vector.extract_strided_slice %63 {offsets = [0, 2], sizes = [2, 1], strides = [1, 1]} : vector<2x9xf32> to vector<2x1xf32>
    %77 = vector.extract_strided_slice %64 {offsets = [2, 0], sizes = [1, 64], strides = [1, 1]} : vector<3x64xf32> to vector<1x64xf32>
    %78 = vector.broadcast %76 : vector<2x1xf32> to vector<2x64xf32>
    %79 = vector.broadcast %77 : vector<1x64xf32> to vector<2x64xf32>
    %80 = arith.mulf %78, %79 : vector<2x64xf32>
    %81 = arith.addf %75, %80 : vector<2x64xf32>
    %82 = vector.extract_strided_slice %63 {offsets = [0, 3], sizes = [2, 1], strides = [1, 1]} : vector<2x9xf32> to vector<2x1xf32>
    %83 = vector.extract_strided_slice %64 {offsets = [0, 0], sizes = [1, 64], strides = [1, 1]} : vector<3x64xf32> to vector<1x64xf32>
    %84 = vector.broadcast %82 : vector<2x1xf32> to vector<2x64xf32>
    %85 = vector.broadcast %83 : vector<1x64xf32> to vector<2x64xf32>
    %86 = arith.mulf %84, %85 : vector<2x64xf32>
    %87 = vector.extract_strided_slice %63 {offsets = [0, 4], sizes = [2, 1], strides = [1, 1]} : vector<2x9xf32> to vector<2x1xf32>
    %88 = vector.extract_strided_slice %64 {offsets = [1, 0], sizes = [1, 64], strides = [1, 1]} : vector<3x64xf32> to vector<1x64xf32>
    %89 = vector.broadcast %87 : vector<2x1xf32> to vector<2x64xf32>
    %90 = vector.broadcast %88 : vector<1x64xf32> to vector<2x64xf32>
    %91 = arith.mulf %89, %90 : vector<2x64xf32>
    %92 = arith.addf %86, %91 : vector<2x64xf32>
    %93 = vector.extract_strided_slice %63 {offsets = [0, 5], sizes = [2, 1], strides = [1, 1]} : vector<2x9xf32> to vector<2x1xf32>
    %94 = vector.extract_strided_slice %64 {offsets = [2, 0], sizes = [1, 64], strides = [1, 1]} : vector<3x64xf32> to vector<1x64xf32>
    %95 = vector.broadcast %93 : vector<2x1xf32> to vector<2x64xf32>
    %96 = vector.broadcast %94 : vector<1x64xf32> to vector<2x64xf32>
    %97 = arith.mulf %95, %96 : vector<2x64xf32>
    %98 = arith.addf %92, %97 : vector<2x64xf32>
    %99 = vector.extract_strided_slice %63 {offsets = [0, 6], sizes = [2, 1], strides = [1, 1]} : vector<2x9xf32> to vector<2x1xf32>
    %100 = vector.extract_strided_slice %64 {offsets = [0, 0], sizes = [1, 64], strides = [1, 1]} : vector<3x64xf32> to vector<1x64xf32>
    %101 = vector.broadcast %99 : vector<2x1xf32> to vector<2x64xf32>
    %102 = vector.broadcast %100 : vector<1x64xf32> to vector<2x64xf32>
    %103 = arith.mulf %101, %102 : vector<2x64xf32>
    %104 = vector.extract_strided_slice %63 {offsets = [0, 7], sizes = [2, 1], strides = [1, 1]} : vector<2x9xf32> to vector<2x1xf32>
    %105 = vector.extract_strided_slice %64 {offsets = [1, 0], sizes = [1, 64], strides = [1, 1]} : vector<3x64xf32> to vector<1x64xf32>
    %106 = vector.broadcast %104 : vector<2x1xf32> to vector<2x64xf32>
    %107 = vector.broadcast %105 : vector<1x64xf32> to vector<2x64xf32>
    %108 = arith.mulf %106, %107 : vector<2x64xf32>
    %109 = arith.addf %103, %108 : vector<2x64xf32>
    %110 = vector.extract_strided_slice %63 {offsets = [0, 8], sizes = [2, 1], strides = [1, 1]} : vector<2x9xf32> to vector<2x1xf32>
    %111 = vector.extract_strided_slice %64 {offsets = [2, 0], sizes = [1, 64], strides = [1, 1]} : vector<3x64xf32> to vector<1x64xf32>
    %112 = vector.broadcast %110 : vector<2x1xf32> to vector<2x64xf32>
    %113 = vector.broadcast %111 : vector<1x64xf32> to vector<2x64xf32>
    %114 = arith.mulf %112, %113 : vector<2x64xf32>
    %115 = arith.addf %109, %114 : vector<2x64xf32>
    %116 = vector.extract_strided_slice %0 {offsets = [0, 0, 0], sizes = [2, 64, 1], strides = [1, 1, 1]} : vector<2x64x3xf32> to vector<2x64x1xf32>
    %117 = vector.shape_cast %81 : vector<2x64xf32> to vector<2x1x64xf32>
    %118 = vector.broadcast %116 : vector<2x64x1xf32> to vector<2x64x64xf32>
    %119 = vector.broadcast %117 : vector<2x1x64xf32> to vector<2x64x64xf32>
    %120 = arith.mulf %118, %119 : vector<2x64x64xf32>
    %121 = vector.extract_strided_slice %0 {offsets = [0, 0, 1], sizes = [2, 64, 1], strides = [1, 1, 1]} : vector<2x64x3xf32> to vector<2x64x1xf32>
    %122 = vector.shape_cast %98 : vector<2x64xf32> to vector<2x1x64xf32>
    %123 = vector.broadcast %121 : vector<2x64x1xf32> to vector<2x64x64xf32>
    %124 = vector.broadcast %122 : vector<2x1x64xf32> to vector<2x64x64xf32>
    %125 = arith.mulf %123, %124 : vector<2x64x64xf32>
    %126 = arith.addf %120, %125 : vector<2x64x64xf32>
    %127 = vector.extract_strided_slice %0 {offsets = [0, 0, 2], sizes = [2, 64, 1], strides = [1, 1, 1]} : vector<2x64x3xf32> to vector<2x64x1xf32>
    %128 = vector.shape_cast %115 : vector<2x64xf32> to vector<2x1x64xf32>
    %129 = vector.broadcast %127 : vector<2x64x1xf32> to vector<2x64x64xf32>
    %130 = vector.broadcast %128 : vector<2x1x64xf32> to vector<2x64x64xf32>
    %131 = arith.mulf %129, %130 : vector<2x64x64xf32>
    %132 = arith.addf %126, %131 : vector<2x64x64xf32>
    %c0_38 = arith.constant 0 : index
    %c0_39 = arith.constant 0 : index
    %133 = vector.load %arg15[%c0_38, %c0_39] : memref<1x64xf32, #tpu.memory_space<vmem>>, vector<1x64xf32>
    %134 = vector.shape_cast %133 : vector<1x64xf32> to vector<1x1x64xf32>
    %135 = vector.broadcast %134 : vector<1x1x64xf32> to vector<2x64x64xf32>
    %136 = arith.addf %132, %135 : vector<2x64x64xf32>
    %cst_40 = arith.constant 0.000000e+00 : f32
    %137 = vector.broadcast %cst_40 : f32 to vector<2x64x64xf32>
    %138 = arith.maximumf %136, %137 : vector<2x64x64xf32>
    %139 = vector.shape_cast %138 : vector<2x64x64xf32> to vector<128x64xf32>
    %c0_41 = arith.constant 0 : index
    %c0_42 = arith.constant 0 : index
    %140 = vector.load %arg16[%c0_41, %c0_42] : memref<64x128xbf16, #tpu.memory_space<vmem>>, vector<64x128xbf16>
    %141 = arith.truncf %139 : vector<128x64xf32> to vector<128x64xbf16>
    %cst_43 = arith.constant dense<0.000000e+00> : vector<128x128xf32>
    %142 = tpu.matmul %141, %140, %cst_43 {dimension_numbers = #tpu.dot_dimension_numbers<[1], [0], [0], [1], [0, 0, 1, 1], [], []>} : vector<128x64xbf16>, vector<64x128xbf16>, vector<128x128xf32> -> vector<128x128xf32>
    %c0_44 = arith.constant 0 : index
    %c0_45 = arith.constant 0 : index
    %143 = vector.load %arg17[%c0_44, %c0_45] : memref<1x128xf32, #tpu.memory_space<vmem>>, vector<1x128xf32>
    %144 = vector.broadcast %143 : vector<1x128xf32> to vector<128x128xf32>
    %145 = arith.addf %142, %144 : vector<128x128xf32>
    %cst_46 = arith.constant 0.000000e+00 : f32
    %146 = vector.broadcast %cst_46 : f32 to vector<128x128xf32>
    %147 = arith.maximumf %145, %146 : vector<128x128xf32>
    %c0_47 = arith.constant 0 : index
    %c0_48 = arith.constant 0 : index
    %148 = vector.load %arg18[%c0_47, %c0_48] : memref<128x128xbf16, #tpu.memory_space<vmem>>, vector<128x128xbf16>
    %149 = arith.truncf %147 : vector<128x128xf32> to vector<128x128xbf16>
    %cst_49 = arith.constant dense<0.000000e+00> : vector<128x128xf32>
    %150 = tpu.matmul %149, %148, %cst_49 {dimension_numbers = #tpu.dot_dimension_numbers<[1], [0], [0], [1], [0, 0, 1, 1], [], []>} : vector<128x128xbf16>, vector<128x128xbf16>, vector<128x128xf32> -> vector<128x128xf32>
    %c0_50 = arith.constant 0 : index
    %c0_51 = arith.constant 0 : index
    %151 = vector.load %arg19[%c0_50, %c0_51] : memref<1x128xf32, #tpu.memory_space<vmem>>, vector<1x128xf32>
    %152 = vector.broadcast %151 : vector<1x128xf32> to vector<128x128xf32>
    %153 = arith.addf %150, %152 : vector<128x128xf32>
    %cst_52 = arith.constant 0.000000e+00 : f32
    %154 = vector.broadcast %cst_52 : f32 to vector<128x128xf32>
    %155 = arith.maximumf %153, %154 : vector<128x128xf32>
    %156 = vector.shape_cast %155 : vector<128x128xf32> to vector<2x64x128xf32>
    %cst_53 = arith.constant dense<0xFF800000> : vector<2x128xf32>
    %157 = vector.multi_reduction <maximumf>, %156, %cst_53 [1] : vector<2x64x128xf32> to vector<2x128xf32>
    %c0_54 = arith.constant 0 : index
    %c0_55 = arith.constant 0 : index
    %158 = vector.load %arg20[%c0_54, %c0_55] : memref<2x128xf32, #tpu.memory_space<vmem>>, vector<2x128xf32>
    tpu.vector_store %arg20[%c0_54, %c0_55], %157 {strides = array<i32>} : memref<2x128xf32, #tpu.memory_space<vmem>>, vector<2x128xf32>,
    return
  }
  func.func @transform_0(%arg0: i32) -> (i32, i32, i32) {
    %c0_i32 = arith.constant 0 : i32
    %c0_i32_0 = arith.constant 0 : i32
    %c0_i32_1 = arith.constant 0 : i32
    return %arg0, %c0_i32, %c0_i32_0 : i32, i32, i32
  }
  func.func @transform_1(%arg0: i32) -> (i32, i32) {
    %c0_i32 = arith.constant 0 : i32
    %c0_i32_0 = arith.constant 0 : i32
    %c0_i32_1 = arith.constant 0 : i32
    return %c0_i32, %c0_i32_0 : i32, i32
  }
  func.func @transform_2(%arg0: i32) -> (i32, i32) {
    %c0_i32 = arith.constant 0 : i32
    %c0_i32_0 = arith.constant 0 : i32
    %c0_i32_1 = arith.constant 0 : i32
    return %c0_i32, %c0_i32_0 : i32, i32
  }
  func.func @transform_3(%arg0: i32) -> (i32, i32) {
    %c0_i32 = arith.constant 0 : i32
    %c0_i32_0 = arith.constant 0 : i32
    %c0_i32_1 = arith.constant 0 : i32
    return %c0_i32, %c0_i32_0 : i32, i32
  }
  func.func @transform_4(%arg0: i32) -> (i32, i32) {
    %c0_i32 = arith.constant 0 : i32
    %c0_i32_0 = arith.constant 0 : i32
    %c0_i32_1 = arith.constant 0 : i32
    return %c0_i32, %c0_i32_0 : i32, i32
  }
  func.func @transform_5(%arg0: i32) -> (i32, i32) {
    %c0_i32 = arith.constant 0 : i32
    %c0_i32_0 = arith.constant 0 : i32
    %c0_i32_1 = arith.constant 0 : i32
    return %c0_i32, %c0_i32_0 : i32, i32
  }
  func.func @transform_6(%arg0: i32) -> (i32, i32) {
    %c0_i32 = arith.constant 0 : i32
    %c0_i32_0 = arith.constant 0 : i32
    %c0_i32_1 = arith.constant 0 : i32
    return %c0_i32, %c0_i32_0 : i32, i32
  }
  func.func @transform_7(%arg0: i32) -> (i32, i32) {
    %c0_i32 = arith.constant 0 : i32
    %c0_i32_0 = arith.constant 0 : i32
    %c0_i32_1 = arith.constant 0 : i32
    return %c0_i32, %c0_i32_0 : i32, i32
  }
  func.func @transform_8(%arg0: i32) -> (i32, i32) {
    %c0_i32 = arith.constant 0 : i32
    %c0_i32_0 = arith.constant 0 : i32
    %c0_i32_1 = arith.constant 0 : i32
    return %c0_i32, %c0_i32_0 : i32, i32
  }
  func.func @transform_9(%arg0: i32) -> (i32, i32) {
    %c0_i32 = arith.constant 0 : i32
    %c0_i32_0 = arith.constant 0 : i32
    %c0_i32_1 = arith.constant 0 : i32
    return %c0_i32, %c0_i32_0 : i32, i32
  }
  func.func @transform_10(%arg0: i32) -> (i32, i32) {
    %c0_i32 = arith.constant 0 : i32
    %c0_i32_0 = arith.constant 0 : i32
    %c0_i32_1 = arith.constant 0 : i32
    return %c0_i32, %c0_i32_0 : i32, i32
  }
  func.func @transform_11(%arg0: i32) -> (i32, i32) {
    %c0_i32 = arith.constant 0 : i32
    %c0_i32_0 = arith.constant 0 : i32
    %c0_i32_1 = arith.constant 0 : i32
    return %c0_i32, %c0_i32_0 : i32, i32
  }
  func.func @transform_12(%arg0: i32) -> (i32, i32) {
    %c0_i32 = arith.constant 0 : i32
    %c0_i32_0 = arith.constant 0 : i32
    %c0_i32_1 = arith.constant 0 : i32
    return %c0_i32, %c0_i32_0 : i32, i32
  }
  func.func @transform_13(%arg0: i32) -> (i32, i32) {
    %c0_i32 = arith.constant 0 : i32
    %c0_i32_0 = arith.constant 0 : i32
    %c0_i32_1 = arith.constant 0 : i32
    return %c0_i32, %c0_i32_0 : i32, i32
  }
  func.func @transform_14(%arg0: i32) -> (i32, i32) {
    %c0_i32 = arith.constant 0 : i32
    %c0_i32_0 = arith.constant 0 : i32
    %c0_i32_1 = arith.constant 0 : i32
    return %c0_i32, %c0_i32_0 : i32, i32
  }
  func.func @transform_15(%arg0: i32) -> (i32, i32) {
    %c0_i32 = arith.constant 0 : i32
    %c0_i32_0 = arith.constant 0 : i32
    %c0_i32_1 = arith.constant 0 : i32
    return %c0_i32, %c0_i32_0 : i32, i32
  }
  func.func @transform_16(%arg0: i32) -> (i32, i32) {
    %c0_i32 = arith.constant 0 : i32
    %c0_i32_0 = arith.constant 0 : i32
    %c0_i32_1 = arith.constant 0 : i32
    return %c0_i32, %c0_i32_0 : i32, i32
  }
  func.func @transform_17(%arg0: i32) -> (i32, i32) {
    %c0_i32 = arith.constant 0 : i32
    %c0_i32_0 = arith.constant 0 : i32
    %c0_i32_1 = arith.constant 0 : i32
    return %c0_i32, %c0_i32_0 : i32, i32
  }
  func.func @transform_18(%arg0: i32) -> (i32, i32) {
    %c0_i32 = arith.constant 0 : i32
    %c0_i32_0 = arith.constant 0 : i32
    %c0_i32_1 = arith.constant 0 : i32
    return %c0_i32, %c0_i32_0 : i32, i32
  }
  func.func @transform_19(%arg0: i32) -> (i32, i32) {
    %c0_i32 = arith.constant 0 : i32
    %c0_i32_0 = arith.constant 0 : i32
    return %arg0, %c0_i32 : i32, i32
  }
}

</mosaic_0001>

<bundles_post_ra>
// kernel: tpu_custom_call.1
= control target key start
LH: loop header
LB: loop body
LE: loop exit
PB: predicated region body
PF: predicated region fallthrough
CT: control target
= control target key end

     0   :  { %s8352_s0 = inlined_call_operand.hbm [shape: f32[2,64,3], index: 0, kind: input, shape index: {}]   ;;  %s8353_s1 = inlined_call_operand.hbm [shape: f32[3,64], index: 1, kind: input, shape index: {}]   ;;  %s8354_s2 = inlined_call_operand.hbm [shape: f32[1,64], index: 2, kind: input, shape index: {}]   ;;  %s8355_s3 = inlined_call_operand.hbm [shape: bf16[64,128], index: 3, kind: input, shape index: {}]   ;;  %s8356_s4 = inlined_call_operand.hbm [shape: f32[1,128], index: 4, kind: input, shape index: {}]   ;;  %s8357_s5 = inlined_call_operand.hbm [shape: bf16[128,1024], index: 5, kind: input, shape index: {}]   ;;  %s8358_s6 = inlined_call_operand.hbm [shape: f32[1,1024], index: 6, kind: input, shape index: {}]   ;;  %s8359_s7 = inlined_call_operand.hbm [shape: bf16[1024,512], index: 7, kind: input, shape index: {}]   ;;  %s8360_s8 = inlined_call_operand.hbm [shape: f32[1,512], index: 8, kind: input, shape index: {}]   ;;  %s8361_s9 = inlined_call_operand.hbm [shape: bf16[512,256], index: 9, kind: input, shape index: {}]   ;;  %s8362_s10 = inlined_call_operand.hbm [shape: f32[1,256], index: 10, kind: input, shape index: {}]   ;;  %s8363_s11 = inlined_call_operand.hbm [shape: f32[256,9], index: 11, kind: input, shape index: {}]   ;;  %s8364_s12 = inlined_call_operand.hbm [shape: f32[1,9], index: 12, kind: input, shape index: {}]   ;;  %s8365_s13 = inlined_call_operand.hbm [shape: f32[3,64], index: 13, kind: input, shape index: {}]   ;;  %s8366_s14 = inlined_call_operand.hbm [shape: f32[1,64], index: 14, kind: input, shape index: {}]   ;;  %s8367_s15 = inlined_call_operand.hbm [shape: bf16[64,128], index: 15, kind: input, shape index: {}]   ;;  %s8368_s16 = inlined_call_operand.hbm [shape: f32[1,128], index: 16, kind: input, shape index: {}]   ;;  %s8369_s17 = inlined_call_operand.hbm [shape: bf16[128,128], index: 17, kind: input, shape index: {}]   ;;  %s8370_s18 = inlined_call_operand.hbm [shape: f32[1,128], index: 18, kind: input, shape index: {}]   ;;  %s8371_s19 = inlined_call_operand.hbm [shape: f32[2,128], index: 19, kind: output, shape index: {}]  }
   0x1   :  { %8422 = sst [smem:[#allocation83_spill]] %s8352_s0 }
   0x2   :  { %8423 = sst [smem:[#allocation84_spill]] %s8353_s1 }
   0x3   :  { %8424 = sst [smem:[#allocation85_spill]] %s8354_s2 }
   0x4   :  { %8425 = sst [smem:[#allocation86_spill]] %s8355_s3 }
   0x5   :  { %8426 = sst [smem:[#allocation87_spill]] %s8371_s19 }
   0x6   :  { %24 = vsyncpa [#allocation3], 0 }
   0x7   :  { %25 = vsyncpa [#allocation6], 0 }
   0x8   :  { %26 = vsyncpa [#allocation9], 0 }
   0x9   :  { %27 = vsyncpa [#allocation12], 0 }
   0xa   :  { %28 = vsyncpa [#allocation15], 0 }
   0xb   :  { %29 = vsyncpa [#allocation18], 0 }
   0xc   :  { %30 = vsyncpa [#allocation21], 0 }
   0xd   :  { %31 = vsyncpa [#allocation24], 0 }
   0xe   :  { %32 = vsyncpa [#allocation27], 0 }
   0xf   :  { %33 = vsyncpa [#allocation30], 0 }
  0x10   :  { %34 = vsyncpa [#allocation4], 0  ;;  %s7054_s0 = smov [#allocation5]   ;;  %s7055_s20 = smov [#allocation8]  }
  0x11   :  { %s53_s30 = sshll.u32 %s7054_s0, 4  ;;  %s72_s21 = sshll.u32 %s7055_s20, 4  ;;  %s54_s30 = int_to_ptr.vmem [resolvable:$true] %s53_s30  ;;  %s7192_s21 = int_to_ptr.vmem [resolvable:$true] %s72_s21 }
  0x12   :  { %s8427_s2 = sld [smem:[#allocation84_spill]] }
  0x18   :  { %s6592_s23 = scalar_lea.hbm %s8427_s2, 64 }
  0x19   :  { %p6593_p0 = scmp.ne.s32.totalorder %s8427_s2, %s6592_s23  ;;  %p6596_p1 = scmp.lt.u32.totalorder %s6592_s23, %s8427_s2 }
  0x1b   :  { %p6598_p2 = pnand %p6596_p1, %p6593_p0 }
  0x1d   :  { %6601 = shalt.err (!%p6598_p2)
}
  0x1e   :  { %s6602_s27 = scalar_lea.vmem %s54_s30, 64  ;;  %p6607_p4 = scmp.lt.s32.totalorder %s54_s30, %s54_s30 }
  0x1f   :  { %p6603_p3 = scmp.ne.s32.totalorder %s54_s30, %s6602_s27  ;;  %p6608_p5 = scmp.lt.s32.totalorder %s6602_s27, %s6602_s27 }
  0x21   :  { %p6609_p6 = por %p6608_p5, %p6607_p4 }
  0x23   :  { %p6610_p7 = pnand %p6609_p6, %p6603_p3 }
  0x25   :  { %6613 = shalt.err (!%p6610_p7)
}
  0x26   :  { %56 = dma.hbm_to_vmem [thread:$0]  %s8427_s2, 64, %s54_s30, [#allocation6]  }
  0x27   :  { %s8428_s1 = sld [smem:[#allocation86_spill]] }
  0x2d   :  { %s6614_s22 = scalar_lea.hbm %s8428_s1, 512 }
  0x2e   :  { %p6615_p8 = scmp.ne.s32.totalorder %s8428_s1, %s6614_s22  ;;  %p6618_p9 = scmp.lt.u32.totalorder %s6614_s22, %s8428_s1 }
  0x30   :  { %p6620_p10 = pnand %p6618_p9, %p6615_p8 }
  0x32   :  { %6623 = shalt.err (!%p6620_p10)
}
  0x33   :  { %s6624_s26 = scalar_lea.vmem %s7192_s21, 512  ;;  %p6629_p12 = scmp.lt.s32.totalorder %s7192_s21, %s7192_s21 }
  0x34   :  { %p6625_p11 = scmp.ne.s32.totalorder %s7192_s21, %s6624_s26  ;;  %p6630_p13 = scmp.lt.s32.totalorder %s6624_s26, %s6624_s26 }
  0x36   :  { %p6631_p0 = por %p6630_p13, %p6629_p12 }
  0x38   :  { %p6632_p1 = pnand %p6631_p0, %p6625_p11 }
  0x3a   :  { %6635 = shalt.err (!%p6632_p1)
}
  0x3b   :  { %s8377_s30 = smov 64   ;;  %s7057_s2 = smov 4  }
  0x3c   :  { %78 = dma.hbm_to_vmem [thread:$0]  %s8428_s1, 512, %s7192_s21, [#allocation9], %s8377_s30, %s8377_s30, %s7057_s2  }
  0x3d   :  { %s7058_s29 = smov [#allocation11]   ;;  %s6636_s24 = scalar_lea.hbm %s8357_s5, 8192 }
  0x3e   :  { %s94_s0 = sshll.u32 %s7058_s29, 4  ;;  %p6637_p2 = scmp.ne.s32.totalorder %s8357_s5, %s6636_s24  ;;  %s95_s0 = int_to_ptr.vmem [resolvable:$true] %s94_s0 }
  0x3f   :  { %p6640_p3 = scmp.lt.u32.totalorder %s6636_s24, %s8357_s5 }
  0x41   :  { %p6642_p4 = pnand %p6640_p3, %p6637_p2 }
  0x43   :  { %6645 = shalt.err (!%p6642_p4)
}
  0x44   :  { %s6646_s19 = scalar_lea.vmem %s95_s0, 8192  ;;  %p6651_p6 = scmp.lt.s32.totalorder %s95_s0, %s95_s0 }
  0x45   :  { %p6647_p5 = scmp.ne.s32.totalorder %s95_s0, %s6646_s19  ;;  %p6652_p7 = scmp.lt.s32.totalorder %s6646_s19, %s6646_s19 }
  0x47   :  { %p6653_p8 = por %p6652_p7, %p6651_p6 }
  0x49   :  { %p6654_p9 = pnand %p6653_p8, %p6647_p5 }
  0x4b   :  { %6657 = shalt.err (!%p6654_p9)
}
  0x4c   :  { %s7059_s21 = smov 512   ;;  %s7060_s1 = smov 32  }
  0x4d   :  { %100 = dma.hbm_to_vmem [thread:$0]  %s8357_s5, 8192, %s95_s0, [#allocation12], %s7059_s21, %s7059_s21, %s7060_s1  }
  0x4e   :  { %s7061_s29 = smov [#allocation14]   ;;  %s6658_s25 = scalar_lea.hbm %s8359_s7, 32768 }
  0x4f   :  { %s116_s20 = sshll.u32 %s7061_s29, 4  ;;  %p6659_p10 = scmp.ne.s32.totalorder %s8359_s7, %s6658_s25  ;;  %s117_s20 = int_to_ptr.vmem [resolvable:$true] %s116_s20 }
  0x50   :  { %p6662_p11 = scmp.lt.u32.totalorder %s6658_s25, %s8359_s7 }
  0x52   :  { %p6664_p12 = pnand %p6662_p11, %p6659_p10 }
  0x54   :  { %6667 = shalt.err (!%p6664_p12)
}
  0x55   :  { %s6668_s30 = scalar_lea.vmem %s117_s20, 32768  ;;  %p6673_p0 = scmp.lt.s32.totalorder %s117_s20, %s117_s20 }
  0x56   :  { %p6669_p13 = scmp.ne.s32.totalorder %s117_s20, %s6668_s30  ;;  %p6674_p1 = scmp.lt.s32.totalorder %s6668_s30, %s6668_s30 }
  0x58   :  { %p6675_p2 = por %p6674_p1, %p6673_p0 }
  0x5a   :  { %p6676_p3 = pnand %p6675_p2, %p6669_p13 }
  0x5c   :  { %6679 = shalt.err (!%p6676_p3)
}
  0x5d   :  { %s7062_s5 = smov 256   ;;  %s7063_s0 = smov 16  }
  0x5e   :  { %122 = dma.hbm_to_vmem [thread:$0]  %s8359_s7, 32768, %s117_s20, [#allocation15], %s7062_s5, %s7062_s5, %s7063_s0  }
  0x5f   :  { %s7064_s27 = smov [#allocation17]   ;;  %s7065_s29 = smov [#allocation20]  }
  0x60   :  { %s138_s28 = sshll.u32 %s7064_s27, 4  ;;  %s160_s22 = sshll.u32 %s7065_s29, 4  ;;  %s139_s28 = int_to_ptr.vmem [resolvable:$true] %s138_s28  ;;  %s7250_s22 = int_to_ptr.vmem [resolvable:$true] %s160_s22 }
  0x61   :  { %s6680_s30 = scalar_lea.hbm %s8361_s9, 8192 }
  0x62   :  { %p6681_p4 = scmp.ne.s32.totalorder %s8361_s9, %s6680_s30  ;;  %p6684_p5 = scmp.lt.u32.totalorder %s6680_s30, %s8361_s9 }
  0x64   :  { %p6686_p6 = pnand %p6684_p5, %p6681_p4 }
  0x66   :  { %6689 = shalt.err (!%p6686_p6)
}
  0x67   :  { %s6690_s7 = scalar_lea.vmem %s139_s28, 8192  ;;  %p6695_p8 = scmp.lt.s32.totalorder %s139_s28, %s139_s28 }
  0x68   :  { %p6691_p7 = scmp.ne.s32.totalorder %s139_s28, %s6690_s7  ;;  %p6696_p9 = scmp.lt.s32.totalorder %s6690_s7, %s6690_s7 }
  0x6a   :  { %p6697_p10 = por %p6696_p9, %p6695_p8 }
  0x6c   :  { %p6698_p11 = pnand %p6697_p10, %p6691_p7 }
  0x6e   :  { %6701 = shalt.err (!%p6698_p11)
}
  0x6f   :  { %s7066_s20 = smov 128   ;;  %s7067_s5 = smov 8  }
  0x70   :  { %144 = dma.hbm_to_vmem [thread:$0]  %s8361_s9, 8192, %s139_s28, [#allocation18], %s7066_s20, %s7066_s20, %s7067_s5  }
  0x71   :  { %s6702_s29 = scalar_lea.hbm %s8363_s11, 4096 }
  0x72   :  { %p6703_p12 = scmp.ne.s32.totalorder %s8363_s11, %s6702_s29  ;;  %p6706_p13 = scmp.lt.u32.totalorder %s6702_s29, %s8363_s11 }
  0x74   :  { %p6708_p0 = pnand %p6706_p13, %p6703_p12 }
  0x76   :  { %6711 = shalt.err (!%p6708_p0)
}
  0x77   :  { %s6712_s3 = scalar_lea.vmem %s7250_s22, 4096  ;;  %p6717_p2 = scmp.lt.s32.totalorder %s7250_s22, %s7250_s22 }
  0x78   :  { %p6713_p1 = scmp.ne.s32.totalorder %s7250_s22, %s6712_s3  ;;  %p6718_p3 = scmp.lt.s32.totalorder %s6712_s3, %s6712_s3 }
  0x7a   :  { %p6719_p4 = por %p6718_p3, %p6717_p2 }
  0x7c   :  { %p6720_p5 = pnand %p6719_p4, %p6713_p1 }
  0x7e   :  { %6723 = shalt.err (!%p6720_p5)
}
  0x7f   :  { %166 = dma.hbm_to_vmem [thread:$0]  %s8363_s11, 4096, %s7250_s22, [#allocation21], %s7066_s20, %s7066_s20, %s7067_s5  }
  0x80   :  { %s7068_s19 = smov [#allocation23]   ;;  %s7069_s7 = smov [#allocation26]  }
  0x81   :  { %s183_s26 = sshll.u32 %s7068_s19, 4  ;;  %s202_s0 = sshll.u32 %s7069_s7, 4  ;;  %s184_s26 = int_to_ptr.vmem [resolvable:$true] %s183_s26  ;;  %s7287_s0 = int_to_ptr.vmem [resolvable:$true] %s202_s0 }
  0x82   :  { %s6724_s27 = scalar_lea.hbm %s8365_s13, 64 }
  0x83   :  { %p6725_p6 = scmp.ne.s32.totalorder %s8365_s13, %s6724_s27  ;;  %p6728_p7 = scmp.lt.u32.totalorder %s6724_s27, %s8365_s13 }
  0x85   :  { %p6730_p8 = pnand %p6728_p7, %p6725_p6 }
  0x87   :  { %6733 = shalt.err (!%p6730_p8)
}
  0x88   :  { %s6734_s11 = scalar_lea.vmem %s184_s26, 64  ;;  %p6739_p10 = scmp.lt.s32.totalorder %s184_s26, %s184_s26 }
  0x89   :  { %p6735_p9 = scmp.ne.s32.totalorder %s184_s26, %s6734_s11  ;;  %p6740_p11 = scmp.lt.s32.totalorder %s6734_s11, %s6734_s11 }
  0x8b   :  { %p6741_p12 = por %p6740_p11, %p6739_p10 }
  0x8d   :  { %p6742_p13 = pnand %p6741_p12, %p6735_p9 }
  0x8f   :  { %6745 = shalt.err (!%p6742_p13)
}
  0x90   :  { %186 = dma.hbm_to_vmem [thread:$0]  %s8365_s13, 64, %s184_s26, [#allocation24]  }
  0x91   :  { %s6746_s28 = scalar_lea.hbm %s8367_s15, 512 }
  0x92   :  { %p6747_p0 = scmp.ne.s32.totalorder %s8367_s15, %s6746_s28  ;;  %p6750_p1 = scmp.lt.u32.totalorder %s6746_s28, %s8367_s15 }
  0x94   :  { %p6752_p2 = pnand %p6750_p1, %p6747_p0 }
  0x96   :  { %6755 = shalt.err (!%p6752_p2)
}
  0x97   :  { %s6756_s27 = scalar_lea.vmem %s7287_s0, 512  ;;  %p6761_p4 = scmp.lt.s32.totalorder %s7287_s0, %s7287_s0 }
  0x98   :  { %p6757_p3 = scmp.ne.s32.totalorder %s7287_s0, %s6756_s27  ;;  %p6762_p5 = scmp.lt.s32.totalorder %s6756_s27, %s6756_s27 }
  0x9a   :  { %p6763_p6 = por %p6762_p5, %p6761_p4 }
  0x9c   :  { %p6764_p7 = pnand %p6763_p6, %p6757_p3 }
  0x9e   :  { %6767 = shalt.err (!%p6764_p7)
}
  0x9f   :  { %s8429_s13 = smov 64   ;;  %s7070_s24 = smov [#allocation29]  }
  0xa0   :  { %208 = dma.hbm_to_vmem [thread:$0]  %s8367_s15, 512, %s7287_s0, [#allocation27], %s8429_s13, %s8429_s13, %s7057_s2  }
  0xa1   :  { %s224_s25 = sshll.u32 %s7070_s24, 4  ;;  %s7071_s30 = smov [#allocation2]   ;;  %s225_s25 = int_to_ptr.vmem [resolvable:$true] %s224_s25 }
  0xa2   :  { %s40_s11 = sshll.u32 %s7071_s30, 4  ;;  %s6768_s3 = scalar_lea.hbm %s8369_s17, 1024  ;;  %s7321_s11 = int_to_ptr.vmem [resolvable:$true] %s40_s11 }
  0xa3   :  { %p6769_p8 = scmp.ne.s32.totalorder %s8369_s17, %s6768_s3  ;;  %p6772_p9 = scmp.lt.u32.totalorder %s6768_s3, %s8369_s17 }
  0xa5   :  { %p6774_p10 = pnand %p6772_p9, %p6769_p8 }
  0xa7   :  { %6777 = shalt.err (!%p6774_p10)
}
  0xa8   :  { %s6778_s15 = scalar_lea.vmem %s225_s25, 1024  ;;  %p6783_p12 = scmp.lt.s32.totalorder %s225_s25, %s225_s25 }
  0xa9   :  { %p6779_p11 = scmp.ne.s32.totalorder %s225_s25, %s6778_s15  ;;  %p6784_p13 = scmp.lt.s32.totalorder %s6778_s15, %s6778_s15 }
  0xab   :  { %p6785_p0 = por %p6784_p13, %p6783_p12 }
  0xad   :  { %p6786_p1 = pnand %p6785_p0, %p6779_p11 }
  0xaf   :  { %6789 = shalt.err (!%p6786_p1)
}
  0xb0   :  { %230 = dma.hbm_to_vmem [thread:$0]  %s8369_s17, 1024, %s225_s25, [#allocation30], %s8429_s13, %s8429_s13, %s7057_s2  }
  0xb1   :  { %s8430_s26 = sld [smem:[#allocation83_spill]] }
  0xb7   :  { %s6790_s29 = scalar_lea.hbm %s8430_s26, 2048 }
  0xb8   :  { %p6791_p2 = scmp.ne.s32.totalorder %s8430_s26, %s6790_s29  ;;  %p6794_p3 = scmp.lt.u32.totalorder %s6790_s29, %s8430_s26 }
  0xba   :  { %p6796_p4 = pnand %p6794_p3, %p6791_p2 }
  0xbc   :  { %6799 = shalt.err (!%p6796_p4)
}
  0xbd   :  { %s6800_s3 = scalar_lea.vmem %s7321_s11, 2048  ;;  %p6805_p6 = scmp.lt.s32.totalorder %s7321_s11, %s7321_s11 }
  0xbe   :  { %p6801_p5 = scmp.ne.s32.totalorder %s7321_s11, %s6800_s3  ;;  %p6806_p7 = scmp.lt.s32.totalorder %s6800_s3, %s6800_s3 }
  0xc0   :  { %p6807_p8 = por %p6806_p7, %p6805_p6 }
  0xc2   :  { %p6808_p9 = pnand %p6807_p8, %p6801_p5 }
  0xc4   :  { %6811 = shalt.err (!%p6808_p9)
}
  0xc5   :  { %46 = dma.hbm_to_vmem [thread:$0]  %s8430_s26, 2048, %s7321_s11, [#allocation3], %s7066_s20, %s7066_s20, %s7067_s5  }
  0xc6   :  { %s7072_s13 = smov [#allocation7]   ;;  %s7073_s9 = smov [#allocation10]  }
  0xc7   :  { %s63_s25 = sshll.u32 %s7072_s13, 4  ;;  %s85_s28 = sshll.u32 %s7073_s9, 4  ;;  %s64_s25 = int_to_ptr.vmem [resolvable:$true] %s63_s25  ;;  %s86_s28 = int_to_ptr.vmem [resolvable:$true] %s85_s28 }
  0xc8   :  { %s8431_s15 = sld [smem:[#allocation85_spill]] }
  0xce   :  { %s6812_s0 = scalar_lea.hbm %s8431_s15, 16 }
  0xcf   :  { %p6813_p10 = scmp.ne.s32.totalorder %s8431_s15, %s6812_s0  ;;  %p6816_p11 = scmp.lt.u32.totalorder %s6812_s0, %s8431_s15 }
  0xd1   :  { %p6818_p12 = pnand %p6816_p11, %p6813_p10 }
  0xd3   :  { %6821 = shalt.err (!%p6818_p12)
}
  0xd4   :  { %s6822_s20 = scalar_lea.vmem %s64_s25, 16  ;;  %s6826_s5 = scalar_lea.vmem %s64_s25, 32 }
  0xd5   :  { %p6823_p13 = scmp.ne.s32.totalorder %s64_s25, %s6822_s20  ;;  %p6827_p0 = scmp.lt.s32.totalorder %s64_s25, %s64_s25 }
  0xd6   :  { %p6828_p1 = scmp.lt.s32.totalorder %s6826_s5, %s6822_s20 }
  0xd8   :  { %p6829_p2 = por %p6828_p1, %p6827_p0 }
  0xda   :  { %p6830_p3 = pnand %p6829_p2, %p6823_p13 }
  0xdc   :  { %6833 = shalt.err (!%p6830_p3)
}
  0xdd   :  { %66 = dma.hbm_to_vmem [thread:$0]  %s8431_s15, 16, %s64_s25, [#allocation6]  }
  0xde   :  { %s6834_s22 = scalar_lea.hbm %s8356_s4, 16 }
  0xdf   :  { %p6835_p4 = scmp.ne.s32.totalorder %s8356_s4, %s6834_s22  ;;  %p6838_p5 = scmp.lt.u32.totalorder %s6834_s22, %s8356_s4 }
  0xe1   :  { %p6840_p6 = pnand %p6838_p5, %p6835_p4 }
  0xe3   :  { %6843 = shalt.err (!%p6840_p6)
}
  0xe4   :  { %s6844_s13 = scalar_lea.vmem %s86_s28, 16  ;;  %s6848_s9 = scalar_lea.vmem %s86_s28, 32 }
  0xe5   :  { %p6845_p7 = scmp.ne.s32.totalorder %s86_s28, %s6844_s13  ;;  %p6849_p8 = scmp.lt.s32.totalorder %s86_s28, %s86_s28 }
  0xe6   :  { %p6850_p9 = scmp.lt.s32.totalorder %s6848_s9, %s6844_s13 }
  0xe8   :  { %p6851_p10 = por %p6850_p9, %p6849_p8 }
  0xea   :  { %p6852_p11 = pnand %p6851_p10, %p6845_p7 }
  0xec   :  { %6855 = shalt.err (!%p6852_p11)
}
  0xed   :  { %88 = dma.hbm_to_vmem [thread:$0]  %s8356_s4, 16, %s86_s28, [#allocation9]  }
  0xee   :  { %s7074_s7 = smov [#allocation13]   ;;  %s7075_s0 = smov [#allocation16]  }
  0xef   :  { %s107_s15 = sshll.u32 %s7074_s7, 4  ;;  %s129_s21 = sshll.u32 %s7075_s0, 4  ;;  %s108_s15 = int_to_ptr.vmem [resolvable:$true] %s107_s15  ;;  %s130_s21 = int_to_ptr.vmem [resolvable:$true] %s129_s21 }
  0xf0   :  { %s6856_s29 = scalar_lea.hbm %s8358_s6, 128 }
  0xf1   :  { %p6857_p12 = scmp.ne.s32.totalorder %s8358_s6, %s6856_s29  ;;  %p6860_p13 = scmp.lt.u32.totalorder %s6856_s29, %s8358_s6 }
  0xf3   :  { %p6862_p0 = pnand %p6860_p13, %p6857_p12 }
  0xf5   :  { %6865 = shalt.err (!%p6862_p0)
}
  0xf6   :  { %s6866_s4 = scalar_lea.vmem %s108_s15, 128  ;;  %p6871_p2 = scmp.lt.s32.totalorder %s108_s15, %s108_s15 }
  0xf7   :  { %p6867_p1 = scmp.ne.s32.totalorder %s108_s15, %s6866_s4  ;;  %p6872_p3 = scmp.lt.s32.totalorder %s6866_s4, %s6866_s4 }
  0xf9   :  { %p6873_p4 = por %p6872_p3, %p6871_p2 }
  0xfb   :  { %p6874_p5 = pnand %p6873_p4, %p6867_p1 }
  0xfd   :  { %6877 = shalt.err (!%p6874_p5)
}
  0xfe   :  { %110 = dma.hbm_to_vmem [thread:$0]  %s8358_s6, 128, %s108_s15, [#allocation12]  }
  0xff   :  { %s6878_s23 = scalar_lea.hbm %s8360_s8, 64 }
 0x100   :  { %p6879_p6 = scmp.ne.s32.totalorder %s8360_s8, %s6878_s23  ;;  %p6882_p7 = scmp.lt.u32.totalorder %s6878_s23, %s8360_s8 }
 0x102   :  { %p6884_p8 = pnand %p6882_p7, %p6879_p6 }
 0x104   :  { %6887 = shalt.err (!%p6884_p8)
}
 0x105   :  { %s6888_s9 = scalar_lea.vmem %s130_s21, 64  ;;  %p6893_p10 = scmp.lt.s32.totalorder %s130_s21, %s130_s21 }
 0x106   :  { %p6889_p9 = scmp.ne.s32.totalorder %s130_s21, %s6888_s9  ;;  %p6894_p11 = scmp.lt.s32.totalorder %s6888_s9, %s6888_s9 }
 0x108   :  { %p6895_p12 = por %p6894_p11, %p6893_p10 }
 0x10a   :  { %p6896_p13 = pnand %p6895_p12, %p6889_p9 }
 0x10c   :  { %6899 = shalt.err (!%p6896_p13)
}
 0x10d   :  { %132 = dma.hbm_to_vmem [thread:$0]  %s8360_s8, 64, %s130_s21, [#allocation15]  }
 0x10e   :  { %s7076_s19 = smov [#allocation19]   ;;  %s7077_s15 = smov [#allocation22]  }
 0x10f   :  { %s151_s7 = sshll.u32 %s7076_s19, 4  ;;  %s173_s0 = sshll.u32 %s7077_s15, 4  ;;  %s152_s7 = int_to_ptr.vmem [resolvable:$true] %s151_s7  ;;  %s174_s0 = int_to_ptr.vmem [resolvable:$true] %s173_s0 }
 0x110   :  { %s6900_s29 = scalar_lea.hbm %s8362_s10, 32 }
 0x111   :  { %p6901_p0 = scmp.ne.s32.totalorder %s8362_s10, %s6900_s29  ;;  %p6904_p1 = scmp.lt.u32.totalorder %s6900_s29, %s8362_s10 }
 0x113   :  { %p6906_p2 = pnand %p6904_p1, %p6901_p0 }
 0x115   :  { %6909 = shalt.err (!%p6906_p2)
}
 0x116   :  { %s6910_s8 = scalar_lea.vmem %s152_s7, 32  ;;  %p6915_p4 = scmp.lt.s32.totalorder %s152_s7, %s152_s7 }
 0x117   :  { %p6911_p3 = scmp.ne.s32.totalorder %s152_s7, %s6910_s8  ;;  %p6916_p5 = scmp.lt.s32.totalorder %s6910_s8, %s6910_s8 }
 0x119   :  { %p6917_p6 = por %p6916_p5, %p6915_p4 }
 0x11b   :  { %p6918_p7 = pnand %p6917_p6, %p6911_p3 }
 0x11d   :  { %6921 = shalt.err (!%p6918_p7)
}
 0x11e   :  { %154 = dma.hbm_to_vmem [thread:$0]  %s8362_s10, 32, %s152_s7, [#allocation18]  }
 0x11f   :  { %s6922_s30 = scalar_lea.hbm %s8364_s12, 16 }
 0x120   :  { %p6923_p8 = scmp.ne.s32.totalorder %s8364_s12, %s6922_s30  ;;  %p6926_p9 = scmp.lt.u32.totalorder %s6922_s30, %s8364_s12 }
 0x122   :  { %p6928_p10 = pnand %p6926_p9, %p6923_p8 }
 0x124   :  { %6931 = shalt.err (!%p6928_p10)
}
 0x125   :  { %s6932_s2 = scalar_lea.vmem %s174_s0, 16  ;;  %s6936_s13 = scalar_lea.vmem %s174_s0, 32 }
 0x126   :  { %p6933_p11 = scmp.ne.s32.totalorder %s174_s0, %s6932_s2  ;;  %p6937_p12 = scmp.lt.s32.totalorder %s174_s0, %s174_s0 }
 0x127   :  { %p6938_p13 = scmp.lt.s32.totalorder %s6936_s13, %s6932_s2 }
 0x129   :  { %p6939_p0 = por %p6938_p13, %p6937_p12 }
 0x12b   :  { %p6940_p1 = pnand %p6939_p0, %p6933_p11 }
 0x12d   :  { %6943 = shalt.err (!%p6940_p1)
}
 0x12e   :  { %176 = dma.hbm_to_vmem [thread:$0]  %s8364_s12, 16, %s174_s0, [#allocation21]  }
 0x12f   :  { %s7078_s6 = smov [#allocation25]   ;;  %s7079_s19 = smov [#allocation28]  }
 0x130   :  { %s193_s25 = sshll.u32 %s7078_s6, 4  ;;  %s215_s7 = sshll.u32 %s7079_s19, 4  ;;  %s194_s25 = int_to_ptr.vmem [resolvable:$true] %s193_s25  ;;  %s216_s7 = int_to_ptr.vmem [resolvable:$true] %s215_s7 }
 0x131   :  { %s6944_s27 = scalar_lea.hbm %s8366_s14, 16 }
 0x132   :  { %p6945_p2 = scmp.ne.s32.totalorder %s8366_s14, %s6944_s27  ;;  %p6948_p3 = scmp.lt.u32.totalorder %s6944_s27, %s8366_s14 }
 0x134   :  { %p6950_p4 = pnand %p6948_p3, %p6945_p2 }
 0x136   :  { %6953 = shalt.err (!%p6950_p4)
}
 0x137   :  { %s6954_s12 = scalar_lea.vmem %s194_s25, 16  ;;  %s6958_s0 = scalar_lea.vmem %s194_s25, 32 }
 0x138   :  { %p6955_p5 = scmp.ne.s32.totalorder %s194_s25, %s6954_s12  ;;  %p6959_p6 = scmp.lt.s32.totalorder %s194_s25, %s194_s25 }
 0x139   :  { %p6960_p7 = scmp.lt.s32.totalorder %s6958_s0, %s6954_s12 }
 0x13b   :  { %p6961_p8 = por %p6960_p7, %p6959_p6 }
 0x13d   :  { %p6962_p9 = pnand %p6961_p8, %p6955_p5 }
 0x13f   :  { %6965 = shalt.err (!%p6962_p9)
}
 0x140   :  { %196 = dma.hbm_to_vmem [thread:$0]  %s8366_s14, 16, %s194_s25, [#allocation24]  }
 0x141   :  { %s6966_s28 = scalar_lea.hbm %s8368_s16, 16 }
 0x142   :  { %p6967_p10 = scmp.ne.s32.totalorder %s8368_s16, %s6966_s28  ;;  %p6970_p11 = scmp.lt.u32.totalorder %s6966_s28, %s8368_s16 }
 0x144   :  { %p6972_p12 = pnand %p6970_p11, %p6967_p10 }
 0x146   :  { %6975 = shalt.err (!%p6972_p12)
}
 0x147   :  { %s6976_s3 = scalar_lea.vmem %s216_s7, 16  ;;  %s6980_s17 = scalar_lea.vmem %s216_s7, 32 }
 0x148   :  { %p6977_p13 = scmp.ne.s32.totalorder %s216_s7, %s6976_s3  ;;  %p6981_p0 = scmp.lt.s32.totalorder %s216_s7, %s216_s7 }
 0x149   :  { %p6982_p1 = scmp.lt.s32.totalorder %s6980_s17, %s6976_s3 }
 0x14b   :  { %p6983_p2 = por %p6982_p1, %p6981_p0 }
 0x14d   :  { %p6984_p3 = pnand %p6983_p2, %p6977_p13 }
 0x14f   :  { %6987 = shalt.err (!%p6984_p3)
}
 0x150   :  { %218 = dma.hbm_to_vmem [thread:$0]  %s8368_s16, 16, %s216_s7, [#allocation27]  }
 0x151   :  { %s7080_s13 = smov [#allocation31]   ;;  %s6988_s25 = scalar_lea.hbm %s8370_s18, 16 }
 0x152   :  { %s237_s10 = sshll.u32 %s7080_s13, 4  ;;  %p6989_p4 = scmp.ne.s32.totalorder %s8370_s18, %s6988_s25  ;;  %s238_s10 = int_to_ptr.vmem [resolvable:$true] %s237_s10 }
 0x153   :  { %p6992_p5 = scmp.lt.u32.totalorder %s6988_s25, %s8370_s18 }
 0x155   :  { %p6994_p6 = pnand %p6992_p5, %p6989_p4 }
 0x157   :  { %6997 = shalt.err (!%p6994_p6)
}
 0x158   :  { %s6998_s29 = scalar_lea.vmem %s238_s10, 16  ;;  %s7002_s16 = scalar_lea.vmem %s238_s10, 32 }
 0x159   :  { %p6999_p7 = scmp.ne.s32.totalorder %s238_s10, %s6998_s29  ;;  %p7003_p8 = scmp.lt.s32.totalorder %s238_s10, %s238_s10 }
 0x15a   :  { %p7004_p9 = scmp.lt.s32.totalorder %s7002_s16, %s6998_s29 }
 0x15c   :  { %p7005_p10 = por %p7004_p9, %p7003_p8 }
 0x15e   :  { %p7006_p11 = pnand %p7005_p10, %p6999_p7 }
 0x160   :  { %7009 = shalt.err (!%p7006_p11)
}
 0x161   :  { %240 = dma.hbm_to_vmem [thread:$0]  %s8370_s18, 16, %s238_s10, [#allocation30]  }
 0x162   :  { %7032 = dma.done.wait [#allocation3], 2048  }
 0x163   :  { %7033 = vsyncadd [#allocation3], 4294965248 }
 0x164   :  { %7034 = dma.done.wait [#allocation6], 80  }
 0x165   :  { %7035 = vsyncadd [#allocation6], 4294967216 }
 0x166   :  { %7036 = dma.done.wait [#allocation9], 528  }
 0x167   :  { %7037 = vsyncadd [#allocation9], 4294966768 }
 0x168   :  { %7038 = dma.done.wait [#allocation12], 8320  }
 0x169   :  { %7039 = vsyncadd [#allocation12], 4294958976 }
 0x16a   :  { %7040 = dma.done.wait [#allocation15], 32832  }
 0x16b   :  { %7041 = vsyncadd [#allocation15], 4294934464 }
 0x16c   :  { %7042 = dma.done.wait [#allocation18], 8224  }
 0x16d   :  { %7043 = vsyncadd [#allocation18], 4294959072 }
 0x16e   :  { %7044 = dma.done.wait [#allocation21], 4112  }
 0x16f   :  { %7045 = vsyncadd [#allocation21], 4294963184 }
 0x170   :  { %7046 = dma.done.wait [#allocation24], 80  }
 0x171   :  { %7047 = vsyncadd [#allocation24], 4294967216 }
 0x172   :  { %7048 = dma.done.wait [#allocation27], 528  }
 0x173   :  { %7049 = vsyncadd [#allocation27], 4294966768 }
 0x174   :  { %7050 = dma.done.wait [#allocation30], 1040  }
 0x175   :  { %7051 = vsyncadd [#allocation30], 4294966256  ;;  %v7081_v0 = vmov 1   ;;  %v8380_v1 = vmov 0   ;;  %v299_v2 = vld [vmem:[#allocation2] sm:$0xff]  ;;  %v300_v3 = vld [vmem:[#allocation2 + $0x8] sm:$0xff]  ;;  %v396_v25 = vlaneseq }
 0x176   :  { %6062 = vset.pattern.permute.xlu1 %v7081_v0  ;;  %6061 = vset.pattern.permute.xlu0 %v8380_v1  ;;  %v301_v4 = vld [vmem:[#allocation2 + $0x10] sm:$0xff]  ;;  %v302_v5 = vld [vmem:[#allocation2 + $0x18] sm:$0xff]  ;;  %v304_v6 = vld [vmem:[#allocation2 + $0x28] sm:$0xff]  ;;  %v8379_v8 = vmov 2   ;;  %vm702_vm0 = vcmask 523264   ;;  %vm2436_vm1 = vcmask 1041409  }
 0x177   :  { %1306 = vmatprep.mubr.bf16.mxu1 %v8380_v1  ;;  %417 = vperm.xlu1 %6062, %v299_v2   ;;  %v305_v7 = vld [vmem:[#allocation2 + $0x30] sm:$0xff]  ;;  %v6096_v9 = vld [vmem:[#allocation8] sm:$0xff]   ;;  %v306_v13 = vld [vmem:[#allocation2 + $0x38] sm:$0xff]  ;;  %v7501_v28 = vshrl.u32 %v396_v25, 7  ;;  %s7091_s18 = smov [#allocation32]  }
 0x178   :  { %318 = vperm.xlu0 %6061, %v299_v2   ;;  %5877 = vmatprep.subr.bf16.mxu0 %v6096_v9  ;;  %v6097_v10 = vld [vmem:[#allocation8 + $0x8] sm:$0xff]   ;;  %v303_v11 = vld [vmem:[#allocation2 + $0x20] sm:$0xff]  ;;  %v6098_v12 = vld [vmem:[#allocation8 + $0x10] sm:$0xff]   ;;  %s5362_s5 = sshll.u32 %s7091_s18, 4  ;;  %s5363_s5 = int_to_ptr.vmem [resolvable:$true] %s5362_s5 }
 0x179   :  { %5878 = vmatpush3.bf16.msra.mxu0 %v6096_v9  ;;  %v6099_v14 = vld [vmem:[#allocation8 + $0x18] sm:$0xff]   ;;  %v308_v15 = vld [vmem:[#allocation2 + $0x48] sm:$0xff]  ;;  %v309_v16 = vld [vmem:[#allocation2 + $0x50] sm:$0xff]  ;;  %v7509_v31 = vsub.s32 1, %v7501_v28  ;;  %v7512_v32 = vsub.s32 0, %v7501_v28  ;;  %v7517_v35 = vsub.s32 2, %v7501_v28  ;;  %p7015_p13 = scmp.lt.s32.totalorder %s5363_s5, %s5363_s5 }
 0x17a   :  { %5879 = vmatprep.subr.bf16.mxu0 %v6097_v10  ;;  %v311_v17 = vld [vmem:[#allocation2 + $0x60] sm:$0xff]  ;;  %v312_v18 = vld [vmem:[#allocation2 + $0x68] sm:$0xff]  ;;  %v313_v20 = vld [vmem:[#allocation2 + $0x70] sm:$0xff]  ;;  %s7010_s11 = scalar_lea.vmem %s5363_s5, 32 }
 0x17b   :  { %421 = vperm.xlu1 %6062, %v300_v3   ;;  %v307_v19 = vld [vmem:[#allocation2 + $0x40] sm:$0xff]  ;;  %v310_v21 = vld [vmem:[#allocation2 + $0x58] sm:$0xff]  ;;  %v840_v36 = vld [vmem:[#allocation11] sm:$0xff]  ;;  %p7011_p12 = scmp.ne.s32.totalorder %s5363_s5, %s7010_s11  ;;  %p7016_p0 = scmp.lt.s32.totalorder %s7010_s11, %s7010_s11 }
 0x17c   :  { %323 = vperm.xlu0 %6061, %v300_v3   ;;  %v314_v22 = vld [vmem:[#allocation2 + $0x78] sm:$0xff]  ;;  %v315_v33 = vld [vmem:[#allocation5] sm:$0x7]  ;;  %v844_v37 = vld [vmem:[#allocation11 + $0x20] sm:$0xff] }
 0x17d   :  { %5880 = vmatpush3.bf16.msra.mxu0 %v6097_v10  ;;  %v7519_v38 = vld [vmem:[#allocation11 + $0x8] sm:$0xff]  ;;  %v5395_v40 = vcombine.high %v840_v36, %v844_v37  ;;  %v5394_v42 = vcombine.low %v840_v36, %v844_v37  ;;  %v848_v43 = vld [vmem:[#allocation11 + $0x40] sm:$0xff]  ;;  %v7526_v45 = vrot.slane %v315_v33, %v7509_v31  ;;  %v7529_v46 = vrot.slane %v315_v33, %v7512_v32  ;;  %p7017_p1 = por %p7016_p0, %p7015_p13 }
 0x17e   :  { %5881 = vmatprep.subr.bf16.mxu0 %v6098_v12  ;;  %v7523_v41 = vld [vmem:[#allocation11 + $0x28] sm:$0xff]  ;;  %v852_v44 = vld [vmem:[#allocation11 + $0x60] sm:$0xff]  ;;  %v7536_v52 = vrot.slane %v315_v33, %v7517_v35 }
 0x17f   :  { %6063 = vset.pattern.permute.xlu1 %v8380_v1  ;;  %v5397_v47 = vcombine.high %v7519_v38, %v7523_v41  ;;  %v5403_v48 = vcombine.high %v848_v43, %v852_v44  ;;  %v856_v49 = vld [vmem:[#allocation11 + $0x80] sm:$0xff]  ;;  %1274 = vmatprep.subr.bf16.mxu1 %v5395_v40  ;;  %v5402_v53 = vcombine.low %v848_v43, %v852_v44  ;;  %p7018_p2 = pnand %p7017_p1, %p7011_p12 }
 0x180   :  { %328 = vperm.xlu0 %6061, %v301_v4   ;;  %333 = vperm.xlu1 %6063, %v302_v5   ;;  %v860_v50 = vld [vmem:[#allocation11 + $0xa0] sm:$0xff] }
 0x181   :  { %5882 = vmatpush3.bf16.msra.mxu0 %v6098_v12  ;;  %1275 = vmatpush1.bf16.msra.mxu1 %v5394_v42  ;;  %v5411_v56 = vcombine.high %v856_v49, %v860_v50  ;;  %v864_v60 = vld [vmem:[#allocation11 + $0xc0] sm:$0xff] }
 0x182   :  { %5883 = vmatprep.subr.bf16.mxu0 %v6099_v14  ;;  %1276 = vmatprep.subr.bf16.mxu1 %v5403_v48  ;;  %v868_v61 = vld [vmem:[#allocation11 + $0xe0] sm:$0xff] }
 0x183   :  { %v872_v9 = vld [vmem:[#allocation11 + $0x100] sm:$0xff] }
 0x184   :  { %6064 = vset.pattern.permute.xlu0 %v7081_v0  ;;  %6065 = vset.pattern.permute.xlu1 %v7081_v0  ;;  %v876_v10 = vld [vmem:[#allocation11 + $0x120] sm:$0xff] }
 0x185   :  { %425 = vperm.xlu0 %6064, %v301_v4   ;;  %429 = vperm.xlu1 %6065, %v302_v5   ;;  %v880_v25 = vld [vmem:[#allocation11 + $0x140] sm:$0xff]  ;;  %v5426_v43 = vcombine.low %v872_v9, %v876_v10 }
 0x186   :  { %5884 = vmatpush3.bf16.msra.mxu0 %v6099_v14  ;;  %1277 = vmatpush1.bf16.msra.mxu1 %v5402_v53  ;;  %v5418_v14 = vcombine.low %v864_v60, %v868_v61  ;;  %v884_v33 = vld [vmem:[#allocation11 + $0x160] sm:$0xff] }
 0x187   :  { %1387 = vmatprep.subr.bf16.mxu0 %v5397_v47  ;;  %1278 = vmatprep.subr.bf16.mxu1 %v5411_v56 }
 0x189   :  { %437 = vperm.xlu0 %6064, %v304_v6   ;;  %6066 = vset.pattern.permute.xlu1 %v8379_v8 }
 0x18a   :  { %517 = vperm.xlu1 %6066, %v299_v2  }
 0x18d   :  { %441 = vperm.xlu0 %6064, %v305_v7  }
 0x18e   :  { %525 = vperm.xlu1 %6066, %v301_v4  }
 0x191   :  { %6070 = vset.pattern.permute.xlu0 %v8379_v8 }
 0x192   :  { %521 = vperm.xlu0 %6070, %v300_v3   ;;  %529 = vperm.xlu1 %6066, %v302_v5   ;;  %v5419_v3 = vcombine.high %v864_v60, %v868_v61  ;;  %v5434_v60 = vcombine.low %v880_v25, %v884_v33 }
 0x196   :  { %533 = vperm.xlu0 %6070, %v303_v11   ;;  %6067 = vset.pattern.permute.xlu1 %v8380_v1 }
 0x197   :  { %343 = vperm.xlu1 %6067, %v304_v6  }
 0x19a   :  { %545 = vperm.xlu0 %6070, %v306_v13  }
 0x19b   :  { %6068 = vset.pattern.permute.xlu1 %v7081_v0 }
 0x19c   :  { %433 = vperm.xlu1 %6068, %v303_v11  }
 0x19e   :  { %553 = vperm.xlu0 %6070, %v308_v15  }
 0x1a0   :  { %6069 = vset.pattern.permute.xlu1 %v8380_v1 }
 0x1a1   :  { %348 = vperm.xlu1 %6069, %v305_v7  }
 0x1a2   :  { %6078 = vset.pattern.permute.xlu0 %v8380_v1 }
 0x1a3   :  { %338 = vperm.xlu0 %6078, %v303_v11  }
 0x1a5   :  { %353 = vperm.xlu1 %6069, %v306_v13  }
 0x1a7   :  { %363 = vperm.xlu0 %6078, %v308_v15  }
 0x1a9   :  { %6071 = vset.pattern.permute.xlu1 %v7081_v0 }
 0x1aa   :  { %445 = vperm.xlu1 %6071, %v306_v13  }
 0x1ab   :  { %368 = vperm.xlu0 %6078, %v309_v16  }
 0x1ae   :  { %6072 = vset.pattern.permute.xlu1 %v8379_v8 }
 0x1af   :  { %378 = vperm.xlu0 %6078, %v311_v17   ;;  %537 = vperm.xlu1 %6072, %v304_v6  }
 0x1b3   :  { %6079 = vset.pattern.permute.xlu0 %v7081_v0  ;;  %541 = vperm.xlu1 %6072, %v305_v7  }
 0x1b4   :  { %457 = vperm.xlu0 %6079, %v309_v16  }
 0x1b7   :  { %6073 = vset.pattern.permute.xlu1 %v8380_v1 }
 0x1b8   :  { %469 = vperm.xlu0 %6079, %v312_v18   ;;  %358 = vperm.xlu1 %6073, %v307_v19  }
 0x1bc   :  { %473 = vperm.xlu0 %6079, %v313_v20   ;;  %6074 = vset.pattern.permute.xlu1 %v7081_v0 }
 0x1bd   :  { %449 = vperm.xlu1 %6074, %v307_v19  }
 0x1c0   :  { %6084 = vset.pattern.permute.xlu0 %v8379_v8 }
 0x1c1   :  { %565 = vperm.xlu0 %6084, %v311_v17   ;;  %453 = vperm.xlu1 %6074, %v308_v15  }
 0x1c5   :  { %577 = vperm.xlu0 %6084, %v314_v22   ;;  %6075 = vset.pattern.permute.xlu1 %v8380_v1 }
 0x1c6   :  { %373 = vperm.xlu1 %6075, %v310_v21  }
 0x1c9   :  { %6087 = vset.pattern.permute.xlu0 %v7081_v0 }
 0x1ca   :  { %6076 = vset.pattern.permute.xlu1 %v7081_v0 }
 0x1cb   :  { %461 = vperm.xlu1 %6076, %v310_v21  }
 0x1cf   :  { %6077 = vset.pattern.permute.xlu1 %v8379_v8 }
 0x1d0   :  { %549 = vperm.xlu1 %6077, %v307_v19   ;;  %v5427_v19 = vcombine.high %v872_v9, %v876_v10  ;;  %v857_v9 = vld [vmem:[#allocation11 + $0x88] sm:$0xff] }
 0x1d1   :  { %v861_v10 = vld [vmem:[#allocation11 + $0xa8] sm:$0xff] }
 0x1d4   :  { %557 = vperm.xlu1 %6077, %v309_v16   ;;  %v7564_v16 = vld [vmem:[#allocation7] ss:$0 sm:$0xff] }
 0x1d8   :  { %561 = vperm.xlu1 %6077, %v310_v21  }
 0x1dc   :  { %6080 = vset.pattern.permute.xlu1 %v8380_v1 }
 0x1dd   :  { %383 = vperm.xlu1 %6080, %v312_v18  }
 0x1e1   :  { %6081 = vset.pattern.permute.xlu1 %v7081_v0 }
 0x1e2   :  { %465 = vperm.xlu1 %6081, %v311_v17  }
 0x1e6   :  { %6082 = vset.pattern.permute.xlu1 %v8380_v1 }
 0x1e7   :  { %388 = vperm.xlu1 %6082, %v313_v20  }
 0x1eb   :  { %393 = vperm.xlu1 %6082, %v314_v22  }
 0x1ef   :  { %6083 = vset.pattern.permute.xlu1 %v7081_v0  ;;  %v5410_v0 = vcombine.low %v856_v49, %v860_v50  ;;  %v5435_v49 = vcombine.high %v880_v25, %v884_v33 }
 0x1f0   :  { %477 = vperm.xlu1 %6083, %v314_v22  }
 0x1f1   :  { %1279 = vmatpush1.bf16.msra.mxu1 %v5410_v0 }
 0x1f2   :  { %1280 = vmatprep.subr.bf16.mxu1 %v5419_v3  ;;  %v5396_v3 = vcombine.low %v7519_v38, %v7523_v41  ;;  %v5412_v41 = vcombine.low %v857_v9, %v861_v10 }
 0x1f4   :  { %6085 = vset.pattern.permute.xlu1 %v8379_v8 }
 0x1f5   :  { %569 = vperm.xlu1 %6085, %v312_v18   ;;  %1281 = vmatpush1.bf16.msra.mxu1 %v5418_v14  ;;  %v865_v14 = vld [vmem:[#allocation11 + $0xc8] sm:$0xff] }
 0x1f6   :  { %v7493_v23 = vpop.permute.xlu1 %417  ;;  %1282 = vmatprep.subr.bf16.mxu1 %v5427_v19 }
 0x1f7   :  { %v7495_v24 = vpop.permute.xlu0 %318  ;;  %v484_v57 = vmul.f32 %v7526_v45, %v7493_v23 }
 0x1f8   :  { %v400_v58 = vmul.f32 %v7529_v46, %v7495_v24 }
 0x1f9   :  { %573 = vperm.xlu1 %6085, %v313_v20   ;;  %1283 = vmatpush1.bf16.msra.mxu1 %v5426_v43  ;;  %v885_v43 = vld [vmem:[#allocation11 + $0x168] sm:$0xff] }
 0x1fa   :  { %v7497_v26 = vpop.permute.xlu1 %421  ;;  %v500_v4 = vadd.f32 %v484_v57, %v400_v58  ;;  %v849_v57 = vld [vmem:[#allocation11 + $0x48] sm:$0xff]  ;;  %1284 = vmatprep.subr.bf16.mxu1 %v5435_v49 }
 0x1fb   :  { %8432 = vst [vmem:[#allocation44_spill] sm:$0xff] %v7497_v26  ;;  %v7499_v27 = vpop.permute.xlu0 %323  ;;  %v485_v5 = vmul.f32 %v7526_v45, %v7497_v26  ;;  %v853_v58 = vld [vmem:[#allocation11 + $0x68] sm:$0xff] }
 0x1fc   :  { %v401_v6 = vmul.f32 %v7529_v46, %v7499_v27 }
 0x1fd   :  { %6086 = vset.pattern.permute.xlu1 %v8380_v1  ;;  %1285 = vmatpush1.bf16.msra.mxu1 %v5434_v60 }
 0x1fe   :  { %v501_v20 = vadd.f32 %v485_v5, %v401_v6  ;;  %v5405_v5 = vcombine.high %v849_v57, %v853_v58 }
 0x1ff   :  { %v7504_v29 = vpop.permute.xlu0 %328  ;;  %v7506_v30 = vpop.permute.xlu1 %333 }
 0x200   :  { %v402_v54 = vmul.f32 %v7529_v46, %v7504_v29  ;;  %v403_v15 = vmul.f32 %v7529_v46, %v7506_v30 }
 0x204   :  { %v7514_v34 = vpop.permute.xlu0 %425  ;;  %v7521_v39 = vpop.permute.xlu1 %429 }
 0x205   :  { %8433 = vst [vmem:[#allocation45_spill] sm:$0xff] %v7514_v34  ;;  %8434 = vst [vmem:[#allocation46_spill] sm:$0xff] %v7521_v39  ;;  %v486_v55 = vmul.f32 %v7526_v45, %v7514_v34  ;;  %v487_v11 = vmul.f32 %v7526_v45, %v7521_v39 }
 0x207   :  { %v502_v2 = vadd.f32 %v486_v55, %v402_v54  ;;  %v503_v36 = vadd.f32 %v487_v11, %v403_v15  ;;  %v869_v15 = vld [vmem:[#allocation11 + $0xe8] sm:$0xff] }
 0x208   :  { %v7533_v51 = vpop.permute.xlu0 %437  ;;  %v5421_v19 = vcombine.high %v865_v14, %v869_v15 }
 0x209   :  { %8435 = vst [vmem:[#allocation47_spill] sm:$0xff] %v7533_v51  ;;  %v7546_v59 = vpop.permute.xlu1 %517 }
 0x20a   :  { %8436 = vst [vmem:[#allocation48_spill] sm:$0xff] %v7546_v59  ;;  %v584_v62 = vmul.f32 %v7536_v52, %v7546_v59  ;;  %v6184_v59 = vld [vmem:[#allocation14 + $0x1c0] ss:$16 sps:$4 sm:$0xff]  }
 0x20c   :  { %v7550_v63 = vpop.permute.xlu0 %441  ;;  %v600_v13 = vadd.f32 %v584_v62, %v500_v4 }
 0x20d   :  { %8437 = vst [vmem:[#allocation49_spill] sm:$0xff] %v7550_v63  ;;  %v7556_v7 = vpop.permute.xlu1 %525 }
 0x20e   :  { %8438 = vst [vmem:[#allocation50_spill] sm:$0xff] %v7556_v7  ;;  %v586_v12 = vmul.f32 %v7536_v52, %v7556_v7  ;;  %v623_v42 = vadd.f32 %v7564_v16, %v600_v13  ;;  %v5413_v13 = vcombine.high %v857_v9, %v861_v10 }
 0x210   :  { %v602_v17 = vadd.f32 %v586_v12, %v502_v2  ;;  %v639_v55 = vmax.f32 %v623_v42, 0.0  ;;  %v5404_v12 = vcombine.low %v849_v57, %v853_v58  ;;  %v881_v42 = vld [vmem:[#allocation11 + $0x148] sm:$0xff] }
 0x211   :  { %v7566_v18 = vpop.permute.xlu0 %521  ;;  %v7570_v22 = vpop.permute.xlu1 %529 }
 0x212   :  { %8439 = vst [vmem:[#allocation51_spill] sm:$0xff] %v7566_v18  ;;  %v585_v21 = vmul.f32 %v7536_v52, %v7566_v18  ;;  %8440 = vst [vmem:[#allocation52_spill] sm:$0xff] %v7570_v22  ;;  %v587_v37 = vmul.f32 %v7536_v52, %v7570_v22  ;;  %v625_v44 = vadd.f32 %v7564_v16, %v602_v17 }
 0x214   :  { %v601_v40 = vadd.f32 %v585_v21, %v501_v20  ;;  %v603_v47 = vadd.f32 %v587_v37, %v503_v36  ;;  %v641_v61 = vmax.f32 %v625_v44, 0.0  ;;  %v873_v20 = vld [vmem:[#allocation11 + $0x108] sm:$0xff]  ;;  %v5420_v36 = vcombine.low %v865_v14, %v869_v15 }
 0x215   :  { %v7576_v48 = vpop.permute.xlu0 %533  ;;  %v877_v21 = vld [vmem:[#allocation11 + $0x128] sm:$0xff] }
 0x216   :  { %8441 = vst [vmem:[#allocation53_spill] sm:$0xff] %v7576_v48  ;;  %v624_v50 = vadd.f32 %v7564_v16, %v601_v40  ;;  %v626_v53 = vadd.f32 %v7564_v16, %v603_v47  ;;  %v7580_v54 = vpop.permute.xlu1 %343  ;;  %v5429_v37 = vcombine.high %v873_v20, %v877_v21  ;;  %v588_v44 = vmul.f32 %v7536_v52, %v7576_v48 }
 0x217   :  { %v405_v57 = vmul.f32 %v7529_v46, %v7580_v54 }
 0x218   :  { %v640_v56 = vmax.f32 %v624_v50, 0.0  ;;  %v642_v62 = vmax.f32 %v626_v53, 0.0  ;;  %v5428_v50 = vcombine.low %v873_v20, %v877_v21 }
 0x219   :  { %v7582_v0 = vpop.permute.xlu0 %545 }
 0x21a   :  { %8442 = vst [vmem:[#allocation54_spill] sm:$0xff] %v7582_v0  ;;  %v663_v2 = vpack.c.bf16 %v640_v56, %v639_v55  ;;  %v664_v4 = vpack.c.bf16 %v642_v62, %v641_v61  ;;  %v5437_v55 = vcombine.high %v881_v42, %v885_v43  ;;  %v489_v56 = vmul.f32 %v7526_v45, %v7533_v51 }
 0x21b   :  { %v7586_v6 = vpop.permute.xlu1 %433  ;;  %v591_v60 = vmul.f32 %v7536_v52, %v7582_v0  ;;  %v900_v0 = vld [vmem:[#allocation11 + $0x1e0] sm:$0xff] }
 0x21c   :  { %8443 = vst [vmem:[#allocation55_spill] sm:$0xff] %v7586_v6  ;;  %5885 = vmatprep.mubr.msk.bf16.mxu0 %vm702_vm0, %v663_v2  ;;  %v488_v40 = vmul.f32 %v7526_v45, %v7586_v6  ;;  %v5436_v2 = vcombine.low %v881_v42, %v885_v43 }
 0x21d   :  { %5886 = vmatmul.mubr.msk.bf16.vlgmr.msra.gmra.mrb[0].mxu0 %vm702_vm0, %v664_v4  ;;  %v7590_v11 = vpop.permute.xlu0 %553  ;;  %v490_v4 = vmul.f32 %v7526_v45, %v7550_v63 }
 0x21e   :  { %8444 = vst [vmem:[#allocation56_spill] sm:$0xff] %v7590_v11  ;;  %1388 = vmatpush1.bf16.msra.mxu0 %v5396_v3 }
 0x21f   :  { %1389 = vmatprep.subr.bf16.mxu0 %v5405_v5  ;;  %v505_v5 = vadd.f32 %v489_v56, %v405_v57 }
 0x220   :  { %v7592_v38 = vpop.permute.xlu1 %348 }
 0x221   :  { %v406_v9 = vmul.f32 %v7529_v46, %v7592_v38 }
 0x222   :  { %1390 = vmatpush1.bf16.msra.mxu0 %v5404_v12  ;;  %v7594_v17 = vpop.permute.xlu0 %338 }
 0x223   :  { %1391 = vmatprep.subr.bf16.mxu0 %v5413_v13  ;;  %v404_v33 = vmul.f32 %v7529_v46, %v7594_v17 }
 0x224   :  { %v7596_v25 = vpop.permute.xlu1 %353 }
 0x225   :  { %v504_v47 = vadd.f32 %v488_v40, %v404_v33  ;;  %v407_v58 = vmul.f32 %v7529_v46, %v7596_v25 }
 0x226   :  { %1392 = vmatpush1.bf16.msra.mxu0 %v5412_v41  ;;  %v506_v41 = vadd.f32 %v490_v4, %v406_v9 }
 0x227   :  { %1393 = vmatprep.subr.bf16.mxu0 %v5421_v19  ;;  %v604_v61 = vadd.f32 %v588_v44, %v504_v47 }
 0x229   :  { %v7604_v49 = vpop.permute.xlu1 %445  ;;  %v627_v12 = vadd.f32 %v7564_v16, %v604_v61 }
 0x22a   :  { %8445 = vst [vmem:[#allocation57_spill] sm:$0xff] %v7604_v49  ;;  %1394 = vmatpush1.bf16.msra.mxu0 %v5420_v36  ;;  %v491_v53 = vmul.f32 %v7526_v45, %v7604_v49 }
 0x22b   :  { %1395 = vmatprep.subr.bf16.mxu0 %v5429_v37  ;;  %v643_v21 = vmax.f32 %v627_v12, 0.0 }
 0x22c   :  { %v507_v62 = vadd.f32 %v491_v53, %v407_v58  ;;  %v7635_v53 = vpop.permute.xlu0 %363 }
 0x22d   :  { %8449 = vst [vmem:[#allocation61_spill] sm:$0xff] %v7635_v53 }
 0x22e   :  { %1396 = vmatpush1.bf16.msra.mxu0 %v5428_v50  ;;  %v7616_v3 = vpop.permute.xlu1 %537  ;;  %v607_v13 = vadd.f32 %v591_v60, %v507_v62  ;;  %v409_v62 = vmul.f32 %v7529_v46, %v7635_v53 }
 0x22f   :  { %8446 = vst [vmem:[#allocation58_spill] sm:$0xff] %v7616_v3  ;;  %1397 = vmatprep.subr.bf16.mxu0 %v5437_v55  ;;  %v589_v10 = vmul.f32 %v7536_v52, %v7616_v3 }
 0x230   :  { %v630_v33 = vadd.f32 %v7564_v16, %v607_v13  ;;  %v7640_v56 = vpop.permute.xlu0 %368 }
 0x231   :  { %v605_v14 = vadd.f32 %v589_v10, %v505_v5  ;;  %8451 = vst [vmem:[#allocation63_spill] sm:$0xff] %v7640_v56 }
 0x232   :  { %1398 = vmatpush1.bf16.msra.mxu0 %v5436_v2  ;;  %v7625_v15 = vpop.permute.xlu1 %541  ;;  %v646_v44 = vmax.f32 %v630_v33, 0.0  ;;  %v593_v2 = vmul.f32 %v7536_v52, %v7590_v11 }
 0x233   :  { %8447 = vst [vmem:[#allocation59_spill] sm:$0xff] %v7625_v15  ;;  %v628_v19 = vadd.f32 %v7564_v16, %v605_v14  ;;  %v590_v20 = vmul.f32 %v7536_v52, %v7625_v15  ;;  %v410_v14 = vmul.f32 %v7529_v46, %v7640_v56 }
 0x234   :  { %v7646_v60 = vpop.permute.xlu0 %378 }
 0x235   :  { %v644_v36 = vmax.f32 %v628_v19, 0.0  ;;  %v606_v37 = vadd.f32 %v590_v20, %v506_v41  ;;  %8454 = vst [vmem:[#allocation66_spill] sm:$0xff] %v7646_v60 }
 0x237   :  { %v629_v40 = vadd.f32 %v7564_v16, %v606_v37  ;;  %v7632_v42 = vpop.permute.xlu1 %358  ;;  %v665_v43 = vpack.c.bf16 %v644_v36, %v643_v21 }
 0x238   :  { %8448 = vst [vmem:[#allocation60_spill] sm:$0xff] %v7632_v42  ;;  %v7656_v9 = vpop.permute.xlu0 %457  ;;  %v408_v12 = vmul.f32 %v7529_v46, %v7632_v42 }
 0x239   :  { %v645_v47 = vmax.f32 %v629_v40, 0.0  ;;  %5889 = vmatprep.mubr.msk.bf16.mxu0 %vm702_vm0, %v665_v43  ;;  %8456 = vst [vmem:[#allocation68_spill] sm:$0xff] %v7656_v9  ;;  %v494_v41 = vmul.f32 %v7526_v45, %v7656_v9 }
 0x23b   :  { %v666_v50 = vpack.c.bf16 %v646_v44, %v645_v47  ;;  %v510_v37 = vadd.f32 %v494_v41, %v410_v14 }
 0x23c   :  { %v7637_v55 = vpop.permute.xlu1 %449 }
 0x23d   :  { %8450 = vst [vmem:[#allocation62_spill] sm:$0xff] %v7637_v55  ;;  %5890 = vmatmul.mubr.msk.bf16.gmra.mrb[4].mxu0 %vm702_vm0, %v666_v50  ;;  %v492_v10 = vmul.f32 %v7526_v45, %v7637_v55 }
 0x23f   :  { %v508_v20 = vadd.f32 %v492_v10, %v408_v12 }
 0x240   :  { %v7642_v57 = vpop.permute.xlu1 %453 }
 0x241   :  { %8452 = vst [vmem:[#allocation64_spill] sm:$0xff] %v7642_v57  ;;  %v493_v61 = vmul.f32 %v7526_v45, %v7642_v57 }
 0x243   :  { %v509_v4 = vadd.f32 %v493_v61, %v409_v62 }
 0x245   :  { %v7644_v58 = vpop.permute.xlu1 %373  ;;  %v609_v13 = vadd.f32 %v593_v2, %v509_v4 }
 0x246   :  { %8453 = vst [vmem:[#allocation65_spill] sm:$0xff] %v7644_v58  ;;  %v411_v61 = vmul.f32 %v7529_v46, %v7644_v58 }
 0x247   :  { %v632_v33 = vadd.f32 %v7564_v16, %v609_v13 }
 0x249   :  { %v648_v50 = vmax.f32 %v632_v33, 0.0 }
 0x24a   :  { %v7654_v5 = vpop.permute.xlu1 %461 }
 0x24b   :  { %8455 = vst [vmem:[#allocation67_spill] sm:$0xff] %v7654_v5  ;;  %v495_v43 = vmul.f32 %v7526_v45, %v7654_v5 }
 0x24d   :  { %v511_v10 = vadd.f32 %v495_v43, %v411_v61 }
 0x24f   :  { %v7666_v19 = vpop.permute.xlu1 %549 }
 0x250   :  { %8457 = vst [vmem:[#allocation69_spill] sm:$0xff] %v7666_v19  ;;  %v592_v21 = vmul.f32 %v7536_v52, %v7666_v19 }
 0x252   :  { %v608_v36 = vadd.f32 %v592_v21, %v508_v20 }
 0x253   :  { %v7671_v40 = vpop.permute.xlu1 %557 }
 0x254   :  { %8458 = vst [vmem:[#allocation70_spill] sm:$0xff] %v7671_v40  ;;  %v631_v44 = vadd.f32 %v7564_v16, %v608_v36  ;;  %v594_v47 = vmul.f32 %v7536_v52, %v7671_v40 }
 0x256   :  { %v647_v62 = vmax.f32 %v631_v44, 0.0  ;;  %v610_v2 = vadd.f32 %v594_v47, %v510_v37  ;;  %v7689_v44 = vpop.permute.xlu0 %469 }
 0x257   :  { %v7680_v4 = vpop.permute.xlu1 %561  ;;  %8461 = vst [vmem:[#allocation73_spill] sm:$0xff] %v7689_v44  ;;  %v497_v19 = vmul.f32 %v7526_v45, %v7689_v44 }
 0x258   :  { %8459 = vst [vmem:[#allocation71_spill] sm:$0xff] %v7680_v4  ;;  %v595_v12 = vmul.f32 %v7536_v52, %v7680_v4  ;;  %v667_v13 = vpack.c.bf16 %v648_v50, %v647_v62  ;;  %v633_v14 = vadd.f32 %v7564_v16, %v610_v2 }
 0x25a   :  { %v611_v41 = vadd.f32 %v595_v12, %v511_v10  ;;  %5893 = vmatprep.mubr.msk.bf16.mxu0 %vm702_vm0, %v667_v13  ;;  %v649_v33 = vmax.f32 %v633_v14, 0.0  ;;  %v7694_v43 = vpop.permute.xlu0 %473  ;;  %v412_v10 = vmul.f32 %v7529_v46, %v7646_v60  ;;  %v888_v12 = vld [vmem:[#allocation11 + $0x180] sm:$0xff]  ;;  %v889_v14 = vld [vmem:[#allocation11 + $0x188] sm:$0xff] }
 0x25b   :  { %8463 = vst [vmem:[#allocation75_spill] sm:$0xff] %v7694_v43  ;;  %v892_v13 = vld [vmem:[#allocation11 + $0x1a0] sm:$0xff] }
 0x25c   :  { %v634_v20 = vadd.f32 %v7564_v16, %v611_v41  ;;  %v7687_v21 = vpop.permute.xlu1 %383  ;;  %v5442_v11 = vcombine.low %v888_v12, %v892_v13 }
 0x25d   :  { %8460 = vst [vmem:[#allocation72_spill] sm:$0xff] %v7687_v21 }
 0x25e   :  { %v650_v36 = vmax.f32 %v634_v20, 0.0  ;;  %v7702_v2 = vpop.permute.xlu0 %565 }
 0x25f   :  { %8466 = vst [vmem:[#allocation78_spill] sm:$0xff] %v7702_v2  ;;  %v596_v20 = vmul.f32 %v7536_v52, %v7702_v2  ;;  %v896_v2 = vld [vmem:[#allocation11 + $0x1c0] sm:$0xff] }
 0x260   :  { %v668_v37 = vpack.c.bf16 %v650_v36, %v649_v33  ;;  %v5443_v36 = vcombine.high %v888_v12, %v892_v13  ;;  %v5451_v13 = vcombine.high %v896_v2, %v900_v0  ;;  %v5450_v22 = vcombine.low %v896_v2, %v900_v0 }
 0x261   :  { %v7691_v47 = vpop.permute.xlu1 %465 }
 0x262   :  { %8462 = vst [vmem:[#allocation74_spill] sm:$0xff] %v7691_v47  ;;  %5894 = vmatmul.mubr.msk.bf16.gmra.mrb[8].mxu0 %vm702_vm0, %v668_v37  ;;  %v496_v62 = vmul.f32 %v7526_v45, %v7691_v47  ;;  %v893_v37 = vld [vmem:[#allocation11 + $0x1a8] sm:$0xff]  ;;  %v7712_v1 = vpop.permute.xlu0 %577  ;;  %1286 = vmatprep.subr.bf16.mxu1 %v5443_v36 }
 0x263   :  { %8468 = vst [vmem:[#allocation80_spill] sm:$0xff] %v7712_v1  ;;  %v5444_v4 = vcombine.low %v889_v14, %v893_v37  ;;  %v5445_v40 = vcombine.high %v889_v14, %v893_v37  ;;  %1287 = vmatpush1.bf16.msra.mxu1 %v5442_v11  ;;  %v599_v12 = vmul.f32 %v7536_v52, %v7712_v1  ;;  %v901_v14 = vld [vmem:[#allocation11 + $0x1e8] sm:$0xff] }
 0x264   :  { %v512_v41 = vadd.f32 %v496_v62, %v412_v10  ;;  %v413_v62 = vmul.f32 %v7529_v46, %v7687_v21  ;;  %v498_v11 = vmul.f32 %v7526_v45, %v7694_v43  ;;  %1288 = vmatprep.subr.bf16.mxu1 %v5451_v13 }
 0x265   :  { %1399 = vmatprep.subr.bf16.mxu0 %v5445_v40 }
 0x266   :  { %v7696_v50 = vpop.permute.xlu1 %388  ;;  %v612_v15 = vadd.f32 %v596_v20, %v512_v41  ;;  %1400 = vmatpush1.bf16.msra.mxu0 %v5444_v4 }
 0x267   :  { %8464 = vst [vmem:[#allocation76_spill] sm:$0xff] %v7696_v50  ;;  %v414_v40 = vmul.f32 %v7529_v46, %v7696_v50  ;;  %1289 = vmatpush1.bf16.msra.mxu1 %v5450_v22 }
 0x268   :  { %v635_v4 = vadd.f32 %v7564_v16, %v612_v15 }
 0x269   :  { %v514_v0 = vadd.f32 %v498_v11, %v414_v40  ;;  %v7741_v40 = vld [vmem:[#allocation10] ss:$0 sm:$0xff] }
 0x26a   :  { %v7698_v61 = vpop.permute.xlu1 %393 }
 0x26b   :  { %8465 = vst [vmem:[#allocation77_spill] sm:$0xff] %v7698_v61  ;;  %v415_v10 = vmul.f32 %v7529_v46, %v7698_v61  ;;  %v513_v61 = vadd.f32 %v497_v19, %v413_v62  ;;  %v651_v46 = vmax.f32 %v635_v4, 0.0 }
 0x26f   :  { %v7708_v33 = vpop.permute.xlu1 %477 }
 0x270   :  { %8467 = vst [vmem:[#allocation79_spill] sm:$0xff] %v7708_v33  ;;  %v499_v8 = vmul.f32 %v7526_v45, %v7708_v33  ;;  %v897_v33 = vld [vmem:[#allocation11 + $0x1c8] sm:$0xff] }
 0x271   :  { %v5452_v44 = vcombine.low %v897_v33, %v901_v14  ;;  %v5453_v48 = vcombine.high %v897_v33, %v901_v14  ;;  %v847_v14 = vld [vmem:[#allocation11 + $0x38] sm:$0xff] }
 0x272   :  { %v515_v3 = vadd.f32 %v499_v8, %v415_v10  ;;  %v842_v10 = vld [vmem:[#allocation11 + $0x10] sm:$0xff] }
 0x273   :  { %1401 = vmatprep.subr.bf16.mxu0 %v5453_v48 }
 0x274   :  { %v7722_v37 = vpop.permute.xlu1 %569  ;;  %v615_v41 = vadd.f32 %v599_v12, %v515_v3  ;;  %1402 = vmatpush1.bf16.msra.mxu0 %v5452_v44  ;;  %v846_v12 = vld [vmem:[#allocation11 + $0x30] sm:$0xff] }
 0x275   :  { %8469 = vst [vmem:[#allocation81_spill] sm:$0xff] %v7722_v37  ;;  %v597_v8 = vmul.f32 %v7536_v52, %v7722_v37  ;;  %v5399_v13 = vcombine.high %v842_v10, %v846_v12 }
 0x276   :  { %v638_v2 = vadd.f32 %v7564_v16, %v615_v41 }
 0x277   :  { %v613_v20 = vadd.f32 %v597_v8, %v513_v61  ;;  %v8471_v61 = vmov 0   ;;  %1500 = vmatprep.subr.bf16.mxu1 %v5399_v13 }
 0x278   :  { %v7731_v33 = vpop.permute.xlu1 %573  ;;  %v654_v15 = vmax.f32 %v638_v2, 0.0 }
 0x279   :  { %8470 = vst [vmem:[#allocation82_spill] sm:$0xff] %v7731_v33  ;;  %v636_v19 = vadd.f32 %v7564_v16, %v613_v20  ;;  %v598_v45 = vmul.f32 %v7536_v52, %v7731_v33  ;;  %v843_v52 = vld [vmem:[#allocation11 + $0x18] sm:$0xff] }
 0x27a   :  { %v5401_v11 = vcombine.high %v843_v52, %v847_v14 }
 0x27b   :  { %v652_v36 = vmax.f32 %v636_v19, 0.0  ;;  %v614_v62 = vadd.f32 %v598_v45, %v514_v0 }
 0x27c   :  { %1613 = vmatprep.subr.bf16.mxu0 %v5401_v11  ;;  %v5398_v11 = vcombine.low %v842_v10, %v846_v12 }
 0x27d   :  { %v637_v22 = vadd.f32 %v7564_v16, %v614_v62  ;;  %v669_v48 = vpack.c.bf16 %v652_v36, %v651_v46  ;;  %v850_v36 = vld [vmem:[#allocation11 + $0x50] sm:$0xff] }
 0x27f   :  { %v653_v3 = vmax.f32 %v637_v22, 0.0  ;;  %5897 = vmatprep.mubr.msk.bf16.mxu0 %vm702_vm0, %v669_v48  ;;  %v854_v48 = vld [vmem:[#allocation11 + $0x70] sm:$0xff] }
 0x281   :  { %v670_v44 = vpack.c.bf16 %v654_v15, %v653_v3  ;;  %v851_v15 = vld [vmem:[#allocation11 + $0x58] sm:$0xff] }
 0x282   :  { %v855_v3 = vld [vmem:[#allocation11 + $0x78] sm:$0xff] }
 0x283   :  { %5898 = vmatmul.mubr.msk.bf16.gmra.mrb[12].mxu0 %vm702_vm0, %v670_v44  ;;  %v5409_v1 = vcombine.high %v851_v15, %v855_v3 }
 0x284   :  { %1419 = vmatprep.mubr.bf16.mxu0 %v8471_v61 }
 0x2f0   :  { %v5887_v16 = vpop.f32.mrb[0].mxu0 }
 0x2f1   :  { %v770_v8 = vadd.f32 %v5887_v16, %v7741_v40  ;;  %v761_v4 = vpop.f32.mrb[1].mxu0  ;;  %v5400_v16 = vcombine.low %v843_v52, %v847_v14  ;;  %v866_v52 = vld [vmem:[#allocation11 + $0xd0] sm:$0xff] }
 0x2f2   :  { %v762_v41 = vadd.f32 %v7741_v40, %v761_v4  ;;  %v5888_v20 = vpop.f32.mrb[2].mxu0  ;;  %v5407_v4 = vcombine.high %v850_v36, %v854_v48  ;;  %v870_v14 = vld [vmem:[#allocation11 + $0xf0] sm:$0xff] }
 0x2f3   :  { %v773_v0 = vadd.f32 %v5888_v20, %v7741_v40  ;;  %v764_v19 = vpop.f32.mrb[3].mxu0  ;;  %v826_v46 = vmax.f32 %v770_v8, 0.0  ;;  %v858_v20 = vld [vmem:[#allocation11 + $0x90] sm:$0xff]  ;;  %v5423_v33 = vcombine.high %v866_v52, %v870_v14 }
 0x2f4   :  { %v765_v45 = vadd.f32 %v7741_v40, %v764_v19  ;;  %v824_v62 = vmax.f32 %v762_v41, 0.0  ;;  %v862_v8 = vld [vmem:[#allocation11 + $0xb0] sm:$0xff]  ;;  %v863_v41 = vld [vmem:[#allocation11 + $0xb8] sm:$0xff]  ;;  %v5406_v19 = vcombine.low %v850_v36, %v854_v48 }
 0x2f5   :  { %v827_v2 = vmax.f32 %v773_v0, 0.0  ;;  %v859_v0 = vld [vmem:[#allocation11 + $0x98] sm:$0xff]  ;;  %v5415_v10 = vcombine.high %v858_v20, %v862_v8 }
 0x2f6   :  { %v825_v22 = vmax.f32 %v765_v45, 0.0  ;;  %v5408_v45 = vcombine.low %v851_v15, %v855_v3  ;;  %v5417_v12 = vcombine.high %v859_v0, %v863_v41  ;;  %v875_v36 = vld [vmem:[#allocation11 + $0x118] sm:$0xff]  ;;  %v5422_v15 = vcombine.low %v866_v52, %v870_v14 }
 0x2f7   :  { %v7747_v44 = vpack.c.bf16 %v827_v2, %v826_v46  ;;  %v867_v46 = vld [vmem:[#allocation11 + $0xd8] sm:$0xff] }
 0x2f8   :  { %v7749_v13 = vpack.c.bf16 %v825_v22, %v824_v62  ;;  %v871_v2 = vld [vmem:[#allocation11 + $0xf8] sm:$0xff]  ;;  %v5414_v62 = vcombine.low %v858_v20, %v862_v8  ;;  %v5416_v22 = vcombine.low %v859_v0, %v863_v41  ;;  %v882_v20 = vld [vmem:[#allocation11 + $0x150] sm:$0xff] }
 0x2f9   :  { %v5425_v50 = vcombine.high %v867_v46, %v871_v2  ;;  %v879_v48 = vld [vmem:[#allocation11 + $0x138] sm:$0xff]  ;;  %v5424_v3 = vcombine.low %v867_v46, %v871_v2  ;;  %v886_v8 = vld [vmem:[#allocation11 + $0x170] sm:$0xff] }
 0x2fa   :  { %1307 = vmatmul.mubr.bf16.vlgmr.msra.gmra.mrb[0].mxu1 %v7749_v13  ;;  %1420 = vmatmul.mubr.bf16.vlgmr.msra.gmra.mrb[16].mxu0 %v7749_v13  ;;  %v883_v0 = vld [vmem:[#allocation11 + $0x158] sm:$0xff] }
 0x2fb   :  { %1316 = vmatprep.mubr.bf16.mxu1 %v8471_v61  ;;  %1429 = vmatprep.mubr.bf16.mxu0 %v8471_v61  ;;  %v887_v41 = vld [vmem:[#allocation11 + $0x178] sm:$0xff] }
 0x2fc   :  { %1501 = vmatpush1.bf16.msra.mxu1 %v5398_v11  ;;  %1614 = vmatpush1.bf16.msra.mxu0 %v5400_v16  ;;  %v874_v11 = vld [vmem:[#allocation11 + $0x110] sm:$0xff]  ;;  %v891_v52 = vld [vmem:[#allocation11 + $0x198] sm:$0xff] }
 0x2fd   :  { %1502 = vmatprep.subr.bf16.mxu1 %v5407_v4  ;;  %1615 = vmatprep.subr.bf16.mxu0 %v5409_v1  ;;  %v878_v1 = vld [vmem:[#allocation11 + $0x130] sm:$0xff]  ;;  %v5433_v4 = vcombine.high %v875_v36, %v879_v48  ;;  %v895_v14 = vld [vmem:[#allocation11 + $0x1b8] sm:$0xff] }
 0x2fe   :  { %v5431_v16 = vcombine.high %v874_v11, %v878_v1  ;;  %v5449_v2 = vcombine.high %v891_v52, %v895_v14 }
 0x300   :  { %1503 = vmatpush1.bf16.msra.mxu1 %v5406_v19  ;;  %1616 = vmatpush1.bf16.msra.mxu0 %v5408_v45  ;;  %v5430_v19 = vcombine.low %v874_v11, %v878_v1  ;;  %v5432_v45 = vcombine.low %v875_v36, %v879_v48  ;;  %v899_v11 = vld [vmem:[#allocation11 + $0x1d8] sm:$0xff]  ;;  %v5448_v48 = vcombine.low %v891_v52, %v895_v14 }
 0x301   :  { %1504 = vmatprep.subr.bf16.mxu1 %v5415_v10  ;;  %1617 = vmatprep.subr.bf16.mxu0 %v5417_v12  ;;  %v5439_v10 = vcombine.high %v882_v20, %v886_v8  ;;  %v5441_v12 = vcombine.high %v883_v0, %v887_v41  ;;  %v903_v1 = vld [vmem:[#allocation11 + $0x1f8] sm:$0xff] }
 0x302   :  { %1317 = vmatmul.mubr.bf16.gmra.mrb[4].mxu1 %v7747_v44  ;;  %1430 = vmatmul.mubr.bf16.gmra.mrb[20].mxu0 %v7747_v44 }
 0x303   :  { %1326 = vmatprep.mubr.bf16.mxu1 %v8471_v61  ;;  %1439 = vmatprep.mubr.bf16.mxu0 %v8471_v61 }
 0x304   :  { %1505 = vmatpush1.bf16.msra.mxu1 %v5414_v62  ;;  %1618 = vmatpush1.bf16.msra.mxu0 %v5416_v22  ;;  %v890_v62 = vld [vmem:[#allocation11 + $0x190] sm:$0xff] }
 0x305   :  { %1506 = vmatprep.subr.bf16.mxu1 %v5423_v33  ;;  %1619 = vmatprep.subr.bf16.mxu0 %v5425_v50  ;;  %v894_v22 = vld [vmem:[#allocation11 + $0x1b0] sm:$0xff]  ;;  %v5438_v50 = vcombine.low %v882_v20, %v886_v8  ;;  %v5440_v33 = vcombine.low %v883_v0, %v887_v41 }
 0x306   :  { %v5447_v46 = vcombine.high %v890_v62, %v894_v22  ;;  %v5446_v36 = vcombine.low %v890_v62, %v894_v22 }
 0x308   :  { %1507 = vmatpush1.bf16.msra.mxu1 %v5422_v15  ;;  %1620 = vmatpush1.bf16.msra.mxu0 %v5424_v3  ;;  %v898_v15 = vld [vmem:[#allocation11 + $0x1d0] sm:$0xff] }
 0x309   :  { %1508 = vmatprep.subr.bf16.mxu1 %v5431_v16  ;;  %1621 = vmatprep.subr.bf16.mxu0 %v5433_v4  ;;  %v902_v3 = vld [vmem:[#allocation11 + $0x1f0] sm:$0xff] }
 0x30a   :  { %v5455_v4 = vcombine.high %v898_v15, %v902_v3 }
 0x30c   :  { %1509 = vmatpush1.bf16.msra.mxu1 %v5430_v19  ;;  %1622 = vmatpush1.bf16.msra.mxu0 %v5432_v45  ;;  %v5457_v19 = vcombine.high %v899_v11, %v903_v1 }
 0x30d   :  { %1510 = vmatprep.subr.bf16.mxu1 %v5439_v10  ;;  %1623 = vmatprep.subr.bf16.mxu0 %v5441_v12  ;;  %v5454_v12 = vcombine.low %v898_v15, %v902_v3 }
 0x310   :  { %1511 = vmatpush1.bf16.msra.mxu1 %v5438_v50  ;;  %1624 = vmatpush1.bf16.msra.mxu0 %v5440_v33  ;;  %v5891_v16 = vpop.f32.mrb[4].mxu0  ;;  %v5456_v50 = vcombine.low %v899_v11, %v903_v1 }
 0x311   :  { %1512 = vmatprep.subr.bf16.mxu1 %v5447_v46  ;;  %1625 = vmatprep.subr.bf16.mxu0 %v5449_v2  ;;  %v786_v20 = vadd.f32 %v5891_v16, %v7741_v40  ;;  %v777_v8 = vpop.f32.mrb[5].mxu0 }
 0x312   :  { %v778_v0 = vadd.f32 %v7741_v40, %v777_v8  ;;  %v5892_v41 = vpop.f32.mrb[6].mxu0 }
 0x313   :  { %v789_v45 = vadd.f32 %v5892_v41, %v7741_v40  ;;  %v780_v10 = vpop.f32.mrb[7].mxu0  ;;  %v830_v22 = vmax.f32 %v786_v20, 0.0 }
 0x314   :  { %1513 = vmatpush1.bf16.msra.mxu1 %v5446_v36  ;;  %1626 = vmatpush1.bf16.msra.mxu0 %v5448_v48  ;;  %v781_v62 = vadd.f32 %v7741_v40, %v780_v10  ;;  %v828_v14 = vmax.f32 %v778_v0, 0.0 }
 0x315   :  { %1514 = vmatprep.subr.bf16.mxu1 %v5455_v4  ;;  %1627 = vmatprep.subr.bf16.mxu0 %v5457_v19  ;;  %v831_v52 = vmax.f32 %v789_v45, 0.0 }
 0x316   :  { %v829_v33 = vmax.f32 %v781_v62, 0.0 }
 0x317   :  { %v7763_v46 = vpack.c.bf16 %v831_v52, %v830_v22 }
 0x318   :  { %1515 = vmatpush1.bf16.msra.mxu1 %v5454_v12  ;;  %1628 = vmatpush1.bf16.msra.mxu0 %v5456_v50  ;;  %v906_v2 = vpack.c.bf16 %v829_v33, %v828_v14 }
 0x31a   :  { %1327 = vmatmul.mubr.bf16.gmra.mrb[8].mxu1 %v906_v2  ;;  %1440 = vmatmul.mubr.bf16.gmra.mrb[24].mxu0 %v906_v2 }
 0x31b   :  { %1336 = vmatprep.mubr.bf16.mxu1 %v8471_v61  ;;  %1449 = vmatprep.mubr.bf16.mxu0 %v8471_v61 }
 0x322   :  { %1337 = vmatmul.mubr.bf16.gmra.mrb[12].mxu1 %v7763_v46  ;;  %1450 = vmatmul.mubr.bf16.gmra.mrb[28].mxu0 %v7763_v46 }
 0x323   :  { %1346 = vmatprep.mubr.bf16.mxu1 %v8471_v61  ;;  %1459 = vmatprep.mubr.bf16.mxu0 %v8471_v61 }
 0x335   :  { %v5895_v15 = vpop.f32.mrb[8].mxu0 }
 0x336   :  { %v802_v3 = vadd.f32 %v5895_v15, %v7741_v40  ;;  %v793_v11 = vpop.f32.mrb[9].mxu0 }
 0x337   :  { %v794_v1 = vadd.f32 %v7741_v40, %v793_v11  ;;  %v5896_v36 = vpop.f32.mrb[10].mxu0 }
 0x338   :  { %v805_v48 = vadd.f32 %v5896_v36, %v7741_v40  ;;  %v796_v16 = vpop.f32.mrb[11].mxu0  ;;  %v834_v19 = vmax.f32 %v802_v3, 0.0 }
 0x339   :  { %v797_v4 = vadd.f32 %v7741_v40, %v796_v16  ;;  %v832_v8 = vmax.f32 %v794_v1, 0.0  ;;  %v6111_v16 = vld [vmem:[#allocation14 + $0x2c] ss:$16 sps:$4 sm:$0xff]  }
 0x33a   :  { %v835_v20 = vmax.f32 %v805_v48, 0.0 }
 0x33b   :  { %v833_v0 = vmax.f32 %v797_v4, 0.0  ;;  %v6106_v4 = vld [vmem:[#allocation14 + $0x20] ss:$16 sps:$4 sm:$0xff]  }
 0x33c   :  { %v909_v41 = vpack.c.bf16 %v835_v20, %v834_v19  ;;  %v6109_v19 = vld [vmem:[#allocation14 + $0x28] ss:$16 sps:$4 sm:$0xff]   ;;  %v6112_v20 = vld [vmem:[#allocation14 + $0x40] ss:$16 sps:$4 sm:$0xff]  }
 0x33d   :  { %v908_v45 = vpack.c.bf16 %v833_v0, %v832_v8  ;;  %v6114_v8 = vld [vmem:[#allocation14 + $0x44] ss:$16 sps:$4 sm:$0xff]   ;;  %v6115_v0 = vld [vmem:[#allocation14 + $0x48] ss:$16 sps:$4 sm:$0xff]  }
 0x33f   :  { %1347 = vmatmul.mubr.bf16.gmra.mrb[16].mxu1 %v908_v45  ;;  %1460 = vmatmul.mubr.bf16.gmra.mrb[32].mxu0 %v908_v45 }
 0x340   :  { %1356 = vmatprep.mubr.bf16.mxu1 %v8471_v61  ;;  %1469 = vmatprep.mubr.bf16.mxu0 %v8471_v61 }
 0x347   :  { %1357 = vmatmul.mubr.bf16.gmra.mrb[20].mxu1 %v909_v41  ;;  %1470 = vmatmul.mubr.bf16.gmra.mrb[36].mxu0 %v909_v41 }
 0x348   :  { %1366 = vmatprep.mubr.bf16.mxu1 %v8471_v61  ;;  %1479 = vmatprep.mubr.bf16.mxu0 %v8471_v61 }
 0x356   :  { %v5899_v10 = vpop.f32.mrb[12].mxu0 }
 0x357   :  { %v818_v12 = vadd.f32 %v5899_v10, %v7741_v40  ;;  %v809_v50 = vpop.f32.mrb[13].mxu0  ;;  %v6123_v10 = vld [vmem:[#allocation14 + $0x6c] ss:$16 sps:$4 sm:$0xff]  }
 0x358   :  { %v810_v62 = vadd.f32 %v7741_v40, %v809_v50  ;;  %v5900_v22 = vpop.f32.mrb[14].mxu0  ;;  %v6121_v50 = vld [vmem:[#allocation14 + $0x68] ss:$16 sps:$4 sm:$0xff]  }
 0x359   :  { %v821_v52 = vadd.f32 %v5900_v22, %v7741_v40  ;;  %v812_v14 = vpop.f32.mrb[15].mxu0  ;;  %v838_v15 = vmax.f32 %v818_v12, 0.0  ;;  %v6118_v12 = vld [vmem:[#allocation14 + $0x60] ss:$16 sps:$4 sm:$0xff]  }
 0x35a   :  { %v813_v33 = vadd.f32 %v7741_v40, %v812_v14  ;;  %v836_v11 = vmax.f32 %v810_v62, 0.0  ;;  %v6102_v40 = vld [vmem:[#allocation14 + $0x4] ss:$16 sps:$4 sm:$0xff]   ;;  %v6129_v62 = vld [vmem:[#allocation14 + $0x8c] ss:$16 sps:$4 sm:$0xff]  }
 0x35b   :  { %v839_v3 = vmax.f32 %v821_v52, 0.0  ;;  %3741 = vmatprep.subr.bf16.mxu1 %v6102_v40  ;;  %v6124_v22 = vld [vmem:[#allocation14 + $0x80] ss:$16 sps:$4 sm:$0xff]   ;;  %v6132_v52 = vld [vmem:[#allocation14 + $0xa4] ss:$16 sps:$4 sm:$0xff]  }
 0x35c   :  { %v837_v1 = vmax.f32 %v813_v33, 0.0  ;;  %v6127_v14 = vld [vmem:[#allocation14 + $0x88] ss:$16 sps:$4 sm:$0xff]   ;;  %v6135_v33 = vld [vmem:[#allocation14 + $0xac] ss:$16 sps:$4 sm:$0xff]  }
 0x35d   :  { %v7783_v36 = vpack.c.bf16 %v839_v3, %v838_v15  ;;  %v6130_v15 = vld [vmem:[#allocation14 + $0xa0] ss:$16 sps:$4 sm:$0xff]   ;;  %v6133_v3 = vld [vmem:[#allocation14 + $0xa8] ss:$16 sps:$4 sm:$0xff]   ;;  %v6144_v40 = vld [vmem:[#allocation14 + $0xe4] ss:$16 sps:$4 sm:$0xff]  }
 0x35e   :  { %v910_v48 = vpack.c.bf16 %v837_v1, %v836_v11  ;;  %v6138_v11 = vld [vmem:[#allocation14 + $0xc4] ss:$16 sps:$4 sm:$0xff]   ;;  %v6141_v1 = vld [vmem:[#allocation14 + $0xcc] ss:$16 sps:$4 sm:$0xff]  }
 0x360   :  { %1367 = vmatmul.mubr.bf16.gmra.mrb[24].mxu1 %v910_v48  ;;  %1480 = vmatmul.mubr.bf16.gmra.mrb[40].mxu0 %v910_v48 }
 0x361   :  { %1376 = vmatprep.mubr.bf16.mxu1 %v8471_v61  ;;  %1489 = vmatprep.mubr.bf16.mxu0 %v8471_v61 }
 0x368   :  { %1377 = vmatmul.mubr.bf16.gmra.mrb[28].mxu1 %v7783_v36  ;;  %1490 = vmatmul.mubr.bf16.gmra.mrb[44].mxu0 %v7783_v36 }
 0x369   :  { %1532 = vmatprep.mubr.bf16.mxu1 %v8471_v61  ;;  %1645 = vmatprep.mubr.bf16.mxu0 %v8471_v61 }
 0x370   :  { %1533 = vmatmul.mubr.bf16.vlgmr.msra.gmra.mrb[32].mxu1 %v7749_v13  ;;  %1646 = vmatmul.mubr.bf16.vlgmr.msra.gmra.mrb[48].mxu0 %v7749_v13  ;;  %v6100_v13 = vld [vmem:[#allocation14] ss:$16 sps:$4 sm:$0xff]  }
 0x371   :  { %1542 = vmatprep.mubr.bf16.mxu1 %v8471_v61  ;;  %1655 = vmatprep.mubr.bf16.mxu0 %v8471_v61 }
 0x372   :  { %3742 = vmatpush1.bf16.msra.mxu1 %v6100_v13  ;;  %v6142_v13 = vld [vmem:[#allocation14 + $0xe0] ss:$16 sps:$4 sm:$0xff]  }
 0x378   :  { %1543 = vmatmul.mubr.bf16.gmra.mrb[36].mxu1 %v7747_v44  ;;  %1656 = vmatmul.mubr.bf16.gmra.mrb[52].mxu0 %v7747_v44  ;;  %v6105_v44 = vld [vmem:[#allocation14 + $0xc] ss:$16 sps:$4 sm:$0xff]  }
 0x379   :  { %1552 = vmatprep.mubr.bf16.mxu1 %v8471_v61  ;;  %1665 = vmatprep.mubr.bf16.mxu0 %v8471_v61 }
 0x37a   :  { %3905 = vmatprep.subr.bf16.mxu0 %v6105_v44  ;;  %v6147_v44 = vld [vmem:[#allocation14 + $0xec] ss:$16 sps:$4 sm:$0xff]  }
 0x380   :  { %1553 = vmatmul.mubr.bf16.gmra.mrb[40].mxu1 %v906_v2  ;;  %1666 = vmatmul.mubr.bf16.gmra.mrb[56].mxu0 %v906_v2  ;;  %v6108_v2 = vld [vmem:[#allocation14 + $0x24] ss:$16 sps:$4 sm:$0xff]  }
 0x381   :  { %1562 = vmatprep.mubr.bf16.mxu1 %v8471_v61  ;;  %1675 = vmatprep.mubr.bf16.mxu0 %v8471_v61 }
 0x382   :  { %3743 = vmatprep.subr.bf16.mxu1 %v6108_v2  ;;  %v6150_v2 = vld [vmem:[#allocation14 + $0x104] ss:$16 sps:$4 sm:$0xff]  }
 0x383   :  { %3744 = vmatpush1.bf16.msra.mxu1 %v6106_v4  ;;  %v6148_v4 = vld [vmem:[#allocation14 + $0x100] ss:$16 sps:$4 sm:$0xff]  }
 0x384   :  { %3745 = vmatprep.subr.bf16.mxu1 %v6114_v8  ;;  %v6159_v8 = vld [vmem:[#allocation14 + $0x12c] ss:$16 sps:$4 sm:$0xff]  }
 0x387   :  { %3746 = vmatpush1.bf16.msra.mxu1 %v6112_v20  ;;  %v6156_v20 = vld [vmem:[#allocation14 + $0x124] ss:$16 sps:$4 sm:$0xff]  }
 0x388   :  { %1563 = vmatmul.mubr.bf16.gmra.mrb[44].mxu1 %v7763_v46  ;;  %1676 = vmatmul.mubr.bf16.gmra.mrb[60].mxu0 %v7763_v46  ;;  %v6103_v46 = vld [vmem:[#allocation14 + $0x8] ss:$16 sps:$4 sm:$0xff]  }
 0x389   :  { %1572 = vmatprep.mubr.bf16.mxu1 %v8471_v61  ;;  %1685 = vmatprep.mubr.bf16.mxu0 %v8471_v61 }
 0x38a   :  { %3906 = vmatpush1.bf16.msra.mxu0 %v6103_v46  ;;  %v6145_v46 = vld [vmem:[#allocation14 + $0xe8] ss:$16 sps:$4 sm:$0xff]  }
 0x38b   :  { %3907 = vmatprep.subr.bf16.mxu0 %v6111_v16  ;;  %v6153_v16 = vld [vmem:[#allocation14 + $0x10c] ss:$16 sps:$4 sm:$0xff]  }
 0x38e   :  { %3908 = vmatpush1.bf16.msra.mxu0 %v6109_v19  ;;  %v6151_v19 = vld [vmem:[#allocation14 + $0x108] ss:$16 sps:$4 sm:$0xff]  }
 0x390   :  { %1573 = vmatmul.mubr.bf16.gmra.mrb[48].mxu1 %v908_v45  ;;  %1686 = vmatmul.mubr.bf16.gmra.mrb[64].mxu0 %v908_v45  ;;  %v6120_v45 = vld [vmem:[#allocation14 + $0x64] ss:$16 sps:$4 sm:$0xff]  }
 0x391   :  { %1582 = vmatprep.mubr.bf16.mxu1 %v8471_v61  ;;  %1695 = vmatprep.mubr.bf16.mxu0 %v8471_v61 }
 0x392   :  { %3747 = vmatprep.subr.bf16.mxu1 %v6120_v45  ;;  %v7813_v45 = vld [vmem:[#allocation13] sm:$0xff] }
 0x393   :  { %3748 = vmatpush1.bf16.msra.mxu1 %v6118_v12  ;;  %v6162_v12 = vld [vmem:[#allocation14 + $0x144] ss:$16 sps:$4 sm:$0xff]  }
 0x398   :  { %1583 = vmatmul.mubr.bf16.gmra.mrb[52].mxu1 %v909_v41  ;;  %1696 = vmatmul.mubr.bf16.gmra.mrb[68].mxu0 %v909_v41  ;;  %v6117_v41 = vld [vmem:[#allocation14 + $0x4c] ss:$16 sps:$4 sm:$0xff]  }
 0x399   :  { %1592 = vmatprep.mubr.bf16.mxu1 %v8471_v61  ;;  %1705 = vmatprep.mubr.bf16.mxu0 %v8471_v61 }
 0x39a   :  { %3909 = vmatprep.subr.bf16.mxu0 %v6117_v41  ;;  %v6157_v41 = vld [vmem:[#allocation14 + $0x128] ss:$16 sps:$4 sm:$0xff]  }
 0x39b   :  { %3910 = vmatpush1.bf16.msra.mxu0 %v6115_v0  ;;  %v6154_v0 = vld [vmem:[#allocation14 + $0x120] ss:$16 sps:$4 sm:$0xff]  }
 0x39c   :  { %3911 = vmatprep.subr.bf16.mxu0 %v6123_v10  ;;  %v8398_v10 = vsub.s32 3, %v7501_v28 }
 0x39f   :  { %3912 = vmatpush1.bf16.msra.mxu0 %v6121_v50  ;;  %v7818_v50 = vrot.slane %v7813_v45, %v7512_v32 }
 0x3a0   :  { %1593 = vmatmul.mubr.bf16.gmra.mrb[56].mxu1 %v910_v48  ;;  %1706 = vmatmul.mubr.bf16.gmra.mrb[72].mxu0 %v910_v48  ;;  %v6139_v48 = vld [vmem:[#allocation14 + $0xc8] ss:$16 sps:$4 sm:$0xff]  }
 0x3a1   :  { %1602 = vmatprep.mubr.bf16.mxu1 %v8471_v61  ;;  %1715 = vmatprep.mubr.bf16.mxu0 %v8471_v61  ;;  %v6126_v61 = vld [vmem:[#allocation14 + $0x84] ss:$16 sps:$4 sm:$0xff]  }
 0x3a2   :  { %3749 = vmatprep.subr.bf16.mxu1 %v6126_v61  ;;  %3913 = vmatprep.subr.bf16.mxu0 %v6129_v62  ;;  %v6165_v61 = vld [vmem:[#allocation14 + $0x14c] ss:$16 sps:$4 sm:$0xff]   ;;  %v7822_v62 = vrot.slane %v7813_v45, %v7517_v35 }
 0x3a3   :  { %3750 = vmatpush1.bf16.msra.mxu1 %v6124_v22  ;;  %3914 = vmatpush1.bf16.msra.mxu0 %v6127_v14  ;;  %v6160_v22 = vld [vmem:[#allocation14 + $0x140] ss:$16 sps:$4 sm:$0xff]   ;;  %v7826_v14 = vrot.slane %v7813_v45, %v7509_v31 }
 0x3a4   :  { %3751 = vmatprep.subr.bf16.mxu1 %v6132_v52  ;;  %3915 = vmatprep.subr.bf16.mxu0 %v6135_v33  ;;  %v6163_v52 = vld [vmem:[#allocation14 + $0x148] ss:$16 sps:$4 sm:$0xff]   ;;  %v7831_v33 = vrot.slane %v7813_v45, %v8398_v10  ;;  %v6172_v10 = vld [vmem:[#allocation14 + $0x180] ss:$16 sps:$4 sm:$0xff]  }
 0x3a7   :  { %3752 = vmatpush1.bf16.msra.mxu1 %v6130_v15  ;;  %3916 = vmatpush1.bf16.msra.mxu0 %v6133_v3 }
 0x3a8   :  { %1603 = vmatmul.mubr.bf16.gmra.mrb[60].mxu1 %v7783_v36  ;;  %1716 = vmatmul.mubr.bf16.gmra.mrb[76].mxu0 %v7783_v36  ;;  %v6136_v36 = vld [vmem:[#allocation14 + $0xc0] ss:$16 sps:$4 sm:$0xff]  }
 0x3a9   :  { %3753 = vmatprep.subr.bf16.mxu1 %v6138_v11  ;;  %3917 = vmatprep.subr.bf16.mxu0 %v6141_v1  ;;  %v6168_v11 = vld [vmem:[#allocation14 + $0x164] ss:$16 sps:$4 sm:$0xff]   ;;  %v6171_v1 = vld [vmem:[#allocation14 + $0x16c] ss:$16 sps:$4 sm:$0xff]  }
 0x3ab   :  { %3754 = vmatpush1.bf16.msra.mxu1 %v6136_v36  ;;  %3918 = vmatpush1.bf16.msra.mxu0 %v6139_v48 }
 0x3ac   :  { %3755 = vmatprep.subr.bf16.mxu1 %v6144_v40  ;;  %3919 = vmatprep.subr.bf16.mxu0 %v6147_v44 }
 0x3af   :  { %3756 = vmatpush1.bf16.msra.mxu1 %v6142_v13  ;;  %3920 = vmatpush1.bf16.msra.mxu0 %v6145_v46  ;;  %v6166_v13 = vld [vmem:[#allocation14 + $0x160] ss:$16 sps:$4 sm:$0xff]   ;;  %v6169_v46 = vld [vmem:[#allocation14 + $0x168] ss:$16 sps:$4 sm:$0xff]  }
 0x3b0   :  { %3757 = vmatprep.subr.bf16.mxu1 %v6150_v2  ;;  %3921 = vmatprep.subr.bf16.mxu0 %v6153_v16 }
 0x3b3   :  { %3758 = vmatpush1.bf16.msra.mxu1 %v6148_v4  ;;  %3922 = vmatpush1.bf16.msra.mxu0 %v6151_v19 }
 0x3b4   :  { %3759 = vmatprep.subr.bf16.mxu1 %v6156_v20  ;;  %3923 = vmatprep.subr.bf16.mxu0 %v6159_v8 }
 0x3b7   :  { %3760 = vmatpush1.bf16.msra.mxu1 %v6154_v0  ;;  %3924 = vmatpush1.bf16.msra.mxu0 %v6157_v41 }
 0x3b8   :  { %3761 = vmatprep.subr.bf16.mxu1 %v6162_v12  ;;  %3925 = vmatprep.subr.bf16.mxu0 %v6165_v61 }
 0x3bb   :  { %3762 = vmatpush1.bf16.msra.mxu1 %v6160_v22  ;;  %3926 = vmatpush1.bf16.msra.mxu0 %v6163_v52 }
 0x3bc   :  { %3763 = vmatprep.subr.bf16.mxu1 %v6168_v11  ;;  %3927 = vmatprep.subr.bf16.mxu0 %v6171_v1  ;;  %v6174_v11 = vld [vmem:[#allocation14 + $0x184] ss:$16 sps:$4 sm:$0xff]   ;;  %v6177_v1 = vld [vmem:[#allocation14 + $0x18c] ss:$16 sps:$4 sm:$0xff]  }
 0x3bf   :  { %3764 = vmatpush1.bf16.msra.mxu1 %v6166_v13  ;;  %3928 = vmatpush1.bf16.msra.mxu0 %v6169_v46 }
 0x3c0   :  { %3765 = vmatprep.subr.bf16.mxu1 %v6174_v11  ;;  %3929 = vmatprep.subr.bf16.mxu0 %v6177_v1 }
 0x3c3   :  { %3766 = vmatpush1.bf16.msra.mxu1 %v6172_v10 }
 0x3cd   :  { %v1308_v15 = vpop.f32.mrb[0].mxu1  ;;  %v1421_v3 = vpop.f32.mrb[16].mxu0 }
 0x3ce   :  { %v1309_v36 = vadd.f32 %v1308_v15, %v7818_v50  ;;  %v1422_v48 = vadd.f32 %v1421_v3, %v7822_v62  ;;  %v1310_v40 = vpop.f32.mrb[1].mxu1  ;;  %v1423_v44 = vpop.f32.mrb[17].mxu0 }
 0x3cf   :  { %v1311_v2 = vadd.f32 %v1310_v40, %v7826_v14  ;;  %v1424_v16 = vadd.f32 %v1423_v44, %v7831_v33  ;;  %v1312_v4 = vpop.f32.mrb[2].mxu1  ;;  %v1425_v19 = vpop.f32.mrb[18].mxu0 }
 0x3d0   :  { %v1726_v20 = vmax.f32 %v1309_v36, 0.0  ;;  %v1728_v8 = vmax.f32 %v1422_v48, 0.0  ;;  %v1313_v0 = vadd.f32 %v1312_v4, %v7818_v50  ;;  %v1426_v41 = vadd.f32 %v1425_v19, %v7822_v62  ;;  %v1314_v12 = vpop.f32.mrb[3].mxu1  ;;  %v1427_v61 = vpop.f32.mrb[19].mxu0  ;;  %v6175_v4 = vld [vmem:[#allocation14 + $0x188] ss:$16 sps:$4 sm:$0xff]  }
 0x3d1   :  { %v1727_v22 = vmax.f32 %v1311_v2, 0.0  ;;  %v1729_v52 = vmax.f32 %v1424_v16, 0.0  ;;  %v1315_v15 = vadd.f32 %v1314_v12, %v7826_v14  ;;  %v1428_v3 = vadd.f32 %v1427_v61, %v7831_v33  ;;  %3930 = vmatpush1.bf16.msra.mxu0 %v6175_v4 }
 0x3d2   :  { %v1734_v40 = vmax.f32 %v1313_v0, 0.0  ;;  %v1736_v44 = vmax.f32 %v1426_v41, 0.0 }
 0x3d3   :  { %v1735_v36 = vmax.f32 %v1315_v15, 0.0  ;;  %v1737_v48 = vmax.f32 %v1428_v3, 0.0  ;;  %v6183_v15 = vld [vmem:[#allocation14 + $0x1ac] ss:$16 sps:$4 sm:$0xff]  }
 0x3d4   :  { %v7841_v43 = vpack.c.bf16 %v1734_v40, %v1726_v20  ;;  %v7843_v19 = vpack.c.bf16 %v1736_v44, %v1728_v8  ;;  %v6180_v20 = vld [vmem:[#allocation14 + $0x1a4] ss:$16 sps:$4 sm:$0xff]   ;;  %v6181_v44 = vld [vmem:[#allocation14 + $0x1a8] ss:$16 sps:$4 sm:$0xff]   ;;  %3931 = vmatprep.subr.bf16.mxu0 %v6183_v15 }
 0x3d5   :  { %v7845_v13 = vpack.c.bf16 %v1735_v36, %v1727_v22  ;;  %v7847_v46 = vpack.c.bf16 %v1737_v48, %v1729_v52  ;;  %v1318_v2 = vpop.f32.mrb[4].mxu1  ;;  %v1431_v16 = vpop.f32.mrb[20].mxu0  ;;  %v6178_v52 = vld [vmem:[#allocation14 + $0x1a0] ss:$16 sps:$4 sm:$0xff]   ;;  %3767 = vmatprep.subr.bf16.mxu1 %v6180_v20  ;;  %3932 = vmatpush1.bf16.msra.mxu0 %v6181_v44  ;;  %v6195_v44 = vld [vmem:[#allocation14 + $0x1ec] ss:$16 sps:$4 sm:$0xff]  }
 0x3d6   :  { %v1319_v0 = vadd.f32 %v1318_v2, %v7818_v50  ;;  %v1432_v41 = vadd.f32 %v1431_v16, %v7822_v62  ;;  %v1320_v12 = vpop.f32.mrb[5].mxu1  ;;  %v1433_v61 = vpop.f32.mrb[21].mxu0  ;;  %3768 = vmatpush1.bf16.msra.mxu1 %v6178_v52  ;;  %v6192_v52 = vld [vmem:[#allocation14 + $0x1e4] ss:$16 sps:$4 sm:$0xff]  }
 0x3d7   :  { %v1321_v8 = vadd.f32 %v1320_v12, %v7826_v14  ;;  %v1434_v3 = vadd.f32 %v1433_v61, %v7831_v33  ;;  %v1322_v22 = vpop.f32.mrb[6].mxu1  ;;  %v1435_v40 = vpop.f32.mrb[22].mxu0 }
 0x3d8   :  { %v1742_v11 = vmax.f32 %v1319_v0, 0.0  ;;  %v1744_v1 = vmax.f32 %v1432_v41, 0.0  ;;  %v1323_v10 = vadd.f32 %v1322_v22, %v7818_v50  ;;  %v1436_v36 = vadd.f32 %v1435_v40, %v7822_v62  ;;  %v1324_v48 = vpop.f32.mrb[7].mxu1  ;;  %v1437_v4 = vpop.f32.mrb[23].mxu0  ;;  %v6186_v0 = vld [vmem:[#allocation14 + $0x1c4] ss:$16 sps:$4 sm:$0xff]  }
 0x3d9   :  { %v1743_v2 = vmax.f32 %v1321_v8, 0.0  ;;  %v1745_v16 = vmax.f32 %v1434_v3, 0.0  ;;  %v1325_v12 = vadd.f32 %v1324_v48, %v7826_v14  ;;  %v1438_v61 = vadd.f32 %v1437_v4, %v7831_v33  ;;  %v6189_v41 = vld [vmem:[#allocation14 + $0x1cc] ss:$16 sps:$4 sm:$0xff]   ;;  %v6187_v40 = vld [vmem:[#allocation14 + $0x1c8] ss:$16 sps:$4 sm:$0xff]   ;;  %3769 = vmatprep.subr.bf16.mxu1 %v6186_v0 }
 0x3da   :  { %v1750_v37 = vmax.f32 %v1323_v10, 0.0  ;;  %v1752_v7 = vmax.f32 %v1436_v36, 0.0  ;;  %3933 = vmatprep.subr.bf16.mxu0 %v6189_v41  ;;  %3770 = vmatpush1.bf16.msra.mxu1 %v6184_v59  ;;  %v6190_v48 = vld [vmem:[#allocation14 + $0x1e0] ss:$16 sps:$4 sm:$0xff]   ;;  %v6193_v4 = vld [vmem:[#allocation14 + $0x1e8] ss:$16 sps:$4 sm:$0xff]  }
 0x3db   :  { %v1751_v18 = vmax.f32 %v1325_v12, 0.0  ;;  %v1753_v22 = vmax.f32 %v1438_v61, 0.0  ;;  %3934 = vmatpush1.bf16.msra.mxu0 %v6187_v40  ;;  %3771 = vmatprep.subr.bf16.mxu1 %v6192_v52 }
 0x3dc   :  { %v1862_v47 = vpack.c.bf16 %v1750_v37, %v1742_v11  ;;  %v1864_v5 = vpack.c.bf16 %v1752_v7, %v1744_v1  ;;  %3935 = vmatprep.subr.bf16.mxu0 %v6195_v44  ;;  %v6198_v7 = vld [vmem:[#allocation14 + $0x204] ss:$16 sps:$4 sm:$0xff]  }
 0x3dd   :  { %v1863_v20 = vpack.c.bf16 %v1751_v18, %v1743_v2  ;;  %v1865_v15 = vpack.c.bf16 %v1753_v22, %v1745_v16  ;;  %v6201_v18 = vld [vmem:[#allocation14 + $0x20c] ss:$16 sps:$4 sm:$0xff]  }
 0x3de   :  { %v1918_v8 = vmax.bf16 %v1862_v47, %v7841_v43  ;;  %v1944_v3 = vmax.bf16 %v1864_v5, %v7843_v19  ;;  %3772 = vmatpush1.bf16.msra.mxu1 %v6190_v48 }
 0x3df   :  { %v1931_v10 = vmax.bf16 %v1863_v20, %v7845_v13  ;;  %v1957_v36 = vmax.bf16 %v1865_v15, %v7847_v46  ;;  %3936 = vmatpush1.bf16.msra.mxu0 %v6193_v4  ;;  %3782 = vmatprep.subr.bf16.mxu1 %v6198_v7 }
 0x3e0   :  { %3946 = vmatprep.subr.bf16.mxu0 %v6201_v18 }
 0x3ed   :  { %v1328_v59 = vpop.f32.mrb[8].mxu1  ;;  %v1441_v47 = vpop.f32.mrb[24].mxu0 }
 0x3ee   :  { %v1329_v5 = vadd.f32 %v1328_v59, %v7818_v50  ;;  %v1442_v43 = vadd.f32 %v1441_v47, %v7822_v62  ;;  %v1330_v37 = vpop.f32.mrb[9].mxu1  ;;  %v1443_v19 = vpop.f32.mrb[25].mxu0 }
 0x3ef   :  { %v1331_v13 = vadd.f32 %v1330_v37, %v7826_v14  ;;  %v1444_v46 = vadd.f32 %v1443_v19, %v7831_v33  ;;  %v1332_v11 = vpop.f32.mrb[10].mxu1  ;;  %v1445_v1 = vpop.f32.mrb[26].mxu0 }
 0x3f0   :  { %v1333_v2 = vadd.f32 %v1332_v11, %v7818_v50  ;;  %v1446_v16 = vadd.f32 %v1445_v1, %v7822_v62  ;;  %v1334_v12 = vpop.f32.mrb[11].mxu1  ;;  %v1447_v61 = vpop.f32.mrb[27].mxu0  ;;  %v1758_v22 = vmax.f32 %v1329_v5, 0.0  ;;  %v1760_v40 = vmax.f32 %v1442_v43, 0.0 }
 0x3f1   :  { %v1335_v0 = vadd.f32 %v1334_v12, %v7826_v14  ;;  %v1448_v41 = vadd.f32 %v1447_v61, %v7831_v33  ;;  %v1759_v52 = vmax.f32 %v1331_v13, 0.0  ;;  %v1761_v44 = vmax.f32 %v1444_v46, 0.0 }
 0x3f2   :  { %v1766_v20 = vmax.f32 %v1333_v2, 0.0  ;;  %v1768_v15 = vmax.f32 %v1446_v16, 0.0 }
 0x3f3   :  { %v1767_v48 = vmax.f32 %v1335_v0, 0.0  ;;  %v1769_v4 = vmax.f32 %v1448_v41, 0.0 }
 0x3f4   :  { %v1870_v7 = vpack.c.bf16 %v1766_v20, %v1758_v22  ;;  %v1872_v18 = vpack.c.bf16 %v1768_v15, %v1760_v40 }
 0x3f5   :  { %v1871_v59 = vpack.c.bf16 %v1767_v48, %v1759_v52  ;;  %v1873_v47 = vpack.c.bf16 %v1769_v4, %v1761_v44  ;;  %v1338_v37 = vpop.f32.mrb[12].mxu1  ;;  %v1451_v19 = vpop.f32.mrb[28].mxu0 }
 0x3f6   :  { %v1919_v11 = vmax.bf16 %v1918_v8, %v1870_v7  ;;  %v1945_v1 = vmax.bf16 %v1944_v3, %v1872_v18  ;;  %v1339_v12 = vadd.f32 %v1338_v37, %v7818_v50  ;;  %v1452_v61 = vadd.f32 %v1451_v19, %v7822_v62  ;;  %v1340_v5 = vpop.f32.mrb[13].mxu1  ;;  %v1453_v43 = vpop.f32.mrb[29].mxu0 }
 0x3f7   :  { %v1932_v2 = vmax.bf16 %v1931_v10, %v1871_v59  ;;  %v1958_v16 = vmax.bf16 %v1957_v36, %v1873_v47  ;;  %v1341_v13 = vadd.f32 %v1340_v5, %v7826_v14  ;;  %v1454_v46 = vadd.f32 %v1453_v43, %v7831_v33  ;;  %v1342_v0 = vpop.f32.mrb[14].mxu1  ;;  %v1455_v41 = vpop.f32.mrb[30].mxu0 }
 0x3f8   :  { %v1343_v22 = vadd.f32 %v1342_v0, %v7818_v50  ;;  %v1456_v40 = vadd.f32 %v1455_v41, %v7822_v62  ;;  %v1344_v8 = vpop.f32.mrb[15].mxu1  ;;  %v1457_v3 = vpop.f32.mrb[31].mxu0  ;;  %v1774_v52 = vmax.f32 %v1339_v12, 0.0  ;;  %v1776_v44 = vmax.f32 %v1452_v61, 0.0 }
 0x3f9   :  { %v1345_v20 = vadd.f32 %v1344_v8, %v7826_v14  ;;  %v1458_v15 = vadd.f32 %v1457_v3, %v7831_v33  ;;  %v1775_v48 = vmax.f32 %v1341_v13, 0.0  ;;  %v1777_v4 = vmax.f32 %v1454_v46, 0.0 }
 0x3fa   :  { %v1782_v10 = vmax.f32 %v1343_v22, 0.0  ;;  %v1784_v36 = vmax.f32 %v1456_v40, 0.0 }
 0x3fb   :  { %v1783_v7 = vmax.f32 %v1345_v20, 0.0  ;;  %v1785_v18 = vmax.f32 %v1458_v15, 0.0 }
 0x3fc   :  { %v1878_v59 = vpack.c.bf16 %v1782_v10, %v1774_v52  ;;  %v1880_v47 = vpack.c.bf16 %v1784_v36, %v1776_v44 }
 0x3fd   :  { %v1879_v37 = vpack.c.bf16 %v1783_v7, %v1775_v48  ;;  %v1881_v19 = vpack.c.bf16 %v1785_v18, %v1777_v4 }
 0x3fe   :  { %v7877_v5 = vmax.bf16 %v1919_v11, %v1878_v59  ;;  %v7879_v43 = vmax.bf16 %v1945_v1, %v1880_v47 }
 0x3ff   :  { %v7881_v0 = vmax.bf16 %v1932_v2, %v1879_v37  ;;  %v7883_v41 = vmax.bf16 %v1958_v16, %v1881_v19 }
 0x412   :  { %v1348_v12 = vpop.f32.mrb[16].mxu1  ;;  %v1461_v61 = vpop.f32.mrb[32].mxu0 }
 0x413   :  { %v1349_v22 = vadd.f32 %v1348_v12, %v7818_v50  ;;  %v1462_v13 = vadd.f32 %v1461_v61, %v7822_v62  ;;  %v1350_v46 = vpop.f32.mrb[17].mxu1  ;;  %v1463_v40 = vpop.f32.mrb[33].mxu0 }
 0x414   :  { %v1351_v8 = vadd.f32 %v1350_v46, %v7826_v14  ;;  %v1464_v3 = vadd.f32 %v1463_v40, %v7831_v33  ;;  %v1352_v11 = vpop.f32.mrb[18].mxu1  ;;  %v1465_v20 = vpop.f32.mrb[34].mxu0 }
 0x415   :  { %v1353_v1 = vadd.f32 %v1352_v11, %v7818_v50  ;;  %v1466_v2 = vadd.f32 %v1465_v20, %v7822_v62  ;;  %v1354_v16 = vpop.f32.mrb[19].mxu1  ;;  %v1467_v15 = vpop.f32.mrb[35].mxu0  ;;  %v1790_v10 = vmax.f32 %v1349_v22, 0.0  ;;  %v1792_v36 = vmax.f32 %v1462_v13, 0.0 }
 0x416   :  { %v1355_v52 = vadd.f32 %v1354_v16, %v7826_v14  ;;  %v1468_v44 = vadd.f32 %v1467_v15, %v7831_v33  ;;  %v1791_v7 = vmax.f32 %v1351_v8, 0.0  ;;  %v1793_v18 = vmax.f32 %v1464_v3, 0.0 }
 0x417   :  { %v1798_v48 = vmax.f32 %v1353_v1, 0.0  ;;  %v1800_v4 = vmax.f32 %v1466_v2, 0.0 }
 0x418   :  { %v1799_v59 = vmax.f32 %v1355_v52, 0.0  ;;  %v1801_v47 = vmax.f32 %v1468_v44, 0.0 }
 0x419   :  { %v7893_v37 = vpack.c.bf16 %v1798_v48, %v1790_v10  ;;  %v7895_v19 = vpack.c.bf16 %v1800_v4, %v1792_v36 }
 0x41a   :  { %v7897_v12 = vpack.c.bf16 %v1799_v59, %v1791_v7  ;;  %v7899_v61 = vpack.c.bf16 %v1801_v47, %v1793_v18  ;;  %v1358_v46 = vpop.f32.mrb[20].mxu1  ;;  %v1471_v40 = vpop.f32.mrb[36].mxu0 }
 0x41b   :  { %v1359_v11 = vadd.f32 %v1358_v46, %v7818_v50  ;;  %v1472_v22 = vadd.f32 %v1471_v40, %v7822_v62  ;;  %v1360_v13 = vpop.f32.mrb[21].mxu1  ;;  %v1473_v20 = vpop.f32.mrb[37].mxu0 }
 0x41c   :  { %v1361_v8 = vadd.f32 %v1360_v13, %v7826_v14  ;;  %v1474_v3 = vadd.f32 %v1473_v20, %v7831_v33  ;;  %v1362_v1 = vpop.f32.mrb[22].mxu1  ;;  %v1475_v2 = vpop.f32.mrb[38].mxu0 }
 0x41d   :  { %v1363_v16 = vadd.f32 %v1362_v1, %v7818_v50  ;;  %v1476_v15 = vadd.f32 %v1475_v2, %v7822_v62  ;;  %v1364_v52 = vpop.f32.mrb[23].mxu1  ;;  %v1477_v44 = vpop.f32.mrb[39].mxu0  ;;  %v1806_v48 = vmax.f32 %v1359_v11, 0.0  ;;  %v1808_v4 = vmax.f32 %v1472_v22, 0.0 }
 0x41e   :  { %v1365_v10 = vadd.f32 %v1364_v52, %v7826_v14  ;;  %v1478_v36 = vadd.f32 %v1477_v44, %v7831_v33  ;;  %v1807_v59 = vmax.f32 %v1361_v8, 0.0  ;;  %v1809_v47 = vmax.f32 %v1474_v3, 0.0 }
 0x41f   :  { %v1814_v7 = vmax.f32 %v1363_v16, 0.0  ;;  %v1816_v18 = vmax.f32 %v1476_v15, 0.0  ;;  %v1921_v3 = vunpack.i.l.bf16 %v7877_v5  ;;  %v1922_v16 = vunpack.i.h.bf16 %v7877_v5 }
 0x420   :  { %v1815_v46 = vmax.f32 %v1365_v10, 0.0  ;;  %v1817_v40 = vmax.f32 %v1478_v36, 0.0  ;;  %v1934_v15 = vunpack.i.l.bf16 %v7881_v0  ;;  %v1935_v44 = vunpack.i.h.bf16 %v7881_v0 }
 0x421   :  { %v7909_v13 = vpack.c.bf16 %v1814_v7, %v1806_v48  ;;  %v7911_v20 = vpack.c.bf16 %v1816_v18, %v1808_v4  ;;  %v1960_v10 = vunpack.i.l.bf16 %v7883_v41  ;;  %v1961_v36 = vunpack.i.h.bf16 %v7883_v41 }
 0x422   :  { %v7913_v1 = vpack.c.bf16 %v1815_v46, %v1807_v59  ;;  %v7915_v2 = vpack.c.bf16 %v1817_v40, %v1809_v47  ;;  %v1923_v48 = vmax.f32 %v1921_v3, %v1922_v16  ;;  %v1936_v4 = vmax.f32 %v1934_v15, %v1935_v44 }
 0x423   :  { %v1962_v7 = vmax.f32 %v1960_v10, %v1961_v36  ;;  %v1947_v59 = vunpack.i.l.bf16 %v7879_v43  ;;  %v1948_v47 = vunpack.i.h.bf16 %v7879_v43  ;;  %v932_v5 = vsub.s32 4, %v7501_v28 }
 0x424   :  { %v1924_v18 = vrot.slane %v1923_v48, 4  ;;  %v1937_v46 = vrot.slane %v1936_v4, 4  ;;  %v940_v8 = vsub.s32 6, %v7501_v28 }
 0x425   :  { %v1963_v40 = vrot.slane %v1962_v7, 4  ;;  %v1949_v0 = vmax.f32 %v1947_v59, %v1948_v47  ;;  %v7938_v43 = vrot.slane %v7813_v45, %v932_v5 }
 0x426   :  { %v1925_v22 = vmax.f32 %v1923_v48, %v1924_v18  ;;  %v1938_v11 = vmax.f32 %v1936_v4, %v1937_v46 }
 0x427   :  { %v1964_v52 = vmax.f32 %v1962_v7, %v1963_v40  ;;  %v7944_v7 = vrot.slane %v7813_v45, %v940_v8  ;;  %v1950_v47 = vrot.slane %v1949_v0, 4 }
 0x428   :  { %v1926_v59 = vrot.slane %v1925_v22, 2  ;;  %v1939_v10 = vrot.slane %v1938_v11, 2 }
 0x429   :  { %v1965_v57 = vrot.slane %v1964_v52, 2 }
 0x42a   :  { %v1927_v51 = vmax.f32 %v1925_v22, %v1926_v59  ;;  %v1940_v42 = vmax.f32 %v1938_v11, %v1939_v10 }
 0x433   :  { %v1368_v9 = vpop.f32.mrb[24].mxu1  ;;  %v1481_v41 = vpop.f32.mrb[40].mxu0 }
 0x434   :  { %v1369_v3 = vadd.f32 %v1368_v9, %v7818_v50  ;;  %v1482_v16 = vadd.f32 %v1481_v41, %v7822_v62  ;;  %v1370_v15 = vpop.f32.mrb[25].mxu1  ;;  %v1483_v44 = vpop.f32.mrb[41].mxu0  ;;  %v944_v9 = vsub.s32 7, %v7501_v28 }
 0x435   :  { %v1371_v36 = vadd.f32 %v1370_v15, %v7826_v14  ;;  %v1484_v48 = vadd.f32 %v1483_v44, %v7831_v33  ;;  %v1372_v18 = vpop.f32.mrb[26].mxu1  ;;  %v1485_v4 = vpop.f32.mrb[42].mxu0 }
 0x436   :  { %v1373_v46 = vadd.f32 %v1372_v18, %v7818_v50  ;;  %v1486_v40 = vadd.f32 %v1485_v4, %v7822_v62  ;;  %v1374_v5 = vpop.f32.mrb[27].mxu1  ;;  %v1487_v41 = vpop.f32.mrb[43].mxu0  ;;  %v1822_v21 = vmax.f32 %v1369_v3, 0.0  ;;  %v1824_v55 = vmax.f32 %v1482_v16, 0.0 }
 0x437   :  { %v1375_v15 = vadd.f32 %v1374_v5, %v7826_v14  ;;  %v1488_v44 = vadd.f32 %v1487_v41, %v7831_v33  ;;  %v1823_v60 = vmax.f32 %v1371_v36, 0.0  ;;  %v1825_v58 = vmax.f32 %v1484_v48, 0.0 }
 0x438   :  { %v1830_v8 = vmax.f32 %v1373_v46, 0.0  ;;  %v1832_v49 = vmax.f32 %v1486_v40, 0.0  ;;  %v1951_v18 = vmax.f32 %v1949_v0, %v1950_v47  ;;  %v1966_v5 = vmax.f32 %v1964_v52, %v1965_v57 }
 0x439   :  { %v1831_v56 = vmax.f32 %v1375_v15, 0.0  ;;  %v1833_v63 = vmax.f32 %v1488_v44, 0.0  ;;  %v8472_v3 = vmax.bf16 %v7909_v13, %v7893_v37  ;;  %v8473_v36 = vmax.bf16 %v7911_v20, %v7895_v19 }
 0x43a   :  { %v1902_v6 = vpack.c.bf16 %v1830_v8, %v1822_v21  ;;  %v1904_v4 = vpack.c.bf16 %v1832_v49, %v1824_v55  ;;  %v1928_v19 = vrot.slane %v1927_v51, 1 }
 0x43b   :  { %v1903_v39 = vpack.c.bf16 %v1831_v56, %v1823_v60  ;;  %v1905_v53 = vpack.c.bf16 %v1833_v63, %v1825_v58  ;;  %v1378_v34 = vpop.f32.mrb[28].mxu1  ;;  %v1491_v26 = vpop.f32.mrb[44].mxu0  ;;  %v8474_v63 = vmax.bf16 %v7913_v1, %v7897_v12  ;;  %v8475_v56 = vmax.bf16 %v7915_v2, %v7899_v61 }
 0x43c   :  { %v2023_v16 = vmax.bf16 %v8472_v3, %v1902_v6  ;;  %v2049_v48 = vmax.bf16 %v8473_v36, %v1904_v4  ;;  %v1379_v46 = vadd.f32 %v1378_v34, %v7818_v50  ;;  %v1492_v22 = vadd.f32 %v1491_v26, %v7822_v62  ;;  %v1380_v21 = vpop.f32.mrb[29].mxu1  ;;  %v1493_v49 = vpop.f32.mrb[45].mxu0 }
 0x43d   :  { %v2036_v55 = vmax.bf16 %v8474_v63, %v1903_v39  ;;  %v2062_v57 = vmax.bf16 %v8475_v56, %v1905_v53  ;;  %v1381_v6 = vadd.f32 %v1380_v21, %v7826_v14  ;;  %v1494_v58 = vadd.f32 %v1493_v49, %v7831_v33  ;;  %v1382_v60 = vpop.f32.mrb[30].mxu1  ;;  %v1495_v37 = vpop.f32.mrb[46].mxu0 }
 0x43e   :  { %v1952_v34 = vrot.slane %v1951_v18, 2  ;;  %v1383_v26 = vadd.f32 %v1382_v60, %v7818_v50  ;;  %v1496_v13 = vadd.f32 %v1495_v37, %v7822_v62  ;;  %v1384_v20 = vpop.f32.mrb[31].mxu1  ;;  %v1497_v52 = vpop.f32.mrb[47].mxu0  ;;  %v1941_v61 = vrot.slane %v1940_v42, 1 }
 0x43f   :  { %v1385_v39 = vadd.f32 %v1384_v20, %v7826_v14  ;;  %v1498_v12 = vadd.f32 %v1497_v52, %v7831_v33  ;;  %v1967_v53 = vrot.slane %v1966_v5, 1  ;;  %v1838_v1 = vmax.f32 %v1379_v46, 0.0 }
 0x440   :  { %v1840_v2 = vmax.f32 %v1492_v22, 0.0  ;;  %v1846_v11 = vmax.f32 %v1383_v26, 0.0  ;;  %v1848_v0 = vmax.f32 %v1496_v13, 0.0  ;;  %v1839_v10 = vmax.f32 %v1381_v6, 0.0 }
 0x441   :  { %v1841_v59 = vmax.f32 %v1494_v58, 0.0  ;;  %v1847_v47 = vmax.f32 %v1385_v39, 0.0  ;;  %v1849_v40 = vmax.f32 %v1498_v12, 0.0  ;;  %v8476_v62 = vsub.s32 5, %v7501_v28 }
 0x442   :  { %v1910_v41 = vpack.c.bf16 %v1846_v11, %v1838_v1  ;;  %v1912_v50 = vpack.c.bf16 %v1848_v0, %v1840_v2  ;;  %v7977_v14 = vrot.slane %v7813_v45, %v944_v9  ;;  %v7979_v33 = vmax.f32 %v1927_v51, %v1928_v19 }
 0x443   :  { %v7974_v15 = vrot.slane %v7813_v45, %v8476_v62  ;;  %v7981_v44 = vmax.f32 %v1951_v18, %v1952_v34  ;;  %v1911_v8 = vpack.c.bf16 %v1847_v47, %v1839_v10  ;;  %v1913_v4 = vpack.c.bf16 %v1849_v40, %v1841_v59  ;;  %v1534_v3 = vpop.f32.mrb[32].mxu1  ;;  %v1647_v36 = vpop.f32.mrb[48].mxu0 }
 0x444   :  { %v2024_v46 = vmax.bf16 %v2023_v16, %v1910_v41  ;;  %v2050_v22 = vmax.bf16 %v2049_v48, %v1912_v50  ;;  %v1536_v21 = vpop.f32.mrb[33].mxu1  ;;  %v1649_v49 = vpop.f32.mrb[49].mxu0  ;;  %v7983_v63 = vmax.f32 %v1940_v42, %v1941_v61  ;;  %v7985_v56 = vmax.f32 %v1966_v5, %v1967_v53 }
 0x445   :  { %v2037_v6 = vmax.bf16 %v2036_v55, %v1911_v8  ;;  %v2063_v58 = vmax.bf16 %v2062_v57, %v1913_v4  ;;  %v1535_v45 = vadd.f32 %v1534_v3, %v7938_v43  ;;  %v1648_v51 = vadd.f32 %v1647_v36, %v7944_v7  ;;  %v1538_v9 = vpop.f32.mrb[34].mxu1  ;;  %v1651_v18 = vpop.f32.mrb[50].mxu0 }
 0x446   :  { %v2025_v60 = vunpack.i.l.bf16 %v2024_v46  ;;  %v2026_v37 = vunpack.i.h.bf16 %v2024_v46  ;;  %v2051_v19 = vunpack.i.l.bf16 %v2050_v22  ;;  %v2052_v34 = vunpack.i.h.bf16 %v2050_v22  ;;  %v1540_v16 = vpop.f32.mrb[35].mxu1  ;;  %v1653_v48 = vpop.f32.mrb[51].mxu0 }
 0x447   :  { %v2038_v26 = vunpack.i.l.bf16 %v2037_v6  ;;  %v2039_v13 = vunpack.i.h.bf16 %v2037_v6  ;;  %v2064_v42 = vunpack.i.l.bf16 %v2063_v58  ;;  %v2065_v20 = vunpack.i.h.bf16 %v2063_v58 }
 0x448   :  { %v1930_v5 = vpack.i.bf16 %v7979_v33, %v7979_v33  ;;  %v2027_v55 = vmax.f32 %v2025_v60, %v2026_v37  ;;  %v2053_v57 = vmax.f32 %v2051_v19, %v2052_v34  ;;  %v1537_v52 = vadd.f32 %v1536_v21, %v7974_v15 }
 0x449   :  { %v2040_v39 = vmax.f32 %v2038_v26, %v2039_v13  ;;  %v2066_v12 = vmax.f32 %v2064_v42, %v2065_v20  ;;  %v1730_v61 = vmax.f32 %v1535_v45, 0.0  ;;  %v1650_v53 = vadd.f32 %v1649_v49, %v7977_v14 }
 0x44a   :  { %v2028_v1 = vrot.slane %v2027_v55, 4  ;;  %v1732_v2 = vmax.f32 %v1648_v51, 0.0  ;;  %v1539_v11 = vadd.f32 %v1538_v9, %v7938_v43  ;;  %v1652_v0 = vadd.f32 %v1651_v18, %v7944_v7 }
 0x44b   :  { %v2054_v10 = vrot.slane %v2053_v57, 4  ;;  %v2041_v59 = vrot.slane %v2040_v39, 4  ;;  %v1541_v47 = vadd.f32 %v1540_v16, %v7974_v15  ;;  %v1654_v40 = vadd.f32 %v1653_v48, %v7977_v14  ;;  %v1544_v41 = vpop.f32.mrb[36].mxu1  ;;  %v1657_v50 = vpop.f32.mrb[52].mxu0 }
 0x44c   :  { %v2029_v62 = vmax.f32 %v2027_v55, %v2028_v1  ;;  %v2067_v33 = vrot.slane %v2066_v12, 4  ;;  %v1738_v8 = vmax.f32 %v1539_v11, 0.0  ;;  %v1740_v4 = vmax.f32 %v1652_v0, 0.0  ;;  %v1546_v3 = vpop.f32.mrb[37].mxu1  ;;  %v1659_v36 = vpop.f32.mrb[53].mxu0 }
 0x44d   :  { %v1731_v46 = vmax.f32 %v1537_v52, 0.0  ;;  %v1733_v22 = vmax.f32 %v1650_v53, 0.0  ;;  %v1739_v21 = vmax.f32 %v1541_v47, 0.0  ;;  %v1741_v49 = vmax.f32 %v1654_v40, 0.0  ;;  %v1548_v6 = vpop.f32.mrb[38].mxu1  ;;  %v1661_v58 = vpop.f32.mrb[54].mxu0 }
 0x44e   :  { %v2030_v45 = vrot.slane %v2029_v62, 2  ;;  %v2042_v51 = vmax.f32 %v2040_v39, %v2041_v59  ;;  %v7997_v9 = vpack.c.bf16 %v1738_v8, %v1730_v61  ;;  %v7999_v18 = vpack.c.bf16 %v1740_v4, %v1732_v2  ;;  %v1550_v60 = vpop.f32.mrb[39].mxu1  ;;  %v1663_v37 = vpop.f32.mrb[55].mxu0 }
 0x44f   :  { %v8001_v19 = vunpack.c.l.b16 %v1930_v5  ;;  %v8003_v34 = vmax.f32 %v2053_v57, %v2054_v10  ;;  %v8005_v16 = vpack.c.bf16 %v1739_v21, %v1731_v46  ;;  %v8007_v48 = vpack.c.bf16 %v1741_v49, %v1733_v22 }
 0x450   :  { %v2031_v26 = vmax.f32 %v2029_v62, %v2030_v45  ;;  %v8009_v13 = vmax.f32 %v2066_v12, %v2067_v33  ;;  %v1545_v42 = vadd.f32 %v1544_v41, %v7938_v43  ;;  %v1658_v20 = vadd.f32 %v1657_v50, %v7944_v7 }
 0x451   :  { %v1547_v55 = vadd.f32 %v1546_v3, %v7974_v15  ;;  %v1660_v52 = vadd.f32 %v1659_v36, %v7977_v14  ;;  %v1549_v5 = vadd.f32 %v1548_v6, %v7938_v43  ;;  %v1662_v57 = vadd.f32 %v1661_v58, %v7944_v7 }
 0x452   :  { %v2032_v39 = vrot.slane %v2031_v26, 1  ;;  %v2043_v61 = vrot.slane %v2042_v51, 2  ;;  %v1746_v53 = vmax.f32 %v1545_v42, 0.0  ;;  %v1748_v1 = vmax.f32 %v1658_v20, 0.0 }
 0x453   :  { %v1747_v2 = vmax.f32 %v1547_v55, 0.0  ;;  %v1749_v12 = vmax.f32 %v1660_v52, 0.0  ;;  %v1754_v11 = vmax.f32 %v1549_v5, 0.0  ;;  %v1756_v0 = vmax.f32 %v1662_v57, 0.0  ;;  %v1554_v10 = vpop.f32.mrb[40].mxu1  ;;  %v1667_v59 = vpop.f32.mrb[56].mxu0 }
 0x454   :  { %v2033_v47 = vmax.f32 %v2031_v26, %v2032_v39  ;;  %v1551_v40 = vadd.f32 %v1550_v60, %v7974_v15  ;;  %v1664_v41 = vadd.f32 %v1663_v37, %v7977_v14  ;;  %v1555_v50 = vadd.f32 %v1554_v10, %v7938_v43  ;;  %v1556_v62 = vpop.f32.mrb[41].mxu1  ;;  %v1669_v33 = vpop.f32.mrb[57].mxu0 }
 0x455   :  { %v1866_v8 = vpack.c.bf16 %v1754_v11, %v1746_v53  ;;  %v1868_v4 = vpack.c.bf16 %v1756_v0, %v1748_v1  ;;  %v1668_v3 = vadd.f32 %v1667_v59, %v7944_v7  ;;  %v1557_v36 = vadd.f32 %v1556_v62, %v7974_v15  ;;  %v1558_v46 = vpop.f32.mrb[42].mxu1  ;;  %v1671_v22 = vpop.f32.mrb[58].mxu0 }
 0x456   :  { %v2034_v21 = vpack.i.bf16 %v2033_v47, %v2033_v47  ;;  %v1755_v49 = vmax.f32 %v1551_v40, 0.0  ;;  %v1757_v6 = vmax.f32 %v1664_v41, 0.0  ;;  %v1762_v58 = vmax.f32 %v1555_v50, 0.0  ;;  %v1560_v45 = vpop.f32.mrb[43].mxu1  ;;  %v1673_v60 = vpop.f32.mrb[59].mxu0 }
 0x457   :  { %v1970_v37 = vmax.bf16 %v1866_v8, %v7997_v9  ;;  %v1996_v26 = vmax.bf16 %v1868_v4, %v7999_v18  ;;  %v1764_v42 = vmax.f32 %v1668_v3, 0.0  ;;  %v1763_v20 = vmax.f32 %v1557_v36, 0.0 }
 0x458   :  { %v2428_v55 = vunpack.c.l.b16 %v2034_v21  ;;  %v1867_v52 = vpack.c.bf16 %v1755_v49, %v1747_v2  ;;  %v1869_v5 = vpack.c.bf16 %v1757_v6, %v1749_v12  ;;  %v1670_v57 = vadd.f32 %v1669_v33, %v7977_v14 }
 0x459   :  { %v1559_v39 = vadd.f32 %v1558_v46, %v7938_v43  ;;  %v1672_v53 = vadd.f32 %v1671_v22, %v7944_v7  ;;  %v1561_v1 = vadd.f32 %v1560_v45, %v7974_v15  ;;  %v1674_v11 = vadd.f32 %v1673_v60, %v7977_v14 }
 0x45a   :  { %v1983_v0 = vmax.bf16 %v1867_v52, %v8005_v16  ;;  %v2009_v9 = vmax.bf16 %v1869_v5, %v8007_v48  ;;  %v1765_v18 = vmax.f32 %v1670_v57, 0.0  ;;  %v2044_v10 = vmax.f32 %v2042_v51, %v2043_v61 }
 0x45b   :  { %v1770_v59 = vmax.f32 %v1559_v39, 0.0  ;;  %v1772_v47 = vmax.f32 %v1672_v53, 0.0  ;;  %v1771_v2 = vmax.f32 %v1561_v1, 0.0  ;;  %v1773_v12 = vmax.f32 %v1674_v11, 0.0  ;;  %v1564_v40 = vpop.f32.mrb[44].mxu1  ;;  %v1677_v41 = vpop.f32.mrb[60].mxu0 }
 0x45c   :  { %v1565_v50 = vadd.f32 %v1564_v40, %v7938_v43  ;;  %v1678_v62 = vadd.f32 %v1677_v41, %v7944_v7  ;;  %v1566_v33 = vpop.f32.mrb[45].mxu1  ;;  %v1679_v8 = vpop.f32.mrb[61].mxu0  ;;  %v2045_v4 = vrot.slane %v2044_v10, 1  ;;  %v8035_v16 = vsel %vm2436_vm1, %v2428_v55, %v8001_v19 }
 0x45d   :  { %v1874_v48 = vpack.c.bf16 %v1770_v59, %v1762_v58  ;;  %v1876_v3 = vpack.c.bf16 %v1772_v47, %v1764_v42  ;;  %v1875_v51 = vpack.c.bf16 %v1771_v2, %v1763_v20  ;;  %v1877_v61 = vpack.c.bf16 %v1773_v12, %v1765_v18  ;;  %v1568_v36 = vpop.f32.mrb[46].mxu1  ;;  %v1681_v46 = vpop.f32.mrb[62].mxu0 }
 0x45e   :  { %v2069_v22 = vrot.slane %v8009_v13, 2  ;;  %v1567_v21 = vadd.f32 %v1566_v33, %v7974_v15  ;;  %v1680_v49 = vadd.f32 %v1679_v8, %v7977_v14  ;;  %v1570_v6 = vpop.f32.mrb[47].mxu1  ;;  %v1683_v45 = vpop.f32.mrb[63].mxu0  ;;  %v1943_v60 = vpack.i.bf16 %v7983_v63, %v7983_v63 }
 0x45f   :  { %v1971_v52 = vmax.bf16 %v1970_v37, %v1874_v48  ;;  %v1997_v19 = vmax.bf16 %v1996_v26, %v1876_v3  ;;  %v1984_v55 = vmax.bf16 %v1983_v0, %v1875_v51  ;;  %v2010_v58 = vmax.bf16 %v2009_v9, %v1877_v61 }
 0x460   :  { %v2056_v42 = vrot.slane %v8003_v34, 2  ;;  %v1778_v20 = vmax.f32 %v1565_v50, 0.0  ;;  %v1569_v5 = vadd.f32 %v1568_v36, %v7938_v43  ;;  %v1682_v57 = vadd.f32 %v1681_v46, %v7944_v7 }
 0x461   :  { %v1780_v39 = vmax.f32 %v1678_v62, 0.0  ;;  %v1571_v53 = vadd.f32 %v1570_v6, %v7974_v15  ;;  %v1684_v1 = vadd.f32 %v1683_v45, %v7977_v14  ;;  %v2046_v11 = vmax.f32 %v2044_v10, %v2045_v4 }
 0x462   :  { %v1779_v18 = vmax.f32 %v1567_v21, 0.0  ;;  %v1786_v59 = vmax.f32 %v1569_v5, 0.0  ;;  %v1788_v63 = vmax.f32 %v1682_v57, 0.0  ;;  %v2070_v37 = vmax.f32 %v8009_v13, %v2069_v22 }
 0x463   :  { %v1781_v26 = vmax.f32 %v1680_v49, 0.0  ;;  %v1787_v0 = vmax.f32 %v1571_v53, 0.0  ;;  %v1789_v9 = vmax.f32 %v1684_v1, 0.0  ;;  %v2047_v47 = vpack.i.bf16 %v2046_v11, %v2046_v11  ;;  %v1574_v2 = vpop.f32.mrb[48].mxu1  ;;  %v1687_v12 = vpop.f32.mrb[64].mxu0 }
 0x464   :  { %v1954_v40 = vrot.slane %v7981_v44, 1  ;;  %v1882_v41 = vpack.c.bf16 %v1786_v59, %v1778_v20  ;;  %v1884_v50 = vpack.c.bf16 %v1788_v63, %v1780_v39  ;;  %v2071_v62 = vrot.slane %v2070_v37, 1  ;;  %v1576_v33 = vpop.f32.mrb[49].mxu1  ;;  %v8049_v8 = vpop.f32.mrb[65].mxu0  ;;  %v6196_v11 = vld [vmem:[#allocation14 + $0x200] ss:$16 sps:$4 sm:$0xff]  }
 0x465   :  { %v1883_v10 = vpack.c.bf16 %v1787_v0, %v1779_v18  ;;  %v1885_v4 = vpack.c.bf16 %v1789_v9, %v1781_v26  ;;  %v2421_v48 = vunpack.c.l.b16 %v1943_v60  ;;  %v2429_v3 = vunpack.c.l.b16 %v2047_v47  ;;  %v1578_v51 = vpop.f32.mrb[50].mxu1  ;;  %v8051_v13 = vpop.f32.mrb[66].mxu0  ;;  %v6199_v18 = vld [vmem:[#allocation14 + $0x208] ss:$16 sps:$4 sm:$0xff]   ;;  %v6204_v63 = vld [vmem:[#allocation14 + $0x224] ss:$16 sps:$4 sm:$0xff]  }
 0x466   :  { %v1972_v61 = vmax.bf16 %v1971_v52, %v1882_v41  ;;  %v1998_v36 = vmax.bf16 %v1997_v19, %v1884_v50  ;;  %v1969_v46 = vpack.i.bf16 %v7985_v56, %v7985_v56  ;;  %v2072_v22 = vmax.f32 %v2070_v37, %v2071_v62  ;;  %v8055_v21 = vpop.f32.mrb[51].mxu1  ;;  %v8057_v49 = vpop.f32.mrb[67].mxu0 }
 0x467   :  { %v2057_v6 = vmax.f32 %v8003_v34, %v2056_v42  ;;  %v1985_v45 = vmax.bf16 %v1984_v55, %v1883_v10  ;;  %v8060_v20 = vmax.bf16 %v2010_v58, %v1885_v4  ;;  %v2438_v60 = vsel %vm2436_vm1, %v2429_v3, %v2421_v48  ;;  %v6207_v58 = vld [vmem:[#allocation14 + $0x22c] ss:$16 sps:$4 sm:$0xff]   ;;  %v6202_v48 = vld [vmem:[#allocation14 + $0x220] ss:$16 sps:$4 sm:$0xff]  }
 0x468   :  { %v1973_v5 = vunpack.i.l.bf16 %v1972_v61  ;;  %v1974_v57 = vunpack.i.h.bf16 %v1972_v61  ;;  %v1575_v52 = vadd.f32 %v1574_v2, %v7938_v43  ;;  %v1999_v19 = vunpack.i.l.bf16 %v1998_v36 }
 0x469   :  { %v2000_v39 = vunpack.i.h.bf16 %v1998_v36  ;;  %v1986_v53 = vunpack.i.l.bf16 %v1985_v45  ;;  %v1987_v56 = vunpack.i.h.bf16 %v1985_v45  ;;  %v2446_v1 = vpack.c.b16 %v2438_v60, %v2438_v60 }
 0x46a   :  { %v2073_v59 = vpack.i.bf16 %v2072_v22, %v2072_v22  ;;  %v2058_v37 = vrot.slane %v2057_v6, 1  ;;  %v2445_v34 = vpack.c.b16 %v8035_v16, %v8035_v16  ;;  %v2423_v55 = vunpack.c.l.b16 %v1969_v46 }
 0x46b   :  { %v1584_v42 = vpop.f32.mrb[52].mxu1  ;;  %v8066_v26 = vpop.f32.mrb[68].mxu0  ;;  %v8069_v0 = vmax.f32 %v7981_v44, %v1954_v40  ;;  %v1975_v9 = vmax.f32 %v1973_v5, %v1974_v57  ;;  %3773 = vmatprep.mubr.bf16.mxu1 %v2446_v1  ;;  %3937 = vmatprep.mubr.bf16.mxu0 %v2446_v1  ;;  %v1688_v2 = vadd.f32 %v1687_v12, %v7944_v7  ;;  %v2012_v4 = vunpack.i.l.bf16 %v8060_v20  ;;  %v6210_v57 = vld [vmem:[#allocation14 + $0x244] ss:$16 sps:$4 sm:$0xff]  }
 0x46c   :  { %v2431_v47 = vunpack.c.l.b16 %v2073_v59  ;;  %v1579_v41 = vadd.f32 %v1578_v51, %v7938_v43  ;;  %v1586_v50 = vpop.f32.mrb[53].mxu1  ;;  %v8073_v62 = vpop.f32.mrb[69].mxu0  ;;  %v2001_v16 = vmax.f32 %v1999_v19, %v2000_v39  ;;  %v1988_v10 = vmax.f32 %v1986_v53, %v1987_v56  ;;  %3774 = vmatmul.mubr.bf16.vlgmr.msra.gmra.mrb[64].mxu1 %v2445_v34  ;;  %3938 = vmatmul.mubr.bf16.vlgmr.msra.gmra.mrb[80].mxu0 %v2445_v34  ;;  %v6205_v51 = vld [vmem:[#allocation14 + $0x228] ss:$16 sps:$4 sm:$0xff]   ;;  %v6208_v53 = vld [vmem:[#allocation14 + $0x240] ss:$16 sps:$4 sm:$0xff]  }
 0x46d   :  { %v1794_v44 = vmax.f32 %v1575_v52, 0.0  ;;  %v8076_v40 = vpop.f32.mrb[54].mxu1  ;;  %v8078_v3 = vpop.f32.mrb[70].mxu0  ;;  %v2013_v61 = vunpack.i.h.bf16 %v8060_v20  ;;  %3783 = vmatpush1.bf16.msra.mxu1 %v6196_v11  ;;  %3947 = vmatpush1.bf16.msra.mxu0 %v6199_v18  ;;  %v1577_v36 = vadd.f32 %v1576_v33, %v7974_v15  ;;  %v1690_v5 = vadd.f32 %v8049_v8, %v7977_v14  ;;  %v6213_v52 = vld [vmem:[#allocation14 + $0x24c] ss:$16 sps:$4 sm:$0xff]  }
 0x46e   :  { %v2440_v12 = vsel %vm2436_vm1, %v2431_v47, %v2423_v55  ;;  %v1802_v46 = vmax.f32 %v1579_v41, 0.0  ;;  %v1590_v22 = vpop.f32.mrb[55].mxu1  ;;  %v1703_v45 = vpop.f32.mrb[71].mxu0  ;;  %3784 = vmatprep.subr.bf16.mxu1 %v6204_v63  ;;  %3948 = vmatprep.subr.bf16.mxu0 %v6207_v58  ;;  %v1956_v20 = vpack.i.bf16 %v8069_v0, %v8069_v0  ;;  %v1976_v19 = vrot.slane %v1975_v9, 4  ;;  %v6211_v59 = vld [vmem:[#allocation14 + $0x248] ss:$16 sps:$4 sm:$0xff]  }
 0x46f   :  { %v2448_v60 = vpack.c.b16 %v2440_v12, %v2440_v12  ;;  %v1692_v33 = vadd.f32 %v8051_v13, %v7944_v7  ;;  %v8091_v56 = vmax.f32 %v2057_v6, %v2058_v37  ;;  %v2002_v1 = vrot.slane %v2001_v16, 4  ;;  %v6216_v63 = vld [vmem:[#allocation14 + $0x264] ss:$16 sps:$4 sm:$0xff]   ;;  %v6219_v37 = vld [vmem:[#allocation14 + $0x26c] ss:$16 sps:$4 sm:$0xff]  }
 0x470   :  { %v8087_v39 = vpack.c.bf16 %v1802_v46, %v1794_v44  ;;  %v1989_v11 = vrot.slane %v1988_v10, 4  ;;  %v1581_v8 = vadd.f32 %v8055_v21, %v7974_v15  ;;  %v1694_v18 = vadd.f32 %v8057_v49, %v7977_v14 }
 0x471   :  { %3814 = vmatprep.mubr.bf16.mxu1 %v2448_v60  ;;  %3978 = vmatprep.mubr.bf16.mxu0 %v2448_v60  ;;  %v8097_v34 = vmax.f32 %v2012_v4, %v2013_v61  ;;  %v1796_v55 = vmax.f32 %v1688_v2, 0.0  ;;  %v1795_v13 = vmax.f32 %v1577_v36, 0.0  ;;  %v1804_v6 = vmax.f32 %v1692_v33, 0.0 }
 0x472   :  { %3785 = vmatpush1.bf16.msra.mxu1 %v6202_v48  ;;  %3949 = vmatpush1.bf16.msra.mxu0 %v6205_v51  ;;  %v1797_v58 = vmax.f32 %v1690_v5, 0.0  ;;  %v1803_v47 = vmax.f32 %v1581_v8, 0.0  ;;  %v1805_v41 = vmax.f32 %v1694_v18, 0.0  ;;  %v1585_v21 = vadd.f32 %v1584_v42, %v7938_v43  ;;  %v6225_v8 = vld [vmem:[#allocation14 + $0x28c] ss:$16 sps:$4 sm:$0xff]  }
 0x473   :  { %3786 = vmatprep.subr.bf16.mxu1 %v6210_v57  ;;  %3950 = vmatprep.subr.bf16.mxu0 %v6213_v52  ;;  %v1594_v44 = vpop.f32.mrb[56].mxu1  ;;  %v1707_v12 = vpop.f32.mrb[72].mxu0  ;;  %v8100_v49 = vmax.f32 %v1975_v9, %v1976_v19  ;;  %v8102_v46 = vpack.c.bf16 %v1804_v6, %v1796_v55  ;;  %v1698_v2 = vadd.f32 %v8066_v26, %v7944_v7  ;;  %v6214_v57 = vld [vmem:[#allocation14 + $0x260] ss:$16 sps:$4 sm:$0xff]   ;;  %v6217_v52 = vld [vmem:[#allocation14 + $0x268] ss:$16 sps:$4 sm:$0xff]  }
 0x474   :  { %v1587_v4 = vadd.f32 %v1586_v50, %v7974_v15  ;;  %v1596_v48 = vpop.f32.mrb[57].mxu1  ;;  %v1709_v61 = vpop.f32.mrb[73].mxu0  ;;  %v8107_v51 = vmax.f32 %v2001_v16, %v2002_v1  ;;  %v8109_v36 = vmax.f32 %v1988_v10, %v1989_v11  ;;  %v8111_v60 = vpack.c.bf16 %v1803_v47, %v1795_v13  ;;  %v6222_v11 = vld [vmem:[#allocation14 + $0x284] ss:$16 sps:$4 sm:$0xff]   ;;  %v6223_v47 = vld [vmem:[#allocation14 + $0x288] ss:$16 sps:$4 sm:$0xff]  }
 0x475   :  { %v8113_v42 = vpack.c.bf16 %v1805_v41, %v1797_v58  ;;  %v1598_v5 = vpop.f32.mrb[58].mxu1  ;;  %v1711_v9 = vpop.f32.mrb[74].mxu0  ;;  %v1700_v26 = vadd.f32 %v8073_v62, %v7977_v14  ;;  %v1589_v50 = vadd.f32 %v8076_v40, %v7938_v43  ;;  %v1702_v16 = vadd.f32 %v8078_v3, %v7944_v7  ;;  %v6220_v58 = vld [vmem:[#allocation14 + $0x280] ss:$16 sps:$4 sm:$0xff]   ;;  %v6228_v41 = vld [vmem:[#allocation14 + $0x2a4] ss:$16 sps:$4 sm:$0xff]  }
 0x476   :  { %3787 = vmatpush1.bf16.msra.mxu1 %v6208_v53  ;;  %3951 = vmatpush1.bf16.msra.mxu0 %v6211_v59  ;;  %v1600_v10 = vpop.f32.mrb[59].mxu1  ;;  %v1713_v19 = vpop.f32.mrb[75].mxu0  ;;  %v1810_v33 = vmax.f32 %v1585_v21, 0.0  ;;  %v1591_v1 = vadd.f32 %v1590_v22, %v7974_v15  ;;  %v1704_v53 = vadd.f32 %v1703_v45, %v7977_v14  ;;  %v1595_v18 = vadd.f32 %v1594_v44, %v7938_v43 }
 0x477   :  { %3788 = vmatprep.subr.bf16.mxu1 %v6216_v63  ;;  %3952 = vmatprep.subr.bf16.mxu0 %v6219_v37  ;;  %v1812_v62 = vmax.f32 %v1698_v2, 0.0  ;;  %v1811_v59 = vmax.f32 %v1587_v4, 0.0  ;;  %v1818_v55 = vmax.f32 %v1589_v50, 0.0  ;;  %v1820_v40 = vmax.f32 %v1702_v16, 0.0  ;;  %v6231_v4 = vld [vmem:[#allocation14 + $0x2ac] ss:$16 sps:$4 sm:$0xff]  }
 0x478   :  { %v1813_v13 = vmax.f32 %v1700_v26, 0.0  ;;  %v1819_v6 = vmax.f32 %v1591_v1, 0.0  ;;  %v1821_v3 = vmax.f32 %v1704_v53, 0.0  ;;  %v1708_v63 = vadd.f32 %v1707_v12, %v7944_v7 }
 0x479   :  { %v2015_v37 = vrot.slane %v8097_v34, 4  ;;  %v1898_v22 = vpack.c.bf16 %v1818_v55, %v1810_v33  ;;  %v1900_v45 = vpack.c.bf16 %v1820_v40, %v1812_v62  ;;  %v1597_v21 = vadd.f32 %v1596_v48, %v7974_v15 }
 0x47a   :  { %3789 = vmatpush1.bf16.msra.mxu1 %v6214_v57  ;;  %3953 = vmatpush1.bf16.msra.mxu0 %v6217_v52  ;;  %v1899_v44 = vpack.c.bf16 %v1819_v6, %v1811_v59  ;;  %v8127_v2 = vpack.c.bf16 %v1821_v3, %v1813_v13  ;;  %v1826_v26 = vmax.f32 %v1595_v18, 0.0  ;;  %v1599_v50 = vadd.f32 %v1598_v5, %v7938_v43 }
 0x47b   :  { %3790 = vmatprep.subr.bf16.mxu1 %v6222_v11  ;;  %3954 = vmatprep.subr.bf16.mxu0 %v6225_v8  ;;  %v1604_v12 = vpop.f32.mrb[60].mxu1  ;;  %v1717_v16 = vpop.f32.mrb[76].mxu0  ;;  %v2074_v57 = vmax.bf16 %v1898_v22, %v8087_v39  ;;  %v2100_v52 = vmax.bf16 %v1900_v45, %v8102_v46  ;;  %v1710_v33 = vadd.f32 %v1709_v61, %v7977_v14  ;;  %v6226_v8 = vld [vmem:[#allocation14 + $0x2a0] ss:$16 sps:$4 sm:$0xff]   ;;  %v6229_v46 = vld [vmem:[#allocation14 + $0x2a8] ss:$16 sps:$4 sm:$0xff]  }
 0x47c   :  { %v1712_v1 = vadd.f32 %v1711_v9, %v7944_v7  ;;  %v1606_v48 = vpop.f32.mrb[61].mxu1  ;;  %v1719_v53 = vpop.f32.mrb[77].mxu0  ;;  %v2087_v62 = vmax.bf16 %v1899_v44, %v8111_v60  ;;  %v2113_v11 = vmax.bf16 %v8127_v2, %v8113_v42  ;;  %v1834_v18 = vmax.f32 %v1599_v50, 0.0  ;;  %v6237_v22 = vld [vmem:[#allocation14 + $0x2cc] ss:$16 sps:$4 sm:$0xff]  }
 0x47d   :  { %v1601_v5 = vadd.f32 %v1600_v10, %v7974_v15  ;;  %v1608_v59 = vpop.f32.mrb[62].mxu1  ;;  %v1721_v55 = vpop.f32.mrb[78].mxu0  ;;  %v8139_v39 = vmax.f32 %v8097_v34, %v2015_v37  ;;  %v1828_v61 = vmax.f32 %v1708_v63, 0.0  ;;  %v1714_v40 = vadd.f32 %v1713_v19, %v7977_v14  ;;  %v6234_v10 = vld [vmem:[#allocation14 + $0x2c4] ss:$16 sps:$4 sm:$0xff]  }
 0x47e   :  { %3791 = vmatpush1.bf16.msra.mxu1 %v6220_v58  ;;  %3955 = vmatpush1.bf16.msra.mxu0 %v6223_v47  ;;  %v1836_v9 = vmax.f32 %v1712_v1, 0.0  ;;  %v1610_v60 = vpop.f32.mrb[63].mxu1  ;;  %v1723_v13 = vpop.f32.mrb[79].mxu0  ;;  %v1827_v42 = vmax.f32 %v1597_v21, 0.0  ;;  %v1906_v6 = vpack.c.bf16 %v1834_v18, %v1826_v26  ;;  %v1605_v45 = vadd.f32 %v1604_v12, %v7938_v43  ;;  %v6235_v26 = vld [vmem:[#allocation14 + $0x2c8] ss:$16 sps:$4 sm:$0xff]  }
 0x47f   :  { %3792 = vmatprep.subr.bf16.mxu1 %v6228_v41  ;;  %3956 = vmatprep.subr.bf16.mxu0 %v6231_v4  ;;  %v1835_v3 = vmax.f32 %v1601_v5, 0.0  ;;  %v1829_v34 = vmax.f32 %v1710_v33, 0.0  ;;  %v1837_v58 = vmax.f32 %v1714_v40, 0.0  ;;  %v1718_v47 = vadd.f32 %v1717_v16, %v7944_v7  ;;  %v6232_v4 = vld [vmem:[#allocation14 + $0x2c0] ss:$16 sps:$4 sm:$0xff]  }
 0x480   :  { %v1908_v37 = vpack.c.bf16 %v1836_v9, %v1828_v61  ;;  %v2075_v63 = vmax.bf16 %v2074_v57, %v1906_v6  ;;  %v1607_v19 = vadd.f32 %v1606_v48, %v7974_v15  ;;  %v1720_v2 = vadd.f32 %v1719_v53, %v7977_v14  ;;  %v6240_v16 = vld [vmem:[#allocation14 + $0x2e4] ss:$16 sps:$4 sm:$0xff]   ;;  %v6243_v57 = vld [vmem:[#allocation14 + $0x2ec] ss:$16 sps:$4 sm:$0xff]  }
 0x481   :  { %v1907_v44 = vpack.c.bf16 %v1835_v3, %v1827_v42  ;;  %v1909_v21 = vpack.c.bf16 %v1837_v58, %v1829_v34  ;;  %v1609_v50 = vadd.f32 %v1608_v59, %v7938_v43  ;;  %v2422_v12 = vunpack.c.l.b16 %v1956_v20  ;;  %v6238_v59 = vld [vmem:[#allocation14 + $0x2e0] ss:$16 sps:$4 sm:$0xff]   ;;  %v6249_v40 = vld [vmem:[#allocation14 + $0x30c] ss:$16 sps:$4 sm:$0xff]  }
 0x482   :  { %3793 = vmatpush1.bf16.msra.mxu1 %v6226_v8  ;;  %3957 = vmatpush1.bf16.msra.mxu0 %v6229_v46  ;;  %v2101_v41 = vmax.bf16 %v2100_v52, %v1908_v37  ;;  %v1842_v1 = vmax.f32 %v1605_v45, 0.0  ;;  %v1722_v48 = vadd.f32 %v1721_v55, %v7944_v7  ;;  %v1611_v53 = vadd.f32 %v1610_v60, %v7974_v15  ;;  %v6241_v46 = vld [vmem:[#allocation14 + $0x2e8] ss:$16 sps:$4 sm:$0xff]  }
 0x483   :  { %v2088_v33 = vmax.bf16 %v2087_v62, %v1907_v44  ;;  %3794 = vmatprep.subr.bf16.mxu1 %v6234_v10  ;;  %3958 = vmatprep.subr.bf16.mxu0 %v6237_v22  ;;  %v2114_v52 = vmax.bf16 %v2113_v11, %v1909_v21  ;;  %v1850_v8 = vmax.f32 %v1609_v50, 0.0  ;;  %v1724_v18 = vadd.f32 %v1723_v13, %v7977_v14  ;;  %v6246_v14 = vld [vmem:[#allocation14 + $0x304] ss:$16 sps:$4 sm:$0xff]   ;;  %v6247_v44 = vld [vmem:[#allocation14 + $0x308] ss:$16 sps:$4 sm:$0xff]  }
 0x484   :  { %v2060_v43 = vpack.i.bf16 %v8091_v56, %v8091_v56  ;;  %v1844_v5 = vmax.f32 %v1718_v47, 0.0  ;;  %v1843_v0 = vmax.f32 %v1607_v19, 0.0  ;;  %v1852_v20 = vmax.f32 %v1722_v48, 0.0  ;;  %v6244_v47 = vld [vmem:[#allocation14 + $0x300] ss:$16 sps:$4 sm:$0xff]  }
 0x485   :  { %v1851_v62 = vmax.f32 %v1611_v53, 0.0  ;;  %v1845_v61 = vmax.f32 %v1720_v2, 0.0  ;;  %v1914_v9 = vpack.c.bf16 %v1850_v8, %v1842_v1  ;;  %v1853_v7 = vmax.f32 %v1724_v18, 0.0  ;;  %v6250_v8 = vld [vmem:[#allocation14 + $0x320] ss:$16 sps:$4 sm:$0xff]  }
 0x486   :  { %3795 = vmatpush1.bf16.msra.mxu1 %v6232_v4  ;;  %3959 = vmatpush1.bf16.msra.mxu0 %v6235_v26  ;;  %v2430_v55 = vunpack.c.l.b16 %v2060_v43  ;;  %v1916_v15 = vpack.c.bf16 %v1852_v20, %v1844_v5  ;;  %v1978_v56 = vrot.slane %v8100_v49, 2  ;;  %v2004_v6 = vrot.slane %v8107_v51, 2  ;;  %v6252_v4 = vld [vmem:[#allocation14 + $0x324] ss:$16 sps:$4 sm:$0xff]   ;;  %v6255_v26 = vld [vmem:[#allocation14 + $0x32c] ss:$16 sps:$4 sm:$0xff]  }
 0x487   :  { %3796 = vmatprep.subr.bf16.mxu1 %v6240_v16  ;;  %3960 = vmatprep.subr.bf16.mxu0 %v6243_v57  ;;  %v1915_v11 = vpack.c.bf16 %v1851_v62, %v1843_v0  ;;  %v2076_v60 = vmax.bf16 %v2075_v63, %v1914_v9  ;;  %v1917_v13 = vpack.c.bf16 %v1853_v7, %v1845_v61  ;;  %v1991_v3 = vrot.slane %v8109_v36, 2  ;;  %v6253_v18 = vld [vmem:[#allocation14 + $0x328] ss:$16 sps:$4 sm:$0xff]   ;;  %v6261_v20 = vld [vmem:[#allocation14 + $0x34c] ss:$16 sps:$4 sm:$0xff]  }
 0x488   :  { %v8157_v42 = vsel %vm2436_vm1, %v2430_v55, %v2422_v12  ;;  %v2102_v10 = vmax.bf16 %v2101_v41, %v1916_v15  ;;  %v2017_v45 = vrot.slane %v8139_v39, 2  ;;  %v1979_v41 = vmax.f32 %v8100_v49, %v1978_v56  ;;  %v6258_v49 = vld [vmem:[#allocation14 + $0x344] ss:$16 sps:$4 sm:$0xff]   ;;  %v6256_v15 = vld [vmem:[#allocation14 + $0x340] ss:$16 sps:$4 sm:$0xff]  }
 0x489   :  { %v2089_v22 = vmax.bf16 %v2088_v33, %v1915_v11  ;;  %v2077_v34 = vunpack.i.l.bf16 %v2076_v60  ;;  %v2078_v37 = vunpack.i.h.bf16 %v2076_v60  ;;  %v2115_v58 = vmax.bf16 %v2114_v52, %v1917_v13  ;;  %v6259_v11 = vld [vmem:[#allocation14 + $0x348] ss:$16 sps:$4 sm:$0xff]   ;;  %v6264_v56 = vld [vmem:[#allocation14 + $0x364] ss:$16 sps:$4 sm:$0xff]   ;;  %v6267_v60 = vld [vmem:[#allocation14 + $0x36c] ss:$16 sps:$4 sm:$0xff]  }
 0x48a   :  { %3797 = vmatpush1.bf16.msra.mxu1 %v6238_v59  ;;  %3961 = vmatpush1.bf16.msra.mxu0 %v6241_v46  ;;  %v2103_v63 = vunpack.i.l.bf16 %v2102_v10  ;;  %v2104_v19 = vunpack.i.h.bf16 %v2102_v10  ;;  %v2005_v16 = vmax.f32 %v8107_v51, %v2004_v6  ;;  %v1992_v48 = vmax.f32 %v8109_v36, %v1991_v3 }
 0x48b   :  { %v2090_v2 = vunpack.i.l.bf16 %v2089_v22  ;;  %v2091_v21 = vunpack.i.h.bf16 %v2089_v22  ;;  %3798 = vmatprep.subr.bf16.mxu1 %v6246_v14  ;;  %3962 = vmatprep.subr.bf16.mxu0 %v6249_v40  ;;  %v2079_v50 = vmax.f32 %v2077_v34, %v2078_v37  ;;  %v2116_v12 = vunpack.i.l.bf16 %v2115_v58 }
 0x48c   :  { %v2117_v33 = vunpack.i.h.bf16 %v2115_v58  ;;  %v2105_v57 = vmax.f32 %v2103_v63, %v2104_v19  ;;  %v2018_v43 = vmax.f32 %v8139_v39, %v2017_v45  ;;  %v1980_v62 = vrot.slane %v1979_v41, 1  ;;  %v6262_v58 = vld [vmem:[#allocation14 + $0x360] ss:$16 sps:$4 sm:$0xff]  }
 0x48d   :  { %v2092_v1 = vmax.f32 %v2090_v2, %v2091_v21  ;;  %v2080_v53 = vrot.slane %v2079_v50, 4  ;;  %v2006_v46 = vrot.slane %v2005_v16, 1  ;;  %v1993_v9 = vrot.slane %v1992_v48, 1  ;;  %v6270_v2 = vld [vmem:[#allocation14 + $0x384] ss:$16 sps:$4 sm:$0xff]  }
 0x48e   :  { %v2118_v52 = vmax.f32 %v2116_v12, %v2117_v33  ;;  %3799 = vmatpush1.bf16.msra.mxu1 %v6244_v47  ;;  %3963 = vmatpush1.bf16.msra.mxu0 %v6247_v44  ;;  %v2106_v5 = vrot.slane %v2105_v57, 4  ;;  %v2019_v39 = vrot.slane %v2018_v43, 1  ;;  %v1981_v3 = vmax.f32 %v1979_v41, %v1980_v62  ;;  %v6265_v47 = vld [vmem:[#allocation14 + $0x368] ss:$16 sps:$4 sm:$0xff]   ;;  %v6273_v21 = vld [vmem:[#allocation14 + $0x38c] ss:$16 sps:$4 sm:$0xff]  }
 0x48f   :  { %v2093_v0 = vrot.slane %v2092_v1, 4  ;;  %3800 = vmatprep.subr.bf16.mxu1 %v6252_v4  ;;  %3964 = vmatprep.subr.bf16.mxu0 %v6255_v26  ;;  %v2081_v51 = vmax.f32 %v2079_v50, %v2080_v53  ;;  %v1994_v22 = vmax.f32 %v1992_v48, %v1993_v9  ;;  %v2007_v34 = vmax.f32 %v2005_v16, %v2006_v46  ;;  %v6271_v48 = vld [vmem:[#allocation14 + $0x388] ss:$16 sps:$4 sm:$0xff]  }
 0x490   :  { %v2119_v59 = vrot.slane %v2118_v52, 4  ;;  %v2107_v61 = vmax.f32 %v2105_v57, %v2106_v5  ;;  %v2020_v44 = vmax.f32 %v2018_v43, %v2019_v39  ;;  %v1982_v26 = vpack.i.bf16 %v1981_v3, %v1981_v3  ;;  %v6279_v43 = vld [vmem:[#allocation14 + $0x3ac] ss:$16 sps:$4 sm:$0xff]   ;;  %v6277_v9 = vld [vmem:[#allocation14 + $0x3a8] ss:$16 sps:$4 sm:$0xff]  }
 0x491   :  { %v2094_v36 = vmax.f32 %v2092_v1, %v2093_v0  ;;  %v2082_v7 = vrot.slane %v2081_v51, 2  ;;  %v1995_v12 = vpack.i.bf16 %v1994_v22, %v1994_v22  ;;  %v2008_v57 = vpack.i.bf16 %v2007_v34, %v2007_v34  ;;  %v6268_v1 = vld [vmem:[#allocation14 + $0x380] ss:$16 sps:$4 sm:$0xff]   ;;  %v6285_v39 = vld [vmem:[#allocation14 + $0x3cc] ss:$16 sps:$4 sm:$0xff]  }
 0x492   :  { %v2120_v55 = vmax.f32 %v2118_v52, %v2119_v59  ;;  %3801 = vmatpush1.bf16.msra.mxu1 %v6250_v8  ;;  %3965 = vmatpush1.bf16.msra.mxu0 %v6253_v18  ;;  %v2108_v14 = vrot.slane %v2107_v61, 2  ;;  %v2021_v52 = vpack.i.bf16 %v2020_v44, %v2020_v44  ;;  %v6276_v18 = vld [vmem:[#allocation14 + $0x3a4] ss:$16 sps:$4 sm:$0xff]   ;;  %v6291_v3 = vld [vmem:[#allocation14 + $0x3ec] ss:$16 sps:$4 sm:$0xff]  }
 0x493   :  { %v2095_v40 = vrot.slane %v2094_v36, 2  ;;  %3802 = vmatprep.subr.bf16.mxu1 %v6258_v49  ;;  %3966 = vmatprep.subr.bf16.mxu0 %v6261_v20  ;;  %v2083_v13 = vmax.f32 %v2081_v51, %v2082_v7  ;;  %v2424_v49 = vunpack.c.l.b16 %v1982_v26  ;;  %v2425_v51 = vunpack.c.l.b16 %v1995_v12  ;;  %v6289_v22 = vld [vmem:[#allocation14 + $0x3e8] ss:$16 sps:$4 sm:$0xff]   ;;  %v6297_v34 = vld [vmem:[#allocation14 + $0x40c] ss:$16 sps:$4 sm:$0xff]  }
 0x494   :  { %v2121_v6 = vrot.slane %v2120_v55, 2  ;;  %v2109_v10 = vmax.f32 %v2107_v61, %v2108_v14  ;;  %v2426_v46 = vunpack.c.l.b16 %v2008_v57  ;;  %v6295_v44 = vld [vmem:[#allocation14 + $0x408] ss:$16 sps:$4 sm:$0xff]   ;;  %v6309_v26 = vld [vmem:[#allocation14 + $0x44c] ss:$16 sps:$4 sm:$0xff]  }
 0x495   :  { %v2096_v45 = vmax.f32 %v2094_v36, %v2095_v40  ;;  %v2084_v37 = vrot.slane %v2083_v13, 1  ;;  %v6274_v36 = vld [vmem:[#allocation14 + $0x3a0] ss:$16 sps:$4 sm:$0xff]   ;;  %v6315_v12 = vld [vmem:[#allocation14 + $0x46c] ss:$16 sps:$4 sm:$0xff]  }
 0x496   :  { %3803 = vmatpush1.bf16.msra.mxu1 %v6256_v15  ;;  %3967 = vmatpush1.bf16.msra.mxu0 %v6259_v11  ;;  %v2122_v63 = vmax.f32 %v2120_v55, %v2121_v6  ;;  %v2110_v19 = vrot.slane %v2109_v10, 1  ;;  %v2427_v55 = vunpack.c.l.b16 %v2021_v52  ;;  %v6282_v11 = vld [vmem:[#allocation14 + $0x3c4] ss:$16 sps:$4 sm:$0xff]   ;;  %v6313_v57 = vld [vmem:[#allocation14 + $0x468] ss:$16 sps:$4 sm:$0xff]  }
 0x497   :  { %3804 = vmatprep.subr.bf16.mxu1 %v6264_v56  ;;  %3968 = vmatprep.subr.bf16.mxu0 %v6267_v60  ;;  %v2097_v4 = vrot.slane %v2096_v45, 1  ;;  %v2085_v50 = vmax.f32 %v2083_v13, %v2084_v37  ;;  %v6280_v60 = vld [vmem:[#allocation14 + $0x3c0] ss:$16 sps:$4 sm:$0xff]   ;;  %v6283_v13 = vld [vmem:[#allocation14 + $0x3c8] ss:$16 sps:$4 sm:$0xff]  }
 0x498   :  { %v2123_v41 = vrot.slane %v2122_v63, 1  ;;  %v2111_v16 = vmax.f32 %v2109_v10, %v2110_v19  ;;  %v6288_v6 = vld [vmem:[#allocation14 + $0x3e4] ss:$16 sps:$4 sm:$0xff]   ;;  %v6286_v10 = vld [vmem:[#allocation14 + $0x3e0] ss:$16 sps:$4 sm:$0xff]  }
 0x499   :  { %v2098_v33 = vmax.f32 %v2096_v45, %v2097_v4  ;;  %v2086_v53 = vpack.i.bf16 %v2085_v50, %v2085_v50  ;;  %v6294_v45 = vld [vmem:[#allocation14 + $0x404] ss:$16 sps:$4 sm:$0xff]   ;;  %v6292_v37 = vld [vmem:[#allocation14 + $0x400] ss:$16 sps:$4 sm:$0xff]   ;;  %v6303_v19 = vld [vmem:[#allocation14 + $0x42c] ss:$16 sps:$4 sm:$0xff]  }
 0x49a   :  { %3805 = vmatpush1.bf16.msra.mxu1 %v6262_v58  ;;  %3969 = vmatpush1.bf16.msra.mxu0 %v6265_v47  ;;  %v2124_v8 = vmax.f32 %v2122_v63, %v2123_v41  ;;  %v2112_v0 = vpack.i.bf16 %v2111_v16, %v2111_v16  ;;  %v2447_v47 = vpack.c.b16 %v8157_v42, %v8157_v42  ;;  %v6300_v63 = vld [vmem:[#allocation14 + $0x424] ss:$16 sps:$4 sm:$0xff]   ;;  %v6304_v50 = vld [vmem:[#allocation14 + $0x440] ss:$16 sps:$4 sm:$0xff]   ;;  %v6307_v42 = vld [vmem:[#allocation14 + $0x448] ss:$16 sps:$4 sm:$0xff]  }
 0x49b   :  { %3806 = vmatprep.subr.bf16.mxu1 %v6270_v2  ;;  %3970 = vmatprep.subr.bf16.mxu0 %v6273_v21  ;;  %v2099_v5 = vpack.i.bf16 %v2098_v33, %v2098_v33  ;;  %v2432_v20 = vunpack.c.l.b16 %v2086_v53  ;;  %v6298_v2 = vld [vmem:[#allocation14 + $0x420] ss:$16 sps:$4 sm:$0xff]   ;;  %v6301_v21 = vld [vmem:[#allocation14 + $0x428] ss:$16 sps:$4 sm:$0xff]   ;;  %v6306_v4 = vld [vmem:[#allocation14 + $0x444] ss:$16 sps:$4 sm:$0xff]  }
 0x49c   :  { %v2125_v62 = vpack.i.bf16 %v2124_v8, %v2124_v8  ;;  %v2434_v61 = vunpack.c.l.b16 %v2112_v0  ;;  %v6312_v41 = vld [vmem:[#allocation14 + $0x464] ss:$16 sps:$4 sm:$0xff]   ;;  %v6310_v33 = vld [vmem:[#allocation14 + $0x460] ss:$16 sps:$4 sm:$0xff]   ;;  %v6319_v53 = vld [vmem:[#allocation14 + $0x488] ss:$16 sps:$4 sm:$0xff]  }
 0x49d   :  { %v2433_v59 = vunpack.c.l.b16 %v2099_v5  ;;  %v8167_v7 = vsel %vm2436_vm1, %v2432_v20, %v2424_v49  ;;  %v6318_v16 = vld [vmem:[#allocation14 + $0x484] ss:$16 sps:$4 sm:$0xff]   ;;  %v6327_v8 = vld [vmem:[#allocation14 + $0x4ac] ss:$16 sps:$4 sm:$0xff]   ;;  %v6328_v49 = vld [vmem:[#allocation14 + $0x4c0] ss:$16 sps:$4 sm:$0xff]  }
 0x49e   :  { %3807 = vmatpush1.bf16.msra.mxu1 %v6268_v1  ;;  %3971 = vmatpush1.bf16.msra.mxu0 %v6271_v48  ;;  %v2435_v15 = vunpack.c.l.b16 %v2125_v62  ;;  %v8171_v40 = vsel %vm2436_vm1, %v2434_v61, %v2426_v46  ;;  %v6321_v1 = vld [vmem:[#allocation14 + $0x48c] ss:$16 sps:$4 sm:$0xff]   ;;  %v6316_v48 = vld [vmem:[#allocation14 + $0x480] ss:$16 sps:$4 sm:$0xff]   ;;  %v6324_v52 = vld [vmem:[#allocation14 + $0x4a4] ss:$16 sps:$4 sm:$0xff]  }
 0x49f   :  { %3808 = vmatprep.subr.bf16.mxu1 %v6276_v18  ;;  %3972 = vmatprep.subr.bf16.mxu0 %v6279_v43  ;;  %v2442_v14 = vsel %vm2436_vm1, %v2433_v59, %v2425_v51  ;;  %v6322_v18 = vld [vmem:[#allocation14 + $0x4a0] ss:$16 sps:$4 sm:$0xff]   ;;  %v6325_v43 = vld [vmem:[#allocation14 + $0x4a8] ss:$16 sps:$4 sm:$0xff]   ;;  %v6330_v5 = vld [vmem:[#allocation14 + $0x4c4] ss:$16 sps:$4 sm:$0xff]  }
 0x4a0   :  { %v8174_v56 = vsel %vm2436_vm1, %v2435_v15, %v2427_v55  ;;  %v2450_v58 = vpack.c.b16 %v2442_v14, %v2442_v14  ;;  %v6333_v0 = vld [vmem:[#allocation14 + $0x4cc] ss:$16 sps:$4 sm:$0xff]   ;;  %v6331_v20 = vld [vmem:[#allocation14 + $0x4c8] ss:$16 sps:$4 sm:$0xff]   ;;  %v6336_v62 = vld [vmem:[#allocation14 + $0x4e4] ss:$16 sps:$4 sm:$0xff]  }
 0x4a1   :  { %v6339_v51 = vld [vmem:[#allocation14 + $0x4ec] ss:$16 sps:$4 sm:$0xff]   ;;  %v6334_v59 = vld [vmem:[#allocation14 + $0x4e0] ss:$16 sps:$4 sm:$0xff]   ;;  %v6337_v46 = vld [vmem:[#allocation14 + $0x4e8] ss:$16 sps:$4 sm:$0xff]  }
 0x4a2   :  { %3809 = vmatpush1.bf16.msra.mxu1 %v6274_v36  ;;  %3973 = vmatpush1.bf16.msra.mxu0 %v6277_v9  ;;  %v6342_v61 = vld [vmem:[#allocation14 + $0x504] ss:$16 sps:$4 sm:$0xff]   ;;  %v6345_v36 = vld [vmem:[#allocation14 + $0x50c] ss:$16 sps:$4 sm:$0xff]   ;;  %v6340_v9 = vld [vmem:[#allocation14 + $0x500] ss:$16 sps:$4 sm:$0xff]  }
 0x4a3   :  { %3810 = vmatprep.subr.bf16.mxu1 %v6282_v11  ;;  %3974 = vmatprep.subr.bf16.mxu0 %v6285_v39  ;;  %v6343_v55 = vld [vmem:[#allocation14 + $0x508] ss:$16 sps:$4 sm:$0xff]   ;;  %v6348_v15 = vld [vmem:[#allocation14 + $0x524] ss:$16 sps:$4 sm:$0xff]   ;;  %v6351_v11 = vld [vmem:[#allocation14 + $0x52c] ss:$16 sps:$4 sm:$0xff]  }
 0x4a4   :  { %v6346_v39 = vld [vmem:[#allocation14 + $0x520] ss:$16 sps:$4 sm:$0xff]   ;;  %v6349_v14 = vld [vmem:[#allocation14 + $0x528] ss:$16 sps:$4 sm:$0xff]  }
 0x4a6   :  { %3811 = vmatpush1.bf16.msra.mxu1 %v6280_v60  ;;  %3975 = vmatpush1.bf16.msra.mxu0 %v6283_v13  ;;  %v6354_v60 = vld [vmem:[#allocation14 + $0x544] ss:$16 sps:$4 sm:$0xff]   ;;  %v6357_v13 = vld [vmem:[#allocation14 + $0x54c] ss:$16 sps:$4 sm:$0xff]  }
 0x4a7   :  { %3812 = vmatprep.subr.bf16.mxu1 %v6288_v6  ;;  %3976 = vmatprep.subr.bf16.mxu0 %v6291_v3  ;;  %v6352_v6 = vld [vmem:[#allocation14 + $0x540] ss:$16 sps:$4 sm:$0xff]   ;;  %v6355_v3 = vld [vmem:[#allocation14 + $0x548] ss:$16 sps:$4 sm:$0xff]  }
 0x4aa   :  { %3813 = vmatpush1.bf16.msra.mxu1 %v6286_v10  ;;  %3977 = vmatpush1.bf16.msra.mxu0 %v6289_v22  ;;  %v6360_v10 = vld [vmem:[#allocation14 + $0x564] ss:$16 sps:$4 sm:$0xff]   ;;  %v6363_v22 = vld [vmem:[#allocation14 + $0x56c] ss:$16 sps:$4 sm:$0xff]  }
 0x4ab   :  { %3823 = vmatprep.subr.bf16.mxu1 %v6294_v45  ;;  %3987 = vmatprep.subr.bf16.mxu0 %v6297_v34  ;;  %v6358_v45 = vld [vmem:[#allocation14 + $0x560] ss:$16 sps:$4 sm:$0xff]   ;;  %v6361_v34 = vld [vmem:[#allocation14 + $0x568] ss:$16 sps:$4 sm:$0xff]  }
 0x4ad   :  { %3815 = vmatmul.mubr.bf16.vlgmr.msra.gmra.mrb[64].mxu1 %v2447_v47  ;;  %3979 = vmatmul.mubr.bf16.vlgmr.msra.gmra.mrb[80].mxu0 %v2447_v47  ;;  %v6364_v47 = vld [vmem:[#allocation14 + $0x580] ss:$16 sps:$4 sm:$0xff]  }
 0x4ae   :  { %3824 = vmatpush1.bf16.msra.mxu1 %v6292_v37  ;;  %3855 = vmatprep.mubr.bf16.mxu1 %v2450_v58  ;;  %v6366_v37 = vld [vmem:[#allocation14 + $0x584] ss:$16 sps:$4 sm:$0xff]  }
 0x4af   :  { %3988 = vmatpush1.bf16.msra.mxu0 %v6295_v44  ;;  %4019 = vmatprep.mubr.bf16.mxu0 %v2450_v58  ;;  %v6369_v58 = vld [vmem:[#allocation14 + $0x58c] ss:$16 sps:$4 sm:$0xff]   ;;  %v6367_v44 = vld [vmem:[#allocation14 + $0x588] ss:$16 sps:$4 sm:$0xff]  }
 0x4b0   :  { %3825 = vmatprep.subr.bf16.mxu1 %v6300_v63  ;;  %3989 = vmatprep.subr.bf16.mxu0 %v6303_v19  ;;  %v6372_v63 = vld [vmem:[#allocation14 + $0x5a4] ss:$16 sps:$4 sm:$0xff]   ;;  %v6375_v19 = vld [vmem:[#allocation14 + $0x5ac] ss:$16 sps:$4 sm:$0xff]  }
 0x4b2   :  { %3826 = vmatpush1.bf16.msra.mxu1 %v6298_v2  ;;  %v6370_v2 = vld [vmem:[#allocation14 + $0x5a0] ss:$16 sps:$4 sm:$0xff]  }
 0x4b3   :  { %3990 = vmatpush1.bf16.msra.mxu0 %v6301_v21  ;;  %3827 = vmatprep.subr.bf16.mxu1 %v6306_v4  ;;  %v6373_v21 = vld [vmem:[#allocation14 + $0x5a8] ss:$16 sps:$4 sm:$0xff]   ;;  %v6378_v4 = vld [vmem:[#allocation14 + $0x5c4] ss:$16 sps:$4 sm:$0xff]  }
 0x4b4   :  { %3991 = vmatprep.subr.bf16.mxu0 %v6309_v26  ;;  %v6381_v26 = vld [vmem:[#allocation14 + $0x5cc] ss:$16 sps:$4 sm:$0xff]  }
 0x4b6   :  { %3828 = vmatpush1.bf16.msra.mxu1 %v6304_v50  ;;  %v6376_v50 = vld [vmem:[#allocation14 + $0x5c0] ss:$16 sps:$4 sm:$0xff]  }
 0x4b7   :  { %3992 = vmatpush1.bf16.msra.mxu0 %v6307_v42  ;;  %3829 = vmatprep.subr.bf16.mxu1 %v6312_v41  ;;  %v6379_v42 = vld [vmem:[#allocation14 + $0x5c8] ss:$16 sps:$4 sm:$0xff]   ;;  %v6384_v41 = vld [vmem:[#allocation14 + $0x5e4] ss:$16 sps:$4 sm:$0xff]  }
 0x4b8   :  { %3993 = vmatprep.subr.bf16.mxu0 %v6315_v12  ;;  %v6387_v12 = vld [vmem:[#allocation14 + $0x5ec] ss:$16 sps:$4 sm:$0xff]  }
 0x4ba   :  { %3830 = vmatpush1.bf16.msra.mxu1 %v6310_v33  ;;  %v6382_v33 = vld [vmem:[#allocation14 + $0x5e0] ss:$16 sps:$4 sm:$0xff]  }
 0x4bb   :  { %3994 = vmatpush1.bf16.msra.mxu0 %v6313_v57  ;;  %3831 = vmatprep.subr.bf16.mxu1 %v6318_v16  ;;  %v6385_v57 = vld [vmem:[#allocation14 + $0x5e8] ss:$16 sps:$4 sm:$0xff]   ;;  %v6390_v16 = vld [vmem:[#allocation14 + $0x604] ss:$16 sps:$4 sm:$0xff]  }
 0x4bc   :  { %3995 = vmatprep.subr.bf16.mxu0 %v6321_v1  ;;  %v6393_v1 = vld [vmem:[#allocation14 + $0x60c] ss:$16 sps:$4 sm:$0xff]  }
 0x4be   :  { %3832 = vmatpush1.bf16.msra.mxu1 %v6316_v48  ;;  %v6388_v48 = vld [vmem:[#allocation14 + $0x600] ss:$16 sps:$4 sm:$0xff]  }
 0x4bf   :  { %3996 = vmatpush1.bf16.msra.mxu0 %v6319_v53  ;;  %3833 = vmatprep.subr.bf16.mxu1 %v6324_v52  ;;  %v2449_v53 = vpack.c.b16 %v8167_v7, %v8167_v7  ;;  %v6391_v52 = vld [vmem:[#allocation14 + $0x608] ss:$16 sps:$4 sm:$0xff]   ;;  %v6400_v7 = vld [vmem:[#allocation14 + $0x640] ss:$16 sps:$4 sm:$0xff]  }
 0x4c0   :  { %3997 = vmatprep.subr.bf16.mxu0 %v6327_v8  ;;  %v6396_v8 = vld [vmem:[#allocation14 + $0x624] ss:$16 sps:$4 sm:$0xff]  }
 0x4c2   :  { %3834 = vmatpush1.bf16.msra.mxu1 %v6322_v18  ;;  %v2452_v18 = vpack.c.b16 %v8174_v56, %v8174_v56  ;;  %v6411_v56 = vld [vmem:[#allocation14 + $0x66c] ss:$16 sps:$4 sm:$0xff]  }
 0x4c3   :  { %3998 = vmatpush1.bf16.msra.mxu0 %v6325_v43  ;;  %3835 = vmatprep.subr.bf16.mxu1 %v6330_v5  ;;  %v6399_v43 = vld [vmem:[#allocation14 + $0x62c] ss:$16 sps:$4 sm:$0xff]   ;;  %v6394_v5 = vld [vmem:[#allocation14 + $0x620] ss:$16 sps:$4 sm:$0xff]  }
 0x4c4   :  { %3999 = vmatprep.subr.bf16.mxu0 %v6333_v0  ;;  %v6397_v0 = vld [vmem:[#allocation14 + $0x628] ss:$16 sps:$4 sm:$0xff]  }
 0x4c6   :  { %3836 = vmatpush1.bf16.msra.mxu1 %v6328_v49  ;;  %v6402_v49 = vld [vmem:[#allocation14 + $0x644] ss:$16 sps:$4 sm:$0xff]  }
 0x4c7   :  { %4000 = vmatpush1.bf16.msra.mxu0 %v6331_v20  ;;  %3837 = vmatprep.subr.bf16.mxu1 %v6336_v62  ;;  %v6405_v20 = vld [vmem:[#allocation14 + $0x64c] ss:$16 sps:$4 sm:$0xff]   ;;  %v6403_v62 = vld [vmem:[#allocation14 + $0x648] ss:$16 sps:$4 sm:$0xff]  }
 0x4c8   :  { %4001 = vmatprep.subr.bf16.mxu0 %v6339_v51  ;;  %v6408_v51 = vld [vmem:[#allocation14 + $0x664] ss:$16 sps:$4 sm:$0xff]  }
 0x4ca   :  { %3838 = vmatpush1.bf16.msra.mxu1 %v6334_v59  ;;  %v6406_v59 = vld [vmem:[#allocation14 + $0x660] ss:$16 sps:$4 sm:$0xff]  }
 0x4cb   :  { %4002 = vmatpush1.bf16.msra.mxu0 %v6337_v46  ;;  %3839 = vmatprep.subr.bf16.mxu1 %v6342_v61  ;;  %v6409_v46 = vld [vmem:[#allocation14 + $0x668] ss:$16 sps:$4 sm:$0xff]   ;;  %v6414_v61 = vld [vmem:[#allocation14 + $0x684] ss:$16 sps:$4 sm:$0xff]  }
 0x4cc   :  { %4003 = vmatprep.subr.bf16.mxu0 %v6345_v36  ;;  %v6417_v36 = vld [vmem:[#allocation14 + $0x68c] ss:$16 sps:$4 sm:$0xff]  }
 0x4ce   :  { %3840 = vmatpush1.bf16.msra.mxu1 %v6340_v9  ;;  %v6412_v9 = vld [vmem:[#allocation14 + $0x680] ss:$16 sps:$4 sm:$0xff]  }
 0x4cf   :  { %4004 = vmatpush1.bf16.msra.mxu0 %v6343_v55  ;;  %3841 = vmatprep.subr.bf16.mxu1 %v6348_v15  ;;  %v6415_v55 = vld [vmem:[#allocation14 + $0x688] ss:$16 sps:$4 sm:$0xff]   ;;  %v6420_v15 = vld [vmem:[#allocation14 + $0x6a4] ss:$16 sps:$4 sm:$0xff]  }
 0x4d0   :  { %4005 = vmatprep.subr.bf16.mxu0 %v6351_v11  ;;  %v6423_v11 = vld [vmem:[#allocation14 + $0x6ac] ss:$16 sps:$4 sm:$0xff]  }
 0x4d2   :  { %3842 = vmatpush1.bf16.msra.mxu1 %v6346_v39  ;;  %v6418_v39 = vld [vmem:[#allocation14 + $0x6a0] ss:$16 sps:$4 sm:$0xff]  }
 0x4d3   :  { %4006 = vmatpush1.bf16.msra.mxu0 %v6349_v14  ;;  %3843 = vmatprep.subr.bf16.mxu1 %v6354_v60  ;;  %v6421_v14 = vld [vmem:[#allocation14 + $0x6a8] ss:$16 sps:$4 sm:$0xff]   ;;  %v6426_v60 = vld [vmem:[#allocation14 + $0x6c4] ss:$16 sps:$4 sm:$0xff]  }
 0x4d4   :  { %4007 = vmatprep.subr.bf16.mxu0 %v6357_v13  ;;  %v6429_v13 = vld [vmem:[#allocation14 + $0x6cc] ss:$16 sps:$4 sm:$0xff]  }
 0x4d6   :  { %3844 = vmatpush1.bf16.msra.mxu1 %v6352_v6  ;;  %v6424_v6 = vld [vmem:[#allocation14 + $0x6c0] ss:$16 sps:$4 sm:$0xff]  }
 0x4d7   :  { %4008 = vmatpush1.bf16.msra.mxu0 %v6355_v3  ;;  %3845 = vmatprep.subr.bf16.mxu1 %v6360_v10  ;;  %v6427_v3 = vld [vmem:[#allocation14 + $0x6c8] ss:$16 sps:$4 sm:$0xff]   ;;  %v6432_v10 = vld [vmem:[#allocation14 + $0x6e4] ss:$16 sps:$4 sm:$0xff]  }
 0x4d8   :  { %4009 = vmatprep.subr.bf16.mxu0 %v6363_v22  ;;  %v6435_v22 = vld [vmem:[#allocation14 + $0x6ec] ss:$16 sps:$4 sm:$0xff]  }
 0x4da   :  { %3846 = vmatpush1.bf16.msra.mxu1 %v6358_v45  ;;  %v6430_v45 = vld [vmem:[#allocation14 + $0x6e0] ss:$16 sps:$4 sm:$0xff]  }
 0x4db   :  { %4010 = vmatpush1.bf16.msra.mxu0 %v6361_v34  ;;  %3847 = vmatprep.subr.bf16.mxu1 %v6366_v37  ;;  %v6433_v34 = vld [vmem:[#allocation14 + $0x6e8] ss:$16 sps:$4 sm:$0xff]   ;;  %v6438_v37 = vld [vmem:[#allocation14 + $0x704] ss:$16 sps:$4 sm:$0xff]  }
 0x4dc   :  { %4011 = vmatprep.subr.bf16.mxu0 %v6369_v58  ;;  %v6441_v58 = vld [vmem:[#allocation14 + $0x70c] ss:$16 sps:$4 sm:$0xff]  }
 0x4de   :  { %3848 = vmatpush1.bf16.msra.mxu1 %v6364_v47  ;;  %v6436_v47 = vld [vmem:[#allocation14 + $0x700] ss:$16 sps:$4 sm:$0xff]  }
 0x4df   :  { %4012 = vmatpush1.bf16.msra.mxu0 %v6367_v44  ;;  %3849 = vmatprep.subr.bf16.mxu1 %v6372_v63  ;;  %v6439_v44 = vld [vmem:[#allocation14 + $0x708] ss:$16 sps:$4 sm:$0xff]   ;;  %v6444_v63 = vld [vmem:[#allocation14 + $0x724] ss:$16 sps:$4 sm:$0xff]  }
 0x4e0   :  { %4013 = vmatprep.subr.bf16.mxu0 %v6375_v19  ;;  %v6447_v19 = vld [vmem:[#allocation14 + $0x72c] ss:$16 sps:$4 sm:$0xff]  }
 0x4e2   :  { %3850 = vmatpush1.bf16.msra.mxu1 %v6370_v2  ;;  %v6442_v2 = vld [vmem:[#allocation14 + $0x720] ss:$16 sps:$4 sm:$0xff]  }
 0x4e3   :  { %4014 = vmatpush1.bf16.msra.mxu0 %v6373_v21  ;;  %3851 = vmatprep.subr.bf16.mxu1 %v6378_v4  ;;  %v6445_v21 = vld [vmem:[#allocation14 + $0x728] ss:$16 sps:$4 sm:$0xff]   ;;  %v6450_v4 = vld [vmem:[#allocation14 + $0x744] ss:$16 sps:$4 sm:$0xff]  }
 0x4e4   :  { %4015 = vmatprep.subr.bf16.mxu0 %v6381_v26  ;;  %v6453_v26 = vld [vmem:[#allocation14 + $0x74c] ss:$16 sps:$4 sm:$0xff]  }
 0x4e6   :  { %3852 = vmatpush1.bf16.msra.mxu1 %v6376_v50  ;;  %v6448_v50 = vld [vmem:[#allocation14 + $0x740] ss:$16 sps:$4 sm:$0xff]  }
 0x4e7   :  { %4016 = vmatpush1.bf16.msra.mxu0 %v6379_v42  ;;  %3853 = vmatprep.subr.bf16.mxu1 %v6384_v41  ;;  %v6451_v42 = vld [vmem:[#allocation14 + $0x748] ss:$16 sps:$4 sm:$0xff]   ;;  %v6456_v41 = vld [vmem:[#allocation14 + $0x764] ss:$16 sps:$4 sm:$0xff]  }
 0x4e8   :  { %4017 = vmatprep.subr.bf16.mxu0 %v6387_v12  ;;  %v6459_v12 = vld [vmem:[#allocation14 + $0x76c] ss:$16 sps:$4 sm:$0xff]  }
 0x4ea   :  { %3854 = vmatpush1.bf16.msra.mxu1 %v6382_v33  ;;  %v6454_v33 = vld [vmem:[#allocation14 + $0x760] ss:$16 sps:$4 sm:$0xff]  }
 0x4eb   :  { %4018 = vmatpush1.bf16.msra.mxu0 %v6385_v57  ;;  %3864 = vmatprep.subr.bf16.mxu1 %v6390_v16  ;;  %v6457_v57 = vld [vmem:[#allocation14 + $0x768] ss:$16 sps:$4 sm:$0xff]   ;;  %v6462_v16 = vld [vmem:[#allocation14 + $0x784] ss:$16 sps:$4 sm:$0xff]  }
 0x4ec   :  { %4028 = vmatprep.subr.bf16.mxu0 %v6393_v1  ;;  %v6465_v1 = vld [vmem:[#allocation14 + $0x78c] ss:$16 sps:$4 sm:$0xff]  }
 0x4ed   :  { %3856 = vmatmul.mubr.bf16.vlgmr.msra.gmra.mrb[64].mxu1 %v2449_v53 }
 0x4ee   :  { %4020 = vmatmul.mubr.bf16.vlgmr.msra.gmra.mrb[80].mxu0 %v2449_v53  ;;  %3865 = vmatpush1.bf16.msra.mxu1 %v6388_v48  ;;  %v6460_v48 = vld [vmem:[#allocation14 + $0x780] ss:$16 sps:$4 sm:$0xff]   ;;  %v6463_v53 = vld [vmem:[#allocation14 + $0x788] ss:$16 sps:$4 sm:$0xff]  }
 0x4ef   :  { %3896 = vmatprep.mubr.bf16.mxu1 %v2452_v18  ;;  %4029 = vmatpush1.bf16.msra.mxu0 %v6391_v52  ;;  %v6468_v52 = vld [vmem:[#allocation14 + $0x7a4] ss:$16 sps:$4 sm:$0xff]  }
 0x4f0   :  { %4060 = vmatprep.mubr.bf16.mxu0 %v2452_v18  ;;  %3866 = vmatprep.subr.bf16.mxu1 %v6396_v8  ;;  %v6471_v8 = vld [vmem:[#allocation14 + $0x7ac] ss:$16 sps:$4 sm:$0xff]   ;;  %v6466_v18 = vld [vmem:[#allocation14 + $0x7a0] ss:$16 sps:$4 sm:$0xff]  }
 0x4f1   :  { %4030 = vmatprep.subr.bf16.mxu0 %v6399_v43  ;;  %v6469_v43 = vld [vmem:[#allocation14 + $0x7a8] ss:$16 sps:$4 sm:$0xff]  }
 0x4f2   :  { %3867 = vmatpush1.bf16.msra.mxu1 %v6394_v5  ;;  %v6474_v5 = vld [vmem:[#allocation14 + $0x7c4] ss:$16 sps:$4 sm:$0xff]  }
 0x4f3   :  { %4031 = vmatpush1.bf16.msra.mxu0 %v6397_v0  ;;  %3868 = vmatprep.subr.bf16.mxu1 %v6402_v49  ;;  %v6477_v0 = vld [vmem:[#allocation14 + $0x7cc] ss:$16 sps:$4 sm:$0xff]   ;;  %v6472_v49 = vld [vmem:[#allocation14 + $0x7c0] ss:$16 sps:$4 sm:$0xff]  }
 0x4f4   :  { %4032 = vmatprep.subr.bf16.mxu0 %v6405_v20  ;;  %v6475_v20 = vld [vmem:[#allocation14 + $0x7c8] ss:$16 sps:$4 sm:$0xff]  }
 0x4f6   :  { %3869 = vmatpush1.bf16.msra.mxu1 %v6400_v7  ;;  %v6480_v7 = vld [vmem:[#allocation14 + $0x7e4] ss:$16 sps:$4 sm:$0xff]  }
 0x4f7   :  { %4033 = vmatpush1.bf16.msra.mxu0 %v6403_v62  ;;  %3870 = vmatprep.subr.bf16.mxu1 %v6408_v51  ;;  %v6483_v62 = vld [vmem:[#allocation14 + $0x7ec] ss:$16 sps:$4 sm:$0xff]   ;;  %v6478_v51 = vld [vmem:[#allocation14 + $0x7e0] ss:$16 sps:$4 sm:$0xff]  }
 0x4f8   :  { %4034 = vmatprep.subr.bf16.mxu0 %v6411_v56  ;;  %v6481_v56 = vld [vmem:[#allocation14 + $0x7e8] ss:$16 sps:$4 sm:$0xff]  }
 0x4fa   :  { %3871 = vmatpush1.bf16.msra.mxu1 %v6406_v59  ;;  %v6486_v59 = vld [vmem:[#allocation17 + $0x4] ss:$8 sps:$4 sm:$0xff]  }
 0x4fb   :  { %4035 = vmatpush1.bf16.msra.mxu0 %v6409_v46  ;;  %3872 = vmatprep.subr.bf16.mxu1 %v6414_v61  ;;  %v6484_v46 = vld [vmem:[#allocation17] ss:$8 sps:$4 sm:$0xff]   ;;  %v2451_v61 = vpack.c.b16 %v8171_v40, %v8171_v40  ;;  %v6501_v40 = vld [vmem:[#allocation17 + $0x54] ss:$8 sps:$4 sm:$0xff]  }
 0x4fc   :  { %4036 = vmatprep.subr.bf16.mxu0 %v6417_v36  ;;  %v6489_v36 = vld [vmem:[#allocation17 + $0x14] ss:$8 sps:$4 sm:$0xff]  }
 0x4fe   :  { %3873 = vmatpush1.bf16.msra.mxu1 %v6412_v9  ;;  %v6487_v9 = vld [vmem:[#allocation17 + $0x10] ss:$8 sps:$4 sm:$0xff]  }
 0x4ff   :  { %4037 = vmatpush1.bf16.msra.mxu0 %v6415_v55  ;;  %3874 = vmatprep.subr.bf16.mxu1 %v6420_v15  ;;  %v6492_v55 = vld [vmem:[#allocation17 + $0x24] ss:$8 sps:$4 sm:$0xff]   ;;  %v6490_v15 = vld [vmem:[#allocation17 + $0x20] ss:$8 sps:$4 sm:$0xff]  }
 0x500   :  { %4038 = vmatprep.subr.bf16.mxu0 %v6423_v11  ;;  %v6495_v11 = vld [vmem:[#allocation17 + $0x34] ss:$8 sps:$4 sm:$0xff]  }
 0x502   :  { %3875 = vmatpush1.bf16.msra.mxu1 %v6418_v39  ;;  %v6493_v39 = vld [vmem:[#allocation17 + $0x30] ss:$8 sps:$4 sm:$0xff]  }
 0x503   :  { %4039 = vmatpush1.bf16.msra.mxu0 %v6421_v14  ;;  %3876 = vmatprep.subr.bf16.mxu1 %v6426_v60  ;;  %v6498_v14 = vld [vmem:[#allocation17 + $0x44] ss:$8 sps:$4 sm:$0xff]   ;;  %v6496_v60 = vld [vmem:[#allocation17 + $0x40] ss:$8 sps:$4 sm:$0xff]  }
 0x504   :  { %4040 = vmatprep.subr.bf16.mxu0 %v6429_v13  ;;  %v6499_v13 = vld [vmem:[#allocation17 + $0x50] ss:$8 sps:$4 sm:$0xff]  }
 0x506   :  { %3877 = vmatpush1.bf16.msra.mxu1 %v6424_v6  ;;  %v6504_v6 = vld [vmem:[#allocation17 + $0x64] ss:$8 sps:$4 sm:$0xff]  }
 0x507   :  { %4041 = vmatpush1.bf16.msra.mxu0 %v6427_v3  ;;  %3878 = vmatprep.subr.bf16.mxu1 %v6432_v10  ;;  %v6502_v3 = vld [vmem:[#allocation17 + $0x60] ss:$8 sps:$4 sm:$0xff]   ;;  %v6507_v10 = vld [vmem:[#allocation17 + $0x74] ss:$8 sps:$4 sm:$0xff]  }
 0x508   :  { %4042 = vmatprep.subr.bf16.mxu0 %v6435_v22  ;;  %v6505_v22 = vld [vmem:[#allocation17 + $0x70] ss:$8 sps:$4 sm:$0xff]  }
 0x50a   :  { %3879 = vmatpush1.bf16.msra.mxu1 %v6430_v45  ;;  %v6510_v45 = vld [vmem:[#allocation17 + $0x84] ss:$8 sps:$4 sm:$0xff]  }
 0x50b   :  { %4043 = vmatpush1.bf16.msra.mxu0 %v6433_v34  ;;  %3880 = vmatprep.subr.bf16.mxu1 %v6438_v37  ;;  %v6508_v34 = vld [vmem:[#allocation17 + $0x80] ss:$8 sps:$4 sm:$0xff]   ;;  %v6513_v37 = vld [vmem:[#allocation17 + $0x94] ss:$8 sps:$4 sm:$0xff]  }
 0x50c   :  { %4044 = vmatprep.subr.bf16.mxu0 %v6441_v58  ;;  %v6511_v58 = vld [vmem:[#allocation17 + $0x90] ss:$8 sps:$4 sm:$0xff]  }
 0x50e   :  { %3881 = vmatpush1.bf16.msra.mxu1 %v6436_v47  ;;  %v6516_v47 = vld [vmem:[#allocation17 + $0xa4] ss:$8 sps:$4 sm:$0xff]  }
 0x50f   :  { %4045 = vmatpush1.bf16.msra.mxu0 %v6439_v44  ;;  %3882 = vmatprep.subr.bf16.mxu1 %v6444_v63  ;;  %v6514_v44 = vld [vmem:[#allocation17 + $0xa0] ss:$8 sps:$4 sm:$0xff]   ;;  %v6519_v63 = vld [vmem:[#allocation17 + $0xb4] ss:$8 sps:$4 sm:$0xff]  }
 0x510   :  { %4046 = vmatprep.subr.bf16.mxu0 %v6447_v19  ;;  %v6517_v19 = vld [vmem:[#allocation17 + $0xb0] ss:$8 sps:$4 sm:$0xff]  }
 0x512   :  { %3883 = vmatpush1.bf16.msra.mxu1 %v6442_v2  ;;  %v6522_v2 = vld [vmem:[#allocation17 + $0xc4] ss:$8 sps:$4 sm:$0xff]  }
 0x513   :  { %4047 = vmatpush1.bf16.msra.mxu0 %v6445_v21  ;;  %3884 = vmatprep.subr.bf16.mxu1 %v6450_v4  ;;  %v6520_v21 = vld [vmem:[#allocation17 + $0xc0] ss:$8 sps:$4 sm:$0xff]   ;;  %v6525_v4 = vld [vmem:[#allocation17 + $0xd4] ss:$8 sps:$4 sm:$0xff]  }
 0x514   :  { %4048 = vmatprep.subr.bf16.mxu0 %v6453_v26  ;;  %v6523_v26 = vld [vmem:[#allocation17 + $0xd0] ss:$8 sps:$4 sm:$0xff]  }
 0x516   :  { %3885 = vmatpush1.bf16.msra.mxu1 %v6448_v50  ;;  %v6526_v50 = vld [vmem:[#allocation17 + $0xe0] ss:$8 sps:$4 sm:$0xff]  }
 0x517   :  { %4049 = vmatpush1.bf16.msra.mxu0 %v6451_v42  ;;  %3886 = vmatprep.subr.bf16.mxu1 %v6456_v41  ;;  %v6528_v42 = vld [vmem:[#allocation17 + $0xe4] ss:$8 sps:$4 sm:$0xff]   ;;  %v6531_v41 = vld [vmem:[#allocation17 + $0xf4] ss:$8 sps:$4 sm:$0xff]  }
 0x518   :  { %4050 = vmatprep.subr.bf16.mxu0 %v6459_v12  ;;  %v6529_v12 = vld [vmem:[#allocation17 + $0xf0] ss:$8 sps:$4 sm:$0xff]  }
 0x51a   :  { %3887 = vmatpush1.bf16.msra.mxu1 %v6454_v33  ;;  %v6534_v33 = vld [vmem:[#allocation17 + $0x104] ss:$8 sps:$4 sm:$0xff]  }
 0x51b   :  { %4051 = vmatpush1.bf16.msra.mxu0 %v6457_v57  ;;  %3888 = vmatprep.subr.bf16.mxu1 %v6462_v16  ;;  %v4573_v57 = vld [vmem:[#allocation20 + $0x80] sm:$0xff]  ;;  %v4574_v16 = vld [vmem:[#allocation20 + $0x88] sm:$0xff] }
 0x51c   :  { %4052 = vmatprep.subr.bf16.mxu0 %v6465_v1  ;;  %v4557_v1 = vld [vmem:[#allocation20] sm:$0xff] }
 0x51e   :  { %3889 = vmatpush1.bf16.msra.mxu1 %v6460_v48  ;;  %v5957_v48 = vpack.c.bf16 %v4574_v16, %v4573_v57 }
 0x51f   :  { %4053 = vmatpush1.bf16.msra.mxu0 %v6463_v53  ;;  %3890 = vmatprep.subr.bf16.mxu1 %v6468_v52  ;;  %v4558_v53 = vld [vmem:[#allocation20 + $0x8] sm:$0xff]  ;;  %v4575_v52 = vld [vmem:[#allocation20 + $0x90] sm:$0xff] }
 0x520   :  { %4054 = vmatprep.subr.bf16.mxu0 %v6471_v8  ;;  %v4576_v8 = vld [vmem:[#allocation20 + $0x98] sm:$0xff] }
 0x522   :  { %3891 = vmatpush1.bf16.msra.mxu1 %v6466_v18  ;;  %v5959_v18 = vpack.c.bf16 %v4558_v53, %v4557_v1 }
 0x523   :  { %4055 = vmatpush1.bf16.msra.mxu0 %v6469_v43  ;;  %3892 = vmatprep.subr.bf16.mxu1 %v6474_v5  ;;  %v5961_v43 = vpack.c.bf16 %v4576_v8, %v4575_v52  ;;  %v4559_v5 = vld [vmem:[#allocation20 + $0x10] sm:$0xff] }
 0x524   :  { %4056 = vmatprep.subr.bf16.mxu0 %v6477_v0  ;;  %v4560_v0 = vld [vmem:[#allocation20 + $0x18] sm:$0xff] }
 0x526   :  { %3893 = vmatpush1.bf16.msra.mxu1 %v6472_v49  ;;  %v4577_v49 = vld [vmem:[#allocation20 + $0xa0] sm:$0xff] }
 0x527   :  { %4057 = vmatpush1.bf16.msra.mxu0 %v6475_v20  ;;  %3894 = vmatprep.subr.bf16.mxu1 %v6480_v7  ;;  %v4578_v20 = vld [vmem:[#allocation20 + $0xa8] sm:$0xff]  ;;  %v5963_v7 = vpack.c.bf16 %v4560_v0, %v4559_v5  ;;  %v6537_v0 = vld [vmem:[#allocation17 + $0x114] ss:$8 sps:$4 sm:$0xff]  }
 0x528   :  { %4058 = vmatprep.subr.bf16.mxu0 %v6483_v62  ;;  %v5965_v62 = vpack.c.bf16 %v4578_v20, %v4577_v49  ;;  %v6535_v20 = vld [vmem:[#allocation17 + $0x110] ss:$8 sps:$4 sm:$0xff]  }
 0x52a   :  { %3895 = vmatpush1.bf16.msra.mxu1 %v6478_v51  ;;  %v4561_v51 = vld [vmem:[#allocation20 + $0x20] sm:$0xff] }
 0x52b   :  { %4059 = vmatpush1.bf16.msra.mxu0 %v6481_v56  ;;  %4473 = vmatprep.subr.bf16.mxu1 %v6486_v59  ;;  %v4562_v56 = vld [vmem:[#allocation20 + $0x28] sm:$0xff]  ;;  %v4579_v59 = vld [vmem:[#allocation20 + $0xb0] sm:$0xff] }
 0x52c   :  { %5958 = vmatprep.subr.bf16.mxu0 %v5957_v48 }
 0x52d   :  { %3897 = vmatmul.mubr.bf16.vlgmr.msra.gmra.mrb[64].mxu1 %v2451_v61 }
 0x52e   :  { %4061 = vmatmul.mubr.bf16.vlgmr.msra.gmra.mrb[80].mxu0 %v2451_v61  ;;  %4474 = vmatpush1.bf16.msra.mxu1 %v6484_v46  ;;  %v4580_v46 = vld [vmem:[#allocation20 + $0xb8] sm:$0xff]  ;;  %v5967_v61 = vpack.c.bf16 %v4562_v56, %v4561_v51 }
 0x52f   :  { %4475 = vmatprep.subr.bf16.mxu1 %v6489_v36  ;;  %5960 = vmatpush3.bf16.msra.mxu0 %v5959_v18  ;;  %v5969_v36 = vpack.c.bf16 %v4580_v46, %v4579_v59  ;;  %v6543_v51 = vld [vmem:[#allocation17 + $0x134] ss:$8 sps:$4 sm:$0xff]   ;;  %v6541_v56 = vld [vmem:[#allocation17 + $0x130] ss:$8 sps:$4 sm:$0xff]   ;;  %v6546_v59 = vld [vmem:[#allocation17 + $0x144] ss:$8 sps:$4 sm:$0xff]  }
 0x530   :  { %5962 = vmatprep.subr.bf16.mxu0 %v5961_v43  ;;  %v6532_v43 = vld [vmem:[#allocation17 + $0x100] ss:$8 sps:$4 sm:$0xff]  }
 0x531   :  { %v6544_v46 = vld [vmem:[#allocation17 + $0x140] ss:$8 sps:$4 sm:$0xff]  }
 0x532   :  { %4476 = vmatpush1.bf16.msra.mxu1 %v6487_v9  ;;  %v4563_v9 = vld [vmem:[#allocation20 + $0x30] sm:$0xff] }
 0x533   :  { %4477 = vmatprep.subr.bf16.mxu1 %v6492_v55  ;;  %5964 = vmatpush3.bf16.msra.mxu0 %v5963_v7  ;;  %v4564_v55 = vld [vmem:[#allocation20 + $0x38] sm:$0xff]  ;;  %v6540_v7 = vld [vmem:[#allocation17 + $0x124] ss:$8 sps:$4 sm:$0xff]  }
 0x534   :  { %5966 = vmatprep.subr.bf16.mxu0 %v5965_v62  ;;  %v6538_v62 = vld [vmem:[#allocation17 + $0x120] ss:$8 sps:$4 sm:$0xff]  }
 0x536   :  { %4478 = vmatpush1.bf16.msra.mxu1 %v6490_v15  ;;  %v4581_v15 = vld [vmem:[#allocation20 + $0xc0] sm:$0xff] }
 0x537   :  { %4479 = vmatprep.subr.bf16.mxu1 %v6495_v11  ;;  %v4582_v11 = vld [vmem:[#allocation20 + $0xc8] sm:$0xff]  ;;  %5968 = vmatpush3.bf16.msra.mxu0 %v5967_v61  ;;  %v6549_v61 = vld [vmem:[#allocation17 + $0x154] ss:$8 sps:$4 sm:$0xff]  }
 0x538   :  { %5970 = vmatprep.subr.bf16.mxu0 %v5969_v36  ;;  %v6547_v36 = vld [vmem:[#allocation17 + $0x150] ss:$8 sps:$4 sm:$0xff]  }
 0x53a   :  { %4480 = vmatpush1.bf16.msra.mxu1 %v6493_v39  ;;  %v5971_v39 = vpack.c.bf16 %v4564_v55, %v4563_v9  ;;  %v6552_v9 = vld [vmem:[#allocation17 + $0x164] ss:$8 sps:$4 sm:$0xff]   ;;  %v6550_v55 = vld [vmem:[#allocation17 + $0x160] ss:$8 sps:$4 sm:$0xff]  }
 0x53b   :  { %4481 = vmatprep.subr.bf16.mxu1 %v6498_v14  ;;  %v5973_v14 = vpack.c.bf16 %v4582_v11, %v4581_v15  ;;  %v6555_v15 = vld [vmem:[#allocation17 + $0x174] ss:$8 sps:$4 sm:$0xff]   ;;  %v6553_v11 = vld [vmem:[#allocation17 + $0x170] ss:$8 sps:$4 sm:$0xff]  }
 0x53c   :  { %5972 = vmatpush3.bf16.msra.mxu0 %v5971_v39  ;;  %v6558_v39 = vld [vmem:[#allocation17 + $0x184] ss:$8 sps:$4 sm:$0xff]  }
 0x53d   :  { %5974 = vmatprep.subr.bf16.mxu0 %v5973_v14  ;;  %v6556_v14 = vld [vmem:[#allocation17 + $0x180] ss:$8 sps:$4 sm:$0xff]  }
 0x53e   :  { %4482 = vmatpush1.bf16.msra.mxu1 %v6496_v60  ;;  %v4565_v60 = vld [vmem:[#allocation20 + $0x40] sm:$0xff] }
 0x53f   :  { %4483 = vmatprep.subr.bf16.mxu1 %v6501_v40  ;;  %v4566_v40 = vld [vmem:[#allocation20 + $0x48] sm:$0xff] }
 0x542   :  { %4484 = vmatpush1.bf16.msra.mxu1 %v6499_v13  ;;  %v4583_v13 = vld [vmem:[#allocation20 + $0xd0] sm:$0xff] }
 0x543   :  { %4485 = vmatprep.subr.bf16.mxu1 %v6504_v6  ;;  %v4584_v6 = vld [vmem:[#allocation20 + $0xd8] sm:$0xff] }
 0x546   :  { %4486 = vmatpush1.bf16.msra.mxu1 %v6502_v3  ;;  %v5975_v3 = vpack.c.bf16 %v4566_v40, %v4565_v60  ;;  %v6561_v60 = vld [vmem:[#allocation17 + $0x194] ss:$8 sps:$4 sm:$0xff]   ;;  %v6559_v40 = vld [vmem:[#allocation17 + $0x190] ss:$8 sps:$4 sm:$0xff]  }
 0x547   :  { %4487 = vmatprep.subr.bf16.mxu1 %v6507_v10  ;;  %v5977_v10 = vpack.c.bf16 %v4584_v6, %v4583_v13  ;;  %v6564_v13 = vld [vmem:[#allocation17 + $0x1a4] ss:$8 sps:$4 sm:$0xff]   ;;  %v6562_v6 = vld [vmem:[#allocation17 + $0x1a0] ss:$8 sps:$4 sm:$0xff]  }
 0x548   :  { %5976 = vmatpush3.bf16.msra.mxu0 %v5975_v3  ;;  %v6567_v3 = vld [vmem:[#allocation17 + $0x1b4] ss:$8 sps:$4 sm:$0xff]  }
 0x549   :  { %5978 = vmatprep.subr.bf16.mxu0 %v5977_v10  ;;  %v6565_v10 = vld [vmem:[#allocation17 + $0x1b0] ss:$8 sps:$4 sm:$0xff]  }
 0x54a   :  { %4488 = vmatpush1.bf16.msra.mxu1 %v6505_v22  ;;  %v4567_v22 = vld [vmem:[#allocation20 + $0x50] sm:$0xff] }
 0x54b   :  { %4489 = vmatprep.subr.bf16.mxu1 %v6510_v45  ;;  %v4568_v45 = vld [vmem:[#allocation20 + $0x58] sm:$0xff] }
 0x54e   :  { %4490 = vmatpush1.bf16.msra.mxu1 %v6508_v34  ;;  %v4585_v34 = vld [vmem:[#allocation20 + $0xe0] sm:$0xff] }
 0x54f   :  { %4491 = vmatprep.subr.bf16.mxu1 %v6513_v37  ;;  %v4586_v37 = vld [vmem:[#allocation20 + $0xe8] sm:$0xff] }
 0x552   :  { %4492 = vmatpush1.bf16.msra.mxu1 %v6511_v58  ;;  %v5979_v58 = vpack.c.bf16 %v4568_v45, %v4567_v22  ;;  %v6570_v22 = vld [vmem:[#allocation17 + $0x1c4] ss:$8 sps:$4 sm:$0xff]   ;;  %v6568_v45 = vld [vmem:[#allocation17 + $0x1c0] ss:$8 sps:$4 sm:$0xff]  }
 0x553   :  { %4493 = vmatprep.subr.bf16.mxu1 %v6516_v47  ;;  %v5981_v47 = vpack.c.bf16 %v4586_v37, %v4585_v34  ;;  %v6573_v34 = vld [vmem:[#allocation17 + $0x1d4] ss:$8 sps:$4 sm:$0xff]   ;;  %v6571_v37 = vld [vmem:[#allocation17 + $0x1d0] ss:$8 sps:$4 sm:$0xff]  }
 0x554   :  { %5980 = vmatpush3.bf16.msra.mxu0 %v5979_v58 }
 0x555   :  { %5982 = vmatprep.subr.bf16.mxu0 %v5981_v47  ;;  %v6576_v47 = vld [vmem:[#allocation17 + $0x1e4] ss:$8 sps:$4 sm:$0xff]  }
 0x556   :  { %4494 = vmatpush1.bf16.msra.mxu1 %v6514_v44  ;;  %v8184_v44 = vld [vmem:[#allocation16] sm:$0xf] }
 0x557   :  { %4495 = vmatprep.subr.bf16.mxu1 %v6519_v63  ;;  %v2387_v63 = vrot.slane %v8184_v44, %v7512_v32  ;;  %v2395_v58 = vrot.slane %v8184_v44, %v7517_v35 }
 0x55a   :  { %4496 = vmatpush1.bf16.msra.mxu1 %v6517_v19  ;;  %v2391_v19 = vrot.slane %v8184_v44, %v7509_v31 }
 0x55b   :  { %4497 = vmatprep.subr.bf16.mxu1 %v6522_v2  ;;  %v8477_v2 = vsub.s32 3, %v7501_v28 }
 0x55e   :  { %4498 = vmatpush1.bf16.msra.mxu1 %v6520_v21  ;;  %v2399_v21 = vrot.slane %v8184_v44, %v8477_v2  ;;  %v6579_v2 = vld [vmem:[#allocation17 + $0x1f4] ss:$8 sps:$4 sm:$0xff]  }
 0x55f   :  { %4499 = vmatprep.subr.bf16.mxu1 %v6525_v4  ;;  %v4588_v44 = vld [vmem:[#allocation20 + $0xf8] sm:$0xff] }
 0x562   :  { %4500 = vmatpush1.bf16.msra.mxu1 %v6523_v26 }
 0x563   :  { %4501 = vmatprep.subr.bf16.mxu1 %v6528_v42 }
 0x566   :  { %4502 = vmatpush1.bf16.msra.mxu1 %v6526_v50 }
 0x567   :  { %4503 = vmatprep.subr.bf16.mxu1 %v6531_v41 }
 0x56a   :  { %4504 = vmatpush1.bf16.msra.mxu1 %v6529_v12 }
 0x56b   :  { %4514 = vmatprep.subr.bf16.mxu1 %v6534_v33 }
 0x600   :  { %v3898_v4 = vpop.f32.mrb[64].mxu1 }
 0x601   :  { %v5989_v26 = vadd.f32 %v3898_v4, %v2387_v63  ;;  %v8193_v50 = vpop.f32.mrb[80].mxu0  ;;  %v3900_v42 = vpop.f32.mrb[65].mxu1  ;;  %v6574_v63 = vld [vmem:[#allocation17 + $0x1e0] ss:$8 sps:$4 sm:$0xff]  }
 0x602   :  { %v5990_v41 = vadd.f32 %v3900_v42, %v2391_v19  ;;  %v4064_v12 = vpop.f32.mrb[81].mxu0  ;;  %v3902_v33 = vpop.f32.mrb[66].mxu1  ;;  %v5991_v19 = vadd.f32 %v8193_v50, %v2395_v58  ;;  %v4569_v42 = vld [vmem:[#allocation20 + $0x60] sm:$0xff]  ;;  %v4141_v50 = vld [vmem:[#allocation19] sm:$0x3] }
 0x603   :  { %v4069_v57 = vmax.f32 %v5989_v26, 0.0  ;;  %v5992_v16 = vadd.f32 %v4064_v12, %v2399_v21  ;;  %v4066_v1 = vpop.f32.mrb[82].mxu0  ;;  %v3903_v48 = vpop.f32.mrb[67].mxu1  ;;  %v6577_v21 = vld [vmem:[#allocation17 + $0x1f0] ss:$8 sps:$4 sm:$0xff]  }
 0x604   :  { %v4070_v53 = vmax.f32 %v5990_v41, 0.0  ;;  %v4067_v52 = vpop.f32.mrb[83].mxu0  ;;  %v4071_v4 = vmax.f32 %v5991_v19, 0.0  ;;  %v4570_v41 = vld [vmem:[#allocation20 + $0x68] sm:$0xff]  ;;  %v4587_v33 = vld [vmem:[#allocation20 + $0xf0] sm:$0xff]  ;;  %v4572_v1 = vld [vmem:[#allocation20 + $0x78] sm:$0xff] }
 0x605   :  { %v4072_v8 = vmax.f32 %v5992_v16, 0.0  ;;  %v4137_v5 = vpack.c.bf16 %v4069_v57, %v4069_v57  ;;  %v5983_v12 = vpack.c.bf16 %v4570_v41, %v4569_v42  ;;  %v4571_v57 = vld [vmem:[#allocation20 + $0x70] sm:$0xff]  ;;  %v5985_v16 = vpack.c.bf16 %v4588_v44, %v4587_v33 }
 0x606   :  { %v4138_v18 = vpack.c.bf16 %v4070_v53, %v4070_v53  ;;  %v4139_v26 = vpack.c.bf16 %v4071_v4, %v4071_v4  ;;  %v5987_v48 = vpack.c.bf16 %v4572_v1, %v4571_v57  ;;  %v4146_v53 = vrot.slane %v4141_v50, %v7512_v32 }
 0x607   :  { %v4140_v49 = vpack.c.bf16 %v4072_v8, %v4072_v8  ;;  %5984 = vmatpush3.bf16.msra.mxu0 %v5983_v12  ;;  %v4150_v52 = vrot.slane %v4141_v50, %v7509_v31 }
 0x608   :  { %4505 = vmatprep.mubr.bf16.mxu1 %v4138_v18  ;;  %5986 = vmatprep.subr.bf16.mxu0 %v5985_v16 }
 0x609   :  { %4506 = vmatmul.mubr.bf16.vlgmr.msra.gmra.mrb[68].mxu1 %v4137_v5 }
 0x60a   :  { %4515 = vmatpush1.bf16.msra.mxu1 %v6532_v43  ;;  %4546 = vmatprep.mubr.bf16.mxu1 %v4140_v49 }
 0x60b   :  { %4516 = vmatprep.subr.bf16.mxu1 %v6537_v0  ;;  %5988 = vmatpush3.bf16.msra.mxu0 %v5987_v48 }
 0x60e   :  { %4517 = vmatpush1.bf16.msra.mxu1 %v6535_v20 }
 0x60f   :  { %4518 = vmatprep.subr.bf16.mxu1 %v6540_v7 }
 0x612   :  { %4519 = vmatpush1.bf16.msra.mxu1 %v6538_v62 }
 0x613   :  { %4520 = vmatprep.subr.bf16.mxu1 %v6543_v51  ;;  %v5778_v51 = vld [vmem:[#allocation22] ss:$0 sm:$0xff] }
 0x616   :  { %4521 = vmatpush1.bf16.msra.mxu1 %v6541_v56 }
 0x617   :  { %4522 = vmatprep.subr.bf16.mxu1 %v6546_v59 }
 0x61a   :  { %4523 = vmatpush1.bf16.msra.mxu1 %v6544_v46 }
 0x61b   :  { %4524 = vmatprep.subr.bf16.mxu1 %v6549_v61  ;;  %v8478_v61 = vmov 2  }
 0x61e   :  { %4525 = vmatpush1.bf16.msra.mxu1 %v6547_v36  ;;  %v7084_v36 = vmov 3  }
 0x61f   :  { %4526 = vmatprep.subr.bf16.mxu1 %v6552_v9  ;;  %v7085_v9 = vmov 7  }
 0x622   :  { %4527 = vmatpush1.bf16.msra.mxu1 %v6550_v55  ;;  %v7086_v55 = vmov 4  }
 0x623   :  { %4528 = vmatprep.subr.bf16.mxu1 %v6555_v15  ;;  %v7087_v15 = vmov 5  }
 0x626   :  { %4529 = vmatpush1.bf16.msra.mxu1 %v6553_v11  ;;  %v7088_v11 = vmov 8  }
 0x627   :  { %4530 = vmatprep.subr.bf16.mxu1 %v6558_v39  ;;  %v7089_v39 = vmov 6  }
 0x62a   :  { %4531 = vmatpush1.bf16.msra.mxu1 %v6556_v14  ;;  %v6580_v14 = vld [vmem:[#allocation26] sm:$0xff]  }
 0x62b   :  { %4532 = vmatprep.subr.bf16.mxu1 %v6561_v60  ;;  %v6581_v60 = vld [vmem:[#allocation26 + $0x8] sm:$0xff]   ;;  %5901 = vmatprep.subr.bf16.mxu0 %v6580_v14 }
 0x62e   :  { %4533 = vmatpush1.bf16.msra.mxu1 %v6559_v40  ;;  %v6582_v40 = vld [vmem:[#allocation26 + $0x10] sm:$0xff]  }
 0x62f   :  { %4534 = vmatprep.subr.bf16.mxu1 %v6564_v13  ;;  %v6583_v13 = vld [vmem:[#allocation26 + $0x18] sm:$0xff]  }
 0x632   :  { %4535 = vmatpush1.bf16.msra.mxu1 %v6562_v6  ;;  %v8201_v6 = vld [vmem:[#allocation29] sm:$0xff]  }
 0x633   :  { %4536 = vmatprep.subr.bf16.mxu1 %v6567_v3  ;;  %v4666_v3 = vld [vmem:[#allocation23] sm:$0x7] }
 0x634   :  { %v4694_v19 = vrot.slane %v4666_v3, %v7517_v35 }
 0x636   :  { %4537 = vmatpush1.bf16.msra.mxu1 %v6565_v10  ;;  %v4684_v10 = vrot.slane %v4666_v3, %v7509_v31 }
 0x637   :  { %4538 = vmatprep.subr.bf16.mxu1 %v6570_v22  ;;  %v4675_v22 = vrot.slane %v4666_v3, %v7512_v32 }
 0x63a   :  { %4539 = vmatpush1.bf16.msra.mxu1 %v6568_v45  ;;  %v7090_v45 = vmov 1966171168  }
 0x63b   :  { %4540 = vmatprep.subr.bf16.mxu1 %v6573_v34  ;;  %v4733_v34 = vunpack.c.l.s4 %v7090_v45  ;;  %v8484_v45 = vld [vmem:[#allocation55_spill] sm:$0xff] }
 0x63e   :  { %4541 = vmatpush1.bf16.msra.mxu1 %v6571_v37 }
 0x63f   :  { %4542 = vmatprep.subr.bf16.mxu1 %v6576_v47 }
 0x642   :  { %4543 = vmatpush1.bf16.msra.mxu1 %v6574_v63 }
 0x643   :  { %4544 = vmatprep.subr.bf16.mxu1 %v6579_v2  ;;  %v4734_v2 = vunpack.c.0.s8 %v4733_v34 }
 0x645   :  { %v8208_v41 = vsub.s32 %v4734_v2, %v7501_v28  ;;  %v8488_v2 = vld [vmem:[#allocation65_spill] sm:$0xff] }
 0x646   :  { %4545 = vmatpush1.bf16.msra.mxu1 %v6577_v21 }
 0x649   :  { %4547 = vmatmul.mubr.bf16.vlgmr.msra.gmra.mrb[68].mxu1 %v4139_v26 }
 0x71c   :  { %v4548_v8 = vpop.f32.mrb[68].mxu1 }
 0x71d   :  { %v5993_v18 = vadd.f32 %v4548_v8, %v4146_v53  ;;  %v4550_v43 = vpop.f32.mrb[69].mxu1 }
 0x71e   :  { %v5994_v5 = vadd.f32 %v4550_v43, %v4150_v52  ;;  %v4552_v0 = vpop.f32.mrb[70].mxu1 }
 0x71f   :  { %v4553_v49 = vpop.f32.mrb[71].mxu1  ;;  %v4555_v7 = vmax.f32 %v5993_v18, 0.0 }
 0x720   :  { %v4556_v20 = vmax.f32 %v5994_v5, 0.0 }
 0x722   :  { %4660 = vmatprep.mubr.f32.mxu0 %v4556_v20 }
 0x723   :  { %4661 = vmatmul.mubr.f32.vlgmr.msra.gmra.mrb[84].mxu0 %v4555_v7 }
 0x724   :  { %5902 = vmatpush3.bf16.msra.mxu0 %v6580_v14 }
 0x725   :  { %5903 = vmatprep.subr.bf16.mxu0 %v6581_v60 }
 0x728   :  { %5904 = vmatpush3.bf16.msra.mxu0 %v6581_v60 }
 0x729   :  { %5905 = vmatprep.subr.bf16.mxu0 %v6582_v40 }
 0x72c   :  { %5906 = vmatpush3.bf16.msra.mxu0 %v6582_v40 }
 0x72d   :  { %5907 = vmatprep.subr.bf16.mxu0 %v6583_v13 }
 0x730   :  { %5908 = vmatpush3.bf16.msra.mxu0 %v6583_v13 }
 0x731   :  { %5925 = vmatprep.subr.bf16.mxu0 %v8201_v6 }
 0x7f6   :  { %v5846_v62 = vpop.f32.mrb[84].mxu0 }
 0x7f7   :  { %v5847_v56 = vpop.f32.mrb[85].mxu0 }
 0x7f8   :  { %v5848_v59 = vadd.f32 %v5847_v56, %v5846_v62 }
 0x7fa   :  { %v4663_v46 = vadd.f32 %v5848_v59, %v5778_v51 }
 0x7fc   :  { %4678 = vperm.xlu0 %6087, %v4663_v46   ;;  %4669 = vperm.xlu1 %6086, %v4663_v46  }
 0x800   :  { %6090 = vset.pattern.permute.xlu0 %v8478_v61  ;;  %6088 = vset.pattern.permute.xlu1 %v7084_v36 }
 0x801   :  { %4688 = vperm.xlu0 %6090, %v4663_v46   ;;  %4698 = vperm.xlu1 %6088, %v4663_v46  }
 0x805   :  { %6093 = vset.pattern.permute.xlu0 %v7085_v9  ;;  %6089 = vset.pattern.permute.xlu1 %v7086_v55 }
 0x806   :  { %4720 = vperm.xlu0 %6093, %v4663_v46   ;;  %4703 = vperm.xlu1 %6089, %v4663_v46  }
 0x80a   :  { %6091 = vset.pattern.permute.xlu1 %v7087_v15  ;;  %6095 = vset.pattern.permute.xlu0 %v7088_v11 }
 0x80b   :  { %4709 = vperm.xlu1 %6091, %v4663_v46  }
 0x80f   :  { %6092 = vset.pattern.permute.xlu1 %v7089_v39 }
 0x810   :  { %4715 = vperm.xlu1 %6092, %v4663_v46  }
 0x814   :  { %6094 = vset.pattern.permute.xlu1 %v7088_v11 }
 0x815   :  { %4726 = vperm.xlu1 %6094, %v4663_v46  }
 0x87b   :  { %v4679_v37 = vpop.permute.xlu0 %4678  ;;  %v4670_v58 = vpop.permute.xlu1 %4669 }
 0x87c   :  { %v4685_v47 = vmul.f32 %v4684_v10, %v4679_v37  ;;  %v4676_v63 = vmul.f32 %v4675_v22, %v4670_v58  ;;  %v8485_v37 = vld [vmem:[#allocation47_spill] sm:$0xff] }
 0x87e   :  { %v4686_v26 = vadd.f32 %v4685_v47, %v4676_v63  ;;  %v8487_v63 = vld [vmem:[#allocation63_spill] sm:$0xff] }
 0x880   :  { %v4689_v21 = vpop.permute.xlu0 %4688  ;;  %v4699_v4 = vpop.permute.xlu1 %4698 }
 0x881   :  { %v4695_v42 = vmul.f32 %v4694_v19, %v4689_v21  ;;  %v4701_v57 = vmul.f32 %v4699_v4, %v4675_v22  ;;  %v8489_v4 = vld [vmem:[#allocation66_spill] sm:$0xff] }
 0x883   :  { %v4696_v12 = vadd.f32 %v4695_v42, %v4686_v26 }
 0x885   :  { %v4704_v31 = vpop.permute.xlu1 %4703  ;;  %v4738_v33 = vrot.slane %v4696_v12, %v8208_v41  ;;  %v4721_v43 = vpop.permute.xlu0 %4720  ;;  %v8490_v12 = vld [vmem:[#allocation57_spill] sm:$0xff] }
 0x886   :  { %v4706_v44 = vmul.f32 %v4704_v31, %v4684_v10  ;;  %v4723_v7 = vmul.f32 %v4721_v43, %v4684_v10  ;;  %v8482_v10 = vld [vmem:[#allocation61_spill] sm:$0xff] }
 0x887   :  { %v4739_v16 = vcombine.high %v4738_v33, %v4738_v33  ;;  %v4746_v48 = vrot.slane %v4738_v33, %v8208_v41  ;;  %v8491_v33 = vld [vmem:[#allocation62_spill] sm:$0xff] }
 0x888   :  { %v4707_v50 = vadd.f32 %v4706_v44, %v4701_v57  ;;  %v8492_v57 = vld [vmem:[#allocation72_spill] sm:$0xff] }
 0x889   :  { %v4753_v52 = vrot.slane %v4739_v16, %v8208_v41  ;;  %v4757_v8 = vrot.slane %v4746_v48, %v7512_v32 }
 0x88a   :  { %v4710_v1 = vpop.permute.xlu1 %4709 }
 0x88b   :  { %v4712_v35 = vmul.f32 %v4710_v1, %v4694_v19  ;;  %v8217_v20 = vrot.slane %v4753_v52, %v7512_v32  ;;  %v4764_v56 = vmul.f32 %v4757_v8, %v7495_v24  ;;  %v4765_v46 = vmul.f32 %v4757_v8, %v7499_v27  ;;  %v8479_v27 = vld [vmem:[#allocation60_spill] sm:$0xff] }
 0x88c   :  { %v4766_v61 = vmul.f32 %v4757_v8, %v7504_v29  ;;  %v4767_v36 = vmul.f32 %v4757_v8, %v7506_v30  ;;  %v4768_v9 = vmul.f32 %v4757_v8, %v7594_v17  ;;  %v4769_v11 = vmul.f32 %v4757_v8, %v7580_v54  ;;  %v8480_v30 = vld [vmem:[#allocation44_spill] sm:$0xff]  ;;  %v8481_v17 = vld [vmem:[#allocation45_spill] sm:$0xff] }
 0x88d   :  { %v4713_v53 = vadd.f32 %v4712_v35, %v4707_v50  ;;  %v4770_v39 = vmul.f32 %v4757_v8, %v7592_v38  ;;  %v4771_v60 = vmul.f32 %v4757_v8, %v7596_v25  ;;  %v4772_v29 = vmul.f32 %v8217_v20, %v8479_v27  ;;  %v8500_v27 = vld [vmem:[#allocation52_spill] sm:$0xff] }
 0x88e   :  { %v4773_v54 = vmul.f32 %v8217_v20, %v8482_v10  ;;  %v8248_v21 = vmul.f32 %v8217_v20, %v8488_v2  ;;  %v8252_v26 = vmul.f32 %v8217_v20, %v8489_v4  ;;  %v8259_v16 = vmul.f32 %v8217_v20, %v8492_v57 }
 0x88f   :  { %v4787_v28 = vrot.slane %v4713_v53, %v8208_v41  ;;  %v4716_v18 = vpop.permute.xlu1 %4715 }
 0x890   :  { %v4718_v49 = vmul.f32 %v4716_v18, %v4675_v22  ;;  %v8483_v22 = vld [vmem:[#allocation46_spill] sm:$0xff] }
 0x891   :  { %v4788_v5 = vcombine.high %v4787_v28, %v4787_v28  ;;  %v4795_v0 = vrot.slane %v4787_v28, %v8208_v41 }
 0x892   :  { %v4724_v55 = vadd.f32 %v4723_v7, %v4718_v49  ;;  %v8494_v49 = vld [vmem:[#allocation68_spill] sm:$0xff] }
 0x893   :  { %v4802_v62 = vrot.slane %v4788_v5, %v8208_v41  ;;  %v4806_v51 = vrot.slane %v4795_v0, %v7512_v32  ;;  %v8493_v5 = vld [vmem:[#allocation64_spill] sm:$0xff] }
 0x894   :  { %v4727_v59 = vpop.permute.xlu1 %4726 }
 0x895   :  { %v4729_v15 = vmul.f32 %v4727_v59, %v4694_v19  ;;  %v8229_v14 = vrot.slane %v4802_v62, %v7512_v32  ;;  %v4813_v24 = vmul.f32 %v4806_v51, %v7493_v23  ;;  %v4814_v13 = vmul.f32 %v4806_v51, %v8480_v30  ;;  %v8486_v23 = vld [vmem:[#allocation49_spill] sm:$0xff]  ;;  %v8502_v30 = vld [vmem:[#allocation58_spill] sm:$0xff] }
 0x896   :  { %v4815_v3 = vmul.f32 %v4806_v51, %v8481_v17  ;;  %v4816_v38 = vmul.f32 %v4806_v51, %v8483_v22  ;;  %v4817_v34 = vmul.f32 %v4806_v51, %v8484_v45  ;;  %v4818_v58 = vmul.f32 %v4806_v51, %v8485_v37  ;;  %v8503_v17 = vld [vmem:[#allocation59_spill] sm:$0xff] }
 0x897   :  { %v4730_v40 = vadd.f32 %v4729_v15, %v4724_v55  ;;  %v4819_v47 = vmul.f32 %v4806_v51, %v8486_v23  ;;  %v4774_v19 = vmul.f32 %v8217_v20, %v8487_v63  ;;  %v4829_v42 = vadd.f32 %v4813_v24, %v4764_v56  ;;  %v8495_v56 = vld [vmem:[#allocation67_spill] sm:$0xff] }
 0x898   :  { %v4820_v31 = vmul.f32 %v4806_v51, %v8490_v12  ;;  %v4821_v44 = vmul.f32 %v8229_v14, %v8491_v33  ;;  %v4830_v50 = vadd.f32 %v4814_v13, %v4765_v46  ;;  %v4831_v35 = vadd.f32 %v4815_v3, %v4766_v61  ;;  %v8496_v46 = vld [vmem:[#allocation74_spill] sm:$0xff]  ;;  %v8498_v55 = vld [vmem:[#allocation51_spill] sm:$0xff] }
 0x899   :  { %v4852_v25 = vrot.slane %v4730_v40, %v8208_v41  ;;  %v4832_v53 = vadd.f32 %v4816_v38, %v4767_v36  ;;  %v4833_v52 = vadd.f32 %v4817_v34, %v4768_v9  ;;  %v4834_v8 = vadd.f32 %v4818_v58, %v4769_v11  ;;  %v8499_v11 = vld [vmem:[#allocation50_spill] sm:$0xff]  ;;  %v8278_v24 = vld [vmem:[#allocation25] ss:$0 sm:$0xff] }
 0x89a   :  { %v4835_v28 = vadd.f32 %v4819_v47, %v4770_v39  ;;  %v4822_v0 = vmul.f32 %v8229_v14, %v8493_v5  ;;  %v4823_v7 = vmul.f32 %v8229_v14, %v8494_v49  ;;  %v4836_v62 = vadd.f32 %v4820_v31, %v4771_v60  ;;  %v8504_v38 = vld [vmem:[#allocation54_spill] sm:$0xff]  ;;  %v8507_v5 = vld [vmem:[#allocation56_spill] sm:$0xff] }
 0x89b   :  { %v4853_v1 = vcombine.high %v4852_v25, %v4852_v25  ;;  %v4860_v48 = vrot.slane %v4852_v25, %v8208_v41  ;;  %v4837_v51 = vadd.f32 %v4821_v44, %v4772_v29  ;;  %v4824_v59 = vmul.f32 %v8229_v14, %v8495_v56  ;;  %v8501_v29 = vld [vmem:[#allocation53_spill] sm:$0xff] }
 0x89c   :  { %v4825_v61 = vmul.f32 %v8229_v14, %v8496_v46  ;;  %v4838_v31 = vadd.f32 %v4822_v0, %v4773_v54  ;;  %v4839_v49 = vadd.f32 %v4823_v7, %v4774_v19  ;;  %v8509_v46 = vld [vmem:[#allocation71_spill] sm:$0xff] }
 0x89d   :  { %v4867_v18 = vrot.slane %v4853_v1, %v8208_v41  ;;  %v4871_v43 = vrot.slane %v4860_v48, %v7512_v32  ;;  %v8497_v41 = vld [vmem:[#allocation48_spill] sm:$0xff]  ;;  %v8505_v1 = vld [vmem:[#allocation73_spill] sm:$0xff] }
 0x89e   :  { %v4826_v48 = vmul.f32 %v8229_v14, %v8505_v1  ;;  %v4841_v19 = vadd.f32 %v4825_v61, %v8252_v26 }
 0x89f   :  { %v8273_v36 = vrot.slane %v4867_v18, %v7512_v32  ;;  %v4878_v9 = vmul.f32 %v4871_v43, %v8497_v41  ;;  %v4879_v15 = vmul.f32 %v4871_v43, %v8498_v55  ;;  %v4880_v39 = vmul.f32 %v4871_v43, %v8499_v11  ;;  %v8506_v18 = vld [vmem:[#allocation69_spill] sm:$0xff]  ;;  %v8510_v11 = vld [vmem:[#allocation78_spill] sm:$0xff] }
 0x8a0   :  { %v4881_v60 = vmul.f32 %v4871_v43, %v8500_v27  ;;  %v4882_v40 = vmul.f32 %v4871_v43, %v8501_v29  ;;  %v4883_v13 = vmul.f32 %v4871_v43, %v8502_v30  ;;  %v4884_v3 = vmul.f32 %v4871_v43, %v8503_v17  ;;  %v6585_v27 = vld [vmem:[#allocation29 + $0x8] sm:$0xff]  }
 0x8a1   :  { %v4894_v10 = vadd.f32 %v4878_v9, %v4829_v42  ;;  %v4895_v22 = vadd.f32 %v4879_v15, %v4830_v50  ;;  %v4896_v32 = vadd.f32 %v4880_v39, %v4831_v35  ;;  %v4885_v45 = vmul.f32 %v4871_v43, %v8504_v38  ;;  %v8511_v29 = vld [vmem:[#allocation81_spill] sm:$0xff]  ;;  %v8513_v38 = vld [vmem:[#allocation79_spill] sm:$0xff] }
 0x8a2   :  { %v4897_v34 = vadd.f32 %v4881_v60, %v4832_v53  ;;  %v4898_v37 = vadd.f32 %v4882_v40, %v4833_v52  ;;  %v4899_v58 = vadd.f32 %v4883_v13, %v4834_v8  ;;  %v4900_v23 = vadd.f32 %v4884_v3, %v4835_v28 }
 0x8a3   :  { %v4917_v47 = vadd.f32 %v8278_v24, %v4894_v10  ;;  %v4918_v25 = vadd.f32 %v8278_v24, %v4895_v22  ;;  %v4919_v63 = vadd.f32 %v8278_v24, %v4896_v32  ;;  %v4901_v2 = vadd.f32 %v4885_v45, %v4836_v62  ;;  %v8508_v62 = vld [vmem:[#allocation70_spill] sm:$0xff]  ;;  %v8512_v22 = vld [vmem:[#allocation75_spill] sm:$0xff] }
 0x8a4   :  { %v4920_v4 = vadd.f32 %v8278_v24, %v4897_v34  ;;  %v4921_v12 = vadd.f32 %v8278_v24, %v4898_v37  ;;  %v4922_v42 = vadd.f32 %v8278_v24, %v4899_v58  ;;  %v4923_v52 = vadd.f32 %v8278_v24, %v4900_v23  ;;  %v8514_v37 = vld [vmem:[#allocation76_spill] sm:$0xff]  ;;  %v8515_v23 = vld [vmem:[#allocation77_spill] sm:$0xff] }
 0x8a5   :  { %v4933_v33 = vmax.f32 %v4917_v47, 0.0  ;;  %v4934_v44 = vmax.f32 %v4918_v25, 0.0  ;;  %v4935_v57 = vmax.f32 %v4919_v63, 0.0  ;;  %v4924_v28 = vadd.f32 %v8278_v24, %v4901_v2  ;;  %v8516_v63 = vld [vmem:[#allocation82_spill] sm:$0xff] }
 0x8a6   :  { %v4936_v50 = vmax.f32 %v4920_v4, 0.0  ;;  %v4937_v35 = vmax.f32 %v4921_v12, 0.0  ;;  %v4938_v53 = vmax.f32 %v4922_v42, 0.0  ;;  %v4886_v43 = vmul.f32 %v8273_v36, %v8506_v18  ;;  %v8517_v4 = vld [vmem:[#allocation80_spill] sm:$0xff] }
 0x8a7   :  { %v4957_v8 = vpack.c.bf16 %v4934_v44, %v4933_v33  ;;  %v4887_v54 = vmul.f32 %v8273_v36, %v8507_v5  ;;  %v4888_v56 = vmul.f32 %v8273_v36, %v8508_v62  ;;  %v4889_v41 = vmul.f32 %v8273_v36, %v8509_v46  ;;  %v6587_v33 = vld [vmem:[#allocation29 + $0x18] sm:$0xff]  }
 0x8a8   :  { %v4958_v0 = vpack.c.bf16 %v4936_v50, %v4935_v57  ;;  %v4959_v9 = vpack.c.bf16 %v4938_v53, %v4937_v35  ;;  %v4902_v55 = vadd.f32 %v4886_v43, %v4837_v51  ;;  %v4890_v39 = vmul.f32 %v8273_v36, %v8510_v11  ;;  %v6588_v53 = vld [vmem:[#allocation29 + $0x20] sm:$0xff]   ;;  %v6589_v43 = vld [vmem:[#allocation29 + $0x28] sm:$0xff]   ;;  %v6591_v62 = vld [vmem:[#allocation29 + $0x38] sm:$0xff]  }
 0x8a9   :  { %5909 = vmatprep.mubr.msk.bf16.mxu0 %vm702_vm0, %v4957_v8  ;;  %v4903_v15 = vadd.f32 %v4887_v54, %v4838_v31  ;;  %v4840_v60 = vadd.f32 %v4824_v59, %v8248_v21  ;;  %v4842_v7 = vadd.f32 %v4826_v48, %v8259_v16  ;;  %v4891_v40 = vmul.f32 %v8273_v36, %v8511_v29  ;;  %v6586_v16 = vld [vmem:[#allocation29 + $0x10] sm:$0xff]  }
 0x8aa   :  { %5910 = vmatmul.mubr.msk.bf16.vlgmr.msra.gmra.mrb[88].mxu0 %vm702_vm0, %v4958_v0  ;;  %v4939_v30 = vmax.f32 %v4923_v52, 0.0  ;;  %v4940_v51 = vmax.f32 %v4924_v28, 0.0  ;;  %v4925_v13 = vadd.f32 %v8278_v24, %v4902_v55  ;;  %v4904_v3 = vadd.f32 %v4888_v56, %v4839_v49  ;;  %v6590_v49 = vld [vmem:[#allocation29 + $0x30] sm:$0xff]  }
 0x8ab   :  { %5913 = vmatprep.mubr.msk.bf16.mxu0 %vm702_vm0, %v4959_v9  ;;  %v4926_v17 = vadd.f32 %v8278_v24, %v4903_v15  ;;  %v4905_v10 = vadd.f32 %v4889_v41, %v4840_v60  ;;  %5926 = vmatpush3.bf16.msra.mxu0 %v8201_v6  ;;  %v4906_v26 = vadd.f32 %v4890_v39, %v4841_v19 }
 0x8ac   :  { %v4941_v21 = vmax.f32 %v4925_v13, 0.0  ;;  %v4907_v61 = vadd.f32 %v4891_v40, %v4842_v7  ;;  %5927 = vmatprep.subr.bf16.mxu0 %v6585_v27  ;;  %v4827_v32 = vmul.f32 %v8229_v14, %v8512_v22  ;;  %v4828_v45 = vmul.f32 %v8229_v14, %v8513_v38 }
 0x8ad   :  { %v4942_v59 = vmax.f32 %v4926_v17, 0.0  ;;  %v4960_v34 = vpack.c.bf16 %v4940_v51, %v4939_v30  ;;  %v4778_v58 = vmul.f32 %v8217_v20, %v8514_v37  ;;  %v4779_v47 = vmul.f32 %v8217_v20, %v8515_v23 }
 0x8ae   :  { %v4927_v6 = vadd.f32 %v8278_v24, %v4904_v3  ;;  %v4928_v25 = vadd.f32 %v8278_v24, %v4905_v10  ;;  %v4892_v2 = vmul.f32 %v8273_v36, %v8516_v63  ;;  %v4893_v12 = vmul.f32 %v8273_v36, %v8517_v4 }
 0x8af   :  { %5928 = vmatpush3.bf16.msra.mxu0 %v6585_v27  ;;  %v4961_v42 = vpack.c.bf16 %v4942_v59, %v4941_v21  ;;  %v4929_v14 = vadd.f32 %v8278_v24, %v4906_v26  ;;  %v4930_v31 = vadd.f32 %v8278_v24, %v4907_v61  ;;  %v4843_v20 = vadd.f32 %v4827_v32, %v4778_v58 }
 0x8b0   :  { %5929 = vmatprep.subr.bf16.mxu0 %v6586_v16  ;;  %v4844_v44 = vadd.f32 %v4828_v45, %v4779_v47  ;;  %v4943_v57 = vmax.f32 %v4927_v6, 0.0  ;;  %v4944_v1 = vmax.f32 %v4928_v25, 0.0 }
 0x8b1   :  { %v4908_v48 = vadd.f32 %v4892_v2, %v4843_v20  ;;  %v4945_v36 = vmax.f32 %v4929_v14, 0.0  ;;  %v4946_v35 = vmax.f32 %v4930_v31, 0.0 }
 0x8b2   :  { %5914 = vmatmul.mubr.msk.bf16.gmra.mrb[92].mxu0 %vm702_vm0, %v4960_v34  ;;  %v4909_v50 = vadd.f32 %v4893_v12, %v4844_v44  ;;  %v4962_v52 = vpack.c.bf16 %v4944_v1, %v4943_v57 }
 0x8b3   :  { %5917 = vmatprep.mubr.msk.bf16.mxu0 %vm702_vm0, %v4961_v42  ;;  %5930 = vmatpush3.bf16.msra.mxu0 %v6586_v16  ;;  %v4931_v8 = vadd.f32 %v8278_v24, %v4908_v48  ;;  %v4963_v18 = vpack.c.bf16 %v4946_v35, %v4945_v36 }
 0x8b4   :  { %5931 = vmatprep.subr.bf16.mxu0 %v6587_v33  ;;  %v4932_v28 = vadd.f32 %v8278_v24, %v4909_v50  ;;  %v5780_v24 = vld [vmem:[#allocation28] ss:$0 sm:$0xff] }
 0x8b5   :  { %v4947_v5 = vmax.f32 %v4931_v8, 0.0 }
 0x8b6   :  { %v4948_v54 = vmax.f32 %v4932_v28, 0.0 }
 0x8b7   :  { %5932 = vmatpush3.bf16.msra.mxu0 %v6587_v33 }
 0x8b8   :  { %5933 = vmatprep.subr.bf16.mxu0 %v6588_v53  ;;  %v4964_v0 = vpack.c.bf16 %v4948_v54, %v4947_v5 }
 0x8ba   :  { %5918 = vmatmul.mubr.msk.bf16.gmra.mrb[96].mxu0 %vm702_vm0, %v4962_v52 }
 0x8bb   :  { %5921 = vmatprep.mubr.msk.bf16.mxu0 %vm702_vm0, %v4963_v18  ;;  %5934 = vmatpush3.bf16.msra.mxu0 %v6588_v53  ;;  %v5793_v18 = vld [vmem:[#allocation31] ss:$0 sm:$0xff] }
 0x8bc   :  { %5935 = vmatprep.subr.bf16.mxu0 %v6589_v43 }
 0x8bf   :  { %5936 = vmatpush3.bf16.msra.mxu0 %v6589_v43 }
 0x8c0   :  { %5937 = vmatprep.subr.bf16.mxu0 %v6590_v49 }
 0x8c2   :  { %5922 = vmatmul.mubr.msk.bf16.gmra.mrb[100].mxu0 %vm702_vm0, %v4964_v0 }
 0x8c3   :  { %5938 = vmatpush3.bf16.msra.mxu0 %v6590_v49 }
 0x8c4   :  { %5939 = vmatprep.subr.bf16.mxu0 %v6591_v62 }
 0x8c7   :  { %5940 = vmatpush3.bf16.msra.mxu0 %v6591_v62 }
 0x97d   :  { %v5911_v56 = vpop.f32.mrb[88].mxu0 }
 0x97e   :  { %v5063_v46 = vadd.f32 %v5911_v56, %v5780_v24  ;;  %v5054_v41 = vpop.f32.mrb[89].mxu0 }
 0x97f   :  { %v5055_v9 = vadd.f32 %v5780_v24, %v5054_v41  ;;  %v5912_v55 = vpop.f32.mrb[90].mxu0 }
 0x980   :  { %v5066_v15 = vadd.f32 %v5912_v55, %v5780_v24  ;;  %v5057_v11 = vpop.f32.mrb[91].mxu0  ;;  %v5119_v27 = vmax.f32 %v5063_v46, 0.0 }
 0x981   :  { %v5058_v39 = vadd.f32 %v5780_v24, %v5057_v11  ;;  %v5117_v19 = vmax.f32 %v5055_v9, 0.0 }
 0x982   :  { %v5120_v60 = vmax.f32 %v5066_v15, 0.0 }
 0x983   :  { %v5118_v7 = vmax.f32 %v5058_v39, 0.0 }
 0x984   :  { %v5150_v29 = vpack.c.bf16 %v5120_v60, %v5119_v27 }
 0x985   :  { %v5149_v40 = vpack.c.bf16 %v5118_v7, %v5117_v19  ;;  %v5915_v30 = vpop.f32.mrb[92].mxu0 }
 0x986   :  { %v5079_v51 = vadd.f32 %v5915_v30, %v5780_v24  ;;  %v5070_v13 = vpop.f32.mrb[93].mxu0 }
 0x987   :  { %v5071_v17 = vadd.f32 %v5780_v24, %v5070_v13  ;;  %v5916_v3 = vpop.f32.mrb[94].mxu0  ;;  %5941 = vmatprep.mubr.bf16.mxu0 %v5149_v40 }
 0x988   :  { %v5082_v10 = vadd.f32 %v5916_v3, %v5780_v24  ;;  %v5073_v21 = vpop.f32.mrb[95].mxu0  ;;  %5942 = vmatmul.mubr.bf16.vlgmr.msra.gmra.mrb[104].mxu0 %v5150_v29  ;;  %v5123_v26 = vmax.f32 %v5079_v51, 0.0 }
 0x989   :  { %v5074_v59 = vadd.f32 %v5780_v24, %v5073_v21  ;;  %v5121_v16 = vmax.f32 %v5071_v17, 0.0 }
 0x98a   :  { %v5124_v61 = vmax.f32 %v5082_v10, 0.0 }
 0x98b   :  { %v5122_v22 = vmax.f32 %v5074_v59, 0.0 }
 0x98c   :  { %v5152_v32 = vpack.c.bf16 %v5124_v61, %v5123_v26 }
 0x98d   :  { %v5151_v38 = vpack.c.bf16 %v5122_v22, %v5121_v16  ;;  %v5919_v45 = vpop.f32.mrb[96].mxu0 }
 0x98e   :  { %v5095_v34 = vadd.f32 %v5919_v45, %v5780_v24  ;;  %v5086_v37 = vpop.f32.mrb[97].mxu0 }
 0x98f   :  { %v5087_v58 = vadd.f32 %v5780_v24, %v5086_v37  ;;  %v5920_v23 = vpop.f32.mrb[98].mxu0  ;;  %5945 = vmatprep.mubr.bf16.mxu0 %v5151_v38 }
 0x990   :  { %v5098_v47 = vadd.f32 %v5920_v23, %v5780_v24  ;;  %v5089_v6 = vpop.f32.mrb[99].mxu0  ;;  %5946 = vmatmul.mubr.bf16.gmra.mrb[108].mxu0 %v5152_v32  ;;  %v5127_v63 = vmax.f32 %v5095_v34, 0.0 }
 0x991   :  { %v5090_v25 = vadd.f32 %v5780_v24, %v5089_v6  ;;  %v5125_v4 = vmax.f32 %v5087_v58, 0.0 }
 0x992   :  { %v5128_v2 = vmax.f32 %v5098_v47, 0.0 }
 0x993   :  { %v5126_v12 = vmax.f32 %v5090_v25, 0.0 }
 0x994   :  { %v5154_v42 = vpack.c.bf16 %v5128_v2, %v5127_v63 }
 0x995   :  { %v5153_v14 = vpack.c.bf16 %v5126_v12, %v5125_v4  ;;  %v5923_v31 = vpop.f32.mrb[100].mxu0 }
 0x996   :  { %v5111_v33 = vadd.f32 %v5923_v31, %v5780_v24  ;;  %v5102_v20 = vpop.f32.mrb[101].mxu0 }
 0x997   :  { %v5103_v44 = vadd.f32 %v5780_v24, %v5102_v20  ;;  %v5924_v57 = vpop.f32.mrb[102].mxu0  ;;  %5949 = vmatprep.mubr.bf16.mxu0 %v5153_v14 }
 0x998   :  { %v5114_v1 = vadd.f32 %v5924_v57, %v5780_v24  ;;  %v5105_v48 = vpop.f32.mrb[103].mxu0  ;;  %5950 = vmatmul.mubr.bf16.gmra.mrb[112].mxu0 %v5154_v42  ;;  %v5131_v36 = vmax.f32 %v5111_v33, 0.0 }
 0x999   :  { %v5106_v50 = vadd.f32 %v5780_v24, %v5105_v48  ;;  %v5129_v53 = vmax.f32 %v5103_v44, 0.0 }
 0x99a   :  { %v5132_v35 = vmax.f32 %v5114_v1, 0.0 }
 0x99b   :  { %v5130_v52 = vmax.f32 %v5106_v50, 0.0 }
 0x99c   :  { %v5156_v8 = vpack.c.bf16 %v5132_v35, %v5131_v36 }
 0x99d   :  { %v5155_v28 = vpack.c.bf16 %v5130_v52, %v5129_v53 }
 0x99f   :  { %5953 = vmatprep.mubr.bf16.mxu0 %v5155_v28 }
 0x9a0   :  { %5954 = vmatmul.mubr.bf16.gmra.mrb[116].mxu0 %v5156_v8 }
 0xa5b   :  { %v5943_v43 = vpop.f32.mrb[104].mxu0 }
 0xa5c   :  { %v5255_v5 = vadd.f32 %v5943_v43, %v5793_v18  ;;  %v5246_v54 = vpop.f32.mrb[105].mxu0 }
 0xa5d   :  { %v5247_v0 = vadd.f32 %v5793_v18, %v5246_v54  ;;  %v5944_v49 = vpop.f32.mrb[106].mxu0 }
 0xa5e   :  { %v5311_v62 = vmax.f32 %v5255_v5, 0.0  ;;  %v5258_v56 = vadd.f32 %v5944_v49, %v5793_v18  ;;  %v5249_v46 = vpop.f32.mrb[107].mxu0 }
 0xa5f   :  { %v5309_v41 = vmax.f32 %v5247_v0, 0.0  ;;  %v5250_v9 = vadd.f32 %v5793_v18, %v5249_v46 }
 0xa60   :  { %v5312_v24 = vmax.f32 %v5258_v56, 0.0 }
 0xa61   :  { %v5325_v55 = vmax.f32 %v5309_v41, %v5311_v62  ;;  %v5310_v15 = vmax.f32 %v5250_v9, 0.0 }
 0xa63   :  { %v5326_v11 = vmax.f32 %v5310_v15, %v5312_v24  ;;  %v5947_v39 = vpop.f32.mrb[108].mxu0 }
 0xa64   :  { %v5262_v27 = vpop.f32.mrb[109].mxu0  ;;  %v5271_v60 = vadd.f32 %v5947_v39, %v5793_v18 }
 0xa65   :  { %v5263_v19 = vadd.f32 %v5793_v18, %v5262_v27  ;;  %v5948_v7 = vpop.f32.mrb[110].mxu0 }
 0xa66   :  { %v5265_v29 = vpop.f32.mrb[111].mxu0  ;;  %v5274_v30 = vadd.f32 %v5948_v7, %v5793_v18  ;;  %v5315_v13 = vmax.f32 %v5271_v60, 0.0 }
 0xa67   :  { %v5313_v40 = vmax.f32 %v5263_v19, 0.0  ;;  %v5266_v51 = vadd.f32 %v5793_v18, %v5265_v29 }
 0xa68   :  { %v5316_v21 = vmax.f32 %v5274_v30, 0.0 }
 0xa69   :  { %v5327_v17 = vmax.f32 %v5325_v55, %v5313_v40  ;;  %v5314_v3 = vmax.f32 %v5266_v51, 0.0 }
 0xa6b   :  { %v5329_v10 = vmax.f32 %v5327_v17, %v5315_v13  ;;  %v5328_v59 = vmax.f32 %v5326_v11, %v5314_v3  ;;  %v5951_v26 = vpop.f32.mrb[112].mxu0 }
 0xa6c   :  { %v5287_v61 = vadd.f32 %v5951_v26, %v5793_v18  ;;  %v5278_v16 = vpop.f32.mrb[113].mxu0 }
 0xa6d   :  { %v5330_v22 = vmax.f32 %v5328_v59, %v5316_v21  ;;  %v5279_v32 = vadd.f32 %v5793_v18, %v5278_v16  ;;  %v5952_v38 = vpop.f32.mrb[114].mxu0 }
 0xa6e   :  { %v5319_v45 = vmax.f32 %v5287_v61, 0.0  ;;  %v5290_v34 = vadd.f32 %v5952_v38, %v5793_v18  ;;  %v5281_v37 = vpop.f32.mrb[115].mxu0 }
 0xa6f   :  { %v5331_v58 = vmax.f32 %v5329_v10, %v5330_v22  ;;  %v5317_v23 = vmax.f32 %v5279_v32, 0.0  ;;  %v5282_v47 = vadd.f32 %v5793_v18, %v5281_v37 }
 0xa70   :  { %v5320_v6 = vmax.f32 %v5290_v34, 0.0 }
 0xa71   :  { %v5338_v25 = vmax.f32 %v5317_v23, %v5319_v45  ;;  %v5318_v63 = vmax.f32 %v5282_v47, 0.0  ;;  %v5332_v20 = vrot.slane %v5331_v58, 4 }
 0xa73   :  { %v5339_v2 = vmax.f32 %v5318_v63, %v5320_v6  ;;  %v5955_v4 = vpop.f32.mrb[116].mxu0  ;;  %v5333_v35 = vmax.f32 %v5331_v58, %v5332_v20 }
 0xa74   :  { %v5294_v12 = vpop.f32.mrb[117].mxu0  ;;  %v5303_v42 = vadd.f32 %v5955_v4, %v5793_v18 }
 0xa75   :  { %v5295_v14 = vadd.f32 %v5793_v18, %v5294_v12  ;;  %v5956_v31 = vpop.f32.mrb[118].mxu0  ;;  %v5334_v43 = vrot.slane %v5333_v35, 2 }
 0xa76   :  { %v5297_v33 = vpop.f32.mrb[119].mxu0  ;;  %v5306_v57 = vadd.f32 %v5956_v31, %v5793_v18  ;;  %v5323_v48 = vmax.f32 %v5303_v42, 0.0 }
 0xa77   :  { %v5321_v44 = vmax.f32 %v5295_v14, 0.0  ;;  %v5298_v1 = vadd.f32 %v5793_v18, %v5297_v33  ;;  %v5335_v49 = vmax.f32 %v5333_v35, %v5334_v43 }
 0xa78   :  { %v5324_v52 = vmax.f32 %v5306_v57, 0.0 }
 0xa79   :  { %v5340_v50 = vmax.f32 %v5338_v25, %v5321_v44  ;;  %v5322_v36 = vmax.f32 %v5298_v1, 0.0  ;;  %v5336_v56 = vrot.slane %v5335_v49, 1 }
 0xa7b   :  { %v5342_v53 = vmax.f32 %v5340_v50, %v5323_v48  ;;  %v5341_v8 = vmax.f32 %v5339_v2, %v5322_v36  ;;  %v5337_v18 = vmax.f32 %v5335_v49, %v5336_v56 }
 0xa7d   :  { %v5343_v28 = vmax.f32 %v5341_v8, %v5324_v52 }
 0xa7f   :  { %v5344_v5 = vmax.f32 %v5342_v53, %v5343_v28 }
 0xa81   :  { %v5345_v54 = vrot.slane %v5344_v5, 4 }
 0xa83   :  { %v5346_v0 = vmax.f32 %v5344_v5, %v5345_v54 }
 0xa85   :  { %v5347_v62 = vrot.slane %v5346_v0, 2 }
 0xa87   :  { %v5348_v46 = vmax.f32 %v5346_v0, %v5347_v62 }
 0xa89   :  { %v5349_v41 = vrot.slane %v5348_v46, 1 }
 0xa8b   :  { %v5350_v9 = vmax.f32 %v5348_v46, %v5349_v41 }
 0xa8d   :  { %v5353_v24 = vsel %vm2436_vm1, %v5350_v9, %v5337_v18 }
 0xa8e   :  { %5355 = vst [vmem:[#allocation32] sm:$0x3] %v5353_v24 }
 0xa8f   :  { %7021 = shalt.err (!%p7018_p2)
}
 0xa90   :  { %s8518_s26 = sld [smem:[#allocation87_spill]] }
 0xa96   :  { %s7022_s8 = scalar_lea.hbm %s8518_s26, 32 }
 0xa97   :  { %p7023_p3 = scmp.ne.s32.totalorder %s8518_s26, %s7022_s8  ;;  %p7026_p4 = scmp.lt.u32.totalorder %s7022_s8, %s8518_s26 }
 0xa99   :  { %p7028_p5 = pnand %p7026_p4, %p7023_p3 }
 0xa9b   :  { %7031 = shalt.err (!%p7028_p5)
}
 0xa9c   :  { %5365 = dma.vmem_to_hbm [thread:$0]  %s5363_s5, 32, %s8518_s26, [#allocation4]  }
 0xa9d   :  { %7052 = dma.done.wait [#allocation4], 32  }
 0xa9e   :  { %7053 = vsyncadd [#allocation4], 4294967264 }
 0xa9f   :  { %5369 = vsyncpa [#allocation3], 1 }
 0xaa0   :  { %5370 = vsyncpa [#allocation6], 1 }
 0xaa1   :  { %5371 = vsyncpa [#allocation9], 1 }
 0xaa2   :  { %5372 = vsyncpa [#allocation12], 1 }
 0xaa3   :  { %5373 = vsyncpa [#allocation15], 1 }
 0xaa4   :  { %5374 = vsyncpa [#allocation18], 1 }
 0xaa5   :  { %5375 = vsyncpa [#allocation21], 1 }
 0xaa6   :  { %5376 = vsyncpa [#allocation24], 1 }
 0xaa7   :  { %5377 = vsyncpa [#allocation27], 1 }
 0xaa8   :  { %5378 = vsyncpa [#allocation30], 1 }
 0xaa9   :  { %5379 = vsyncpa [#allocation4], 1 }

// kernel: tpu_custom_call.1
= control target key start
LH: loop header
LB: loop body
LE: loop exit
PB: predicated region body
PF: predicated region fallthrough
CT: control target
= control target key end

     0   :  { %s8352_s0 = inlined_call_operand.hbm [shape: f32[2,64,3], index: 0, kind: input, shape index: {}]   ;;  %s8353_s1 = inlined_call_operand.hbm [shape: f32[3,64], index: 1, kind: input, shape index: {}]   ;;  %s8354_s2 = inlined_call_operand.hbm [shape: f32[1,64], index: 2, kind: input, shape index: {}]   ;;  %s8355_s3 = inlined_call_operand.hbm [shape: bf16[64,128], index: 3, kind: input, shape index: {}]   ;;  %s8356_s4 = inlined_call_operand.hbm [shape: f32[1,128], index: 4, kind: input, shape index: {}]   ;;  %s8357_s5 = inlined_call_operand.hbm [shape: bf16[128,1024], index: 5, kind: input, shape index: {}]   ;;  %s8358_s6 = inlined_call_operand.hbm [shape: f32[1,1024], index: 6, kind: input, shape index: {}]   ;;  %s8359_s7 = inlined_call_operand.hbm [shape: bf16[1024,512], index: 7, kind: input, shape index: {}]   ;;  %s8360_s8 = inlined_call_operand.hbm [shape: f32[1,512], index: 8, kind: input, shape index: {}]   ;;  %s8361_s9 = inlined_call_operand.hbm [shape: bf16[512,256], index: 9, kind: input, shape index: {}]   ;;  %s8362_s10 = inlined_call_operand.hbm [shape: f32[1,256], index: 10, kind: input, shape index: {}]   ;;  %s8363_s11 = inlined_call_operand.hbm [shape: f32[256,9], index: 11, kind: input, shape index: {}]   ;;  %s8364_s12 = inlined_call_operand.hbm [shape: f32[1,9], index: 12, kind: input, shape index: {}]   ;;  %s8365_s13 = inlined_call_operand.hbm [shape: f32[3,64], index: 13, kind: input, shape index: {}]   ;;  %s8366_s14 = inlined_call_operand.hbm [shape: f32[1,64], index: 14, kind: input, shape index: {}]   ;;  %s8367_s15 = inlined_call_operand.hbm [shape: bf16[64,128], index: 15, kind: input, shape index: {}]   ;;  %s8368_s16 = inlined_call_operand.hbm [shape: f32[1,128], index: 16, kind: input, shape index: {}]   ;;  %s8369_s17 = inlined_call_operand.hbm [shape: bf16[128,128], index: 17, kind: input, shape index: {}]   ;;  %s8370_s18 = inlined_call_operand.hbm [shape: f32[1,128], index: 18, kind: input, shape index: {}]   ;;  %s8371_s19 = inlined_call_operand.hbm [shape: f32[2,128], index: 19, kind: output, shape index: {}]  }
   0x1   :  { %8422 = sst [smem:[#allocation83_spill]] %s8352_s0 }
   0x2   :  { %8423 = sst [smem:[#allocation84_spill]] %s8353_s1 }
   0x3   :  { %8424 = sst [smem:[#allocation85_spill]] %s8354_s2 }
   0x4   :  { %8425 = sst [smem:[#allocation86_spill]] %s8355_s3 }
   0x5   :  { %8426 = sst [smem:[#allocation87_spill]] %s8371_s19 }
   0x6   :  { %24 = vsyncpa [#allocation3], 0 }
   0x7   :  { %25 = vsyncpa [#allocation6], 0 }
   0x8   :  { %26 = vsyncpa [#allocation9], 0 }
   0x9   :  { %27 = vsyncpa [#allocation12], 0 }
   0xa   :  { %28 = vsyncpa [#allocation15], 0 }
   0xb   :  { %29 = vsyncpa [#allocation18], 0 }
   0xc   :  { %30 = vsyncpa [#allocation21], 0 }
   0xd   :  { %31 = vsyncpa [#allocation24], 0 }
   0xe   :  { %32 = vsyncpa [#allocation27], 0 }
   0xf   :  { %33 = vsyncpa [#allocation30], 0 }
  0x10   :  { %34 = vsyncpa [#allocation4], 0  ;;  %s7054_s0 = smov [#allocation5]   ;;  %s7055_s20 = smov [#allocation8]  }
  0x11   :  { %s53_s30 = sshll.u32 %s7054_s0, 4  ;;  %s72_s21 = sshll.u32 %s7055_s20, 4  ;;  %s54_s30 = int_to_ptr.vmem [resolvable:$true] %s53_s30  ;;  %s7192_s21 = int_to_ptr.vmem [resolvable:$true] %s72_s21 }
  0x12   :  { %s8427_s2 = sld [smem:[#allocation84_spill]] }
  0x18   :  { %s6592_s23 = scalar_lea.hbm %s8427_s2, 64 }
  0x19   :  { %p6593_p0 = scmp.ne.s32.totalorder %s8427_s2, %s6592_s23  ;;  %p6596_p1 = scmp.lt.u32.totalorder %s6592_s23, %s8427_s2 }
  0x1b   :  { %p6598_p2 = pnand %p6596_p1, %p6593_p0 }
  0x1d   :  { %6601 = shalt.err (!%p6598_p2)
}
  0x1e   :  { %s6602_s27 = scalar_lea.vmem %s54_s30, 64  ;;  %p6607_p4 = scmp.lt.s32.totalorder %s54_s30, %s54_s30 }
  0x1f   :  { %p6603_p3 = scmp.ne.s32.totalorder %s54_s30, %s6602_s27  ;;  %p6608_p5 = scmp.lt.s32.totalorder %s6602_s27, %s6602_s27 }
  0x21   :  { %p6609_p6 = por %p6608_p5, %p6607_p4 }
  0x23   :  { %p6610_p7 = pnand %p6609_p6, %p6603_p3 }
  0x25   :  { %6613 = shalt.err (!%p6610_p7)
}
  0x26   :  { %56 = dma.hbm_to_vmem [thread:$0]  %s8427_s2, 64, %s54_s30, [#allocation6]  }
  0x27   :  { %s8428_s1 = sld [smem:[#allocation86_spill]] }
  0x2d   :  { %s6614_s22 = scalar_lea.hbm %s8428_s1, 512 }
  0x2e   :  { %p6615_p8 = scmp.ne.s32.totalorder %s8428_s1, %s6614_s22  ;;  %p6618_p9 = scmp.lt.u32.totalorder %s6614_s22, %s8428_s1 }
  0x30   :  { %p6620_p10 = pnand %p6618_p9, %p6615_p8 }
  0x32   :  { %6623 = shalt.err (!%p6620_p10)
}
  0x33   :  { %s6624_s26 = scalar_lea.vmem %s7192_s21, 512  ;;  %p6629_p12 = scmp.lt.s32.totalorder %s7192_s21, %s7192_s21 }
  0x34   :  { %p6625_p11 = scmp.ne.s32.totalorder %s7192_s21, %s6624_s26  ;;  %p6630_p13 = scmp.lt.s32.totalorder %s6624_s26, %s6624_s26 }
  0x36   :  { %p6631_p0 = por %p6630_p13, %p6629_p12 }
  0x38   :  { %p6632_p1 = pnand %p6631_p0, %p6625_p11 }
  0x3a   :  { %6635 = shalt.err (!%p6632_p1)
}
  0x3b   :  { %s8377_s30 = smov 64   ;;  %s7057_s2 = smov 4  }
  0x3c   :  { %78 = dma.hbm_to_vmem [thread:$0]  %s8428_s1, 512, %s7192_s21, [#allocation9], %s8377_s30, %s8377_s30, %s7057_s2  }
  0x3d   :  { %s7058_s29 = smov [#allocation11]   ;;  %s6636_s24 = scalar_lea.hbm %s8357_s5, 8192 }
  0x3e   :  { %s94_s0 = sshll.u32 %s7058_s29, 4  ;;  %p6637_p2 = scmp.ne.s32.totalorder %s8357_s5, %s6636_s24  ;;  %s95_s0 = int_to_ptr.vmem [resolvable:$true] %s94_s0 }
  0x3f   :  { %p6640_p3 = scmp.lt.u32.totalorder %s6636_s24, %s8357_s5 }
  0x41   :  { %p6642_p4 = pnand %p6640_p3, %p6637_p2 }
  0x43   :  { %6645 = shalt.err (!%p6642_p4)
}
  0x44   :  { %s6646_s19 = scalar_lea.vmem %s95_s0, 8192  ;;  %p6651_p6 = scmp.lt.s32.totalorder %s95_s0, %s95_s0 }
  0x45   :  { %p6647_p5 = scmp.ne.s32.totalorder %s95_s0, %s6646_s19  ;;  %p6652_p7 = scmp.lt.s32.totalorder %s6646_s19, %s6646_s19 }
  0x47   :  { %p6653_p8 = por %p6652_p7, %p6651_p6 }
  0x49   :  { %p6654_p9 = pnand %p6653_p8, %p6647_p5 }
  0x4b   :  { %6657 = shalt.err (!%p6654_p9)
}
  0x4c   :  { %s7059_s21 = smov 512   ;;  %s7060_s1 = smov 32  }
  0x4d   :  { %100 = dma.hbm_to_vmem [thread:$0]  %s8357_s5, 8192, %s95_s0, [#allocation12], %s7059_s21, %s7059_s21, %s7060_s1  }
  0x4e   :  { %s7061_s29 = smov [#allocation14]   ;;  %s6658_s25 = scalar_lea.hbm %s8359_s7, 32768 }
  0x4f   :  { %s116_s20 = sshll.u32 %s7061_s29, 4  ;;  %p6659_p10 = scmp.ne.s32.totalorder %s8359_s7, %s6658_s25  ;;  %s117_s20 = int_to_ptr.vmem [resolvable:$true] %s116_s20 }
  0x50   :  { %p6662_p11 = scmp.lt.u32.totalorder %s6658_s25, %s8359_s7 }
  0x52   :  { %p6664_p12 = pnand %p6662_p11, %p6659_p10 }
  0x54   :  { %6667 = shalt.err (!%p6664_p12)
}
  0x55   :  { %s6668_s30 = scalar_lea.vmem %s117_s20, 32768  ;;  %p6673_p0 = scmp.lt.s32.totalorder %s117_s20, %s117_s20 }
  0x56   :  { %p6669_p13 = scmp.ne.s32.totalorder %s117_s20, %s6668_s30  ;;  %p6674_p1 = scmp.lt.s32.totalorder %s6668_s30, %s6668_s30 }
  0x58   :  { %p6675_p2 = por %p6674_p1, %p6673_p0 }
  0x5a   :  { %p6676_p3 = pnand %p6675_p2, %p6669_p13 }
  0x5c   :  { %6679 = shalt.err (!%p6676_p3)
}
  0x5d   :  { %s7062_s5 = smov 256   ;;  %s7063_s0 = smov 16  }
  0x5e   :  { %122 = dma.hbm_to_vmem [thread:$0]  %s8359_s7, 32768, %s117_s20, [#allocation15], %s7062_s5, %s7062_s5, %s7063_s0  }
  0x5f   :  { %s7064_s27 = smov [#allocation17]   ;;  %s7065_s29 = smov [#allocation20]  }
  0x60   :  { %s138_s28 = sshll.u32 %s7064_s27, 4  ;;  %s160_s22 = sshll.u32 %s7065_s29, 4  ;;  %s139_s28 = int_to_ptr.vmem [resolvable:$true] %s138_s28  ;;  %s7250_s22 = int_to_ptr.vmem [resolvable:$true] %s160_s22 }
  0x61   :  { %s6680_s30 = scalar_lea.hbm %s8361_s9, 8192 }
  0x62   :  { %p6681_p4 = scmp.ne.s32.totalorder %s8361_s9, %s6680_s30  ;;  %p6684_p5 = scmp.lt.u32.totalorder %s6680_s30, %s8361_s9 }
  0x64   :  { %p6686_p6 = pnand %p6684_p5, %p6681_p4 }
  0x66   :  { %6689 = shalt.err (!%p6686_p6)
}
  0x67   :  { %s6690_s7 = scalar_lea.vmem %s139_s28, 8192  ;;  %p6695_p8 = scmp.lt.s32.totalorder %s139_s28, %s139_s28 }
  0x68   :  { %p6691_p7 = scmp.ne.s32.totalorder %s139_s28, %s6690_s7  ;;  %p6696_p9 = scmp.lt.s32.totalorder %s6690_s7, %s6690_s7 }
  0x6a   :  { %p6697_p10 = por %p6696_p9, %p6695_p8 }
  0x6c   :  { %p6698_p11 = pnand %p6697_p10, %p6691_p7 }
  0x6e   :  { %6701 = shalt.err (!%p6698_p11)
}
  0x6f   :  { %s7066_s20 = smov 128   ;;  %s7067_s5 = smov 8  }
  0x70   :  { %144 = dma.hbm_to_vmem [thread:$0]  %s8361_s9, 8192, %s139_s28, [#allocation18], %s7066_s20, %s7066_s20, %s7067_s5  }
  0x71   :  { %s6702_s29 = scalar_lea.hbm %s8363_s11, 4096 }
  0x72   :  { %p6703_p12 = scmp.ne.s32.totalorder %s8363_s11, %s6702_s29  ;;  %p6706_p13 = scmp.lt.u32.totalorder %s6702_s29, %s8363_s11 }
  0x74   :  { %p6708_p0 = pnand %p6706_p13, %p6703_p12 }
  0x76   :  { %6711 = shalt.err (!%p6708_p0)
}
  0x77   :  { %s6712_s3 = scalar_lea.vmem %s7250_s22, 4096  ;;  %p6717_p2 = scmp.lt.s32.totalorder %s7250_s22, %s7250_s22 }
  0x78   :  { %p6713_p1 = scmp.ne.s32.totalorder %s7250_s22, %s6712_s3  ;;  %p6718_p3 = scmp.lt.s32.totalorder %s6712_s3, %s6712_s3 }
  0x7a   :  { %p6719_p4 = por %p6718_p3, %p6717_p2 }
  0x7c   :  { %p6720_p5 = pnand %p6719_p4, %p6713_p1 }
  0x7e   :  { %6723 = shalt.err (!%p6720_p5)
}
  0x7f   :  { %166 = dma.hbm_to_vmem [thread:$0]  %s8363_s11, 4096, %s7250_s22, [#allocation21], %s7066_s20, %s7066_s20, %s7067_s5  }
  0x80   :  { %s7068_s19 = smov [#allocation23]   ;;  %s7069_s7 = smov [#allocation26]  }
  0x81   :  { %s183_s26 = sshll.u32 %s7068_s19, 4  ;;  %s202_s0 = sshll.u32 %s7069_s7, 4  ;;  %s184_s26 = int_to_ptr.vmem [resolvable:$true] %s183_s26  ;;  %s7287_s0 = int_to_ptr.vmem [resolvable:$true] %s202_s0 }
  0x82   :  { %s6724_s27 = scalar_lea.hbm %s8365_s13, 64 }
  0x83   :  { %p6725_p6 = scmp.ne.s32.totalorder %s8365_s13, %s6724_s27  ;;  %p6728_p7 = scmp.lt.u32.totalorder %s6724_s27, %s8365_s13 }
  0x85   :  { %p6730_p8 = pnand %p6728_p7, %p6725_p6 }
  0x87   :  { %6733 = shalt.err (!%p6730_p8)
}
  0x88   :  { %s6734_s11 = scalar_lea.vmem %s184_s26, 64  ;;  %p6739_p10 = scmp.lt.s32.totalorder %s184_s26, %s184_s26 }
  0x89   :  { %p6735_p9 = scmp.ne.s32.totalorder %s184_s26, %s6734_s11  ;;  %p6740_p11 = scmp.lt.s32.totalorder %s6734_s11, %s6734_s11 }
  0x8b   :  { %p6741_p12 = por %p6740_p11, %p6739_p10 }
  0x8d   :  { %p6742_p13 = pnand %p6741_p12, %p6735_p9 }
  0x8f   :  { %6745 = shalt.err (!%p6742_p13)
}
  0x90   :  { %186 = dma.hbm_to_vmem [thread:$0]  %s8365_s13, 64, %s184_s26, [#allocation24]  }
  0x91   :  { %s6746_s28 = scalar_lea.hbm %s8367_s15, 512 }
  0x92   :  { %p6747_p0 = scmp.ne.s32.totalorder %s8367_s15, %s6746_s28  ;;  %p6750_p1 = scmp.lt.u32.totalorder %s6746_s28, %s8367_s15 }
  0x94   :  { %p6752_p2 = pnand %p6750_p1, %p6747_p0 }
  0x96   :  { %6755 = shalt.err (!%p6752_p2)
}
  0x97   :  { %s6756_s27 = scalar_lea.vmem %s7287_s0, 512  ;;  %p6761_p4 = scmp.lt.s32.totalorder %s7287_s0, %s7287_s0 }
  0x98   :  { %p6757_p3 = scmp.ne.s32.totalorder %s7287_s0, %s6756_s27  ;;  %p6762_p5 = scmp.lt.s32.totalorder %s6756_s27, %s6756_s27 }
  0x9a   :  { %p6763_p6 = por %p6762_p5, %p6761_p4 }
  0x9c   :  { %p6764_p7 = pnand %p6763_p6, %p6757_p3 }
  0x9e   :  { %6767 = shalt.err (!%p6764_p7)
}
  0x9f   :  { %s8429_s13 = smov 64   ;;  %s7070_s24 = smov [#allocation29]  }
  0xa0   :  { %208 = dma.hbm_to_vmem [thread:$0]  %s8367_s15, 512, %s7287_s0, [#allocation27], %s8429_s13, %s8429_s13, %s7057_s2  }
  0xa1   :  { %s224_s25 = sshll.u32 %s7070_s24, 4  ;;  %s7071_s30 = smov [#allocation2]   ;;  %s225_s25 = int_to_ptr.vmem [resolvable:$true] %s224_s25 }
  0xa2   :  { %s40_s11 = sshll.u32 %s7071_s30, 4  ;;  %s6768_s3 = scalar_lea.hbm %s8369_s17, 1024  ;;  %s7321_s11 = int_to_ptr.vmem [resolvable:$true] %s40_s11 }
  0xa3   :  { %p6769_p8 = scmp.ne.s32.totalorder %s8369_s17, %s6768_s3  ;;  %p6772_p9 = scmp.lt.u32.totalorder %s6768_s3, %s8369_s17 }
  0xa5   :  { %p6774_p10 = pnand %p6772_p9, %p6769_p8 }
  0xa7   :  { %6777 = shalt.err (!%p6774_p10)
}
  0xa8   :  { %s6778_s15 = scalar_lea.vmem %s225_s25, 1024  ;;  %p6783_p12 = scmp.lt.s32.totalorder %s225_s25, %s225_s25 }
  0xa9   :  { %p6779_p11 = scmp.ne.s32.totalorder %s225_s25, %s6778_s15  ;;  %p6784_p13 = scmp.lt.s32.totalorder %s6778_s15, %s6778_s15 }
  0xab   :  { %p6785_p0 = por %p6784_p13, %p6783_p12 }
  0xad   :  { %p6786_p1 = pnand %p6785_p0, %p6779_p11 }
  0xaf   :  { %6789 = shalt.err (!%p6786_p1)
}
  0xb0   :  { %230 = dma.hbm_to_vmem [thread:$0]  %s8369_s17, 1024, %s225_s25, [#allocation30], %s8429_s13, %s8429_s13, %s7057_s2  }
  0xb1   :  { %s8430_s26 = sld [smem:[#allocation83_spill]] }
  0xb7   :  { %s6790_s29 = scalar_lea.hbm %s8430_s26, 2048 }
  0xb8   :  { %p6791_p2 = scmp.ne.s32.totalorder %s8430_s26, %s6790_s29  ;;  %p6794_p3 = scmp.lt.u32.totalorder %s6790_s29, %s8430_s26 }
  0xba   :  { %p6796_p4 = pnand %p6794_p3, %p6791_p2 }
  0xbc   :  { %6799 = shalt.err (!%p6796_p4)
}
  0xbd   :  { %s6800_s3 = scalar_lea.vmem %s7321_s11, 2048  ;;  %p6805_p6 = scmp.lt.s32.totalorder %s7321_s11, %s7321_s11 }
  0xbe   :  { %p6801_p5 = scmp.ne.s32.totalorder %s7321_s11, %s6800_s3  ;;  %p6806_p7 = scmp.lt.s32.totalorder %s6800_s3, %s6800_s3 }
  0xc0   :  { %p6807_p8 = por %p6806_p7, %p6805_p6 }
  0xc2   :  { %p6808_p9 = pnand %p6807_p8, %p6801_p5 }
  0xc4   :  { %6811 = shalt.err (!%p6808_p9)
}
  0xc5   :  { %46 = dma.hbm_to_vmem [thread:$0]  %s8430_s26, 2048, %s7321_s11, [#allocation3], %s7066_s20, %s7066_s20, %s7067_s5  }
  0xc6   :  { %s7072_s13 = smov [#allocation7]   ;;  %s7073_s9 = smov [#allocation10]  }
  0xc7   :  { %s63_s25 = sshll.u32 %s7072_s13, 4  ;;  %s85_s28 = sshll.u32 %s7073_s9, 4  ;;  %s64_s25 = int_to_ptr.vmem [resolvable:$true] %s63_s25  ;;  %s86_s28 = int_to_ptr.vmem [resolvable:$true] %s85_s28 }
  0xc8   :  { %s8431_s15 = sld [smem:[#allocation85_spill]] }
  0xce   :  { %s6812_s0 = scalar_lea.hbm %s8431_s15, 16 }
  0xcf   :  { %p6813_p10 = scmp.ne.s32.totalorder %s8431_s15, %s6812_s0  ;;  %p6816_p11 = scmp.lt.u32.totalorder %s6812_s0, %s8431_s15 }
  0xd1   :  { %p6818_p12 = pnand %p6816_p11, %p6813_p10 }
  0xd3   :  { %6821 = shalt.err (!%p6818_p12)
}
  0xd4   :  { %s6822_s20 = scalar_lea.vmem %s64_s25, 16  ;;  %s6826_s5 = scalar_lea.vmem %s64_s25, 32 }
  0xd5   :  { %p6823_p13 = scmp.ne.s32.totalorder %s64_s25, %s6822_s20  ;;  %p6827_p0 = scmp.lt.s32.totalorder %s64_s25, %s64_s25 }
  0xd6   :  { %p6828_p1 = scmp.lt.s32.totalorder %s6826_s5, %s6822_s20 }
  0xd8   :  { %p6829_p2 = por %p6828_p1, %p6827_p0 }
  0xda   :  { %p6830_p3 = pnand %p6829_p2, %p6823_p13 }
  0xdc   :  { %6833 = shalt.err (!%p6830_p3)
}
  0xdd   :  { %66 = dma.hbm_to_vmem [thread:$0]  %s8431_s15, 16, %s64_s25, [#allocation6]  }
  0xde   :  { %s6834_s22 = scalar_lea.hbm %s8356_s4, 16 }
  0xdf   :  { %p6835_p4 = scmp.ne.s32.totalorder %s8356_s4, %s6834_s22  ;;  %p6838_p5 = scmp.lt.u32.totalorder %s6834_s22, %s8356_s4 }
  0xe1   :  { %p6840_p6 = pnand %p6838_p5, %p6835_p4 }
  0xe3   :  { %6843 = shalt.err (!%p6840_p6)
}
  0xe4   :  { %s6844_s13 = scalar_lea.vmem %s86_s28, 16  ;;  %s6848_s9 = scalar_lea.vmem %s86_s28, 32 }
  0xe5   :  { %p6845_p7 = scmp.ne.s32.totalorder %s86_s28, %s6844_s13  ;;  %p6849_p8 = scmp.lt.s32.totalorder %s86_s28, %s86_s28 }
  0xe6   :  { %p6850_p9 = scmp.lt.s32.totalorder %s6848_s9, %s6844_s13 }
  0xe8   :  { %p6851_p10 = por %p6850_p9, %p6849_p8 }
  0xea   :  { %p6852_p11 = pnand %p6851_p10, %p6845_p7 }
  0xec   :  { %6855 = shalt.err (!%p6852_p11)
}
  0xed   :  { %88 = dma.hbm_to_vmem [thread:$0]  %s8356_s4, 16, %s86_s28, [#allocation9]  }
  0xee   :  { %s7074_s7 = smov [#allocation13]   ;;  %s7075_s0 = smov [#allocation16]  }
  0xef   :  { %s107_s15 = sshll.u32 %s7074_s7, 4  ;;  %s129_s21 = sshll.u32 %s7075_s0, 4  ;;  %s108_s15 = int_to_ptr.vmem [resolvable:$true] %s107_s15  ;;  %s130_s21 = int_to_ptr.vmem [resolvable:$true] %s129_s21 }
  0xf0   :  { %s6856_s29 = scalar_lea.hbm %s8358_s6, 128 }
  0xf1   :  { %p6857_p12 = scmp.ne.s32.totalorder %s8358_s6, %s6856_s29  ;;  %p6860_p13 = scmp.lt.u32.totalorder %s6856_s29, %s8358_s6 }
  0xf3   :  { %p6862_p0 = pnand %p6860_p13, %p6857_p12 }
  0xf5   :  { %6865 = shalt.err (!%p6862_p0)
}
  0xf6   :  { %s6866_s4 = scalar_lea.vmem %s108_s15, 128  ;;  %p6871_p2 = scmp.lt.s32.totalorder %s108_s15, %s108_s15 }
  0xf7   :  { %p6867_p1 = scmp.ne.s32.totalorder %s108_s15, %s6866_s4  ;;  %p6872_p3 = scmp.lt.s32.totalorder %s6866_s4, %s6866_s4 }
  0xf9   :  { %p6873_p4 = por %p6872_p3, %p6871_p2 }
  0xfb   :  { %p6874_p5 = pnand %p6873_p4, %p6867_p1 }
  0xfd   :  { %6877 = shalt.err (!%p6874_p5)
}
  0xfe   :  { %110 = dma.hbm_to_vmem [thread:$0]  %s8358_s6, 128, %s108_s15, [#allocation12]  }
  0xff   :  { %s6878_s23 = scalar_lea.hbm %s8360_s8, 64 }
 0x100   :  { %p6879_p6 = scmp.ne.s32.totalorder %s8360_s8, %s6878_s23  ;;  %p6882_p7 = scmp.lt.u32.totalorder %s6878_s23, %s8360_s8 }
 0x102   :  { %p6884_p8 = pnand %p6882_p7, %p6879_p6 }
 0x104   :  { %6887 = shalt.err (!%p6884_p8)
}
 0x105   :  { %s6888_s9 = scalar_lea.vmem %s130_s21, 64  ;;  %p6893_p10 = scmp.lt.s32.totalorder %s130_s21, %s130_s21 }
 0x106   :  { %p6889_p9 = scmp.ne.s32.totalorder %s130_s21, %s6888_s9  ;;  %p6894_p11 = scmp.lt.s32.totalorder %s6888_s9, %s6888_s9 }
 0x108   :  { %p6895_p12 = por %p6894_p11, %p6893_p10 }
 0x10a   :  { %p6896_p13 = pnand %p6895_p12, %p6889_p9 }
 0x10c   :  { %6899 = shalt.err (!%p6896_p13)
}
 0x10d   :  { %132 = dma.hbm_to_vmem [thread:$0]  %s8360_s8, 64, %s130_s21, [#allocation15]  }
 0x10e   :  { %s7076_s19 = smov [#allocation19]   ;;  %s7077_s15 = smov [#allocation22]  }
 0x10f   :  { %s151_s7 = sshll.u32 %s7076_s19, 4  ;;  %s173_s0 = sshll.u32 %s7077_s15, 4  ;;  %s152_s7 = int_to_ptr.vmem [resolvable:$true] %s151_s7  ;;  %s174_s0 = int_to_ptr.vmem [resolvable:$true] %s173_s0 }
 0x110   :  { %s6900_s29 = scalar_lea.hbm %s8362_s10, 32 }
 0x111   :  { %p6901_p0 = scmp.ne.s32.totalorder %s8362_s10, %s6900_s29  ;;  %p6904_p1 = scmp.lt.u32.totalorder %s6900_s29, %s8362_s10 }
 0x113   :  { %p6906_p2 = pnand %p6904_p1, %p6901_p0 }
 0x115   :  { %6909 = shalt.err (!%p6906_p2)
}
 0x116   :  { %s6910_s8 = scalar_lea.vmem %s152_s7, 32  ;;  %p6915_p4 = scmp.lt.s32.totalorder %s152_s7, %s152_s7 }
 0x117   :  { %p6911_p3 = scmp.ne.s32.totalorder %s152_s7, %s6910_s8  ;;  %p6916_p5 = scmp.lt.s32.totalorder %s6910_s8, %s6910_s8 }
 0x119   :  { %p6917_p6 = por %p6916_p5, %p6915_p4 }
 0x11b   :  { %p6918_p7 = pnand %p6917_p6, %p6911_p3 }
 0x11d   :  { %6921 = shalt.err (!%p6918_p7)
}
 0x11e   :  { %154 = dma.hbm_to_vmem [thread:$0]  %s8362_s10, 32, %s152_s7, [#allocation18]  }
 0x11f   :  { %s6922_s30 = scalar_lea.hbm %s8364_s12, 16 }
 0x120   :  { %p6923_p8 = scmp.ne.s32.totalorder %s8364_s12, %s6922_s30  ;;  %p6926_p9 = scmp.lt.u32.totalorder %s6922_s30, %s8364_s12 }
 0x122   :  { %p6928_p10 = pnand %p6926_p9, %p6923_p8 }
 0x124   :  { %6931 = shalt.err (!%p6928_p10)
}
 0x125   :  { %s6932_s2 = scalar_lea.vmem %s174_s0, 16  ;;  %s6936_s13 = scalar_lea.vmem %s174_s0, 32 }
 0x126   :  { %p6933_p11 = scmp.ne.s32.totalorder %s174_s0, %s6932_s2  ;;  %p6937_p12 = scmp.lt.s32.totalorder %s174_s0, %s174_s0 }
 0x127   :  { %p6938_p13 = scmp.lt.s32.totalorder %s6936_s13, %s6932_s2 }
 0x129   :  { %p6939_p0 = por %p6938_p13, %p6937_p12 }
 0x12b   :  { %p6940_p1 = pnand %p6939_p0, %p6933_p11 }
 0x12d   :  { %6943 = shalt.err (!%p6940_p1)
}
 0x12e   :  { %176 = dma.hbm_to_vmem [thread:$0]  %s8364_s12, 16, %s174_s0, [#allocation21]  }
 0x12f   :  { %s7078_s6 = smov [#allocation25]   ;;  %s7079_s19 = smov [#allocation28]  }
 0x130   :  { %s193_s25 = sshll.u32 %s7078_s6, 4  ;;  %s215_s7 = sshll.u32 %s7079_s19, 4  ;;  %s194_s25 = int_to_ptr.vmem [resolvable:$true] %s193_s25  ;;  %s216_s7 = int_to_ptr.vmem [resolvable:$true] %s215_s7 }
 0x131   :  { %s6944_s27 = scalar_lea.hbm %s8366_s14, 16 }
 0x132   :  { %p6945_p2 = scmp.ne.s32.totalorder %s8366_s14, %s6944_s27  ;;  %p6948_p3 = scmp.lt.u32.totalorder %s6944_s27, %s8366_s14 }
 0x134   :  { %p6950_p4 = pnand %p6948_p3, %p6945_p2 }
 0x136   :  { %6953 = shalt.err (!%p6950_p4)
}
 0x137   :  { %s6954_s12 = scalar_lea.vmem %s194_s25, 16  ;;  %s6958_s0 = scalar_lea.vmem %s194_s25, 32 }
 0x138   :  { %p6955_p5 = scmp.ne.s32.totalorder %s194_s25, %s6954_s12  ;;  %p6959_p6 = scmp.lt.s32.totalorder %s194_s25, %s194_s25 }
 0x139   :  { %p6960_p7 = scmp.lt.s32.totalorder %s6958_s0, %s6954_s12 }
 0x13b   :  { %p6961_p8 = por %p6960_p7, %p6959_p6 }
 0x13d   :  { %p6962_p9 = pnand %p6961_p8, %p6955_p5 }
 0x13f   :  { %6965 = shalt.err (!%p6962_p9)
}
 0x140   :  { %196 = dma.hbm_to_vmem [thread:$0]  %s8366_s14, 16, %s194_s25, [#allocation24]  }
 0x141   :  { %s6966_s28 = scalar_lea.hbm %s8368_s16, 16 }
 0x142   :  { %p6967_p10 = scmp.ne.s32.totalorder %s8368_s16, %s6966_s28  ;;  %p6970_p11 = scmp.lt.u32.totalorder %s6966_s28, %s8368_s16 }
 0x144   :  { %p6972_p12 = pnand %p6970_p11, %p6967_p10 }
 0x146   :  { %6975 = shalt.err (!%p6972_p12)
}
 0x147   :  { %s6976_s3 = scalar_lea.vmem %s216_s7, 16  ;;  %s6980_s17 = scalar_lea.vmem %s216_s7, 32 }
 0x148   :  { %p6977_p13 = scmp.ne.s32.totalorder %s216_s7, %s6976_s3  ;;  %p6981_p0 = scmp.lt.s32.totalorder %s216_s7, %s216_s7 }
 0x149   :  { %p6982_p1 = scmp.lt.s32.totalorder %s6980_s17, %s6976_s3 }
 0x14b   :  { %p6983_p2 = por %p6982_p1, %p6981_p0 }
 0x14d   :  { %p6984_p3 = pnand %p6983_p2, %p6977_p13 }
 0x14f   :  { %6987 = shalt.err (!%p6984_p3)
}
 0x150   :  { %218 = dma.hbm_to_vmem [thread:$0]  %s8368_s16, 16, %s216_s7, [#allocation27]  }
 0x151   :  { %s7080_s13 = smov [#allocation31]   ;;  %s6988_s25 = scalar_lea.hbm %s8370_s18, 16 }
 0x152   :  { %s237_s10 = sshll.u32 %s7080_s13, 4  ;;  %p6989_p4 = scmp.ne.s32.totalorder %s8370_s18, %s6988_s25  ;;  %s238_s10 = int_to_ptr.vmem [resolvable:$true] %s237_s10 }
 0x153   :  { %p6992_p5 = scmp.lt.u32.totalorder %s6988_s25, %s8370_s18 }
 0x155   :  { %p6994_p6 = pnand %p6992_p5, %p6989_p4 }
 0x157   :  { %6997 = shalt.err (!%p6994_p6)
}
 0x158   :  { %s6998_s29 = scalar_lea.vmem %s238_s10, 16  ;;  %s7002_s16 = scalar_lea.vmem %s238_s10, 32 }
 0x159   :  { %p6999_p7 = scmp.ne.s32.totalorder %s238_s10, %s6998_s29  ;;  %p7003_p8 = scmp.lt.s32.totalorder %s238_s10, %s238_s10 }
 0x15a   :  { %p7004_p9 = scmp.lt.s32.totalorder %s7002_s16, %s6998_s29 }
 0x15c   :  { %p7005_p10 = por %p7004_p9, %p7003_p8 }
 0x15e   :  { %p7006_p11 = pnand %p7005_p10, %p6999_p7 }
 0x160   :  { %7009 = shalt.err (!%p7006_p11)
}
 0x161   :  { %240 = dma.hbm_to_vmem [thread:$0]  %s8370_s18, 16, %s238_s10, [#allocation30]  }
 0x162   :  { %7032 = dma.done.wait [#allocation3], 2048  }
 0x163   :  { %7033 = vsyncadd [#allocation3], 4294965248 }
 0x164   :  { %7034 = dma.done.wait [#allocation6], 80  }
 0x165   :  { %7035 = vsyncadd [#allocation6], 4294967216 }
 0x166   :  { %7036 = dma.done.wait [#allocation9], 528  }
 0x167   :  { %7037 = vsyncadd [#allocation9], 4294966768 }
 0x168   :  { %7038 = dma.done.wait [#allocation12], 8320  }
 0x169   :  { %7039 = vsyncadd [#allocation12], 4294958976 }
 0x16a   :  { %7040 = dma.done.wait [#allocation15], 32832  }
 0x16b   :  { %7041 = vsyncadd [#allocation15], 4294934464 }
 0x16c   :  { %7042 = dma.done.wait [#allocation18], 8224  }
 0x16d   :  { %7043 = vsyncadd [#allocation18], 4294959072 }
 0x16e   :  { %7044 = dma.done.wait [#allocation21], 4112  }
 0x16f   :  { %7045 = vsyncadd [#allocation21], 4294963184 }
 0x170   :  { %7046 = dma.done.wait [#allocation24], 80  }
 0x171   :  { %7047 = vsyncadd [#allocation24], 4294967216 }
 0x172   :  { %7048 = dma.done.wait [#allocation27], 528  }
 0x173   :  { %7049 = vsyncadd [#allocation27], 4294966768 }
 0x174   :  { %7050 = dma.done.wait [#allocation30], 1040  }
 0x175   :  { %7051 = vsyncadd [#allocation30], 4294966256  ;;  %v7081_v0 = vmov 1   ;;  %v8380_v1 = vmov 0   ;;  %v299_v2 = vld [vmem:[#allocation2] sm:$0xff]  ;;  %v300_v3 = vld [vmem:[#allocation2 + $0x8] sm:$0xff]  ;;  %v396_v25 = vlaneseq }
 0x176   :  { %6062 = vset.pattern.permute.xlu1 %v7081_v0  ;;  %6061 = vset.pattern.permute.xlu0 %v8380_v1  ;;  %v301_v4 = vld [vmem:[#allocation2 + $0x10] sm:$0xff]  ;;  %v302_v5 = vld [vmem:[#allocation2 + $0x18] sm:$0xff]  ;;  %v304_v6 = vld [vmem:[#allocation2 + $0x28] sm:$0xff]  ;;  %v8379_v8 = vmov 2   ;;  %vm702_vm0 = vcmask 523264   ;;  %vm2436_vm1 = vcmask 1041409  }
 0x177   :  { %1306 = vmatprep.mubr.bf16.mxu1 %v8380_v1  ;;  %417 = vperm.xlu1 %6062, %v299_v2   ;;  %v305_v7 = vld [vmem:[#allocation2 + $0x30] sm:$0xff]  ;;  %v6096_v9 = vld [vmem:[#allocation8] sm:$0xff]   ;;  %v306_v13 = vld [vmem:[#allocation2 + $0x38] sm:$0xff]  ;;  %v7501_v28 = vshrl.u32 %v396_v25, 7  ;;  %s7091_s18 = smov [#allocation32]  }
 0x178   :  { %318 = vperm.xlu0 %6061, %v299_v2   ;;  %5877 = vmatprep.subr.bf16.mxu0 %v6096_v9  ;;  %v6097_v10 = vld [vmem:[#allocation8 + $0x8] sm:$0xff]   ;;  %v303_v11 = vld [vmem:[#allocation2 + $0x20] sm:$0xff]  ;;  %v6098_v12 = vld [vmem:[#allocation8 + $0x10] sm:$0xff]   ;;  %s5362_s5 = sshll.u32 %s7091_s18, 4  ;;  %s5363_s5 = int_to_ptr.vmem [resolvable:$true] %s5362_s5 }
 0x179   :  { %5878 = vmatpush3.bf16.msra.mxu0 %v6096_v9  ;;  %v6099_v14 = vld [vmem:[#allocation8 + $0x18] sm:$0xff]   ;;  %v308_v15 = vld [vmem:[#allocation2 + $0x48] sm:$0xff]  ;;  %v309_v16 = vld [vmem:[#allocation2 + $0x50] sm:$0xff]  ;;  %v7509_v31 = vsub.s32 1, %v7501_v28  ;;  %v7512_v32 = vsub.s32 0, %v7501_v28  ;;  %v7517_v35 = vsub.s32 2, %v7501_v28  ;;  %p7015_p13 = scmp.lt.s32.totalorder %s5363_s5, %s5363_s5 }
 0x17a   :  { %5879 = vmatprep.subr.bf16.mxu0 %v6097_v10  ;;  %v311_v17 = vld [vmem:[#allocation2 + $0x60] sm:$0xff]  ;;  %v312_v18 = vld [vmem:[#allocation2 + $0x68] sm:$0xff]  ;;  %v313_v20 = vld [vmem:[#allocation2 + $0x70] sm:$0xff]  ;;  %s7010_s11 = scalar_lea.vmem %s5363_s5, 32 }
 0x17b   :  { %421 = vperm.xlu1 %6062, %v300_v3   ;;  %v307_v19 = vld [vmem:[#allocation2 + $0x40] sm:$0xff]  ;;  %v310_v21 = vld [vmem:[#allocation2 + $0x58] sm:$0xff]  ;;  %v840_v36 = vld [vmem:[#allocation11] sm:$0xff]  ;;  %p7011_p12 = scmp.ne.s32.totalorder %s5363_s5, %s7010_s11  ;;  %p7016_p0 = scmp.lt.s32.totalorder %s7010_s11, %s7010_s11 }
 0x17c   :  { %323 = vperm.xlu0 %6061, %v300_v3   ;;  %v314_v22 = vld [vmem:[#allocation2 + $0x78] sm:$0xff]  ;;  %v315_v33 = vld [vmem:[#allocation5] sm:$0x7]  ;;  %v844_v37 = vld [vmem:[#allocation11 + $0x20] sm:$0xff] }
 0x17d   :  { %5880 = vmatpush3.bf16.msra.mxu0 %v6097_v10  ;;  %v7519_v38 = vld [vmem:[#allocation11 + $0x8] sm:$0xff]  ;;  %v5395_v40 = vcombine.high %v840_v36, %v844_v37  ;;  %v5394_v42 = vcombine.low %v840_v36, %v844_v37  ;;  %v848_v43 = vld [vmem:[#allocation11 + $0x40] sm:$0xff]  ;;  %v7526_v45 = vrot.slane %v315_v33, %v7509_v31  ;;  %v7529_v46 = vrot.slane %v315_v33, %v7512_v32  ;;  %p7017_p1 = por %p7016_p0, %p7015_p13 }
 0x17e   :  { %5881 = vmatprep.subr.bf16.mxu0 %v6098_v12  ;;  %v7523_v41 = vld [vmem:[#allocation11 + $0x28] sm:$0xff]  ;;  %v852_v44 = vld [vmem:[#allocation11 + $0x60] sm:$0xff]  ;;  %v7536_v52 = vrot.slane %v315_v33, %v7517_v35 }
 0x17f   :  { %6063 = vset.pattern.permute.xlu1 %v8380_v1  ;;  %v5397_v47 = vcombine.high %v7519_v38, %v7523_v41  ;;  %v5403_v48 = vcombine.high %v848_v43, %v852_v44  ;;  %v856_v49 = vld [vmem:[#allocation11 + $0x80] sm:$0xff]  ;;  %1274 = vmatprep.subr.bf16.mxu1 %v5395_v40  ;;  %v5402_v53 = vcombine.low %v848_v43, %v852_v44  ;;  %p7018_p2 = pnand %p7017_p1, %p7011_p12 }
 0x180   :  { %328 = vperm.xlu0 %6061, %v301_v4   ;;  %333 = vperm.xlu1 %6063, %v302_v5   ;;  %v860_v50 = vld [vmem:[#allocation11 + $0xa0] sm:$0xff] }
 0x181   :  { %5882 = vmatpush3.bf16.msra.mxu0 %v6098_v12  ;;  %1275 = vmatpush1.bf16.msra.mxu1 %v5394_v42  ;;  %v5411_v56 = vcombine.high %v856_v49, %v860_v50  ;;  %v864_v60 = vld [vmem:[#allocation11 + $0xc0] sm:$0xff] }
 0x182   :  { %5883 = vmatprep.subr.bf16.mxu0 %v6099_v14  ;;  %1276 = vmatprep.subr.bf16.mxu1 %v5403_v48  ;;  %v868_v61 = vld [vmem:[#allocation11 + $0xe0] sm:$0xff] }
 0x183   :  { %v872_v9 = vld [vmem:[#allocation11 + $0x100] sm:$0xff] }
 0x184   :  { %6064 = vset.pattern.permute.xlu0 %v7081_v0  ;;  %6065 = vset.pattern.permute.xlu1 %v7081_v0  ;;  %v876_v10 = vld [vmem:[#allocation11 + $0x120] sm:$0xff] }
 0x185   :  { %425 = vperm.xlu0 %6064, %v301_v4   ;;  %429 = vperm.xlu1 %6065, %v302_v5   ;;  %v880_v25 = vld [vmem:[#allocation11 + $0x140] sm:$0xff]  ;;  %v5426_v43 = vcombine.low %v872_v9, %v876_v10 }
 0x186   :  { %5884 = vmatpush3.bf16.msra.mxu0 %v6099_v14  ;;  %1277 = vmatpush1.bf16.msra.mxu1 %v5402_v53  ;;  %v5418_v14 = vcombine.low %v864_v60, %v868_v61  ;;  %v884_v33 = vld [vmem:[#allocation11 + $0x160] sm:$0xff] }
 0x187   :  { %1387 = vmatprep.subr.bf16.mxu0 %v5397_v47  ;;  %1278 = vmatprep.subr.bf16.mxu1 %v5411_v56 }
 0x189   :  { %437 = vperm.xlu0 %6064, %v304_v6   ;;  %6066 = vset.pattern.permute.xlu1 %v8379_v8 }
 0x18a   :  { %517 = vperm.xlu1 %6066, %v299_v2  }
 0x18d   :  { %441 = vperm.xlu0 %6064, %v305_v7  }
 0x18e   :  { %525 = vperm.xlu1 %6066, %v301_v4  }
 0x191   :  { %6070 = vset.pattern.permute.xlu0 %v8379_v8 }
 0x192   :  { %521 = vperm.xlu0 %6070, %v300_v3   ;;  %529 = vperm.xlu1 %6066, %v302_v5   ;;  %v5419_v3 = vcombine.high %v864_v60, %v868_v61  ;;  %v5434_v60 = vcombine.low %v880_v25, %v884_v33 }
 0x196   :  { %533 = vperm.xlu0 %6070, %v303_v11   ;;  %6067 = vset.pattern.permute.xlu1 %v8380_v1 }
 0x197   :  { %343 = vperm.xlu1 %6067, %v304_v6  }
 0x19a   :  { %545 = vperm.xlu0 %6070, %v306_v13  }
 0x19b   :  { %6068 = vset.pattern.permute.xlu1 %v7081_v0 }
 0x19c   :  { %433 = vperm.xlu1 %6068, %v303_v11  }
 0x19e   :  { %553 = vperm.xlu0 %6070, %v308_v15  }
 0x1a0   :  { %6069 = vset.pattern.permute.xlu1 %v8380_v1 }
 0x1a1   :  { %348 = vperm.xlu1 %6069, %v305_v7  }
 0x1a2   :  { %6078 = vset.pattern.permute.xlu0 %v8380_v1 }
 0x1a3   :  { %338 = vperm.xlu0 %6078, %v303_v11  }
 0x1a5   :  { %353 = vperm.xlu1 %6069, %v306_v13  }
 0x1a7   :  { %363 = vperm.xlu0 %6078, %v308_v15  }
 0x1a9   :  { %6071 = vset.pattern.permute.xlu1 %v7081_v0 }
 0x1aa   :  { %445 = vperm.xlu1 %6071, %v306_v13  }
 0x1ab   :  { %368 = vperm.xlu0 %6078, %v309_v16  }
 0x1ae   :  { %6072 = vset.pattern.permute.xlu1 %v8379_v8 }
 0x1af   :  { %378 = vperm.xlu0 %6078, %v311_v17   ;;  %537 = vperm.xlu1 %6072, %v304_v6  }
 0x1b3   :  { %6079 = vset.pattern.permute.xlu0 %v7081_v0  ;;  %541 = vperm.xlu1 %6072, %v305_v7  }
 0x1b4   :  { %457 = vperm.xlu0 %6079, %v309_v16  }
 0x1b7   :  { %6073 = vset.pattern.permute.xlu1 %v8380_v1 }
 0x1b8   :  { %469 = vperm.xlu0 %6079, %v312_v18   ;;  %358 = vperm.xlu1 %6073, %v307_v19  }
 0x1bc   :  { %473 = vperm.xlu0 %6079, %v313_v20   ;;  %6074 = vset.pattern.permute.xlu1 %v7081_v0 }
 0x1bd   :  { %449 = vperm.xlu1 %6074, %v307_v19  }
 0x1c0   :  { %6084 = vset.pattern.permute.xlu0 %v8379_v8 }
 0x1c1   :  { %565 = vperm.xlu0 %6084, %v311_v17   ;;  %453 = vperm.xlu1 %6074, %v308_v15  }
 0x1c5   :  { %577 = vperm.xlu0 %6084, %v314_v22   ;;  %6075 = vset.pattern.permute.xlu1 %v8380_v1 }
 0x1c6   :  { %373 = vperm.xlu1 %6075, %v310_v21  }
 0x1c9   :  { %6087 = vset.pattern.permute.xlu0 %v7081_v0 }
 0x1ca   :  { %6076 = vset.pattern.permute.xlu1 %v7081_v0 }
 0x1cb   :  { %461 = vperm.xlu1 %6076, %v310_v21  }
 0x1cf   :  { %6077 = vset.pattern.permute.xlu1 %v8379_v8 }
 0x1d0   :  { %549 = vperm.xlu1 %6077, %v307_v19   ;;  %v5427_v19 = vcombine.high %v872_v9, %v876_v10  ;;  %v857_v9 = vld [vmem:[#allocation11 + $0x88] sm:$0xff] }
 0x1d1   :  { %v861_v10 = vld [vmem:[#allocation11 + $0xa8] sm:$0xff] }
 0x1d4   :  { %557 = vperm.xlu1 %6077, %v309_v16   ;;  %v7564_v16 = vld [vmem:[#allocation7] ss:$0 sm:$0xff] }
 0x1d8   :  { %561 = vperm.xlu1 %6077, %v310_v21  }
 0x1dc   :  { %6080 = vset.pattern.permute.xlu1 %v8380_v1 }
 0x1dd   :  { %383 = vperm.xlu1 %6080, %v312_v18  }
 0x1e1   :  { %6081 = vset.pattern.permute.xlu1 %v7081_v0 }
 0x1e2   :  { %465 = vperm.xlu1 %6081, %v311_v17  }
 0x1e6   :  { %6082 = vset.pattern.permute.xlu1 %v8380_v1 }
 0x1e7   :  { %388 = vperm.xlu1 %6082, %v313_v20  }
 0x1eb   :  { %393 = vperm.xlu1 %6082, %v314_v22  }
 0x1ef   :  { %6083 = vset.pattern.permute.xlu1 %v7081_v0  ;;  %v5410_v0 = vcombine.low %v856_v49, %v860_v50  ;;  %v5435_v49 = vcombine.high %v880_v25, %v884_v33 }
 0x1f0   :  { %477 = vperm.xlu1 %6083, %v314_v22  }
 0x1f1   :  { %1279 = vmatpush1.bf16.msra.mxu1 %v5410_v0 }
 0x1f2   :  { %1280 = vmatprep.subr.bf16.mxu1 %v5419_v3  ;;  %v5396_v3 = vcombine.low %v7519_v38, %v7523_v41  ;;  %v5412_v41 = vcombine.low %v857_v9, %v861_v10 }
 0x1f4   :  { %6085 = vset.pattern.permute.xlu1 %v8379_v8 }
 0x1f5   :  { %569 = vperm.xlu1 %6085, %v312_v18   ;;  %1281 = vmatpush1.bf16.msra.mxu1 %v5418_v14  ;;  %v865_v14 = vld [vmem:[#allocation11 + $0xc8] sm:$0xff] }
 0x1f6   :  { %v7493_v23 = vpop.permute.xlu1 %417  ;;  %1282 = vmatprep.subr.bf16.mxu1 %v5427_v19 }
 0x1f7   :  { %v7495_v24 = vpop.permute.xlu0 %318  ;;  %v484_v57 = vmul.f32 %v7526_v45, %v7493_v23 }
 0x1f8   :  { %v400_v58 = vmul.f32 %v7529_v46, %v7495_v24 }
 0x1f9   :  { %573 = vperm.xlu1 %6085, %v313_v20   ;;  %1283 = vmatpush1.bf16.msra.mxu1 %v5426_v43  ;;  %v885_v43 = vld [vmem:[#allocation11 + $0x168] sm:$0xff] }
 0x1fa   :  { %v7497_v26 = vpop.permute.xlu1 %421  ;;  %v500_v4 = vadd.f32 %v484_v57, %v400_v58  ;;  %v849_v57 = vld [vmem:[#allocation11 + $0x48] sm:$0xff]  ;;  %1284 = vmatprep.subr.bf16.mxu1 %v5435_v49 }
 0x1fb   :  { %8432 = vst [vmem:[#allocation44_spill] sm:$0xff] %v7497_v26  ;;  %v7499_v27 = vpop.permute.xlu0 %323  ;;  %v485_v5 = vmul.f32 %v7526_v45, %v7497_v26  ;;  %v853_v58 = vld [vmem:[#allocation11 + $0x68] sm:$0xff] }
 0x1fc   :  { %v401_v6 = vmul.f32 %v7529_v46, %v7499_v27 }
 0x1fd   :  { %6086 = vset.pattern.permute.xlu1 %v8380_v1  ;;  %1285 = vmatpush1.bf16.msra.mxu1 %v5434_v60 }
 0x1fe   :  { %v501_v20 = vadd.f32 %v485_v5, %v401_v6  ;;  %v5405_v5 = vcombine.high %v849_v57, %v853_v58 }
 0x1ff   :  { %v7504_v29 = vpop.permute.xlu0 %328  ;;  %v7506_v30 = vpop.permute.xlu1 %333 }
 0x200   :  { %v402_v54 = vmul.f32 %v7529_v46, %v7504_v29  ;;  %v403_v15 = vmul.f32 %v7529_v46, %v7506_v30 }
 0x204   :  { %v7514_v34 = vpop.permute.xlu0 %425  ;;  %v7521_v39 = vpop.permute.xlu1 %429 }
 0x205   :  { %8433 = vst [vmem:[#allocation45_spill] sm:$0xff] %v7514_v34  ;;  %8434 = vst [vmem:[#allocation46_spill] sm:$0xff] %v7521_v39  ;;  %v486_v55 = vmul.f32 %v7526_v45, %v7514_v34  ;;  %v487_v11 = vmul.f32 %v7526_v45, %v7521_v39 }
 0x207   :  { %v502_v2 = vadd.f32 %v486_v55, %v402_v54  ;;  %v503_v36 = vadd.f32 %v487_v11, %v403_v15  ;;  %v869_v15 = vld [vmem:[#allocation11 + $0xe8] sm:$0xff] }
 0x208   :  { %v7533_v51 = vpop.permute.xlu0 %437  ;;  %v5421_v19 = vcombine.high %v865_v14, %v869_v15 }
 0x209   :  { %8435 = vst [vmem:[#allocation47_spill] sm:$0xff] %v7533_v51  ;;  %v7546_v59 = vpop.permute.xlu1 %517 }
 0x20a   :  { %8436 = vst [vmem:[#allocation48_spill] sm:$0xff] %v7546_v59  ;;  %v584_v62 = vmul.f32 %v7536_v52, %v7546_v59  ;;  %v6184_v59 = vld [vmem:[#allocation14 + $0x1c0] ss:$16 sps:$4 sm:$0xff]  }
 0x20c   :  { %v7550_v63 = vpop.permute.xlu0 %441  ;;  %v600_v13 = vadd.f32 %v584_v62, %v500_v4 }
 0x20d   :  { %8437 = vst [vmem:[#allocation49_spill] sm:$0xff] %v7550_v63  ;;  %v7556_v7 = vpop.permute.xlu1 %525 }
 0x20e   :  { %8438 = vst [vmem:[#allocation50_spill] sm:$0xff] %v7556_v7  ;;  %v586_v12 = vmul.f32 %v7536_v52, %v7556_v7  ;;  %v623_v42 = vadd.f32 %v7564_v16, %v600_v13  ;;  %v5413_v13 = vcombine.high %v857_v9, %v861_v10 }
 0x210   :  { %v602_v17 = vadd.f32 %v586_v12, %v502_v2  ;;  %v639_v55 = vmax.f32 %v623_v42, 0.0  ;;  %v5404_v12 = vcombine.low %v849_v57, %v853_v58  ;;  %v881_v42 = vld [vmem:[#allocation11 + $0x148] sm:$0xff] }
 0x211   :  { %v7566_v18 = vpop.permute.xlu0 %521  ;;  %v7570_v22 = vpop.permute.xlu1 %529 }
 0x212   :  { %8439 = vst [vmem:[#allocation51_spill] sm:$0xff] %v7566_v18  ;;  %v585_v21 = vmul.f32 %v7536_v52, %v7566_v18  ;;  %8440 = vst [vmem:[#allocation52_spill] sm:$0xff] %v7570_v22  ;;  %v587_v37 = vmul.f32 %v7536_v52, %v7570_v22  ;;  %v625_v44 = vadd.f32 %v7564_v16, %v602_v17 }
 0x214   :  { %v601_v40 = vadd.f32 %v585_v21, %v501_v20  ;;  %v603_v47 = vadd.f32 %v587_v37, %v503_v36  ;;  %v641_v61 = vmax.f32 %v625_v44, 0.0  ;;  %v873_v20 = vld [vmem:[#allocation11 + $0x108] sm:$0xff]  ;;  %v5420_v36 = vcombine.low %v865_v14, %v869_v15 }
 0x215   :  { %v7576_v48 = vpop.permute.xlu0 %533  ;;  %v877_v21 = vld [vmem:[#allocation11 + $0x128] sm:$0xff] }
 0x216   :  { %8441 = vst [vmem:[#allocation53_spill] sm:$0xff] %v7576_v48  ;;  %v624_v50 = vadd.f32 %v7564_v16, %v601_v40  ;;  %v626_v53 = vadd.f32 %v7564_v16, %v603_v47  ;;  %v7580_v54 = vpop.permute.xlu1 %343  ;;  %v5429_v37 = vcombine.high %v873_v20, %v877_v21  ;;  %v588_v44 = vmul.f32 %v7536_v52, %v7576_v48 }
 0x217   :  { %v405_v57 = vmul.f32 %v7529_v46, %v7580_v54 }
 0x218   :  { %v640_v56 = vmax.f32 %v624_v50, 0.0  ;;  %v642_v62 = vmax.f32 %v626_v53, 0.0  ;;  %v5428_v50 = vcombine.low %v873_v20, %v877_v21 }
 0x219   :  { %v7582_v0 = vpop.permute.xlu0 %545 }
 0x21a   :  { %8442 = vst [vmem:[#allocation54_spill] sm:$0xff] %v7582_v0  ;;  %v663_v2 = vpack.c.bf16 %v640_v56, %v639_v55  ;;  %v664_v4 = vpack.c.bf16 %v642_v62, %v641_v61  ;;  %v5437_v55 = vcombine.high %v881_v42, %v885_v43  ;;  %v489_v56 = vmul.f32 %v7526_v45, %v7533_v51 }
 0x21b   :  { %v7586_v6 = vpop.permute.xlu1 %433  ;;  %v591_v60 = vmul.f32 %v7536_v52, %v7582_v0  ;;  %v900_v0 = vld [vmem:[#allocation11 + $0x1e0] sm:$0xff] }
 0x21c   :  { %8443 = vst [vmem:[#allocation55_spill] sm:$0xff] %v7586_v6  ;;  %5885 = vmatprep.mubr.msk.bf16.mxu0 %vm702_vm0, %v663_v2  ;;  %v488_v40 = vmul.f32 %v7526_v45, %v7586_v6  ;;  %v5436_v2 = vcombine.low %v881_v42, %v885_v43 }
 0x21d   :  { %5886 = vmatmul.mubr.msk.bf16.vlgmr.msra.gmra.mrb[0].mxu0 %vm702_vm0, %v664_v4  ;;  %v7590_v11 = vpop.permute.xlu0 %553  ;;  %v490_v4 = vmul.f32 %v7526_v45, %v7550_v63 }
 0x21e   :  { %8444 = vst [vmem:[#allocation56_spill] sm:$0xff] %v7590_v11  ;;  %1388 = vmatpush1.bf16.msra.mxu0 %v5396_v3 }
 0x21f   :  { %1389 = vmatprep.subr.bf16.mxu0 %v5405_v5  ;;  %v505_v5 = vadd.f32 %v489_v56, %v405_v57 }
 0x220   :  { %v7592_v38 = vpop.permute.xlu1 %348 }
 0x221   :  { %v406_v9 = vmul.f32 %v7529_v46, %v7592_v38 }
 0x222   :  { %1390 = vmatpush1.bf16.msra.mxu0 %v5404_v12  ;;  %v7594_v17 = vpop.permute.xlu0 %338 }
 0x223   :  { %1391 = vmatprep.subr.bf16.mxu0 %v5413_v13  ;;  %v404_v33 = vmul.f32 %v7529_v46, %v7594_v17 }
 0x224   :  { %v7596_v25 = vpop.permute.xlu1 %353 }
 0x225   :  { %v504_v47 = vadd.f32 %v488_v40, %v404_v33  ;;  %v407_v58 = vmul.f32 %v7529_v46, %v7596_v25 }
 0x226   :  { %1392 = vmatpush1.bf16.msra.mxu0 %v5412_v41  ;;  %v506_v41 = vadd.f32 %v490_v4, %v406_v9 }
 0x227   :  { %1393 = vmatprep.subr.bf16.mxu0 %v5421_v19  ;;  %v604_v61 = vadd.f32 %v588_v44, %v504_v47 }
 0x229   :  { %v7604_v49 = vpop.permute.xlu1 %445  ;;  %v627_v12 = vadd.f32 %v7564_v16, %v604_v61 }
 0x22a   :  { %8445 = vst [vmem:[#allocation57_spill] sm:$0xff] %v7604_v49  ;;  %1394 = vmatpush1.bf16.msra.mxu0 %v5420_v36  ;;  %v491_v53 = vmul.f32 %v7526_v45, %v7604_v49 }
 0x22b   :  { %1395 = vmatprep.subr.bf16.mxu0 %v5429_v37  ;;  %v643_v21 = vmax.f32 %v627_v12, 0.0 }
 0x22c   :  { %v507_v62 = vadd.f32 %v491_v53, %v407_v58  ;;  %v7635_v53 = vpop.permute.xlu0 %363 }
 0x22d   :  { %8449 = vst [vmem:[#allocation61_spill] sm:$0xff] %v7635_v53 }
 0x22e   :  { %1396 = vmatpush1.bf16.msra.mxu0 %v5428_v50  ;;  %v7616_v3 = vpop.permute.xlu1 %537  ;;  %v607_v13 = vadd.f32 %v591_v60, %v507_v62  ;;  %v409_v62 = vmul.f32 %v7529_v46, %v7635_v53 }
 0x22f   :  { %8446 = vst [vmem:[#allocation58_spill] sm:$0xff] %v7616_v3  ;;  %1397 = vmatprep.subr.bf16.mxu0 %v5437_v55  ;;  %v589_v10 = vmul.f32 %v7536_v52, %v7616_v3 }
 0x230   :  { %v630_v33 = vadd.f32 %v7564_v16, %v607_v13  ;;  %v7640_v56 = vpop.permute.xlu0 %368 }
 0x231   :  { %v605_v14 = vadd.f32 %v589_v10, %v505_v5  ;;  %8451 = vst [vmem:[#allocation63_spill] sm:$0xff] %v7640_v56 }
 0x232   :  { %1398 = vmatpush1.bf16.msra.mxu0 %v5436_v2  ;;  %v7625_v15 = vpop.permute.xlu1 %541  ;;  %v646_v44 = vmax.f32 %v630_v33, 0.0  ;;  %v593_v2 = vmul.f32 %v7536_v52, %v7590_v11 }
 0x233   :  { %8447 = vst [vmem:[#allocation59_spill] sm:$0xff] %v7625_v15  ;;  %v628_v19 = vadd.f32 %v7564_v16, %v605_v14  ;;  %v590_v20 = vmul.f32 %v7536_v52, %v7625_v15  ;;  %v410_v14 = vmul.f32 %v7529_v46, %v7640_v56 }
 0x234   :  { %v7646_v60 = vpop.permute.xlu0 %378 }
 0x235   :  { %v644_v36 = vmax.f32 %v628_v19, 0.0  ;;  %v606_v37 = vadd.f32 %v590_v20, %v506_v41  ;;  %8454 = vst [vmem:[#allocation66_spill] sm:$0xff] %v7646_v60 }
 0x237   :  { %v629_v40 = vadd.f32 %v7564_v16, %v606_v37  ;;  %v7632_v42 = vpop.permute.xlu1 %358  ;;  %v665_v43 = vpack.c.bf16 %v644_v36, %v643_v21 }
 0x238   :  { %8448 = vst [vmem:[#allocation60_spill] sm:$0xff] %v7632_v42  ;;  %v7656_v9 = vpop.permute.xlu0 %457  ;;  %v408_v12 = vmul.f32 %v7529_v46, %v7632_v42 }
 0x239   :  { %v645_v47 = vmax.f32 %v629_v40, 0.0  ;;  %5889 = vmatprep.mubr.msk.bf16.mxu0 %vm702_vm0, %v665_v43  ;;  %8456 = vst [vmem:[#allocation68_spill] sm:$0xff] %v7656_v9  ;;  %v494_v41 = vmul.f32 %v7526_v45, %v7656_v9 }
 0x23b   :  { %v666_v50 = vpack.c.bf16 %v646_v44, %v645_v47  ;;  %v510_v37 = vadd.f32 %v494_v41, %v410_v14 }
 0x23c   :  { %v7637_v55 = vpop.permute.xlu1 %449 }
 0x23d   :  { %8450 = vst [vmem:[#allocation62_spill] sm:$0xff] %v7637_v55  ;;  %5890 = vmatmul.mubr.msk.bf16.gmra.mrb[4].mxu0 %vm702_vm0, %v666_v50  ;;  %v492_v10 = vmul.f32 %v7526_v45, %v7637_v55 }
 0x23f   :  { %v508_v20 = vadd.f32 %v492_v10, %v408_v12 }
 0x240   :  { %v7642_v57 = vpop.permute.xlu1 %453 }
 0x241   :  { %8452 = vst [vmem:[#allocation64_spill] sm:$0xff] %v7642_v57  ;;  %v493_v61 = vmul.f32 %v7526_v45, %v7642_v57 }
 0x243   :  { %v509_v4 = vadd.f32 %v493_v61, %v409_v62 }
 0x245   :  { %v7644_v58 = vpop.permute.xlu1 %373  ;;  %v609_v13 = vadd.f32 %v593_v2, %v509_v4 }
 0x246   :  { %8453 = vst [vmem:[#allocation65_spill] sm:$0xff] %v7644_v58  ;;  %v411_v61 = vmul.f32 %v7529_v46, %v7644_v58 }
 0x247   :  { %v632_v33 = vadd.f32 %v7564_v16, %v609_v13 }
 0x249   :  { %v648_v50 = vmax.f32 %v632_v33, 0.0 }
 0x24a   :  { %v7654_v5 = vpop.permute.xlu1 %461 }
 0x24b   :  { %8455 = vst [vmem:[#allocation67_spill] sm:$0xff] %v7654_v5  ;;  %v495_v43 = vmul.f32 %v7526_v45, %v7654_v5 }
 0x24d   :  { %v511_v10 = vadd.f32 %v495_v43, %v411_v61 }
 0x24f   :  { %v7666_v19 = vpop.permute.xlu1 %549 }
 0x250   :  { %8457 = vst [vmem:[#allocation69_spill] sm:$0xff] %v7666_v19  ;;  %v592_v21 = vmul.f32 %v7536_v52, %v7666_v19 }
 0x252   :  { %v608_v36 = vadd.f32 %v592_v21, %v508_v20 }
 0x253   :  { %v7671_v40 = vpop.permute.xlu1 %557 }
 0x254   :  { %8458 = vst [vmem:[#allocation70_spill] sm:$0xff] %v7671_v40  ;;  %v631_v44 = vadd.f32 %v7564_v16, %v608_v36  ;;  %v594_v47 = vmul.f32 %v7536_v52, %v7671_v40 }
 0x256   :  { %v647_v62 = vmax.f32 %v631_v44, 0.0  ;;  %v610_v2 = vadd.f32 %v594_v47, %v510_v37  ;;  %v7689_v44 = vpop.permute.xlu0 %469 }
 0x257   :  { %v7680_v4 = vpop.permute.xlu1 %561  ;;  %8461 = vst [vmem:[#allocation73_spill] sm:$0xff] %v7689_v44  ;;  %v497_v19 = vmul.f32 %v7526_v45, %v7689_v44 }
 0x258   :  { %8459 = vst [vmem:[#allocation71_spill] sm:$0xff] %v7680_v4  ;;  %v595_v12 = vmul.f32 %v7536_v52, %v7680_v4  ;;  %v667_v13 = vpack.c.bf16 %v648_v50, %v647_v62  ;;  %v633_v14 = vadd.f32 %v7564_v16, %v610_v2 }
 0x25a   :  { %v611_v41 = vadd.f32 %v595_v12, %v511_v10  ;;  %5893 = vmatprep.mubr.msk.bf16.mxu0 %vm702_vm0, %v667_v13  ;;  %v649_v33 = vmax.f32 %v633_v14, 0.0  ;;  %v7694_v43 = vpop.permute.xlu0 %473  ;;  %v412_v10 = vmul.f32 %v7529_v46, %v7646_v60  ;;  %v888_v12 = vld [vmem:[#allocation11 + $0x180] sm:$0xff]  ;;  %v889_v14 = vld [vmem:[#allocation11 + $0x188] sm:$0xff] }
 0x25b   :  { %8463 = vst [vmem:[#allocation75_spill] sm:$0xff] %v7694_v43  ;;  %v892_v13 = vld [vmem:[#allocation11 + $0x1a0] sm:$0xff] }
 0x25c   :  { %v634_v20 = vadd.f32 %v7564_v16, %v611_v41  ;;  %v7687_v21 = vpop.permute.xlu1 %383  ;;  %v5442_v11 = vcombine.low %v888_v12, %v892_v13 }
 0x25d   :  { %8460 = vst [vmem:[#allocation72_spill] sm:$0xff] %v7687_v21 }
 0x25e   :  { %v650_v36 = vmax.f32 %v634_v20, 0.0  ;;  %v7702_v2 = vpop.permute.xlu0 %565 }
 0x25f   :  { %8466 = vst [vmem:[#allocation78_spill] sm:$0xff] %v7702_v2  ;;  %v596_v20 = vmul.f32 %v7536_v52, %v7702_v2  ;;  %v896_v2 = vld [vmem:[#allocation11 + $0x1c0] sm:$0xff] }
 0x260   :  { %v668_v37 = vpack.c.bf16 %v650_v36, %v649_v33  ;;  %v5443_v36 = vcombine.high %v888_v12, %v892_v13  ;;  %v5451_v13 = vcombine.high %v896_v2, %v900_v0  ;;  %v5450_v22 = vcombine.low %v896_v2, %v900_v0 }
 0x261   :  { %v7691_v47 = vpop.permute.xlu1 %465 }
 0x262   :  { %8462 = vst [vmem:[#allocation74_spill] sm:$0xff] %v7691_v47  ;;  %5894 = vmatmul.mubr.msk.bf16.gmra.mrb[8].mxu0 %vm702_vm0, %v668_v37  ;;  %v496_v62 = vmul.f32 %v7526_v45, %v7691_v47  ;;  %v893_v37 = vld [vmem:[#allocation11 + $0x1a8] sm:$0xff]  ;;  %v7712_v1 = vpop.permute.xlu0 %577  ;;  %1286 = vmatprep.subr.bf16.mxu1 %v5443_v36 }
 0x263   :  { %8468 = vst [vmem:[#allocation80_spill] sm:$0xff] %v7712_v1  ;;  %v5444_v4 = vcombine.low %v889_v14, %v893_v37  ;;  %v5445_v40 = vcombine.high %v889_v14, %v893_v37  ;;  %1287 = vmatpush1.bf16.msra.mxu1 %v5442_v11  ;;  %v599_v12 = vmul.f32 %v7536_v52, %v7712_v1  ;;  %v901_v14 = vld [vmem:[#allocation11 + $0x1e8] sm:$0xff] }
 0x264   :  { %v512_v41 = vadd.f32 %v496_v62, %v412_v10  ;;  %v413_v62 = vmul.f32 %v7529_v46, %v7687_v21  ;;  %v498_v11 = vmul.f32 %v7526_v45, %v7694_v43  ;;  %1288 = vmatprep.subr.bf16.mxu1 %v5451_v13 }
 0x265   :  { %1399 = vmatprep.subr.bf16.mxu0 %v5445_v40 }
 0x266   :  { %v7696_v50 = vpop.permute.xlu1 %388  ;;  %v612_v15 = vadd.f32 %v596_v20, %v512_v41  ;;  %1400 = vmatpush1.bf16.msra.mxu0 %v5444_v4 }
 0x267   :  { %8464 = vst [vmem:[#allocation76_spill] sm:$0xff] %v7696_v50  ;;  %v414_v40 = vmul.f32 %v7529_v46, %v7696_v50  ;;  %1289 = vmatpush1.bf16.msra.mxu1 %v5450_v22 }
 0x268   :  { %v635_v4 = vadd.f32 %v7564_v16, %v612_v15 }
 0x269   :  { %v514_v0 = vadd.f32 %v498_v11, %v414_v40  ;;  %v7741_v40 = vld [vmem:[#allocation10] ss:$0 sm:$0xff] }
 0x26a   :  { %v7698_v61 = vpop.permute.xlu1 %393 }
 0x26b   :  { %8465 = vst [vmem:[#allocation77_spill] sm:$0xff] %v7698_v61  ;;  %v415_v10 = vmul.f32 %v7529_v46, %v7698_v61  ;;  %v513_v61 = vadd.f32 %v497_v19, %v413_v62  ;;  %v651_v46 = vmax.f32 %v635_v4, 0.0 }
 0x26f   :  { %v7708_v33 = vpop.permute.xlu1 %477 }
 0x270   :  { %8467 = vst [vmem:[#allocation79_spill] sm:$0xff] %v7708_v33  ;;  %v499_v8 = vmul.f32 %v7526_v45, %v7708_v33  ;;  %v897_v33 = vld [vmem:[#allocation11 + $0x1c8] sm:$0xff] }
 0x271   :  { %v5452_v44 = vcombine.low %v897_v33, %v901_v14  ;;  %v5453_v48 = vcombine.high %v897_v33, %v901_v14  ;;  %v847_v14 = vld [vmem:[#allocation11 + $0x38] sm:$0xff] }
 0x272   :  { %v515_v3 = vadd.f32 %v499_v8, %v415_v10  ;;  %v842_v10 = vld [vmem:[#allocation11 + $0x10] sm:$0xff] }
 0x273   :  { %1401 = vmatprep.subr.bf16.mxu0 %v5453_v48 }
 0x274   :  { %v7722_v37 = vpop.permute.xlu1 %569  ;;  %v615_v41 = vadd.f32 %v599_v12, %v515_v3  ;;  %1402 = vmatpush1.bf16.msra.mxu0 %v5452_v44  ;;  %v846_v12 = vld [vmem:[#allocation11 + $0x30] sm:$0xff] }
 0x275   :  { %8469 = vst [vmem:[#allocation81_spill] sm:$0xff] %v7722_v37  ;;  %v597_v8 = vmul.f32 %v7536_v52, %v7722_v37  ;;  %v5399_v13 = vcombine.high %v842_v10, %v846_v12 }
 0x276   :  { %v638_v2 = vadd.f32 %v7564_v16, %v615_v41 }
 0x277   :  { %v613_v20 = vadd.f32 %v597_v8, %v513_v61  ;;  %v8471_v61 = vmov 0   ;;  %1500 = vmatprep.subr.bf16.mxu1 %v5399_v13 }
 0x278   :  { %v7731_v33 = vpop.permute.xlu1 %573  ;;  %v654_v15 = vmax.f32 %v638_v2, 0.0 }
 0x279   :  { %8470 = vst [vmem:[#allocation82_spill] sm:$0xff] %v7731_v33  ;;  %v636_v19 = vadd.f32 %v7564_v16, %v613_v20  ;;  %v598_v45 = vmul.f32 %v7536_v52, %v7731_v33  ;;  %v843_v52 = vld [vmem:[#allocation11 + $0x18] sm:$0xff] }
 0x27a   :  { %v5401_v11 = vcombine.high %v843_v52, %v847_v14 }
 0x27b   :  { %v652_v36 = vmax.f32 %v636_v19, 0.0  ;;  %v614_v62 = vadd.f32 %v598_v45, %v514_v0 }
 0x27c   :  { %1613 = vmatprep.subr.bf16.mxu0 %v5401_v11  ;;  %v5398_v11 = vcombine.low %v842_v10, %v846_v12 }
 0x27d   :  { %v637_v22 = vadd.f32 %v7564_v16, %v614_v62  ;;  %v669_v48 = vpack.c.bf16 %v652_v36, %v651_v46  ;;  %v850_v36 = vld [vmem:[#allocation11 + $0x50] sm:$0xff] }
 0x27f   :  { %v653_v3 = vmax.f32 %v637_v22, 0.0  ;;  %5897 = vmatprep.mubr.msk.bf16.mxu0 %vm702_vm0, %v669_v48  ;;  %v854_v48 = vld [vmem:[#allocation11 + $0x70] sm:$0xff] }
 0x281   :  { %v670_v44 = vpack.c.bf16 %v654_v15, %v653_v3  ;;  %v851_v15 = vld [vmem:[#allocation11 + $0x58] sm:$0xff] }
 0x282   :  { %v855_v3 = vld [vmem:[#allocation11 + $0x78] sm:$0xff] }
 0x283   :  { %5898 = vmatmul.mubr.msk.bf16.gmra.mrb[12].mxu0 %vm702_vm0, %v670_v44  ;;  %v5409_v1 = vcombine.high %v851_v15, %v855_v3 }
 0x284   :  { %1419 = vmatprep.mubr.bf16.mxu0 %v8471_v61 }
 0x2f0   :  { %v5887_v16 = vpop.f32.mrb[0].mxu0 }
 0x2f1   :  { %v770_v8 = vadd.f32 %v5887_v16, %v7741_v40  ;;  %v761_v4 = vpop.f32.mrb[1].mxu0  ;;  %v5400_v16 = vcombine.low %v843_v52, %v847_v14  ;;  %v866_v52 = vld [vmem:[#allocation11 + $0xd0] sm:$0xff] }
 0x2f2   :  { %v762_v41 = vadd.f32 %v7741_v40, %v761_v4  ;;  %v5888_v20 = vpop.f32.mrb[2].mxu0  ;;  %v5407_v4 = vcombine.high %v850_v36, %v854_v48  ;;  %v870_v14 = vld [vmem:[#allocation11 + $0xf0] sm:$0xff] }
 0x2f3   :  { %v773_v0 = vadd.f32 %v5888_v20, %v7741_v40  ;;  %v764_v19 = vpop.f32.mrb[3].mxu0  ;;  %v826_v46 = vmax.f32 %v770_v8, 0.0  ;;  %v858_v20 = vld [vmem:[#allocation11 + $0x90] sm:$0xff]  ;;  %v5423_v33 = vcombine.high %v866_v52, %v870_v14 }
 0x2f4   :  { %v765_v45 = vadd.f32 %v7741_v40, %v764_v19  ;;  %v824_v62 = vmax.f32 %v762_v41, 0.0  ;;  %v862_v8 = vld [vmem:[#allocation11 + $0xb0] sm:$0xff]  ;;  %v863_v41 = vld [vmem:[#allocation11 + $0xb8] sm:$0xff]  ;;  %v5406_v19 = vcombine.low %v850_v36, %v854_v48 }
 0x2f5   :  { %v827_v2 = vmax.f32 %v773_v0, 0.0  ;;  %v859_v0 = vld [vmem:[#allocation11 + $0x98] sm:$0xff]  ;;  %v5415_v10 = vcombine.high %v858_v20, %v862_v8 }
 0x2f6   :  { %v825_v22 = vmax.f32 %v765_v45, 0.0  ;;  %v5408_v45 = vcombine.low %v851_v15, %v855_v3  ;;  %v5417_v12 = vcombine.high %v859_v0, %v863_v41  ;;  %v875_v36 = vld [vmem:[#allocation11 + $0x118] sm:$0xff]  ;;  %v5422_v15 = vcombine.low %v866_v52, %v870_v14 }
 0x2f7   :  { %v7747_v44 = vpack.c.bf16 %v827_v2, %v826_v46  ;;  %v867_v46 = vld [vmem:[#allocation11 + $0xd8] sm:$0xff] }
 0x2f8   :  { %v7749_v13 = vpack.c.bf16 %v825_v22, %v824_v62  ;;  %v871_v2 = vld [vmem:[#allocation11 + $0xf8] sm:$0xff]  ;;  %v5414_v62 = vcombine.low %v858_v20, %v862_v8  ;;  %v5416_v22 = vcombine.low %v859_v0, %v863_v41  ;;  %v882_v20 = vld [vmem:[#allocation11 + $0x150] sm:$0xff] }
 0x2f9   :  { %v5425_v50 = vcombine.high %v867_v46, %v871_v2  ;;  %v879_v48 = vld [vmem:[#allocation11 + $0x138] sm:$0xff]  ;;  %v5424_v3 = vcombine.low %v867_v46, %v871_v2  ;;  %v886_v8 = vld [vmem:[#allocation11 + $0x170] sm:$0xff] }
 0x2fa   :  { %1307 = vmatmul.mubr.bf16.vlgmr.msra.gmra.mrb[0].mxu1 %v7749_v13  ;;  %1420 = vmatmul.mubr.bf16.vlgmr.msra.gmra.mrb[16].mxu0 %v7749_v13  ;;  %v883_v0 = vld [vmem:[#allocation11 + $0x158] sm:$0xff] }
 0x2fb   :  { %1316 = vmatprep.mubr.bf16.mxu1 %v8471_v61  ;;  %1429 = vmatprep.mubr.bf16.mxu0 %v8471_v61  ;;  %v887_v41 = vld [vmem:[#allocation11 + $0x178] sm:$0xff] }
 0x2fc   :  { %1501 = vmatpush1.bf16.msra.mxu1 %v5398_v11  ;;  %1614 = vmatpush1.bf16.msra.mxu0 %v5400_v16  ;;  %v874_v11 = vld [vmem:[#allocation11 + $0x110] sm:$0xff]  ;;  %v891_v52 = vld [vmem:[#allocation11 + $0x198] sm:$0xff] }
 0x2fd   :  { %1502 = vmatprep.subr.bf16.mxu1 %v5407_v4  ;;  %1615 = vmatprep.subr.bf16.mxu0 %v5409_v1  ;;  %v878_v1 = vld [vmem:[#allocation11 + $0x130] sm:$0xff]  ;;  %v5433_v4 = vcombine.high %v875_v36, %v879_v48  ;;  %v895_v14 = vld [vmem:[#allocation11 + $0x1b8] sm:$0xff] }
 0x2fe   :  { %v5431_v16 = vcombine.high %v874_v11, %v878_v1  ;;  %v5449_v2 = vcombine.high %v891_v52, %v895_v14 }
 0x300   :  { %1503 = vmatpush1.bf16.msra.mxu1 %v5406_v19  ;;  %1616 = vmatpush1.bf16.msra.mxu0 %v5408_v45  ;;  %v5430_v19 = vcombine.low %v874_v11, %v878_v1  ;;  %v5432_v45 = vcombine.low %v875_v36, %v879_v48  ;;  %v899_v11 = vld [vmem:[#allocation11 + $0x1d8] sm:$0xff]  ;;  %v5448_v48 = vcombine.low %v891_v52, %v895_v14 }
 0x301   :  { %1504 = vmatprep.subr.bf16.mxu1 %v5415_v10  ;;  %1617 = vmatprep.subr.bf16.mxu0 %v5417_v12  ;;  %v5439_v10 = vcombine.high %v882_v20, %v886_v8  ;;  %v5441_v12 = vcombine.high %v883_v0, %v887_v41  ;;  %v903_v1 = vld [vmem:[#allocation11 + $0x1f8] sm:$0xff] }
 0x302   :  { %1317 = vmatmul.mubr.bf16.gmra.mrb[4].mxu1 %v7747_v44  ;;  %1430 = vmatmul.mubr.bf16.gmra.mrb[20].mxu0 %v7747_v44 }
 0x303   :  { %1326 = vmatprep.mubr.bf16.mxu1 %v8471_v61  ;;  %1439 = vmatprep.mubr.bf16.mxu0 %v8471_v61 }
 0x304   :  { %1505 = vmatpush1.bf16.msra.mxu1 %v5414_v62  ;;  %1618 = vmatpush1.bf16.msra.mxu0 %v5416_v22  ;;  %v890_v62 = vld [vmem:[#allocation11 + $0x190] sm:$0xff] }
 0x305   :  { %1506 = vmatprep.subr.bf16.mxu1 %v5423_v33  ;;  %1619 = vmatprep.subr.bf16.mxu0 %v5425_v50  ;;  %v894_v22 = vld [vmem:[#allocation11 + $0x1b0] sm:$0xff]  ;;  %v5438_v50 = vcombine.low %v882_v20, %v886_v8  ;;  %v5440_v33 = vcombine.low %v883_v0, %v887_v41 }
 0x306   :  { %v5447_v46 = vcombine.high %v890_v62, %v894_v22  ;;  %v5446_v36 = vcombine.low %v890_v62, %v894_v22 }
 0x308   :  { %1507 = vmatpush1.bf16.msra.mxu1 %v5422_v15  ;;  %1620 = vmatpush1.bf16.msra.mxu0 %v5424_v3  ;;  %v898_v15 = vld [vmem:[#allocation11 + $0x1d0] sm:$0xff] }
 0x309   :  { %1508 = vmatprep.subr.bf16.mxu1 %v5431_v16  ;;  %1621 = vmatprep.subr.bf16.mxu0 %v5433_v4  ;;  %v902_v3 = vld [vmem:[#allocation11 + $0x1f0] sm:$0xff] }
 0x30a   :  { %v5455_v4 = vcombine.high %v898_v15, %v902_v3 }
 0x30c   :  { %1509 = vmatpush1.bf16.msra.mxu1 %v5430_v19  ;;  %1622 = vmatpush1.bf16.msra.mxu0 %v5432_v45  ;;  %v5457_v19 = vcombine.high %v899_v11, %v903_v1 }
 0x30d   :  { %1510 = vmatprep.subr.bf16.mxu1 %v5439_v10  ;;  %1623 = vmatprep.subr.bf16.mxu0 %v5441_v12  ;;  %v5454_v12 = vcombine.low %v898_v15, %v902_v3 }
 0x310   :  { %1511 = vmatpush1.bf16.msra.mxu1 %v5438_v50  ;;  %1624 = vmatpush1.bf16.msra.mxu0 %v5440_v33  ;;  %v5891_v16 = vpop.f32.mrb[4].mxu0  ;;  %v5456_v50 = vcombine.low %v899_v11, %v903_v1 }
 0x311   :  { %1512 = vmatprep.subr.bf16.mxu1 %v5447_v46  ;;  %1625 = vmatprep.subr.bf16.mxu0 %v5449_v2  ;;  %v786_v20 = vadd.f32 %v5891_v16, %v7741_v40  ;;  %v777_v8 = vpop.f32.mrb[5].mxu0 }
 0x312   :  { %v778_v0 = vadd.f32 %v7741_v40, %v777_v8  ;;  %v5892_v41 = vpop.f32.mrb[6].mxu0 }
 0x313   :  { %v789_v45 = vadd.f32 %v5892_v41, %v7741_v40  ;;  %v780_v10 = vpop.f32.mrb[7].mxu0  ;;  %v830_v22 = vmax.f32 %v786_v20, 0.0 }
 0x314   :  { %1513 = vmatpush1.bf16.msra.mxu1 %v5446_v36  ;;  %1626 = vmatpush1.bf16.msra.mxu0 %v5448_v48  ;;  %v781_v62 = vadd.f32 %v7741_v40, %v780_v10  ;;  %v828_v14 = vmax.f32 %v778_v0, 0.0 }
 0x315   :  { %1514 = vmatprep.subr.bf16.mxu1 %v5455_v4  ;;  %1627 = vmatprep.subr.bf16.mxu0 %v5457_v19  ;;  %v831_v52 = vmax.f32 %v789_v45, 0.0 }
 0x316   :  { %v829_v33 = vmax.f32 %v781_v62, 0.0 }
 0x317   :  { %v7763_v46 = vpack.c.bf16 %v831_v52, %v830_v22 }
 0x318   :  { %1515 = vmatpush1.bf16.msra.mxu1 %v5454_v12  ;;  %1628 = vmatpush1.bf16.msra.mxu0 %v5456_v50  ;;  %v906_v2 = vpack.c.bf16 %v829_v33, %v828_v14 }
 0x31a   :  { %1327 = vmatmul.mubr.bf16.gmra.mrb[8].mxu1 %v906_v2  ;;  %1440 = vmatmul.mubr.bf16.gmra.mrb[24].mxu0 %v906_v2 }
 0x31b   :  { %1336 = vmatprep.mubr.bf16.mxu1 %v8471_v61  ;;  %1449 = vmatprep.mubr.bf16.mxu0 %v8471_v61 }
 0x322   :  { %1337 = vmatmul.mubr.bf16.gmra.mrb[12].mxu1 %v7763_v46  ;;  %1450 = vmatmul.mubr.bf16.gmra.mrb[28].mxu0 %v7763_v46 }
 0x323   :  { %1346 = vmatprep.mubr.bf16.mxu1 %v8471_v61  ;;  %1459 = vmatprep.mubr.bf16.mxu0 %v8471_v61 }
 0x335   :  { %v5895_v15 = vpop.f32.mrb[8].mxu0 }
 0x336   :  { %v802_v3 = vadd.f32 %v5895_v15, %v7741_v40  ;;  %v793_v11 = vpop.f32.mrb[9].mxu0 }
 0x337   :  { %v794_v1 = vadd.f32 %v7741_v40, %v793_v11  ;;  %v5896_v36 = vpop.f32.mrb[10].mxu0 }
 0x338   :  { %v805_v48 = vadd.f32 %v5896_v36, %v7741_v40  ;;  %v796_v16 = vpop.f32.mrb[11].mxu0  ;;  %v834_v19 = vmax.f32 %v802_v3, 0.0 }
 0x339   :  { %v797_v4 = vadd.f32 %v7741_v40, %v796_v16  ;;  %v832_v8 = vmax.f32 %v794_v1, 0.0  ;;  %v6111_v16 = vld [vmem:[#allocation14 + $0x2c] ss:$16 sps:$4 sm:$0xff]  }
 0x33a   :  { %v835_v20 = vmax.f32 %v805_v48, 0.0 }
 0x33b   :  { %v833_v0 = vmax.f32 %v797_v4, 0.0  ;;  %v6106_v4 = vld [vmem:[#allocation14 + $0x20] ss:$16 sps:$4 sm:$0xff]  }
 0x33c   :  { %v909_v41 = vpack.c.bf16 %v835_v20, %v834_v19  ;;  %v6109_v19 = vld [vmem:[#allocation14 + $0x28] ss:$16 sps:$4 sm:$0xff]   ;;  %v6112_v20 = vld [vmem:[#allocation14 + $0x40] ss:$16 sps:$4 sm:$0xff]  }
 0x33d   :  { %v908_v45 = vpack.c.bf16 %v833_v0, %v832_v8  ;;  %v6114_v8 = vld [vmem:[#allocation14 + $0x44] ss:$16 sps:$4 sm:$0xff]   ;;  %v6115_v0 = vld [vmem:[#allocation14 + $0x48] ss:$16 sps:$4 sm:$0xff]  }
 0x33f   :  { %1347 = vmatmul.mubr.bf16.gmra.mrb[16].mxu1 %v908_v45  ;;  %1460 = vmatmul.mubr.bf16.gmra.mrb[32].mxu0 %v908_v45 }
 0x340   :  { %1356 = vmatprep.mubr.bf16.mxu1 %v8471_v61  ;;  %1469 = vmatprep.mubr.bf16.mxu0 %v8471_v61 }
 0x347   :  { %1357 = vmatmul.mubr.bf16.gmra.mrb[20].mxu1 %v909_v41  ;;  %1470 = vmatmul.mubr.bf16.gmra.mrb[36].mxu0 %v909_v41 }
 0x348   :  { %1366 = vmatprep.mubr.bf16.mxu1 %v8471_v61  ;;  %1479 = vmatprep.mubr.bf16.mxu0 %v8471_v61 }
 0x356   :  { %v5899_v10 = vpop.f32.mrb[12].mxu0 }
 0x357   :  { %v818_v12 = vadd.f32 %v5899_v10, %v7741_v40  ;;  %v809_v50 = vpop.f32.mrb[13].mxu0  ;;  %v6123_v10 = vld [vmem:[#allocation14 + $0x6c] ss:$16 sps:$4 sm:$0xff]  }
 0x358   :  { %v810_v62 = vadd.f32 %v7741_v40, %v809_v50  ;;  %v5900_v22 = vpop.f32.mrb[14].mxu0  ;;  %v6121_v50 = vld [vmem:[#allocation14 + $0x68] ss:$16 sps:$4 sm:$0xff]  }
 0x359   :  { %v821_v52 = vadd.f32 %v5900_v22, %v7741_v40  ;;  %v812_v14 = vpop.f32.mrb[15].mxu0  ;;  %v838_v15 = vmax.f32 %v818_v12, 0.0  ;;  %v6118_v12 = vld [vmem:[#allocation14 + $0x60] ss:$16 sps:$4 sm:$0xff]  }
 0x35a   :  { %v813_v33 = vadd.f32 %v7741_v40, %v812_v14  ;;  %v836_v11 = vmax.f32 %v810_v62, 0.0  ;;  %v6102_v40 = vld [vmem:[#allocation14 + $0x4] ss:$16 sps:$4 sm:$0xff]   ;;  %v6129_v62 = vld [vmem:[#allocation14 + $0x8c] ss:$16 sps:$4 sm:$0xff]  }
 0x35b   :  { %v839_v3 = vmax.f32 %v821_v52, 0.0  ;;  %3741 = vmatprep.subr.bf16.mxu1 %v6102_v40  ;;  %v6124_v22 = vld [vmem:[#allocation14 + $0x80] ss:$16 sps:$4 sm:$0xff]   ;;  %v6132_v52 = vld [vmem:[#allocation14 + $0xa4] ss:$16 sps:$4 sm:$0xff]  }
 0x35c   :  { %v837_v1 = vmax.f32 %v813_v33, 0.0  ;;  %v6127_v14 = vld [vmem:[#allocation14 + $0x88] ss:$16 sps:$4 sm:$0xff]   ;;  %v6135_v33 = vld [vmem:[#allocation14 + $0xac] ss:$16 sps:$4 sm:$0xff]  }
 0x35d   :  { %v7783_v36 = vpack.c.bf16 %v839_v3, %v838_v15  ;;  %v6130_v15 = vld [vmem:[#allocation14 + $0xa0] ss:$16 sps:$4 sm:$0xff]   ;;  %v6133_v3 = vld [vmem:[#allocation14 + $0xa8] ss:$16 sps:$4 sm:$0xff]   ;;  %v6144_v40 = vld [vmem:[#allocation14 + $0xe4] ss:$16 sps:$4 sm:$0xff]  }
 0x35e   :  { %v910_v48 = vpack.c.bf16 %v837_v1, %v836_v11  ;;  %v6138_v11 = vld [vmem:[#allocation14 + $0xc4] ss:$16 sps:$4 sm:$0xff]   ;;  %v6141_v1 = vld [vmem:[#allocation14 + $0xcc] ss:$16 sps:$4 sm:$0xff]  }
 0x360   :  { %1367 = vmatmul.mubr.bf16.gmra.mrb[24].mxu1 %v910_v48  ;;  %1480 = vmatmul.mubr.bf16.gmra.mrb[40].mxu0 %v910_v48 }
 0x361   :  { %1376 = vmatprep.mubr.bf16.mxu1 %v8471_v61  ;;  %1489 = vmatprep.mubr.bf16.mxu0 %v8471_v61 }
 0x368   :  { %1377 = vmatmul.mubr.bf16.gmra.mrb[28].mxu1 %v7783_v36  ;;  %1490 = vmatmul.mubr.bf16.gmra.mrb[44].mxu0 %v7783_v36 }
 0x369   :  { %1532 = vmatprep.mubr.bf16.mxu1 %v8471_v61  ;;  %1645 = vmatprep.mubr.bf16.mxu0 %v8471_v61 }
 0x370   :  { %1533 = vmatmul.mubr.bf16.vlgmr.msra.gmra.mrb[32].mxu1 %v7749_v13  ;;  %1646 = vmatmul.mubr.bf16.vlgmr.msra.gmra.mrb[48].mxu0 %v7749_v13  ;;  %v6100_v13 = vld [vmem:[#allocation14] ss:$16 sps:$4 sm:$0xff]  }
 0x371   :  { %1542 = vmatprep.mubr.bf16.mxu1 %v8471_v61  ;;  %1655 = vmatprep.mubr.bf16.mxu0 %v8471_v61 }
 0x372   :  { %3742 = vmatpush1.bf16.msra.mxu1 %v6100_v13  ;;  %v6142_v13 = vld [vmem:[#allocation14 + $0xe0] ss:$16 sps:$4 sm:$0xff]  }
 0x378   :  { %1543 = vmatmul.mubr.bf16.gmra.mrb[36].mxu1 %v7747_v44  ;;  %1656 = vmatmul.mubr.bf16.gmra.mrb[52].mxu0 %v7747_v44  ;;  %v6105_v44 = vld [vmem:[#allocation14 + $0xc] ss:$16 sps:$4 sm:$0xff]  }
 0x379   :  { %1552 = vmatprep.mubr.bf16.mxu1 %v8471_v61  ;;  %1665 = vmatprep.mubr.bf16.mxu0 %v8471_v61 }
 0x37a   :  { %3905 = vmatprep.subr.bf16.mxu0 %v6105_v44  ;;  %v6147_v44 = vld [vmem:[#allocation14 + $0xec] ss:$16 sps:$4 sm:$0xff]  }
 0x380   :  { %1553 = vmatmul.mubr.bf16.gmra.mrb[40].mxu1 %v906_v2  ;;  %1666 = vmatmul.mubr.bf16.gmra.mrb[56].mxu0 %v906_v2  ;;  %v6108_v2 = vld [vmem:[#allocation14 + $0x24] ss:$16 sps:$4 sm:$0xff]  }
 0x381   :  { %1562 = vmatprep.mubr.bf16.mxu1 %v8471_v61  ;;  %1675 = vmatprep.mubr.bf16.mxu0 %v8471_v61 }
 0x382   :  { %3743 = vmatprep.subr.bf16.mxu1 %v6108_v2  ;;  %v6150_v2 = vld [vmem:[#allocation14 + $0x104] ss:$16 sps:$4 sm:$0xff]  }
 0x383   :  { %3744 = vmatpush1.bf16.msra.mxu1 %v6106_v4  ;;  %v6148_v4 = vld [vmem:[#allocation14 + $0x100] ss:$16 sps:$4 sm:$0xff]  }
 0x384   :  { %3745 = vmatprep.subr.bf16.mxu1 %v6114_v8  ;;  %v6159_v8 = vld [vmem:[#allocation14 + $0x12c] ss:$16 sps:$4 sm:$0xff]  }
 0x387   :  { %3746 = vmatpush1.bf16.msra.mxu1 %v6112_v20  ;;  %v6156_v20 = vld [vmem:[#allocation14 + $0x124] ss:$16 sps:$4 sm:$0xff]  }
 0x388   :  { %1563 = vmatmul.mubr.bf16.gmra.mrb[44].mxu1 %v7763_v46  ;;  %1676 = vmatmul.mubr.bf16.gmra.mrb[60].mxu0 %v7763_v46  ;;  %v6103_v46 = vld [vmem:[#allocation14 + $0x8] ss:$16 sps:$4 sm:$0xff]  }
 0x389   :  { %1572 = vmatprep.mubr.bf16.mxu1 %v8471_v61  ;;  %1685 = vmatprep.mubr.bf16.mxu0 %v8471_v61 }
 0x38a   :  { %3906 = vmatpush1.bf16.msra.mxu0 %v6103_v46  ;;  %v6145_v46 = vld [vmem:[#allocation14 + $0xe8] ss:$16 sps:$4 sm:$0xff]  }
 0x38b   :  { %3907 = vmatprep.subr.bf16.mxu0 %v6111_v16  ;;  %v6153_v16 = vld [vmem:[#allocation14 + $0x10c] ss:$16 sps:$4 sm:$0xff]  }
 0x38e   :  { %3908 = vmatpush1.bf16.msra.mxu0 %v6109_v19  ;;  %v6151_v19 = vld [vmem:[#allocation14 + $0x108] ss:$16 sps:$4 sm:$0xff]  }
 0x390   :  { %1573 = vmatmul.mubr.bf16.gmra.mrb[48].mxu1 %v908_v45  ;;  %1686 = vmatmul.mubr.bf16.gmra.mrb[64].mxu0 %v908_v45  ;;  %v6120_v45 = vld [vmem:[#allocation14 + $0x64] ss:$16 sps:$4 sm:$0xff]  }
 0x391   :  { %1582 = vmatprep.mubr.bf16.mxu1 %v8471_v61  ;;  %1695 = vmatprep.mubr.bf16.mxu0 %v8471_v61 }
 0x392   :  { %3747 = vmatprep.subr.bf16.mxu1 %v6120_v45  ;;  %v7813_v45 = vld [vmem:[#allocation13] sm:$0xff] }
 0x393   :  { %3748 = vmatpush1.bf16.msra.mxu1 %v6118_v12  ;;  %v6162_v12 = vld [vmem:[#allocation14 + $0x144] ss:$16 sps:$4 sm:$0xff]  }
 0x398   :  { %1583 = vmatmul.mubr.bf16.gmra.mrb[52].mxu1 %v909_v41  ;;  %1696 = vmatmul.mubr.bf16.gmra.mrb[68].mxu0 %v909_v41  ;;  %v6117_v41 = vld [vmem:[#allocation14 + $0x4c] ss:$16 sps:$4 sm:$0xff]  }
 0x399   :  { %1592 = vmatprep.mubr.bf16.mxu1 %v8471_v61  ;;  %1705 = vmatprep.mubr.bf16.mxu0 %v8471_v61 }
 0x39a   :  { %3909 = vmatprep.subr.bf16.mxu0 %v6117_v41  ;;  %v6157_v41 = vld [vmem:[#allocation14 + $0x128] ss:$16 sps:$4 sm:$0xff]  }
 0x39b   :  { %3910 = vmatpush1.bf16.msra.mxu0 %v6115_v0  ;;  %v6154_v0 = vld [vmem:[#allocation14 + $0x120] ss:$16 sps:$4 sm:$0xff]  }
 0x39c   :  { %3911 = vmatprep.subr.bf16.mxu0 %v6123_v10  ;;  %v8398_v10 = vsub.s32 3, %v7501_v28 }
 0x39f   :  { %3912 = vmatpush1.bf16.msra.mxu0 %v6121_v50  ;;  %v7818_v50 = vrot.slane %v7813_v45, %v7512_v32 }
 0x3a0   :  { %1593 = vmatmul.mubr.bf16.gmra.mrb[56].mxu1 %v910_v48  ;;  %1706 = vmatmul.mubr.bf16.gmra.mrb[72].mxu0 %v910_v48  ;;  %v6139_v48 = vld [vmem:[#allocation14 + $0xc8] ss:$16 sps:$4 sm:$0xff]  }
 0x3a1   :  { %1602 = vmatprep.mubr.bf16.mxu1 %v8471_v61  ;;  %1715 = vmatprep.mubr.bf16.mxu0 %v8471_v61  ;;  %v6126_v61 = vld [vmem:[#allocation14 + $0x84] ss:$16 sps:$4 sm:$0xff]  }
 0x3a2   :  { %3749 = vmatprep.subr.bf16.mxu1 %v6126_v61  ;;  %3913 = vmatprep.subr.bf16.mxu0 %v6129_v62  ;;  %v6165_v61 = vld [vmem:[#allocation14 + $0x14c] ss:$16 sps:$4 sm:$0xff]   ;;  %v7822_v62 = vrot.slane %v7813_v45, %v7517_v35 }
 0x3a3   :  { %3750 = vmatpush1.bf16.msra.mxu1 %v6124_v22  ;;  %3914 = vmatpush1.bf16.msra.mxu0 %v6127_v14  ;;  %v6160_v22 = vld [vmem:[#allocation14 + $0x140] ss:$16 sps:$4 sm:$0xff]   ;;  %v7826_v14 = vrot.slane %v7813_v45, %v7509_v31 }
 0x3a4   :  { %3751 = vmatprep.subr.bf16.mxu1 %v6132_v52  ;;  %3915 = vmatprep.subr.bf16.mxu0 %v6135_v33  ;;  %v6163_v52 = vld [vmem:[#allocation14 + $0x148] ss:$16 sps:$4 sm:$0xff]   ;;  %v7831_v33 = vrot.slane %v7813_v45, %v8398_v10  ;;  %v6172_v10 = vld [vmem:[#allocation14 + $0x180] ss:$16 sps:$4 sm:$0xff]  }
 0x3a7   :  { %3752 = vmatpush1.bf16.msra.mxu1 %v6130_v15  ;;  %3916 = vmatpush1.bf16.msra.mxu0 %v6133_v3 }
 0x3a8   :  { %1603 = vmatmul.mubr.bf16.gmra.mrb[60].mxu1 %v7783_v36  ;;  %1716 = vmatmul.mubr.bf16.gmra.mrb[76].mxu0 %v7783_v36  ;;  %v6136_v36 = vld [vmem:[#allocation14 + $0xc0] ss:$16 sps:$4 sm:$0xff]  }
 0x3a9   :  { %3753 = vmatprep.subr.bf16.mxu1 %v6138_v11  ;;  %3917 = vmatprep.subr.bf16.mxu0 %v6141_v1  ;;  %v6168_v11 = vld [vmem:[#allocation14 + $0x164] ss:$16 sps:$4 sm:$0xff]   ;;  %v6171_v1 = vld [vmem:[#allocation14 + $0x16c] ss:$16 sps:$4 sm:$0xff]  }
 0x3ab   :  { %3754 = vmatpush1.bf16.msra.mxu1 %v6136_v36  ;;  %3918 = vmatpush1.bf16.msra.mxu0 %v6139_v48 }
 0x3ac   :  { %3755 = vmatprep.subr.bf16.mxu1 %v6144_v40  ;;  %3919 = vmatprep.subr.bf16.mxu0 %v6147_v44 }
 0x3af   :  { %3756 = vmatpush1.bf16.msra.mxu1 %v6142_v13  ;;  %3920 = vmatpush1.bf16.msra.mxu0 %v6145_v46  ;;  %v6166_v13 = vld [vmem:[#allocation14 + $0x160] ss:$16 sps:$4 sm:$0xff]   ;;  %v6169_v46 = vld [vmem:[#allocation14 + $0x168] ss:$16 sps:$4 sm:$0xff]  }
 0x3b0   :  { %3757 = vmatprep.subr.bf16.mxu1 %v6150_v2  ;;  %3921 = vmatprep.subr.bf16.mxu0 %v6153_v16 }
 0x3b3   :  { %3758 = vmatpush1.bf16.msra.mxu1 %v6148_v4  ;;  %3922 = vmatpush1.bf16.msra.mxu0 %v6151_v19 }
 0x3b4   :  { %3759 = vmatprep.subr.bf16.mxu1 %v6156_v20  ;;  %3923 = vmatprep.subr.bf16.mxu0 %v6159_v8 }
 0x3b7   :  { %3760 = vmatpush1.bf16.msra.mxu1 %v6154_v0  ;;  %3924 = vmatpush1.bf16.msra.mxu0 %v6157_v41 }
 0x3b8   :  { %3761 = vmatprep.subr.bf16.mxu1 %v6162_v12  ;;  %3925 = vmatprep.subr.bf16.mxu0 %v6165_v61 }
 0x3bb   :  { %3762 = vmatpush1.bf16.msra.mxu1 %v6160_v22  ;;  %3926 = vmatpush1.bf16.msra.mxu0 %v6163_v52 }
 0x3bc   :  { %3763 = vmatprep.subr.bf16.mxu1 %v6168_v11  ;;  %3927 = vmatprep.subr.bf16.mxu0 %v6171_v1  ;;  %v6174_v11 = vld [vmem:[#allocation14 + $0x184] ss:$16 sps:$4 sm:$0xff]   ;;  %v6177_v1 = vld [vmem:[#allocation14 + $0x18c] ss:$16 sps:$4 sm:$0xff]  }
 0x3bf   :  { %3764 = vmatpush1.bf16.msra.mxu1 %v6166_v13  ;;  %3928 = vmatpush1.bf16.msra.mxu0 %v6169_v46 }
 0x3c0   :  { %3765 = vmatprep.subr.bf16.mxu1 %v6174_v11  ;;  %3929 = vmatprep.subr.bf16.mxu0 %v6177_v1 }
 0x3c3   :  { %3766 = vmatpush1.bf16.msra.mxu1 %v6172_v10 }
 0x3cd   :  { %v1308_v15 = vpop.f32.mrb[0].mxu1  ;;  %v1421_v3 = vpop.f32.mrb[16].mxu0 }
 0x3ce   :  { %v1309_v36 = vadd.f32 %v1308_v15, %v7818_v50  ;;  %v1422_v48 = vadd.f32 %v1421_v3, %v7822_v62  ;;  %v1310_v40 = vpop.f32.mrb[1].mxu1  ;;  %v1423_v44 = vpop.f32.mrb[17].mxu0 }
 0x3cf   :  { %v1311_v2 = vadd.f32 %v1310_v40, %v7826_v14  ;;  %v1424_v16 = vadd.f32 %v1423_v44, %v7831_v33  ;;  %v1312_v4 = vpop.f32.mrb[2].mxu1  ;;  %v1425_v19 = vpop.f32.mrb[18].mxu0 }
 0x3d0   :  { %v1726_v20 = vmax.f32 %v1309_v36, 0.0  ;;  %v1728_v8 = vmax.f32 %v1422_v48, 0.0  ;;  %v1313_v0 = vadd.f32 %v1312_v4, %v7818_v50  ;;  %v1426_v41 = vadd.f32 %v1425_v19, %v7822_v62  ;;  %v1314_v12 = vpop.f32.mrb[3].mxu1  ;;  %v1427_v61 = vpop.f32.mrb[19].mxu0  ;;  %v6175_v4 = vld [vmem:[#allocation14 + $0x188] ss:$16 sps:$4 sm:$0xff]  }
 0x3d1   :  { %v1727_v22 = vmax.f32 %v1311_v2, 0.0  ;;  %v1729_v52 = vmax.f32 %v1424_v16, 0.0  ;;  %v1315_v15 = vadd.f32 %v1314_v12, %v7826_v14  ;;  %v1428_v3 = vadd.f32 %v1427_v61, %v7831_v33  ;;  %3930 = vmatpush1.bf16.msra.mxu0 %v6175_v4 }
 0x3d2   :  { %v1734_v40 = vmax.f32 %v1313_v0, 0.0  ;;  %v1736_v44 = vmax.f32 %v1426_v41, 0.0 }
 0x3d3   :  { %v1735_v36 = vmax.f32 %v1315_v15, 0.0  ;;  %v1737_v48 = vmax.f32 %v1428_v3, 0.0  ;;  %v6183_v15 = vld [vmem:[#allocation14 + $0x1ac] ss:$16 sps:$4 sm:$0xff]  }
 0x3d4   :  { %v7841_v43 = vpack.c.bf16 %v1734_v40, %v1726_v20  ;;  %v7843_v19 = vpack.c.bf16 %v1736_v44, %v1728_v8  ;;  %v6180_v20 = vld [vmem:[#allocation14 + $0x1a4] ss:$16 sps:$4 sm:$0xff]   ;;  %v6181_v44 = vld [vmem:[#allocation14 + $0x1a8] ss:$16 sps:$4 sm:$0xff]   ;;  %3931 = vmatprep.subr.bf16.mxu0 %v6183_v15 }
 0x3d5   :  { %v7845_v13 = vpack.c.bf16 %v1735_v36, %v1727_v22  ;;  %v7847_v46 = vpack.c.bf16 %v1737_v48, %v1729_v52  ;;  %v1318_v2 = vpop.f32.mrb[4].mxu1  ;;  %v1431_v16 = vpop.f32.mrb[20].mxu0  ;;  %v6178_v52 = vld [vmem:[#allocation14 + $0x1a0] ss:$16 sps:$4 sm:$0xff]   ;;  %3767 = vmatprep.subr.bf16.mxu1 %v6180_v20  ;;  %3932 = vmatpush1.bf16.msra.mxu0 %v6181_v44  ;;  %v6195_v44 = vld [vmem:[#allocation14 + $0x1ec] ss:$16 sps:$4 sm:$0xff]  }
 0x3d6   :  { %v1319_v0 = vadd.f32 %v1318_v2, %v7818_v50  ;;  %v1432_v41 = vadd.f32 %v1431_v16, %v7822_v62  ;;  %v1320_v12 = vpop.f32.mrb[5].mxu1  ;;  %v1433_v61 = vpop.f32.mrb[21].mxu0  ;;  %3768 = vmatpush1.bf16.msra.mxu1 %v6178_v52  ;;  %v6192_v52 = vld [vmem:[#allocation14 + $0x1e4] ss:$16 sps:$4 sm:$0xff]  }
 0x3d7   :  { %v1321_v8 = vadd.f32 %v1320_v12, %v7826_v14  ;;  %v1434_v3 = vadd.f32 %v1433_v61, %v7831_v33  ;;  %v1322_v22 = vpop.f32.mrb[6].mxu1  ;;  %v1435_v40 = vpop.f32.mrb[22].mxu0 }
 0x3d8   :  { %v1742_v11 = vmax.f32 %v1319_v0, 0.0  ;;  %v1744_v1 = vmax.f32 %v1432_v41, 0.0  ;;  %v1323_v10 = vadd.f32 %v1322_v22, %v7818_v50  ;;  %v1436_v36 = vadd.f32 %v1435_v40, %v7822_v62  ;;  %v1324_v48 = vpop.f32.mrb[7].mxu1  ;;  %v1437_v4 = vpop.f32.mrb[23].mxu0  ;;  %v6186_v0 = vld [vmem:[#allocation14 + $0x1c4] ss:$16 sps:$4 sm:$0xff]  }
 0x3d9   :  { %v1743_v2 = vmax.f32 %v1321_v8, 0.0  ;;  %v1745_v16 = vmax.f32 %v1434_v3, 0.0  ;;  %v1325_v12 = vadd.f32 %v1324_v48, %v7826_v14  ;;  %v1438_v61 = vadd.f32 %v1437_v4, %v7831_v33  ;;  %v6189_v41 = vld [vmem:[#allocation14 + $0x1cc] ss:$16 sps:$4 sm:$0xff]   ;;  %v6187_v40 = vld [vmem:[#allocation14 + $0x1c8] ss:$16 sps:$4 sm:$0xff]   ;;  %3769 = vmatprep.subr.bf16.mxu1 %v6186_v0 }
 0x3da   :  { %v1750_v37 = vmax.f32 %v1323_v10, 0.0  ;;  %v1752_v7 = vmax.f32 %v1436_v36, 0.0  ;;  %3933 = vmatprep.subr.bf16.mxu0 %v6189_v41  ;;  %3770 = vmatpush1.bf16.msra.mxu1 %v6184_v59  ;;  %v6190_v48 = vld [vmem:[#allocation14 + $0x1e0] ss:$16 sps:$4 sm:$0xff]   ;;  %v6193_v4 = vld [vmem:[#allocation14 + $0x1e8] ss:$16 sps:$4 sm:$0xff]  }
 0x3db   :  { %v1751_v18 = vmax.f32 %v1325_v12, 0.0  ;;  %v1753_v22 = vmax.f32 %v1438_v61, 0.0  ;;  %3934 = vmatpush1.bf16.msra.mxu0 %v6187_v40  ;;  %3771 = vmatprep.subr.bf16.mxu1 %v6192_v52 }
 0x3dc   :  { %v1862_v47 = vpack.c.bf16 %v1750_v37, %v1742_v11  ;;  %v1864_v5 = vpack.c.bf16 %v1752_v7, %v1744_v1  ;;  %3935 = vmatprep.subr.bf16.mxu0 %v6195_v44  ;;  %v6198_v7 = vld [vmem:[#allocation14 + $0x204] ss:$16 sps:$4 sm:$0xff]  }
 0x3dd   :  { %v1863_v20 = vpack.c.bf16 %v1751_v18, %v1743_v2  ;;  %v1865_v15 = vpack.c.bf16 %v1753_v22, %v1745_v16  ;;  %v6201_v18 = vld [vmem:[#allocation14 + $0x20c] ss:$16 sps:$4 sm:$0xff]  }
 0x3de   :  { %v1918_v8 = vmax.bf16 %v1862_v47, %v7841_v43  ;;  %v1944_v3 = vmax.bf16 %v1864_v5, %v7843_v19  ;;  %3772 = vmatpush1.bf16.msra.mxu1 %v6190_v48 }
 0x3df   :  { %v1931_v10 = vmax.bf16 %v1863_v20, %v7845_v13  ;;  %v1957_v36 = vmax.bf16 %v1865_v15, %v7847_v46  ;;  %3936 = vmatpush1.bf16.msra.mxu0 %v6193_v4  ;;  %3782 = vmatprep.subr.bf16.mxu1 %v6198_v7 }
 0x3e0   :  { %3946 = vmatprep.subr.bf16.mxu0 %v6201_v18 }
 0x3ed   :  { %v1328_v59 = vpop.f32.mrb[8].mxu1  ;;  %v1441_v47 = vpop.f32.mrb[24].mxu0 }
 0x3ee   :  { %v1329_v5 = vadd.f32 %v1328_v59, %v7818_v50  ;;  %v1442_v43 = vadd.f32 %v1441_v47, %v7822_v62  ;;  %v1330_v37 = vpop.f32.mrb[9].mxu1  ;;  %v1443_v19 = vpop.f32.mrb[25].mxu0 }
 0x3ef   :  { %v1331_v13 = vadd.f32 %v1330_v37, %v7826_v14  ;;  %v1444_v46 = vadd.f32 %v1443_v19, %v7831_v33  ;;  %v1332_v11 = vpop.f32.mrb[10].mxu1  ;;  %v1445_v1 = vpop.f32.mrb[26].mxu0 }
 0x3f0   :  { %v1333_v2 = vadd.f32 %v1332_v11, %v7818_v50  ;;  %v1446_v16 = vadd.f32 %v1445_v1, %v7822_v62  ;;  %v1334_v12 = vpop.f32.mrb[11].mxu1  ;;  %v1447_v61 = vpop.f32.mrb[27].mxu0  ;;  %v1758_v22 = vmax.f32 %v1329_v5, 0.0  ;;  %v1760_v40 = vmax.f32 %v1442_v43, 0.0 }
 0x3f1   :  { %v1335_v0 = vadd.f32 %v1334_v12, %v7826_v14  ;;  %v1448_v41 = vadd.f32 %v1447_v61, %v7831_v33  ;;  %v1759_v52 = vmax.f32 %v1331_v13, 0.0  ;;  %v1761_v44 = vmax.f32 %v1444_v46, 0.0 }
 0x3f2   :  { %v1766_v20 = vmax.f32 %v1333_v2, 0.0  ;;  %v1768_v15 = vmax.f32 %v1446_v16, 0.0 }
 0x3f3   :  { %v1767_v48 = vmax.f32 %v1335_v0, 0.0  ;;  %v1769_v4 = vmax.f32 %v1448_v41, 0.0 }
 0x3f4   :  { %v1870_v7 = vpack.c.bf16 %v1766_v20, %v1758_v22  ;;  %v1872_v18 = vpack.c.bf16 %v1768_v15, %v1760_v40 }
 0x3f5   :  { %v1871_v59 = vpack.c.bf16 %v1767_v48, %v1759_v52  ;;  %v1873_v47 = vpack.c.bf16 %v1769_v4, %v1761_v44  ;;  %v1338_v37 = vpop.f32.mrb[12].mxu1  ;;  %v1451_v19 = vpop.f32.mrb[28].mxu0 }
 0x3f6   :  { %v1919_v11 = vmax.bf16 %v1918_v8, %v1870_v7  ;;  %v1945_v1 = vmax.bf16 %v1944_v3, %v1872_v18  ;;  %v1339_v12 = vadd.f32 %v1338_v37, %v7818_v50  ;;  %v1452_v61 = vadd.f32 %v1451_v19, %v7822_v62  ;;  %v1340_v5 = vpop.f32.mrb[13].mxu1  ;;  %v1453_v43 = vpop.f32.mrb[29].mxu0 }
 0x3f7   :  { %v1932_v2 = vmax.bf16 %v1931_v10, %v1871_v59  ;;  %v1958_v16 = vmax.bf16 %v1957_v36, %v1873_v47  ;;  %v1341_v13 = vadd.f32 %v1340_v5, %v7826_v14  ;;  %v1454_v46 = vadd.f32 %v1453_v43, %v7831_v33  ;;  %v1342_v0 = vpop.f32.mrb[14].mxu1  ;;  %v1455_v41 = vpop.f32.mrb[30].mxu0 }
 0x3f8   :  { %v1343_v22 = vadd.f32 %v1342_v0, %v7818_v50  ;;  %v1456_v40 = vadd.f32 %v1455_v41, %v7822_v62  ;;  %v1344_v8 = vpop.f32.mrb[15].mxu1  ;;  %v1457_v3 = vpop.f32.mrb[31].mxu0  ;;  %v1774_v52 = vmax.f32 %v1339_v12, 0.0  ;;  %v1776_v44 = vmax.f32 %v1452_v61, 0.0 }
 0x3f9   :  { %v1345_v20 = vadd.f32 %v1344_v8, %v7826_v14  ;;  %v1458_v15 = vadd.f32 %v1457_v3, %v7831_v33  ;;  %v1775_v48 = vmax.f32 %v1341_v13, 0.0  ;;  %v1777_v4 = vmax.f32 %v1454_v46, 0.0 }
 0x3fa   :  { %v1782_v10 = vmax.f32 %v1343_v22, 0.0  ;;  %v1784_v36 = vmax.f32 %v1456_v40, 0.0 }
 0x3fb   :  { %v1783_v7 = vmax.f32 %v1345_v20, 0.0  ;;  %v1785_v18 = vmax.f32 %v1458_v15, 0.0 }
 0x3fc   :  { %v1878_v59 = vpack.c.bf16 %v1782_v10, %v1774_v52  ;;  %v1880_v47 = vpack.c.bf16 %v1784_v36, %v1776_v44 }
 0x3fd   :  { %v1879_v37 = vpack.c.bf16 %v1783_v7, %v1775_v48  ;;  %v1881_v19 = vpack.c.bf16 %v1785_v18, %v1777_v4 }
 0x3fe   :  { %v7877_v5 = vmax.bf16 %v1919_v11, %v1878_v59  ;;  %v7879_v43 = vmax.bf16 %v1945_v1, %v1880_v47 }
 0x3ff   :  { %v7881_v0 = vmax.bf16 %v1932_v2, %v1879_v37  ;;  %v7883_v41 = vmax.bf16 %v1958_v16, %v1881_v19 }
 0x412   :  { %v1348_v12 = vpop.f32.mrb[16].mxu1  ;;  %v1461_v61 = vpop.f32.mrb[32].mxu0 }
 0x413   :  { %v1349_v22 = vadd.f32 %v1348_v12, %v7818_v50  ;;  %v1462_v13 = vadd.f32 %v1461_v61, %v7822_v62  ;;  %v1350_v46 = vpop.f32.mrb[17].mxu1  ;;  %v1463_v40 = vpop.f32.mrb[33].mxu0 }
 0x414   :  { %v1351_v8 = vadd.f32 %v1350_v46, %v7826_v14  ;;  %v1464_v3 = vadd.f32 %v1463_v40, %v7831_v33  ;;  %v1352_v11 = vpop.f32.mrb[18].mxu1  ;;  %v1465_v20 = vpop.f32.mrb[34].mxu0 }
 0x415   :  { %v1353_v1 = vadd.f32 %v1352_v11, %v7818_v50  ;;  %v1466_v2 = vadd.f32 %v1465_v20, %v7822_v62  ;;  %v1354_v16 = vpop.f32.mrb[19].mxu1  ;;  %v1467_v15 = vpop.f32.mrb[35].mxu0  ;;  %v1790_v10 = vmax.f32 %v1349_v22, 0.0  ;;  %v1792_v36 = vmax.f32 %v1462_v13, 0.0 }
 0x416   :  { %v1355_v52 = vadd.f32 %v1354_v16, %v7826_v14  ;;  %v1468_v44 = vadd.f32 %v1467_v15, %v7831_v33  ;;  %v1791_v7 = vmax.f32 %v1351_v8, 0.0  ;;  %v1793_v18 = vmax.f32 %v1464_v3, 0.0 }
 0x417   :  { %v1798_v48 = vmax.f32 %v1353_v1, 0.0  ;;  %v1800_v4 = vmax.f32 %v1466_v2, 0.0 }
 0x418   :  { %v1799_v59 = vmax.f32 %v1355_v52, 0.0  ;;  %v1801_v47 = vmax.f32 %v1468_v44, 0.0 }
 0x419   :  { %v7893_v37 = vpack.c.bf16 %v1798_v48, %v1790_v10  ;;  %v7895_v19 = vpack.c.bf16 %v1800_v4, %v1792_v36 }
 0x41a   :  { %v7897_v12 = vpack.c.bf16 %v1799_v59, %v1791_v7  ;;  %v7899_v61 = vpack.c.bf16 %v1801_v47, %v1793_v18  ;;  %v1358_v46 = vpop.f32.mrb[20].mxu1  ;;  %v1471_v40 = vpop.f32.mrb[36].mxu0 }
 0x41b   :  { %v1359_v11 = vadd.f32 %v1358_v46, %v7818_v50  ;;  %v1472_v22 = vadd.f32 %v1471_v40, %v7822_v62  ;;  %v1360_v13 = vpop.f32.mrb[21].mxu1  ;;  %v1473_v20 = vpop.f32.mrb[37].mxu0 }
 0x41c   :  { %v1361_v8 = vadd.f32 %v1360_v13, %v7826_v14  ;;  %v1474_v3 = vadd.f32 %v1473_v20, %v7831_v33  ;;  %v1362_v1 = vpop.f32.mrb[22].mxu1  ;;  %v1475_v2 = vpop.f32.mrb[38].mxu0 }
 0x41d   :  { %v1363_v16 = vadd.f32 %v1362_v1, %v7818_v50  ;;  %v1476_v15 = vadd.f32 %v1475_v2, %v7822_v62  ;;  %v1364_v52 = vpop.f32.mrb[23].mxu1  ;;  %v1477_v44 = vpop.f32.mrb[39].mxu0  ;;  %v1806_v48 = vmax.f32 %v1359_v11, 0.0  ;;  %v1808_v4 = vmax.f32 %v1472_v22, 0.0 }
 0x41e   :  { %v1365_v10 = vadd.f32 %v1364_v52, %v7826_v14  ;;  %v1478_v36 = vadd.f32 %v1477_v44, %v7831_v33  ;;  %v1807_v59 = vmax.f32 %v1361_v8, 0.0  ;;  %v1809_v47 = vmax.f32 %v1474_v3, 0.0 }
 0x41f   :  { %v1814_v7 = vmax.f32 %v1363_v16, 0.0  ;;  %v1816_v18 = vmax.f32 %v1476_v15, 0.0  ;;  %v1921_v3 = vunpack.i.l.bf16 %v7877_v5  ;;  %v1922_v16 = vunpack.i.h.bf16 %v7877_v5 }
 0x420   :  { %v1815_v46 = vmax.f32 %v1365_v10, 0.0  ;;  %v1817_v40 = vmax.f32 %v1478_v36, 0.0  ;;  %v1934_v15 = vunpack.i.l.bf16 %v7881_v0  ;;  %v1935_v44 = vunpack.i.h.bf16 %v7881_v0 }
 0x421   :  { %v7909_v13 = vpack.c.bf16 %v1814_v7, %v1806_v48  ;;  %v7911_v20 = vpack.c.bf16 %v1816_v18, %v1808_v4  ;;  %v1960_v10 = vunpack.i.l.bf16 %v7883_v41  ;;  %v1961_v36 = vunpack.i.h.bf16 %v7883_v41 }
 0x422   :  { %v7913_v1 = vpack.c.bf16 %v1815_v46, %v1807_v59  ;;  %v7915_v2 = vpack.c.bf16 %v1817_v40, %v1809_v47  ;;  %v1923_v48 = vmax.f32 %v1921_v3, %v1922_v16  ;;  %v1936_v4 = vmax.f32 %v1934_v15, %v1935_v44 }
 0x423   :  { %v1962_v7 = vmax.f32 %v1960_v10, %v1961_v36  ;;  %v1947_v59 = vunpack.i.l.bf16 %v7879_v43  ;;  %v1948_v47 = vunpack.i.h.bf16 %v7879_v43  ;;  %v932_v5 = vsub.s32 4, %v7501_v28 }
 0x424   :  { %v1924_v18 = vrot.slane %v1923_v48, 4  ;;  %v1937_v46 = vrot.slane %v1936_v4, 4  ;;  %v940_v8 = vsub.s32 6, %v7501_v28 }
 0x425   :  { %v1963_v40 = vrot.slane %v1962_v7, 4  ;;  %v1949_v0 = vmax.f32 %v1947_v59, %v1948_v47  ;;  %v7938_v43 = vrot.slane %v7813_v45, %v932_v5 }
 0x426   :  { %v1925_v22 = vmax.f32 %v1923_v48, %v1924_v18  ;;  %v1938_v11 = vmax.f32 %v1936_v4, %v1937_v46 }
 0x427   :  { %v1964_v52 = vmax.f32 %v1962_v7, %v1963_v40  ;;  %v7944_v7 = vrot.slane %v7813_v45, %v940_v8  ;;  %v1950_v47 = vrot.slane %v1949_v0, 4 }
 0x428   :  { %v1926_v59 = vrot.slane %v1925_v22, 2  ;;  %v1939_v10 = vrot.slane %v1938_v11, 2 }
 0x429   :  { %v1965_v57 = vrot.slane %v1964_v52, 2 }
 0x42a   :  { %v1927_v51 = vmax.f32 %v1925_v22, %v1926_v59  ;;  %v1940_v42 = vmax.f32 %v1938_v11, %v1939_v10 }
 0x433   :  { %v1368_v9 = vpop.f32.mrb[24].mxu1  ;;  %v1481_v41 = vpop.f32.mrb[40].mxu0 }
 0x434   :  { %v1369_v3 = vadd.f32 %v1368_v9, %v7818_v50  ;;  %v1482_v16 = vadd.f32 %v1481_v41, %v7822_v62  ;;  %v1370_v15 = vpop.f32.mrb[25].mxu1  ;;  %v1483_v44 = vpop.f32.mrb[41].mxu0  ;;  %v944_v9 = vsub.s32 7, %v7501_v28 }
 0x435   :  { %v1371_v36 = vadd.f32 %v1370_v15, %v7826_v14  ;;  %v1484_v48 = vadd.f32 %v1483_v44, %v7831_v33  ;;  %v1372_v18 = vpop.f32.mrb[26].mxu1  ;;  %v1485_v4 = vpop.f32.mrb[42].mxu0 }
 0x436   :  { %v1373_v46 = vadd.f32 %v1372_v18, %v7818_v50  ;;  %v1486_v40 = vadd.f32 %v1485_v4, %v7822_v62  ;;  %v1374_v5 = vpop.f32.mrb[27].mxu1  ;;  %v1487_v41 = vpop.f32.mrb[43].mxu0  ;;  %v1822_v21 = vmax.f32 %v1369_v3, 0.0  ;;  %v1824_v55 = vmax.f32 %v1482_v16, 0.0 }
 0x437   :  { %v1375_v15 = vadd.f32 %v1374_v5, %v7826_v14  ;;  %v1488_v44 = vadd.f32 %v1487_v41, %v7831_v33  ;;  %v1823_v60 = vmax.f32 %v1371_v36, 0.0  ;;  %v1825_v58 = vmax.f32 %v1484_v48, 0.0 }
 0x438   :  { %v1830_v8 = vmax.f32 %v1373_v46, 0.0  ;;  %v1832_v49 = vmax.f32 %v1486_v40, 0.0  ;;  %v1951_v18 = vmax.f32 %v1949_v0, %v1950_v47  ;;  %v1966_v5 = vmax.f32 %v1964_v52, %v1965_v57 }
 0x439   :  { %v1831_v56 = vmax.f32 %v1375_v15, 0.0  ;;  %v1833_v63 = vmax.f32 %v1488_v44, 0.0  ;;  %v8472_v3 = vmax.bf16 %v7909_v13, %v7893_v37  ;;  %v8473_v36 = vmax.bf16 %v7911_v20, %v7895_v19 }
 0x43a   :  { %v1902_v6 = vpack.c.bf16 %v1830_v8, %v1822_v21  ;;  %v1904_v4 = vpack.c.bf16 %v1832_v49, %v1824_v55  ;;  %v1928_v19 = vrot.slane %v1927_v51, 1 }
 0x43b   :  { %v1903_v39 = vpack.c.bf16 %v1831_v56, %v1823_v60  ;;  %v1905_v53 = vpack.c.bf16 %v1833_v63, %v1825_v58  ;;  %v1378_v34 = vpop.f32.mrb[28].mxu1  ;;  %v1491_v26 = vpop.f32.mrb[44].mxu0  ;;  %v8474_v63 = vmax.bf16 %v7913_v1, %v7897_v12  ;;  %v8475_v56 = vmax.bf16 %v7915_v2, %v7899_v61 }
 0x43c   :  { %v2023_v16 = vmax.bf16 %v8472_v3, %v1902_v6  ;;  %v2049_v48 = vmax.bf16 %v8473_v36, %v1904_v4  ;;  %v1379_v46 = vadd.f32 %v1378_v34, %v7818_v50  ;;  %v1492_v22 = vadd.f32 %v1491_v26, %v7822_v62  ;;  %v1380_v21 = vpop.f32.mrb[29].mxu1  ;;  %v1493_v49 = vpop.f32.mrb[45].mxu0 }
 0x43d   :  { %v2036_v55 = vmax.bf16 %v8474_v63, %v1903_v39  ;;  %v2062_v57 = vmax.bf16 %v8475_v56, %v1905_v53  ;;  %v1381_v6 = vadd.f32 %v1380_v21, %v7826_v14  ;;  %v1494_v58 = vadd.f32 %v1493_v49, %v7831_v33  ;;  %v1382_v60 = vpop.f32.mrb[30].mxu1  ;;  %v1495_v37 = vpop.f32.mrb[46].mxu0 }
 0x43e   :  { %v1952_v34 = vrot.slane %v1951_v18, 2  ;;  %v1383_v26 = vadd.f32 %v1382_v60, %v7818_v50  ;;  %v1496_v13 = vadd.f32 %v1495_v37, %v7822_v62  ;;  %v1384_v20 = vpop.f32.mrb[31].mxu1  ;;  %v1497_v52 = vpop.f32.mrb[47].mxu0  ;;  %v1941_v61 = vrot.slane %v1940_v42, 1 }
 0x43f   :  { %v1385_v39 = vadd.f32 %v1384_v20, %v7826_v14  ;;  %v1498_v12 = vadd.f32 %v1497_v52, %v7831_v33  ;;  %v1967_v53 = vrot.slane %v1966_v5, 1  ;;  %v1838_v1 = vmax.f32 %v1379_v46, 0.0 }
 0x440   :  { %v1840_v2 = vmax.f32 %v1492_v22, 0.0  ;;  %v1846_v11 = vmax.f32 %v1383_v26, 0.0  ;;  %v1848_v0 = vmax.f32 %v1496_v13, 0.0  ;;  %v1839_v10 = vmax.f32 %v1381_v6, 0.0 }
 0x441   :  { %v1841_v59 = vmax.f32 %v1494_v58, 0.0  ;;  %v1847_v47 = vmax.f32 %v1385_v39, 0.0  ;;  %v1849_v40 = vmax.f32 %v1498_v12, 0.0  ;;  %v8476_v62 = vsub.s32 5, %v7501_v28 }
 0x442   :  { %v1910_v41 = vpack.c.bf16 %v1846_v11, %v1838_v1  ;;  %v1912_v50 = vpack.c.bf16 %v1848_v0, %v1840_v2  ;;  %v7977_v14 = vrot.slane %v7813_v45, %v944_v9  ;;  %v7979_v33 = vmax.f32 %v1927_v51, %v1928_v19 }
 0x443   :  { %v7974_v15 = vrot.slane %v7813_v45, %v8476_v62  ;;  %v7981_v44 = vmax.f32 %v1951_v18, %v1952_v34  ;;  %v1911_v8 = vpack.c.bf16 %v1847_v47, %v1839_v10  ;;  %v1913_v4 = vpack.c.bf16 %v1849_v40, %v1841_v59  ;;  %v1534_v3 = vpop.f32.mrb[32].mxu1  ;;  %v1647_v36 = vpop.f32.mrb[48].mxu0 }
 0x444   :  { %v2024_v46 = vmax.bf16 %v2023_v16, %v1910_v41  ;;  %v2050_v22 = vmax.bf16 %v2049_v48, %v1912_v50  ;;  %v1536_v21 = vpop.f32.mrb[33].mxu1  ;;  %v1649_v49 = vpop.f32.mrb[49].mxu0  ;;  %v7983_v63 = vmax.f32 %v1940_v42, %v1941_v61  ;;  %v7985_v56 = vmax.f32 %v1966_v5, %v1967_v53 }
 0x445   :  { %v2037_v6 = vmax.bf16 %v2036_v55, %v1911_v8  ;;  %v2063_v58 = vmax.bf16 %v2062_v57, %v1913_v4  ;;  %v1535_v45 = vadd.f32 %v1534_v3, %v7938_v43  ;;  %v1648_v51 = vadd.f32 %v1647_v36, %v7944_v7  ;;  %v1538_v9 = vpop.f32.mrb[34].mxu1  ;;  %v1651_v18 = vpop.f32.mrb[50].mxu0 }
 0x446   :  { %v2025_v60 = vunpack.i.l.bf16 %v2024_v46  ;;  %v2026_v37 = vunpack.i.h.bf16 %v2024_v46  ;;  %v2051_v19 = vunpack.i.l.bf16 %v2050_v22  ;;  %v2052_v34 = vunpack.i.h.bf16 %v2050_v22  ;;  %v1540_v16 = vpop.f32.mrb[35].mxu1  ;;  %v1653_v48 = vpop.f32.mrb[51].mxu0 }
 0x447   :  { %v2038_v26 = vunpack.i.l.bf16 %v2037_v6  ;;  %v2039_v13 = vunpack.i.h.bf16 %v2037_v6  ;;  %v2064_v42 = vunpack.i.l.bf16 %v2063_v58  ;;  %v2065_v20 = vunpack.i.h.bf16 %v2063_v58 }
 0x448   :  { %v1930_v5 = vpack.i.bf16 %v7979_v33, %v7979_v33  ;;  %v2027_v55 = vmax.f32 %v2025_v60, %v2026_v37  ;;  %v2053_v57 = vmax.f32 %v2051_v19, %v2052_v34  ;;  %v1537_v52 = vadd.f32 %v1536_v21, %v7974_v15 }
 0x449   :  { %v2040_v39 = vmax.f32 %v2038_v26, %v2039_v13  ;;  %v2066_v12 = vmax.f32 %v2064_v42, %v2065_v20  ;;  %v1730_v61 = vmax.f32 %v1535_v45, 0.0  ;;  %v1650_v53 = vadd.f32 %v1649_v49, %v7977_v14 }
 0x44a   :  { %v2028_v1 = vrot.slane %v2027_v55, 4  ;;  %v1732_v2 = vmax.f32 %v1648_v51, 0.0  ;;  %v1539_v11 = vadd.f32 %v1538_v9, %v7938_v43  ;;  %v1652_v0 = vadd.f32 %v1651_v18, %v7944_v7 }
 0x44b   :  { %v2054_v10 = vrot.slane %v2053_v57, 4  ;;  %v2041_v59 = vrot.slane %v2040_v39, 4  ;;  %v1541_v47 = vadd.f32 %v1540_v16, %v7974_v15  ;;  %v1654_v40 = vadd.f32 %v1653_v48, %v7977_v14  ;;  %v1544_v41 = vpop.f32.mrb[36].mxu1  ;;  %v1657_v50 = vpop.f32.mrb[52].mxu0 }
 0x44c   :  { %v2029_v62 = vmax.f32 %v2027_v55, %v2028_v1  ;;  %v2067_v33 = vrot.slane %v2066_v12, 4  ;;  %v1738_v8 = vmax.f32 %v1539_v11, 0.0  ;;  %v1740_v4 = vmax.f32 %v1652_v0, 0.0  ;;  %v1546_v3 = vpop.f32.mrb[37].mxu1  ;;  %v1659_v36 = vpop.f32.mrb[53].mxu0 }
 0x44d   :  { %v1731_v46 = vmax.f32 %v1537_v52, 0.0  ;;  %v1733_v22 = vmax.f32 %v1650_v53, 0.0  ;;  %v1739_v21 = vmax.f32 %v1541_v47, 0.0  ;;  %v1741_v49 = vmax.f32 %v1654_v40, 0.0  ;;  %v1548_v6 = vpop.f32.mrb[38].mxu1  ;;  %v1661_v58 = vpop.f32.mrb[54].mxu0 }
 0x44e   :  { %v2030_v45 = vrot.slane %v2029_v62, 2  ;;  %v2042_v51 = vmax.f32 %v2040_v39, %v2041_v59  ;;  %v7997_v9 = vpack.c.bf16 %v1738_v8, %v1730_v61  ;;  %v7999_v18 = vpack.c.bf16 %v1740_v4, %v1732_v2  ;;  %v1550_v60 = vpop.f32.mrb[39].mxu1  ;;  %v1663_v37 = vpop.f32.mrb[55].mxu0 }
 0x44f   :  { %v8001_v19 = vunpack.c.l.b16 %v1930_v5  ;;  %v8003_v34 = vmax.f32 %v2053_v57, %v2054_v10  ;;  %v8005_v16 = vpack.c.bf16 %v1739_v21, %v1731_v46  ;;  %v8007_v48 = vpack.c.bf16 %v1741_v49, %v1733_v22 }
 0x450   :  { %v2031_v26 = vmax.f32 %v2029_v62, %v2030_v45  ;;  %v8009_v13 = vmax.f32 %v2066_v12, %v2067_v33  ;;  %v1545_v42 = vadd.f32 %v1544_v41, %v7938_v43  ;;  %v1658_v20 = vadd.f32 %v1657_v50, %v7944_v7 }
 0x451   :  { %v1547_v55 = vadd.f32 %v1546_v3, %v7974_v15  ;;  %v1660_v52 = vadd.f32 %v1659_v36, %v7977_v14  ;;  %v1549_v5 = vadd.f32 %v1548_v6, %v7938_v43  ;;  %v1662_v57 = vadd.f32 %v1661_v58, %v7944_v7 }
 0x452   :  { %v2032_v39 = vrot.slane %v2031_v26, 1  ;;  %v2043_v61 = vrot.slane %v2042_v51, 2  ;;  %v1746_v53 = vmax.f32 %v1545_v42, 0.0  ;;  %v1748_v1 = vmax.f32 %v1658_v20, 0.0 }
 0x453   :  { %v1747_v2 = vmax.f32 %v1547_v55, 0.0  ;;  %v1749_v12 = vmax.f32 %v1660_v52, 0.0  ;;  %v1754_v11 = vmax.f32 %v1549_v5, 0.0  ;;  %v1756_v0 = vmax.f32 %v1662_v57, 0.0  ;;  %v1554_v10 = vpop.f32.mrb[40].mxu1  ;;  %v1667_v59 = vpop.f32.mrb[56].mxu0 }
 0x454   :  { %v2033_v47 = vmax.f32 %v2031_v26, %v2032_v39  ;;  %v1551_v40 = vadd.f32 %v1550_v60, %v7974_v15  ;;  %v1664_v41 = vadd.f32 %v1663_v37, %v7977_v14  ;;  %v1555_v50 = vadd.f32 %v1554_v10, %v7938_v43  ;;  %v1556_v62 = vpop.f32.mrb[41].mxu1  ;;  %v1669_v33 = vpop.f32.mrb[57].mxu0 }
 0x455   :  { %v1866_v8 = vpack.c.bf16 %v1754_v11, %v1746_v53  ;;  %v1868_v4 = vpack.c.bf16 %v1756_v0, %v1748_v1  ;;  %v1668_v3 = vadd.f32 %v1667_v59, %v7944_v7  ;;  %v1557_v36 = vadd.f32 %v1556_v62, %v7974_v15  ;;  %v1558_v46 = vpop.f32.mrb[42].mxu1  ;;  %v1671_v22 = vpop.f32.mrb[58].mxu0 }
 0x456   :  { %v2034_v21 = vpack.i.bf16 %v2033_v47, %v2033_v47  ;;  %v1755_v49 = vmax.f32 %v1551_v40, 0.0  ;;  %v1757_v6 = vmax.f32 %v1664_v41, 0.0  ;;  %v1762_v58 = vmax.f32 %v1555_v50, 0.0  ;;  %v1560_v45 = vpop.f32.mrb[43].mxu1  ;;  %v1673_v60 = vpop.f32.mrb[59].mxu0 }
 0x457   :  { %v1970_v37 = vmax.bf16 %v1866_v8, %v7997_v9  ;;  %v1996_v26 = vmax.bf16 %v1868_v4, %v7999_v18  ;;  %v1764_v42 = vmax.f32 %v1668_v3, 0.0  ;;  %v1763_v20 = vmax.f32 %v1557_v36, 0.0 }
 0x458   :  { %v2428_v55 = vunpack.c.l.b16 %v2034_v21  ;;  %v1867_v52 = vpack.c.bf16 %v1755_v49, %v1747_v2  ;;  %v1869_v5 = vpack.c.bf16 %v1757_v6, %v1749_v12  ;;  %v1670_v57 = vadd.f32 %v1669_v33, %v7977_v14 }
 0x459   :  { %v1559_v39 = vadd.f32 %v1558_v46, %v7938_v43  ;;  %v1672_v53 = vadd.f32 %v1671_v22, %v7944_v7  ;;  %v1561_v1 = vadd.f32 %v1560_v45, %v7974_v15  ;;  %v1674_v11 = vadd.f32 %v1673_v60, %v7977_v14 }
 0x45a   :  { %v1983_v0 = vmax.bf16 %v1867_v52, %v8005_v16  ;;  %v2009_v9 = vmax.bf16 %v1869_v5, %v8007_v48  ;;  %v1765_v18 = vmax.f32 %v1670_v57, 0.0  ;;  %v2044_v10 = vmax.f32 %v2042_v51, %v2043_v61 }
 0x45b   :  { %v1770_v59 = vmax.f32 %v1559_v39, 0.0  ;;  %v1772_v47 = vmax.f32 %v1672_v53, 0.0  ;;  %v1771_v2 = vmax.f32 %v1561_v1, 0.0  ;;  %v1773_v12 = vmax.f32 %v1674_v11, 0.0  ;;  %v1564_v40 = vpop.f32.mrb[44].mxu1  ;;  %v1677_v41 = vpop.f32.mrb[60].mxu0 }
 0x45c   :  { %v1565_v50 = vadd.f32 %v1564_v40, %v7938_v43  ;;  %v1678_v62 = vadd.f32 %v1677_v41, %v7944_v7  ;;  %v1566_v33 = vpop.f32.mrb[45].mxu1  ;;  %v1679_v8 = vpop.f32.mrb[61].mxu0  ;;  %v2045_v4 = vrot.slane %v2044_v10, 1  ;;  %v8035_v16 = vsel %vm2436_vm1, %v2428_v55, %v8001_v19 }
 0x45d   :  { %v1874_v48 = vpack.c.bf16 %v1770_v59, %v1762_v58  ;;  %v1876_v3 = vpack.c.bf16 %v1772_v47, %v1764_v42  ;;  %v1875_v51 = vpack.c.bf16 %v1771_v2, %v1763_v20  ;;  %v1877_v61 = vpack.c.bf16 %v1773_v12, %v1765_v18  ;;  %v1568_v36 = vpop.f32.mrb[46].mxu1  ;;  %v1681_v46 = vpop.f32.mrb[62].mxu0 }
 0x45e   :  { %v2069_v22 = vrot.slane %v8009_v13, 2  ;;  %v1567_v21 = vadd.f32 %v1566_v33, %v7974_v15  ;;  %v1680_v49 = vadd.f32 %v1679_v8, %v7977_v14  ;;  %v1570_v6 = vpop.f32.mrb[47].mxu1  ;;  %v1683_v45 = vpop.f32.mrb[63].mxu0  ;;  %v1943_v60 = vpack.i.bf16 %v7983_v63, %v7983_v63 }
 0x45f   :  { %v1971_v52 = vmax.bf16 %v1970_v37, %v1874_v48  ;;  %v1997_v19 = vmax.bf16 %v1996_v26, %v1876_v3  ;;  %v1984_v55 = vmax.bf16 %v1983_v0, %v1875_v51  ;;  %v2010_v58 = vmax.bf16 %v2009_v9, %v1877_v61 }
 0x460   :  { %v2056_v42 = vrot.slane %v8003_v34, 2  ;;  %v1778_v20 = vmax.f32 %v1565_v50, 0.0  ;;  %v1569_v5 = vadd.f32 %v1568_v36, %v7938_v43  ;;  %v1682_v57 = vadd.f32 %v1681_v46, %v7944_v7 }
 0x461   :  { %v1780_v39 = vmax.f32 %v1678_v62, 0.0  ;;  %v1571_v53 = vadd.f32 %v1570_v6, %v7974_v15  ;;  %v1684_v1 = vadd.f32 %v1683_v45, %v7977_v14  ;;  %v2046_v11 = vmax.f32 %v2044_v10, %v2045_v4 }
 0x462   :  { %v1779_v18 = vmax.f32 %v1567_v21, 0.0  ;;  %v1786_v59 = vmax.f32 %v1569_v5, 0.0  ;;  %v1788_v63 = vmax.f32 %v1682_v57, 0.0  ;;  %v2070_v37 = vmax.f32 %v8009_v13, %v2069_v22 }
 0x463   :  { %v1781_v26 = vmax.f32 %v1680_v49, 0.0  ;;  %v1787_v0 = vmax.f32 %v1571_v53, 0.0  ;;  %v1789_v9 = vmax.f32 %v1684_v1, 0.0  ;;  %v2047_v47 = vpack.i.bf16 %v2046_v11, %v2046_v11  ;;  %v1574_v2 = vpop.f32.mrb[48].mxu1  ;;  %v1687_v12 = vpop.f32.mrb[64].mxu0 }
 0x464   :  { %v1954_v40 = vrot.slane %v7981_v44, 1  ;;  %v1882_v41 = vpack.c.bf16 %v1786_v59, %v1778_v20  ;;  %v1884_v50 = vpack.c.bf16 %v1788_v63, %v1780_v39  ;;  %v2071_v62 = vrot.slane %v2070_v37, 1  ;;  %v1576_v33 = vpop.f32.mrb[49].mxu1  ;;  %v8049_v8 = vpop.f32.mrb[65].mxu0  ;;  %v6196_v11 = vld [vmem:[#allocation14 + $0x200] ss:$16 sps:$4 sm:$0xff]  }
 0x465   :  { %v1883_v10 = vpack.c.bf16 %v1787_v0, %v1779_v18  ;;  %v1885_v4 = vpack.c.bf16 %v1789_v9, %v1781_v26  ;;  %v2421_v48 = vunpack.c.l.b16 %v1943_v60  ;;  %v2429_v3 = vunpack.c.l.b16 %v2047_v47  ;;  %v1578_v51 = vpop.f32.mrb[50].mxu1  ;;  %v8051_v13 = vpop.f32.mrb[66].mxu0  ;;  %v6199_v18 = vld [vmem:[#allocation14 + $0x208] ss:$16 sps:$4 sm:$0xff]   ;;  %v6204_v63 = vld [vmem:[#allocation14 + $0x224] ss:$16 sps:$4 sm:$0xff]  }
 0x466   :  { %v1972_v61 = vmax.bf16 %v1971_v52, %v1882_v41  ;;  %v1998_v36 = vmax.bf16 %v1997_v19, %v1884_v50  ;;  %v1969_v46 = vpack.i.bf16 %v7985_v56, %v7985_v56  ;;  %v2072_v22 = vmax.f32 %v2070_v37, %v2071_v62  ;;  %v8055_v21 = vpop.f32.mrb[51].mxu1  ;;  %v8057_v49 = vpop.f32.mrb[67].mxu0 }
 0x467   :  { %v2057_v6 = vmax.f32 %v8003_v34, %v2056_v42  ;;  %v1985_v45 = vmax.bf16 %v1984_v55, %v1883_v10  ;;  %v8060_v20 = vmax.bf16 %v2010_v58, %v1885_v4  ;;  %v2438_v60 = vsel %vm2436_vm1, %v2429_v3, %v2421_v48  ;;  %v6207_v58 = vld [vmem:[#allocation14 + $0x22c] ss:$16 sps:$4 sm:$0xff]   ;;  %v6202_v48 = vld [vmem:[#allocation14 + $0x220] ss:$16 sps:$4 sm:$0xff]  }
 0x468   :  { %v1973_v5 = vunpack.i.l.bf16 %v1972_v61  ;;  %v1974_v57 = vunpack.i.h.bf16 %v1972_v61  ;;  %v1575_v52 = vadd.f32 %v1574_v2, %v7938_v43  ;;  %v1999_v19 = vunpack.i.l.bf16 %v1998_v36 }
 0x469   :  { %v2000_v39 = vunpack.i.h.bf16 %v1998_v36  ;;  %v1986_v53 = vunpack.i.l.bf16 %v1985_v45  ;;  %v1987_v56 = vunpack.i.h.bf16 %v1985_v45  ;;  %v2446_v1 = vpack.c.b16 %v2438_v60, %v2438_v60 }
 0x46a   :  { %v2073_v59 = vpack.i.bf16 %v2072_v22, %v2072_v22  ;;  %v2058_v37 = vrot.slane %v2057_v6, 1  ;;  %v2445_v34 = vpack.c.b16 %v8035_v16, %v8035_v16  ;;  %v2423_v55 = vunpack.c.l.b16 %v1969_v46 }
 0x46b   :  { %v1584_v42 = vpop.f32.mrb[52].mxu1  ;;  %v8066_v26 = vpop.f32.mrb[68].mxu0  ;;  %v8069_v0 = vmax.f32 %v7981_v44, %v1954_v40  ;;  %v1975_v9 = vmax.f32 %v1973_v5, %v1974_v57  ;;  %3773 = vmatprep.mubr.bf16.mxu1 %v2446_v1  ;;  %3937 = vmatprep.mubr.bf16.mxu0 %v2446_v1  ;;  %v1688_v2 = vadd.f32 %v1687_v12, %v7944_v7  ;;  %v2012_v4 = vunpack.i.l.bf16 %v8060_v20  ;;  %v6210_v57 = vld [vmem:[#allocation14 + $0x244] ss:$16 sps:$4 sm:$0xff]  }
 0x46c   :  { %v2431_v47 = vunpack.c.l.b16 %v2073_v59  ;;  %v1579_v41 = vadd.f32 %v1578_v51, %v7938_v43  ;;  %v1586_v50 = vpop.f32.mrb[53].mxu1  ;;  %v8073_v62 = vpop.f32.mrb[69].mxu0  ;;  %v2001_v16 = vmax.f32 %v1999_v19, %v2000_v39  ;;  %v1988_v10 = vmax.f32 %v1986_v53, %v1987_v56  ;;  %3774 = vmatmul.mubr.bf16.vlgmr.msra.gmra.mrb[64].mxu1 %v2445_v34  ;;  %3938 = vmatmul.mubr.bf16.vlgmr.msra.gmra.mrb[80].mxu0 %v2445_v34  ;;  %v6205_v51 = vld [vmem:[#allocation14 + $0x228] ss:$16 sps:$4 sm:$0xff]   ;;  %v6208_v53 = vld [vmem:[#allocation14 + $0x240] ss:$16 sps:$4 sm:$0xff]  }
 0x46d   :  { %v1794_v44 = vmax.f32 %v1575_v52, 0.0  ;;  %v8076_v40 = vpop.f32.mrb[54].mxu1  ;;  %v8078_v3 = vpop.f32.mrb[70].mxu0  ;;  %v2013_v61 = vunpack.i.h.bf16 %v8060_v20  ;;  %3783 = vmatpush1.bf16.msra.mxu1 %v6196_v11  ;;  %3947 = vmatpush1.bf16.msra.mxu0 %v6199_v18  ;;  %v1577_v36 = vadd.f32 %v1576_v33, %v7974_v15  ;;  %v1690_v5 = vadd.f32 %v8049_v8, %v7977_v14  ;;  %v6213_v52 = vld [vmem:[#allocation14 + $0x24c] ss:$16 sps:$4 sm:$0xff]  }
 0x46e   :  { %v2440_v12 = vsel %vm2436_vm1, %v2431_v47, %v2423_v55  ;;  %v1802_v46 = vmax.f32 %v1579_v41, 0.0  ;;  %v1590_v22 = vpop.f32.mrb[55].mxu1  ;;  %v1703_v45 = vpop.f32.mrb[71].mxu0  ;;  %3784 = vmatprep.subr.bf16.mxu1 %v6204_v63  ;;  %3948 = vmatprep.subr.bf16.mxu0 %v6207_v58  ;;  %v1956_v20 = vpack.i.bf16 %v8069_v0, %v8069_v0  ;;  %v1976_v19 = vrot.slane %v1975_v9, 4  ;;  %v6211_v59 = vld [vmem:[#allocation14 + $0x248] ss:$16 sps:$4 sm:$0xff]  }
 0x46f   :  { %v2448_v60 = vpack.c.b16 %v2440_v12, %v2440_v12  ;;  %v1692_v33 = vadd.f32 %v8051_v13, %v7944_v7  ;;  %v8091_v56 = vmax.f32 %v2057_v6, %v2058_v37  ;;  %v2002_v1 = vrot.slane %v2001_v16, 4  ;;  %v6216_v63 = vld [vmem:[#allocation14 + $0x264] ss:$16 sps:$4 sm:$0xff]   ;;  %v6219_v37 = vld [vmem:[#allocation14 + $0x26c] ss:$16 sps:$4 sm:$0xff]  }
 0x470   :  { %v8087_v39 = vpack.c.bf16 %v1802_v46, %v1794_v44  ;;  %v1989_v11 = vrot.slane %v1988_v10, 4  ;;  %v1581_v8 = vadd.f32 %v8055_v21, %v7974_v15  ;;  %v1694_v18 = vadd.f32 %v8057_v49, %v7977_v14 }
 0x471   :  { %3814 = vmatprep.mubr.bf16.mxu1 %v2448_v60  ;;  %3978 = vmatprep.mubr.bf16.mxu0 %v2448_v60  ;;  %v8097_v34 = vmax.f32 %v2012_v4, %v2013_v61  ;;  %v1796_v55 = vmax.f32 %v1688_v2, 0.0  ;;  %v1795_v13 = vmax.f32 %v1577_v36, 0.0  ;;  %v1804_v6 = vmax.f32 %v1692_v33, 0.0 }
 0x472   :  { %3785 = vmatpush1.bf16.msra.mxu1 %v6202_v48  ;;  %3949 = vmatpush1.bf16.msra.mxu0 %v6205_v51  ;;  %v1797_v58 = vmax.f32 %v1690_v5, 0.0  ;;  %v1803_v47 = vmax.f32 %v1581_v8, 0.0  ;;  %v1805_v41 = vmax.f32 %v1694_v18, 0.0  ;;  %v1585_v21 = vadd.f32 %v1584_v42, %v7938_v43  ;;  %v6225_v8 = vld [vmem:[#allocation14 + $0x28c] ss:$16 sps:$4 sm:$0xff]  }
 0x473   :  { %3786 = vmatprep.subr.bf16.mxu1 %v6210_v57  ;;  %3950 = vmatprep.subr.bf16.mxu0 %v6213_v52  ;;  %v1594_v44 = vpop.f32.mrb[56].mxu1  ;;  %v1707_v12 = vpop.f32.mrb[72].mxu0  ;;  %v8100_v49 = vmax.f32 %v1975_v9, %v1976_v19  ;;  %v8102_v46 = vpack.c.bf16 %v1804_v6, %v1796_v55  ;;  %v1698_v2 = vadd.f32 %v8066_v26, %v7944_v7  ;;  %v6214_v57 = vld [vmem:[#allocation14 + $0x260] ss:$16 sps:$4 sm:$0xff]   ;;  %v6217_v52 = vld [vmem:[#allocation14 + $0x268] ss:$16 sps:$4 sm:$0xff]  }
 0x474   :  { %v1587_v4 = vadd.f32 %v1586_v50, %v7974_v15  ;;  %v1596_v48 = vpop.f32.mrb[57].mxu1  ;;  %v1709_v61 = vpop.f32.mrb[73].mxu0  ;;  %v8107_v51 = vmax.f32 %v2001_v16, %v2002_v1  ;;  %v8109_v36 = vmax.f32 %v1988_v10, %v1989_v11  ;;  %v8111_v60 = vpack.c.bf16 %v1803_v47, %v1795_v13  ;;  %v6222_v11 = vld [vmem:[#allocation14 + $0x284] ss:$16 sps:$4 sm:$0xff]   ;;  %v6223_v47 = vld [vmem:[#allocation14 + $0x288] ss:$16 sps:$4 sm:$0xff]  }
 0x475   :  { %v8113_v42 = vpack.c.bf16 %v1805_v41, %v1797_v58  ;;  %v1598_v5 = vpop.f32.mrb[58].mxu1  ;;  %v1711_v9 = vpop.f32.mrb[74].mxu0  ;;  %v1700_v26 = vadd.f32 %v8073_v62, %v7977_v14  ;;  %v1589_v50 = vadd.f32 %v8076_v40, %v7938_v43  ;;  %v1702_v16 = vadd.f32 %v8078_v3, %v7944_v7  ;;  %v6220_v58 = vld [vmem:[#allocation14 + $0x280] ss:$16 sps:$4 sm:$0xff]   ;;  %v6228_v41 = vld [vmem:[#allocation14 + $0x2a4] ss:$16 sps:$4 sm:$0xff]  }
 0x476   :  { %3787 = vmatpush1.bf16.msra.mxu1 %v6208_v53  ;;  %3951 = vmatpush1.bf16.msra.mxu0 %v6211_v59  ;;  %v1600_v10 = vpop.f32.mrb[59].mxu1  ;;  %v1713_v19 = vpop.f32.mrb[75].mxu0  ;;  %v1810_v33 = vmax.f32 %v1585_v21, 0.0  ;;  %v1591_v1 = vadd.f32 %v1590_v22, %v7974_v15  ;;  %v1704_v53 = vadd.f32 %v1703_v45, %v7977_v14  ;;  %v1595_v18 = vadd.f32 %v1594_v44, %v7938_v43 }
 0x477   :  { %3788 = vmatprep.subr.bf16.mxu1 %v6216_v63  ;;  %3952 = vmatprep.subr.bf16.mxu0 %v6219_v37  ;;  %v1812_v62 = vmax.f32 %v1698_v2, 0.0  ;;  %v1811_v59 = vmax.f32 %v1587_v4, 0.0  ;;  %v1818_v55 = vmax.f32 %v1589_v50, 0.0  ;;  %v1820_v40 = vmax.f32 %v1702_v16, 0.0  ;;  %v6231_v4 = vld [vmem:[#allocation14 + $0x2ac] ss:$16 sps:$4 sm:$0xff]  }
 0x478   :  { %v1813_v13 = vmax.f32 %v1700_v26, 0.0  ;;  %v1819_v6 = vmax.f32 %v1591_v1, 0.0  ;;  %v1821_v3 = vmax.f32 %v1704_v53, 0.0  ;;  %v1708_v63 = vadd.f32 %v1707_v12, %v7944_v7 }
 0x479   :  { %v2015_v37 = vrot.slane %v8097_v34, 4  ;;  %v1898_v22 = vpack.c.bf16 %v1818_v55, %v1810_v33  ;;  %v1900_v45 = vpack.c.bf16 %v1820_v40, %v1812_v62  ;;  %v1597_v21 = vadd.f32 %v1596_v48, %v7974_v15 }
 0x47a   :  { %3789 = vmatpush1.bf16.msra.mxu1 %v6214_v57  ;;  %3953 = vmatpush1.bf16.msra.mxu0 %v6217_v52  ;;  %v1899_v44 = vpack.c.bf16 %v1819_v6, %v1811_v59  ;;  %v8127_v2 = vpack.c.bf16 %v1821_v3, %v1813_v13  ;;  %v1826_v26 = vmax.f32 %v1595_v18, 0.0  ;;  %v1599_v50 = vadd.f32 %v1598_v5, %v7938_v43 }
 0x47b   :  { %3790 = vmatprep.subr.bf16.mxu1 %v6222_v11  ;;  %3954 = vmatprep.subr.bf16.mxu0 %v6225_v8  ;;  %v1604_v12 = vpop.f32.mrb[60].mxu1  ;;  %v1717_v16 = vpop.f32.mrb[76].mxu0  ;;  %v2074_v57 = vmax.bf16 %v1898_v22, %v8087_v39  ;;  %v2100_v52 = vmax.bf16 %v1900_v45, %v8102_v46  ;;  %v1710_v33 = vadd.f32 %v1709_v61, %v7977_v14  ;;  %v6226_v8 = vld [vmem:[#allocation14 + $0x2a0] ss:$16 sps:$4 sm:$0xff]   ;;  %v6229_v46 = vld [vmem:[#allocation14 + $0x2a8] ss:$16 sps:$4 sm:$0xff]  }
 0x47c   :  { %v1712_v1 = vadd.f32 %v1711_v9, %v7944_v7  ;;  %v1606_v48 = vpop.f32.mrb[61].mxu1  ;;  %v1719_v53 = vpop.f32.mrb[77].mxu0  ;;  %v2087_v62 = vmax.bf16 %v1899_v44, %v8111_v60  ;;  %v2113_v11 = vmax.bf16 %v8127_v2, %v8113_v42  ;;  %v1834_v18 = vmax.f32 %v1599_v50, 0.0  ;;  %v6237_v22 = vld [vmem:[#allocation14 + $0x2cc] ss:$16 sps:$4 sm:$0xff]  }
 0x47d   :  { %v1601_v5 = vadd.f32 %v1600_v10, %v7974_v15  ;;  %v1608_v59 = vpop.f32.mrb[62].mxu1  ;;  %v1721_v55 = vpop.f32.mrb[78].mxu0  ;;  %v8139_v39 = vmax.f32 %v8097_v34, %v2015_v37  ;;  %v1828_v61 = vmax.f32 %v1708_v63, 0.0  ;;  %v1714_v40 = vadd.f32 %v1713_v19, %v7977_v14  ;;  %v6234_v10 = vld [vmem:[#allocation14 + $0x2c4] ss:$16 sps:$4 sm:$0xff]  }
 0x47e   :  { %3791 = vmatpush1.bf16.msra.mxu1 %v6220_v58  ;;  %3955 = vmatpush1.bf16.msra.mxu0 %v6223_v47  ;;  %v1836_v9 = vmax.f32 %v1712_v1, 0.0  ;;  %v1610_v60 = vpop.f32.mrb[63].mxu1  ;;  %v1723_v13 = vpop.f32.mrb[79].mxu0  ;;  %v1827_v42 = vmax.f32 %v1597_v21, 0.0  ;;  %v1906_v6 = vpack.c.bf16 %v1834_v18, %v1826_v26  ;;  %v1605_v45 = vadd.f32 %v1604_v12, %v7938_v43  ;;  %v6235_v26 = vld [vmem:[#allocation14 + $0x2c8] ss:$16 sps:$4 sm:$0xff]  }
 0x47f   :  { %3792 = vmatprep.subr.bf16.mxu1 %v6228_v41  ;;  %3956 = vmatprep.subr.bf16.mxu0 %v6231_v4  ;;  %v1835_v3 = vmax.f32 %v1601_v5, 0.0  ;;  %v1829_v34 = vmax.f32 %v1710_v33, 0.0  ;;  %v1837_v58 = vmax.f32 %v1714_v40, 0.0  ;;  %v1718_v47 = vadd.f32 %v1717_v16, %v7944_v7  ;;  %v6232_v4 = vld [vmem:[#allocation14 + $0x2c0] ss:$16 sps:$4 sm:$0xff]  }
 0x480   :  { %v1908_v37 = vpack.c.bf16 %v1836_v9, %v1828_v61  ;;  %v2075_v63 = vmax.bf16 %v2074_v57, %v1906_v6  ;;  %v1607_v19 = vadd.f32 %v1606_v48, %v7974_v15  ;;  %v1720_v2 = vadd.f32 %v1719_v53, %v7977_v14  ;;  %v6240_v16 = vld [vmem:[#allocation14 + $0x2e4] ss:$16 sps:$4 sm:$0xff]   ;;  %v6243_v57 = vld [vmem:[#allocation14 + $0x2ec] ss:$16 sps:$4 sm:$0xff]  }
 0x481   :  { %v1907_v44 = vpack.c.bf16 %v1835_v3, %v1827_v42  ;;  %v1909_v21 = vpack.c.bf16 %v1837_v58, %v1829_v34  ;;  %v1609_v50 = vadd.f32 %v1608_v59, %v7938_v43  ;;  %v2422_v12 = vunpack.c.l.b16 %v1956_v20  ;;  %v6238_v59 = vld [vmem:[#allocation14 + $0x2e0] ss:$16 sps:$4 sm:$0xff]   ;;  %v6249_v40 = vld [vmem:[#allocation14 + $0x30c] ss:$16 sps:$4 sm:$0xff]  }
 0x482   :  { %3793 = vmatpush1.bf16.msra.mxu1 %v6226_v8  ;;  %3957 = vmatpush1.bf16.msra.mxu0 %v6229_v46  ;;  %v2101_v41 = vmax.bf16 %v2100_v52, %v1908_v37  ;;  %v1842_v1 = vmax.f32 %v1605_v45, 0.0  ;;  %v1722_v48 = vadd.f32 %v1721_v55, %v7944_v7  ;;  %v1611_v53 = vadd.f32 %v1610_v60, %v7974_v15  ;;  %v6241_v46 = vld [vmem:[#allocation14 + $0x2e8] ss:$16 sps:$4 sm:$0xff]  }
 0x483   :  { %v2088_v33 = vmax.bf16 %v2087_v62, %v1907_v44  ;;  %3794 = vmatprep.subr.bf16.mxu1 %v6234_v10  ;;  %3958 = vmatprep.subr.bf16.mxu0 %v6237_v22  ;;  %v2114_v52 = vmax.bf16 %v2113_v11, %v1909_v21  ;;  %v1850_v8 = vmax.f32 %v1609_v50, 0.0  ;;  %v1724_v18 = vadd.f32 %v1723_v13, %v7977_v14  ;;  %v6246_v14 = vld [vmem:[#allocation14 + $0x304] ss:$16 sps:$4 sm:$0xff]   ;;  %v6247_v44 = vld [vmem:[#allocation14 + $0x308] ss:$16 sps:$4 sm:$0xff]  }
 0x484   :  { %v2060_v43 = vpack.i.bf16 %v8091_v56, %v8091_v56  ;;  %v1844_v5 = vmax.f32 %v1718_v47, 0.0  ;;  %v1843_v0 = vmax.f32 %v1607_v19, 0.0  ;;  %v1852_v20 = vmax.f32 %v1722_v48, 0.0  ;;  %v6244_v47 = vld [vmem:[#allocation14 + $0x300] ss:$16 sps:$4 sm:$0xff]  }
 0x485   :  { %v1851_v62 = vmax.f32 %v1611_v53, 0.0  ;;  %v1845_v61 = vmax.f32 %v1720_v2, 0.0  ;;  %v1914_v9 = vpack.c.bf16 %v1850_v8, %v1842_v1  ;;  %v1853_v7 = vmax.f32 %v1724_v18, 0.0  ;;  %v6250_v8 = vld [vmem:[#allocation14 + $0x320] ss:$16 sps:$4 sm:$0xff]  }
 0x486   :  { %3795 = vmatpush1.bf16.msra.mxu1 %v6232_v4  ;;  %3959 = vmatpush1.bf16.msra.mxu0 %v6235_v26  ;;  %v2430_v55 = vunpack.c.l.b16 %v2060_v43  ;;  %v1916_v15 = vpack.c.bf16 %v1852_v20, %v1844_v5  ;;  %v1978_v56 = vrot.slane %v8100_v49, 2  ;;  %v2004_v6 = vrot.slane %v8107_v51, 2  ;;  %v6252_v4 = vld [vmem:[#allocation14 + $0x324] ss:$16 sps:$4 sm:$0xff]   ;;  %v6255_v26 = vld [vmem:[#allocation14 + $0x32c] ss:$16 sps:$4 sm:$0xff]  }
 0x487   :  { %3796 = vmatprep.subr.bf16.mxu1 %v6240_v16  ;;  %3960 = vmatprep.subr.bf16.mxu0 %v6243_v57  ;;  %v1915_v11 = vpack.c.bf16 %v1851_v62, %v1843_v0  ;;  %v2076_v60 = vmax.bf16 %v2075_v63, %v1914_v9  ;;  %v1917_v13 = vpack.c.bf16 %v1853_v7, %v1845_v61  ;;  %v1991_v3 = vrot.slane %v8109_v36, 2  ;;  %v6253_v18 = vld [vmem:[#allocation14 + $0x328] ss:$16 sps:$4 sm:$0xff]   ;;  %v6261_v20 = vld [vmem:[#allocation14 + $0x34c] ss:$16 sps:$4 sm:$0xff]  }
 0x488   :  { %v8157_v42 = vsel %vm2436_vm1, %v2430_v55, %v2422_v12  ;;  %v2102_v10 = vmax.bf16 %v2101_v41, %v1916_v15  ;;  %v2017_v45 = vrot.slane %v8139_v39, 2  ;;  %v1979_v41 = vmax.f32 %v8100_v49, %v1978_v56  ;;  %v6258_v49 = vld [vmem:[#allocation14 + $0x344] ss:$16 sps:$4 sm:$0xff]   ;;  %v6256_v15 = vld [vmem:[#allocation14 + $0x340] ss:$16 sps:$4 sm:$0xff]  }
 0x489   :  { %v2089_v22 = vmax.bf16 %v2088_v33, %v1915_v11  ;;  %v2077_v34 = vunpack.i.l.bf16 %v2076_v60  ;;  %v2078_v37 = vunpack.i.h.bf16 %v2076_v60  ;;  %v2115_v58 = vmax.bf16 %v2114_v52, %v1917_v13  ;;  %v6259_v11 = vld [vmem:[#allocation14 + $0x348] ss:$16 sps:$4 sm:$0xff]   ;;  %v6264_v56 = vld [vmem:[#allocation14 + $0x364] ss:$16 sps:$4 sm:$0xff]   ;;  %v6267_v60 = vld [vmem:[#allocation14 + $0x36c] ss:$16 sps:$4 sm:$0xff]  }
 0x48a   :  { %3797 = vmatpush1.bf16.msra.mxu1 %v6238_v59  ;;  %3961 = vmatpush1.bf16.msra.mxu0 %v6241_v46  ;;  %v2103_v63 = vunpack.i.l.bf16 %v2102_v10  ;;  %v2104_v19 = vunpack.i.h.bf16 %v2102_v10  ;;  %v2005_v16 = vmax.f32 %v8107_v51, %v2004_v6  ;;  %v1992_v48 = vmax.f32 %v8109_v36, %v1991_v3 }
 0x48b   :  { %v2090_v2 = vunpack.i.l.bf16 %v2089_v22  ;;  %v2091_v21 = vunpack.i.h.bf16 %v2089_v22  ;;  %3798 = vmatprep.subr.bf16.mxu1 %v6246_v14  ;;  %3962 = vmatprep.subr.bf16.mxu0 %v6249_v40  ;;  %v2079_v50 = vmax.f32 %v2077_v34, %v2078_v37  ;;  %v2116_v12 = vunpack.i.l.bf16 %v2115_v58 }
 0x48c   :  { %v2117_v33 = vunpack.i.h.bf16 %v2115_v58  ;;  %v2105_v57 = vmax.f32 %v2103_v63, %v2104_v19  ;;  %v2018_v43 = vmax.f32 %v8139_v39, %v2017_v45  ;;  %v1980_v62 = vrot.slane %v1979_v41, 1  ;;  %v6262_v58 = vld [vmem:[#allocation14 + $0x360] ss:$16 sps:$4 sm:$0xff]  }
 0x48d   :  { %v2092_v1 = vmax.f32 %v2090_v2, %v2091_v21  ;;  %v2080_v53 = vrot.slane %v2079_v50, 4  ;;  %v2006_v46 = vrot.slane %v2005_v16, 1  ;;  %v1993_v9 = vrot.slane %v1992_v48, 1  ;;  %v6270_v2 = vld [vmem:[#allocation14 + $0x384] ss:$16 sps:$4 sm:$0xff]  }
 0x48e   :  { %v2118_v52 = vmax.f32 %v2116_v12, %v2117_v33  ;;  %3799 = vmatpush1.bf16.msra.mxu1 %v6244_v47  ;;  %3963 = vmatpush1.bf16.msra.mxu0 %v6247_v44  ;;  %v2106_v5 = vrot.slane %v2105_v57, 4  ;;  %v2019_v39 = vrot.slane %v2018_v43, 1  ;;  %v1981_v3 = vmax.f32 %v1979_v41, %v1980_v62  ;;  %v6265_v47 = vld [vmem:[#allocation14 + $0x368] ss:$16 sps:$4 sm:$0xff]   ;;  %v6273_v21 = vld [vmem:[#allocation14 + $0x38c] ss:$16 sps:$4 sm:$0xff]  }
 0x48f   :  { %v2093_v0 = vrot.slane %v2092_v1, 4  ;;  %3800 = vmatprep.subr.bf16.mxu1 %v6252_v4  ;;  %3964 = vmatprep.subr.bf16.mxu0 %v6255_v26  ;;  %v2081_v51 = vmax.f32 %v2079_v50, %v2080_v53  ;;  %v1994_v22 = vmax.f32 %v1992_v48, %v1993_v9  ;;  %v2007_v34 = vmax.f32 %v2005_v16, %v2006_v46  ;;  %v6271_v48 = vld [vmem:[#allocation14 + $0x388] ss:$16 sps:$4 sm:$0xff]  }
 0x490   :  { %v2119_v59 = vrot.slane %v2118_v52, 4  ;;  %v2107_v61 = vmax.f32 %v2105_v57, %v2106_v5  ;;  %v2020_v44 = vmax.f32 %v2018_v43, %v2019_v39  ;;  %v1982_v26 = vpack.i.bf16 %v1981_v3, %v1981_v3  ;;  %v6279_v43 = vld [vmem:[#allocation14 + $0x3ac] ss:$16 sps:$4 sm:$0xff]   ;;  %v6277_v9 = vld [vmem:[#allocation14 + $0x3a8] ss:$16 sps:$4 sm:$0xff]  }
 0x491   :  { %v2094_v36 = vmax.f32 %v2092_v1, %v2093_v0  ;;  %v2082_v7 = vrot.slane %v2081_v51, 2  ;;  %v1995_v12 = vpack.i.bf16 %v1994_v22, %v1994_v22  ;;  %v2008_v57 = vpack.i.bf16 %v2007_v34, %v2007_v34  ;;  %v6268_v1 = vld [vmem:[#allocation14 + $0x380] ss:$16 sps:$4 sm:$0xff]   ;;  %v6285_v39 = vld [vmem:[#allocation14 + $0x3cc] ss:$16 sps:$4 sm:$0xff]  }
 0x492   :  { %v2120_v55 = vmax.f32 %v2118_v52, %v2119_v59  ;;  %3801 = vmatpush1.bf16.msra.mxu1 %v6250_v8  ;;  %3965 = vmatpush1.bf16.msra.mxu0 %v6253_v18  ;;  %v2108_v14 = vrot.slane %v2107_v61, 2  ;;  %v2021_v52 = vpack.i.bf16 %v2020_v44, %v2020_v44  ;;  %v6276_v18 = vld [vmem:[#allocation14 + $0x3a4] ss:$16 sps:$4 sm:$0xff]   ;;  %v6291_v3 = vld [vmem:[#allocation14 + $0x3ec] ss:$16 sps:$4 sm:$0xff]  }
 0x493   :  { %v2095_v40 = vrot.slane %v2094_v36, 2  ;;  %3802 = vmatprep.subr.bf16.mxu1 %v6258_v49  ;;  %3966 = vmatprep.subr.bf16.mxu0 %v6261_v20  ;;  %v2083_v13 = vmax.f32 %v2081_v51, %v2082_v7  ;;  %v2424_v49 = vunpack.c.l.b16 %v1982_v26  ;;  %v2425_v51 = vunpack.c.l.b16 %v1995_v12  ;;  %v6289_v22 = vld [vmem:[#allocation14 + $0x3e8] ss:$16 sps:$4 sm:$0xff]   ;;  %v6297_v34 = vld [vmem:[#allocation14 + $0x40c] ss:$16 sps:$4 sm:$0xff]  }
 0x494   :  { %v2121_v6 = vrot.slane %v2120_v55, 2  ;;  %v2109_v10 = vmax.f32 %v2107_v61, %v2108_v14  ;;  %v2426_v46 = vunpack.c.l.b16 %v2008_v57  ;;  %v6295_v44 = vld [vmem:[#allocation14 + $0x408] ss:$16 sps:$4 sm:$0xff]   ;;  %v6309_v26 = vld [vmem:[#allocation14 + $0x44c] ss:$16 sps:$4 sm:$0xff]  }
 0x495   :  { %v2096_v45 = vmax.f32 %v2094_v36, %v2095_v40  ;;  %v2084_v37 = vrot.slane %v2083_v13, 1  ;;  %v6274_v36 = vld [vmem:[#allocation14 + $0x3a0] ss:$16 sps:$4 sm:$0xff]   ;;  %v6315_v12 = vld [vmem:[#allocation14 + $0x46c] ss:$16 sps:$4 sm:$0xff]  }
 0x496   :  { %3803 = vmatpush1.bf16.msra.mxu1 %v6256_v15  ;;  %3967 = vmatpush1.bf16.msra.mxu0 %v6259_v11  ;;  %v2122_v63 = vmax.f32 %v2120_v55, %v2121_v6  ;;  %v2110_v19 = vrot.slane %v2109_v10, 1  ;;  %v2427_v55 = vunpack.c.l.b16 %v2021_v52  ;;  %v6282_v11 = vld [vmem:[#allocation14 + $0x3c4] ss:$16 sps:$4 sm:$0xff]   ;;  %v6313_v57 = vld [vmem:[#allocation14 + $0x468] ss:$16 sps:$4 sm:$0xff]  }
 0x497   :  { %3804 = vmatprep.subr.bf16.mxu1 %v6264_v56  ;;  %3968 = vmatprep.subr.bf16.mxu0 %v6267_v60  ;;  %v2097_v4 = vrot.slane %v2096_v45, 1  ;;  %v2085_v50 = vmax.f32 %v2083_v13, %v2084_v37  ;;  %v6280_v60 = vld [vmem:[#allocation14 + $0x3c0] ss:$16 sps:$4 sm:$0xff]   ;;  %v6283_v13 = vld [vmem:[#allocation14 + $0x3c8] ss:$16 sps:$4 sm:$0xff]  }
 0x498   :  { %v2123_v41 = vrot.slane %v2122_v63, 1  ;;  %v2111_v16 = vmax.f32 %v2109_v10, %v2110_v19  ;;  %v6288_v6 = vld [vmem:[#allocation14 + $0x3e4] ss:$16 sps:$4 sm:$0xff]   ;;  %v6286_v10 = vld [vmem:[#allocation14 + $0x3e0] ss:$16 sps:$4 sm:$0xff]  }
 0x499   :  { %v2098_v33 = vmax.f32 %v2096_v45, %v2097_v4  ;;  %v2086_v53 = vpack.i.bf16 %v2085_v50, %v2085_v50  ;;  %v6294_v45 = vld [vmem:[#allocation14 + $0x404] ss:$16 sps:$4 sm:$0xff]   ;;  %v6292_v37 = vld [vmem:[#allocation14 + $0x400] ss:$16 sps:$4 sm:$0xff]   ;;  %v6303_v19 = vld [vmem:[#allocation14 + $0x42c] ss:$16 sps:$4 sm:$0xff]  }
 0x49a   :  { %3805 = vmatpush1.bf16.msra.mxu1 %v6262_v58  ;;  %3969 = vmatpush1.bf16.msra.mxu0 %v6265_v47  ;;  %v2124_v8 = vmax.f32 %v2122_v63, %v2123_v41  ;;  %v2112_v0 = vpack.i.bf16 %v2111_v16, %v2111_v16  ;;  %v2447_v47 = vpack.c.b16 %v8157_v42, %v8157_v42  ;;  %v6300_v63 = vld [vmem:[#allocation14 + $0x424] ss:$16 sps:$4 sm:$0xff]   ;;  %v6304_v50 = vld [vmem:[#allocation14 + $0x440] ss:$16 sps:$4 sm:$0xff]   ;;  %v6307_v42 = vld [vmem:[#allocation14 + $0x448] ss:$16 sps:$4 sm:$0xff]  }
 0x49b   :  { %3806 = vmatprep.subr.bf16.mxu1 %v6270_v2  ;;  %3970 = vmatprep.subr.bf16.mxu0 %v6273_v21  ;;  %v2099_v5 = vpack.i.bf16 %v2098_v33, %v2098_v33  ;;  %v2432_v20 = vunpack.c.l.b16 %v2086_v53  ;;  %v6298_v2 = vld [vmem:[#allocation14 + $0x420] ss:$16 sps:$4 sm:$0xff]   ;;  %v6301_v21 = vld [vmem:[#allocation14 + $0x428] ss:$16 sps:$4 sm:$0xff]   ;;  %v6306_v4 = vld [vmem:[#allocation14 + $0x444] ss:$16 sps:$4 sm:$0xff]  }
 0x49c   :  { %v2125_v62 = vpack.i.bf16 %v2124_v8, %v2124_v8  ;;  %v2434_v61 = vunpack.c.l.b16 %v2112_v0  ;;  %v6312_v41 = vld [vmem:[#allocation14 + $0x464] ss:$16 sps:$4 sm:$0xff]   ;;  %v6310_v33 = vld [vmem:[#allocation14 + $0x460] ss:$16 sps:$4 sm:$0xff]   ;;  %v6319_v53 = vld [vmem:[#allocation14 + $0x488] ss:$16 sps:$4 sm:$0xff]  }
 0x49d   :  { %v2433_v59 = vunpack.c.l.b16 %v2099_v5  ;;  %v8167_v7 = vsel %vm2436_vm1, %v2432_v20, %v2424_v49  ;;  %v6318_v16 = vld [vmem:[#allocation14 + $0x484] ss:$16 sps:$4 sm:$0xff]   ;;  %v6327_v8 = vld [vmem:[#allocation14 + $0x4ac] ss:$16 sps:$4 sm:$0xff]   ;;  %v6328_v49 = vld [vmem:[#allocation14 + $0x4c0] ss:$16 sps:$4 sm:$0xff]  }
 0x49e   :  { %3807 = vmatpush1.bf16.msra.mxu1 %v6268_v1  ;;  %3971 = vmatpush1.bf16.msra.mxu0 %v6271_v48  ;;  %v2435_v15 = vunpack.c.l.b16 %v2125_v62  ;;  %v8171_v40 = vsel %vm2436_vm1, %v2434_v61, %v2426_v46  ;;  %v6321_v1 = vld [vmem:[#allocation14 + $0x48c] ss:$16 sps:$4 sm:$0xff]   ;;  %v6316_v48 = vld [vmem:[#allocation14 + $0x480] ss:$16 sps:$4 sm:$0xff]   ;;  %v6324_v52 = vld [vmem:[#allocation14 + $0x4a4] ss:$16 sps:$4 sm:$0xff]  }
 0x49f   :  { %3808 = vmatprep.subr.bf16.mxu1 %v6276_v18  ;;  %3972 = vmatprep.subr.bf16.mxu0 %v6279_v43  ;;  %v2442_v14 = vsel %vm2436_vm1, %v2433_v59, %v2425_v51  ;;  %v6322_v18 = vld [vmem:[#allocation14 + $0x4a0] ss:$16 sps:$4 sm:$0xff]   ;;  %v6325_v43 = vld [vmem:[#allocation14 + $0x4a8] ss:$16 sps:$4 sm:$0xff]   ;;  %v6330_v5 = vld [vmem:[#allocation14 + $0x4c4] ss:$16 sps:$4 sm:$0xff]  }
 0x4a0   :  { %v8174_v56 = vsel %vm2436_vm1, %v2435_v15, %v2427_v55  ;;  %v2450_v58 = vpack.c.b16 %v2442_v14, %v2442_v14  ;;  %v6333_v0 = vld [vmem:[#allocation14 + $0x4cc] ss:$16 sps:$4 sm:$0xff]   ;;  %v6331_v20 = vld [vmem:[#allocation14 + $0x4c8] ss:$16 sps:$4 sm:$0xff]   ;;  %v6336_v62 = vld [vmem:[#allocation14 + $0x4e4] ss:$16 sps:$4 sm:$0xff]  }
 0x4a1   :  { %v6339_v51 = vld [vmem:[#allocation14 + $0x4ec] ss:$16 sps:$4 sm:$0xff]   ;;  %v6334_v59 = vld [vmem:[#allocation14 + $0x4e0] ss:$16 sps:$4 sm:$0xff]   ;;  %v6337_v46 = vld [vmem:[#allocation14 + $0x4e8] ss:$16 sps:$4 sm:$0xff]  }
 0x4a2   :  { %3809 = vmatpush1.bf16.msra.mxu1 %v6274_v36  ;;  %3973 = vmatpush1.bf16.msra.mxu0 %v6277_v9  ;;  %v6342_v61 = vld [vmem:[#allocation14 + $0x504] ss:$16 sps:$4 sm:$0xff]   ;;  %v6345_v36 = vld [vmem:[#allocation14 + $0x50c] ss:$16 sps:$4 sm:$0xff]   ;;  %v6340_v9 = vld [vmem:[#allocation14 + $0x500] ss:$16 sps:$4 sm:$0xff]  }
 0x4a3   :  { %3810 = vmatprep.subr.bf16.mxu1 %v6282_v11  ;;  %3974 = vmatprep.subr.bf16.mxu0 %v6285_v39  ;;  %v6343_v55 = vld [vmem:[#allocation14 + $0x508] ss:$16 sps:$4 sm:$0xff]   ;;  %v6348_v15 = vld [vmem:[#allocation14 + $0x524] ss:$16 sps:$4 sm:$0xff]   ;;  %v6351_v11 = vld [vmem:[#allocation14 + $0x52c] ss:$16 sps:$4 sm:$0xff]  }
 0x4a4   :  { %v6346_v39 = vld [vmem:[#allocation14 + $0x520] ss:$16 sps:$4 sm:$0xff]   ;;  %v6349_v14 = vld [vmem:[#allocation14 + $0x528] ss:$16 sps:$4 sm:$0xff]  }
 0x4a6   :  { %3811 = vmatpush1.bf16.msra.mxu1 %v6280_v60  ;;  %3975 = vmatpush1.bf16.msra.mxu0 %v6283_v13  ;;  %v6354_v60 = vld [vmem:[#allocation14 + $0x544] ss:$16 sps:$4 sm:$0xff]   ;;  %v6357_v13 = vld [vmem:[#allocation14 + $0x54c] ss:$16 sps:$4 sm:$0xff]  }
 0x4a7   :  { %3812 = vmatprep.subr.bf16.mxu1 %v6288_v6  ;;  %3976 = vmatprep.subr.bf16.mxu0 %v6291_v3  ;;  %v6352_v6 = vld [vmem:[#allocation14 + $0x540] ss:$16 sps:$4 sm:$0xff]   ;;  %v6355_v3 = vld [vmem:[#allocation14 + $0x548] ss:$16 sps:$4 sm:$0xff]  }
 0x4aa   :  { %3813 = vmatpush1.bf16.msra.mxu1 %v6286_v10  ;;  %3977 = vmatpush1.bf16.msra.mxu0 %v6289_v22  ;;  %v6360_v10 = vld [vmem:[#allocation14 + $0x564] ss:$16 sps:$4 sm:$0xff]   ;;  %v6363_v22 = vld [vmem:[#allocation14 + $0x56c] ss:$16 sps:$4 sm:$0xff]  }
 0x4ab   :  { %3823 = vmatprep.subr.bf16.mxu1 %v6294_v45  ;;  %3987 = vmatprep.subr.bf16.mxu0 %v6297_v34  ;;  %v6358_v45 = vld [vmem:[#allocation14 + $0x560] ss:$16 sps:$4 sm:$0xff]   ;;  %v6361_v34 = vld [vmem:[#allocation14 + $0x568] ss:$16 sps:$4 sm:$0xff]  }
 0x4ad   :  { %3815 = vmatmul.mubr.bf16.vlgmr.msra.gmra.mrb[64].mxu1 %v2447_v47  ;;  %3979 = vmatmul.mubr.bf16.vlgmr.msra.gmra.mrb[80].mxu0 %v2447_v47  ;;  %v6364_v47 = vld [vmem:[#allocation14 + $0x580] ss:$16 sps:$4 sm:$0xff]  }
 0x4ae   :  { %3824 = vmatpush1.bf16.msra.mxu1 %v6292_v37  ;;  %3855 = vmatprep.mubr.bf16.mxu1 %v2450_v58  ;;  %v6366_v37 = vld [vmem:[#allocation14 + $0x584] ss:$16 sps:$4 sm:$0xff]  }
 0x4af   :  { %3988 = vmatpush1.bf16.msra.mxu0 %v6295_v44  ;;  %4019 = vmatprep.mubr.bf16.mxu0 %v2450_v58  ;;  %v6369_v58 = vld [vmem:[#allocation14 + $0x58c] ss:$16 sps:$4 sm:$0xff]   ;;  %v6367_v44 = vld [vmem:[#allocation14 + $0x588] ss:$16 sps:$4 sm:$0xff]  }
 0x4b0   :  { %3825 = vmatprep.subr.bf16.mxu1 %v6300_v63  ;;  %3989 = vmatprep.subr.bf16.mxu0 %v6303_v19  ;;  %v6372_v63 = vld [vmem:[#allocation14 + $0x5a4] ss:$16 sps:$4 sm:$0xff]   ;;  %v6375_v19 = vld [vmem:[#allocation14 + $0x5ac] ss:$16 sps:$4 sm:$0xff]  }
 0x4b2   :  { %3826 = vmatpush1.bf16.msra.mxu1 %v6298_v2  ;;  %v6370_v2 = vld [vmem:[#allocation14 + $0x5a0] ss:$16 sps:$4 sm:$0xff]  }
 0x4b3   :  { %3990 = vmatpush1.bf16.msra.mxu0 %v6301_v21  ;;  %3827 = vmatprep.subr.bf16.mxu1 %v6306_v4  ;;  %v6373_v21 = vld [vmem:[#allocation14 + $0x5a8] ss:$16 sps:$4 sm:$0xff]   ;;  %v6378_v4 = vld [vmem:[#allocation14 + $0x5c4] ss:$16 sps:$4 sm:$0xff]  }
 0x4b4   :  { %3991 = vmatprep.subr.bf16.mxu0 %v6309_v26  ;;  %v6381_v26 = vld [vmem:[#allocation14 + $0x5cc] ss:$16 sps:$4 sm:$0xff]  }
 0x4b6   :  { %3828 = vmatpush1.bf16.msra.mxu1 %v6304_v50  ;;  %v6376_v50 = vld [vmem:[#allocation14 + $0x5c0] ss:$16 sps:$4 sm:$0xff]  }
 0x4b7   :  { %3992 = vmatpush1.bf16.msra.mxu0 %v6307_v42  ;;  %3829 = vmatprep.subr.bf16.mxu1 %v6312_v41  ;;  %v6379_v42 = vld [vmem:[#allocation14 + $0x5c8] ss:$16 sps:$4 sm:$0xff]   ;;  %v6384_v41 = vld [vmem:[#allocation14 + $0x5e4] ss:$16 sps:$4 sm:$0xff]  }
 0x4b8   :  { %3993 = vmatprep.subr.bf16.mxu0 %v6315_v12  ;;  %v6387_v12 = vld [vmem:[#allocation14 + $0x5ec] ss:$16 sps:$4 sm:$0xff]  }
 0x4ba   :  { %3830 = vmatpush1.bf16.msra.mxu1 %v6310_v33  ;;  %v6382_v33 = vld [vmem:[#allocation14 + $0x5e0] ss:$16 sps:$4 sm:$0xff]  }
 0x4bb   :  { %3994 = vmatpush1.bf16.msra.mxu0 %v6313_v57  ;;  %3831 = vmatprep.subr.bf16.mxu1 %v6318_v16  ;;  %v6385_v57 = vld [vmem:[#allocation14 + $0x5e8] ss:$16 sps:$4 sm:$0xff]   ;;  %v6390_v16 = vld [vmem:[#allocation14 + $0x604] ss:$16 sps:$4 sm:$0xff]  }
 0x4bc   :  { %3995 = vmatprep.subr.bf16.mxu0 %v6321_v1  ;;  %v6393_v1 = vld [vmem:[#allocation14 + $0x60c] ss:$16 sps:$4 sm:$0xff]  }
 0x4be   :  { %3832 = vmatpush1.bf16.msra.mxu1 %v6316_v48  ;;  %v6388_v48 = vld [vmem:[#allocation14 + $0x600] ss:$16 sps:$4 sm:$0xff]  }
 0x4bf   :  { %3996 = vmatpush1.bf16.msra.mxu0 %v6319_v53  ;;  %3833 = vmatprep.subr.bf16.mxu1 %v6324_v52  ;;  %v2449_v53 = vpack.c.b16 %v8167_v7, %v8167_v7  ;;  %v6391_v52 = vld [vmem:[#allocation14 + $0x608] ss:$16 sps:$4 sm:$0xff]   ;;  %v6400_v7 = vld [vmem:[#allocation14 + $0x640] ss:$16 sps:$4 sm:$0xff]  }
 0x4c0   :  { %3997 = vmatprep.subr.bf16.mxu0 %v6327_v8  ;;  %v6396_v8 = vld [vmem:[#allocation14 + $0x624] ss:$16 sps:$4 sm:$0xff]  }
 0x4c2   :  { %3834 = vmatpush1.bf16.msra.mxu1 %v6322_v18  ;;  %v2452_v18 = vpack.c.b16 %v8174_v56, %v8174_v56  ;;  %v6411_v56 = vld [vmem:[#allocation14 + $0x66c] ss:$16 sps:$4 sm:$0xff]  }
 0x4c3   :  { %3998 = vmatpush1.bf16.msra.mxu0 %v6325_v43  ;;  %3835 = vmatprep.subr.bf16.mxu1 %v6330_v5  ;;  %v6399_v43 = vld [vmem:[#allocation14 + $0x62c] ss:$16 sps:$4 sm:$0xff]   ;;  %v6394_v5 = vld [vmem:[#allocation14 + $0x620] ss:$16 sps:$4 sm:$0xff]  }
 0x4c4   :  { %3999 = vmatprep.subr.bf16.mxu0 %v6333_v0  ;;  %v6397_v0 = vld [vmem:[#allocation14 + $0x628] ss:$16 sps:$4 sm:$0xff]  }
 0x4c6   :  { %3836 = vmatpush1.bf16.msra.mxu1 %v6328_v49  ;;  %v6402_v49 = vld [vmem:[#allocation14 + $0x644] ss:$16 sps:$4 sm:$0xff]  }
 0x4c7   :  { %4000 = vmatpush1.bf16.msra.mxu0 %v6331_v20  ;;  %3837 = vmatprep.subr.bf16.mxu1 %v6336_v62  ;;  %v6405_v20 = vld [vmem:[#allocation14 + $0x64c] ss:$16 sps:$4 sm:$0xff]   ;;  %v6403_v62 = vld [vmem:[#allocation14 + $0x648] ss:$16 sps:$4 sm:$0xff]  }
 0x4c8   :  { %4001 = vmatprep.subr.bf16.mxu0 %v6339_v51  ;;  %v6408_v51 = vld [vmem:[#allocation14 + $0x664] ss:$16 sps:$4 sm:$0xff]  }
 0x4ca   :  { %3838 = vmatpush1.bf16.msra.mxu1 %v6334_v59  ;;  %v6406_v59 = vld [vmem:[#allocation14 + $0x660] ss:$16 sps:$4 sm:$0xff]  }
 0x4cb   :  { %4002 = vmatpush1.bf16.msra.mxu0 %v6337_v46  ;;  %3839 = vmatprep.subr.bf16.mxu1 %v6342_v61  ;;  %v6409_v46 = vld [vmem:[#allocation14 + $0x668] ss:$16 sps:$4 sm:$0xff]   ;;  %v6414_v61 = vld [vmem:[#allocation14 + $0x684] ss:$16 sps:$4 sm:$0xff]  }
 0x4cc   :  { %4003 = vmatprep.subr.bf16.mxu0 %v6345_v36  ;;  %v6417_v36 = vld [vmem:[#allocation14 + $0x68c] ss:$16 sps:$4 sm:$0xff]  }
 0x4ce   :  { %3840 = vmatpush1.bf16.msra.mxu1 %v6340_v9  ;;  %v6412_v9 = vld [vmem:[#allocation14 + $0x680] ss:$16 sps:$4 sm:$0xff]  }
 0x4cf   :  { %4004 = vmatpush1.bf16.msra.mxu0 %v6343_v55  ;;  %3841 = vmatprep.subr.bf16.mxu1 %v6348_v15  ;;  %v6415_v55 = vld [vmem:[#allocation14 + $0x688] ss:$16 sps:$4 sm:$0xff]   ;;  %v6420_v15 = vld [vmem:[#allocation14 + $0x6a4] ss:$16 sps:$4 sm:$0xff]  }
 0x4d0   :  { %4005 = vmatprep.subr.bf16.mxu0 %v6351_v11  ;;  %v6423_v11 = vld [vmem:[#allocation14 + $0x6ac] ss:$16 sps:$4 sm:$0xff]  }
 0x4d2   :  { %3842 = vmatpush1.bf16.msra.mxu1 %v6346_v39  ;;  %v6418_v39 = vld [vmem:[#allocation14 + $0x6a0] ss:$16 sps:$4 sm:$0xff]  }
 0x4d3   :  { %4006 = vmatpush1.bf16.msra.mxu0 %v6349_v14  ;;  %3843 = vmatprep.subr.bf16.mxu1 %v6354_v60  ;;  %v6421_v14 = vld [vmem:[#allocation14 + $0x6a8] ss:$16 sps:$4 sm:$0xff]   ;;  %v6426_v60 = vld [vmem:[#allocation14 + $0x6c4] ss:$16 sps:$4 sm:$0xff]  }
 0x4d4   :  { %4007 = vmatprep.subr.bf16.mxu0 %v6357_v13  ;;  %v6429_v13 = vld [vmem:[#allocation14 + $0x6cc] ss:$16 sps:$4 sm:$0xff]  }
 0x4d6   :  { %3844 = vmatpush1.bf16.msra.mxu1 %v6352_v6  ;;  %v6424_v6 = vld [vmem:[#allocation14 + $0x6c0] ss:$16 sps:$4 sm:$0xff]  }
 0x4d7   :  { %4008 = vmatpush1.bf16.msra.mxu0 %v6355_v3  ;;  %3845 = vmatprep.subr.bf16.mxu1 %v6360_v10  ;;  %v6427_v3 = vld [vmem:[#allocation14 + $0x6c8] ss:$16 sps:$4 sm:$0xff]   ;;  %v6432_v10 = vld [vmem:[#allocation14 + $0x6e4] ss:$16 sps:$4 sm:$0xff]  }
 0x4d8   :  { %4009 = vmatprep.subr.bf16.mxu0 %v6363_v22  ;;  %v6435_v22 = vld [vmem:[#allocation14 + $0x6ec] ss:$16 sps:$4 sm:$0xff]  }
 0x4da   :  { %3846 = vmatpush1.bf16.msra.mxu1 %v6358_v45  ;;  %v6430_v45 = vld [vmem:[#allocation14 + $0x6e0] ss:$16 sps:$4 sm:$0xff]  }
 0x4db   :  { %4010 = vmatpush1.bf16.msra.mxu0 %v6361_v34  ;;  %3847 = vmatprep.subr.bf16.mxu1 %v6366_v37  ;;  %v6433_v34 = vld [vmem:[#allocation14 + $0x6e8] ss:$16 sps:$4 sm:$0xff]   ;;  %v6438_v37 = vld [vmem:[#allocation14 + $0x704] ss:$16 sps:$4 sm:$0xff]  }
 0x4dc   :  { %4011 = vmatprep.subr.bf16.mxu0 %v6369_v58  ;;  %v6441_v58 = vld [vmem:[#allocation14 + $0x70c] ss:$16 sps:$4 sm:$0xff]  }
 0x4de   :  { %3848 = vmatpush1.bf16.msra.mxu1 %v6364_v47  ;;  %v6436_v47 = vld [vmem:[#allocation14 + $0x700] ss:$16 sps:$4 sm:$0xff]  }
 0x4df   :  { %4012 = vmatpush1.bf16.msra.mxu0 %v6367_v44  ;;  %3849 = vmatprep.subr.bf16.mxu1 %v6372_v63  ;;  %v6439_v44 = vld [vmem:[#allocation14 + $0x708] ss:$16 sps:$4 sm:$0xff]   ;;  %v6444_v63 = vld [vmem:[#allocation14 + $0x724] ss:$16 sps:$4 sm:$0xff]  }
 0x4e0   :  { %4013 = vmatprep.subr.bf16.mxu0 %v6375_v19  ;;  %v6447_v19 = vld [vmem:[#allocation14 + $0x72c] ss:$16 sps:$4 sm:$0xff]  }
 0x4e2   :  { %3850 = vmatpush1.bf16.msra.mxu1 %v6370_v2  ;;  %v6442_v2 = vld [vmem:[#allocation14 + $0x720] ss:$16 sps:$4 sm:$0xff]  }
 0x4e3   :  { %4014 = vmatpush1.bf16.msra.mxu0 %v6373_v21  ;;  %3851 = vmatprep.subr.bf16.mxu1 %v6378_v4  ;;  %v6445_v21 = vld [vmem:[#allocation14 + $0x728] ss:$16 sps:$4 sm:$0xff]   ;;  %v6450_v4 = vld [vmem:[#allocation14 + $0x744] ss:$16 sps:$4 sm:$0xff]  }
 0x4e4   :  { %4015 = vmatprep.subr.bf16.mxu0 %v6381_v26  ;;  %v6453_v26 = vld [vmem:[#allocation14 + $0x74c] ss:$16 sps:$4 sm:$0xff]  }
 0x4e6   :  { %3852 = vmatpush1.bf16.msra.mxu1 %v6376_v50  ;;  %v6448_v50 = vld [vmem:[#allocation14 + $0x740] ss:$16 sps:$4 sm:$0xff]  }
 0x4e7   :  { %4016 = vmatpush1.bf16.msra.mxu0 %v6379_v42  ;;  %3853 = vmatprep.subr.bf16.mxu1 %v6384_v41  ;;  %v6451_v42 = vld [vmem:[#allocation14 + $0x748] ss:$16 sps:$4 sm:$0xff]   ;;  %v6456_v41 = vld [vmem:[#allocation14 + $0x764] ss:$16 sps:$4 sm:$0xff]  }
 0x4e8   :  { %4017 = vmatprep.subr.bf16.mxu0 %v6387_v12  ;;  %v6459_v12 = vld [vmem:[#allocation14 + $0x76c] ss:$16 sps:$4 sm:$0xff]  }
 0x4ea   :  { %3854 = vmatpush1.bf16.msra.mxu1 %v6382_v33  ;;  %v6454_v33 = vld [vmem:[#allocation14 + $0x760] ss:$16 sps:$4 sm:$0xff]  }
 0x4eb   :  { %4018 = vmatpush1.bf16.msra.mxu0 %v6385_v57  ;;  %3864 = vmatprep.subr.bf16.mxu1 %v6390_v16  ;;  %v6457_v57 = vld [vmem:[#allocation14 + $0x768] ss:$16 sps:$4 sm:$0xff]   ;;  %v6462_v16 = vld [vmem:[#allocation14 + $0x784] ss:$16 sps:$4 sm:$0xff]  }
 0x4ec   :  { %4028 = vmatprep.subr.bf16.mxu0 %v6393_v1  ;;  %v6465_v1 = vld [vmem:[#allocation14 + $0x78c] ss:$16 sps:$4 sm:$0xff]  }
 0x4ed   :  { %3856 = vmatmul.mubr.bf16.vlgmr.msra.gmra.mrb[64].mxu1 %v2449_v53 }
 0x4ee   :  { %4020 = vmatmul.mubr.bf16.vlgmr.msra.gmra.mrb[80].mxu0 %v2449_v53  ;;  %3865 = vmatpush1.bf16.msra.mxu1 %v6388_v48  ;;  %v6460_v48 = vld [vmem:[#allocation14 + $0x780] ss:$16 sps:$4 sm:$0xff]   ;;  %v6463_v53 = vld [vmem:[#allocation14 + $0x788] ss:$16 sps:$4 sm:$0xff]  }
 0x4ef   :  { %3896 = vmatprep.mubr.bf16.mxu1 %v2452_v18  ;;  %4029 = vmatpush1.bf16.msra.mxu0 %v6391_v52  ;;  %v6468_v52 = vld [vmem:[#allocation14 + $0x7a4] ss:$16 sps:$4 sm:$0xff]  }
 0x4f0   :  { %4060 = vmatprep.mubr.bf16.mxu0 %v2452_v18  ;;  %3866 = vmatprep.subr.bf16.mxu1 %v6396_v8  ;;  %v6471_v8 = vld [vmem:[#allocation14 + $0x7ac] ss:$16 sps:$4 sm:$0xff]   ;;  %v6466_v18 = vld [vmem:[#allocation14 + $0x7a0] ss:$16 sps:$4 sm:$0xff]  }
 0x4f1   :  { %4030 = vmatprep.subr.bf16.mxu0 %v6399_v43  ;;  %v6469_v43 = vld [vmem:[#allocation14 + $0x7a8] ss:$16 sps:$4 sm:$0xff]  }
 0x4f2   :  { %3867 = vmatpush1.bf16.msra.mxu1 %v6394_v5  ;;  %v6474_v5 = vld [vmem:[#allocation14 + $0x7c4] ss:$16 sps:$4 sm:$0xff]  }
 0x4f3   :  { %4031 = vmatpush1.bf16.msra.mxu0 %v6397_v0  ;;  %3868 = vmatprep.subr.bf16.mxu1 %v6402_v49  ;;  %v6477_v0 = vld [vmem:[#allocation14 + $0x7cc] ss:$16 sps:$4 sm:$0xff]   ;;  %v6472_v49 = vld [vmem:[#allocation14 + $0x7c0] ss:$16 sps:$4 sm:$0xff]  }
 0x4f4   :  { %4032 = vmatprep.subr.bf16.mxu0 %v6405_v20  ;;  %v6475_v20 = vld [vmem:[#allocation14 + $0x7c8] ss:$16 sps:$4 sm:$0xff]  }
 0x4f6   :  { %3869 = vmatpush1.bf16.msra.mxu1 %v6400_v7  ;;  %v6480_v7 = vld [vmem:[#allocation14 + $0x7e4] ss:$16 sps:$4 sm:$0xff]  }
 0x4f7   :  { %4033 = vmatpush1.bf16.msra.mxu0 %v6403_v62  ;;  %3870 = vmatprep.subr.bf16.mxu1 %v6408_v51  ;;  %v6483_v62 = vld [vmem:[#allocation14 + $0x7ec] ss:$16 sps:$4 sm:$0xff]   ;;  %v6478_v51 = vld [vmem:[#allocation14 + $0x7e0] ss:$16 sps:$4 sm:$0xff]  }
 0x4f8   :  { %4034 = vmatprep.subr.bf16.mxu0 %v6411_v56  ;;  %v6481_v56 = vld [vmem:[#allocation14 + $0x7e8] ss:$16 sps:$4 sm:$0xff]  }
 0x4fa   :  { %3871 = vmatpush1.bf16.msra.mxu1 %v6406_v59  ;;  %v6486_v59 = vld [vmem:[#allocation17 + $0x4] ss:$8 sps:$4 sm:$0xff]  }
 0x4fb   :  { %4035 = vmatpush1.bf16.msra.mxu0 %v6409_v46  ;;  %3872 = vmatprep.subr.bf16.mxu1 %v6414_v61  ;;  %v6484_v46 = vld [vmem:[#allocation17] ss:$8 sps:$4 sm:$0xff]   ;;  %v2451_v61 = vpack.c.b16 %v8171_v40, %v8171_v40  ;;  %v6501_v40 = vld [vmem:[#allocation17 + $0x54] ss:$8 sps:$4 sm:$0xff]  }
 0x4fc   :  { %4036 = vmatprep.subr.bf16.mxu0 %v6417_v36  ;;  %v6489_v36 = vld [vmem:[#allocation17 + $0x14] ss:$8 sps:$4 sm:$0xff]  }
 0x4fe   :  { %3873 = vmatpush1.bf16.msra.mxu1 %v6412_v9  ;;  %v6487_v9 = vld [vmem:[#allocation17 + $0x10] ss:$8 sps:$4 sm:$0xff]  }
 0x4ff   :  { %4037 = vmatpush1.bf16.msra.mxu0 %v6415_v55  ;;  %3874 = vmatprep.subr.bf16.mxu1 %v6420_v15  ;;  %v6492_v55 = vld [vmem:[#allocation17 + $0x24] ss:$8 sps:$4 sm:$0xff]   ;;  %v6490_v15 = vld [vmem:[#allocation17 + $0x20] ss:$8 sps:$4 sm:$0xff]  }
 0x500   :  { %4038 = vmatprep.subr.bf16.mxu0 %v6423_v11  ;;  %v6495_v11 = vld [vmem:[#allocation17 + $0x34] ss:$8 sps:$4 sm:$0xff]  }
 0x502   :  { %3875 = vmatpush1.bf16.msra.mxu1 %v6418_v39  ;;  %v6493_v39 = vld [vmem:[#allocation17 + $0x30] ss:$8 sps:$4 sm:$0xff]  }
 0x503   :  { %4039 = vmatpush1.bf16.msra.mxu0 %v6421_v14  ;;  %3876 = vmatprep.subr.bf16.mxu1 %v6426_v60  ;;  %v6498_v14 = vld [vmem:[#allocation17 + $0x44] ss:$8 sps:$4 sm:$0xff]   ;;  %v6496_v60 = vld [vmem:[#allocation17 + $0x40] ss:$8 sps:$4 sm:$0xff]  }
 0x504   :  { %4040 = vmatprep.subr.bf16.mxu0 %v6429_v13  ;;  %v6499_v13 = vld [vmem:[#allocation17 + $0x50] ss:$8 sps:$4 sm:$0xff]  }
 0x506   :  { %3877 = vmatpush1.bf16.msra.mxu1 %v6424_v6  ;;  %v6504_v6 = vld [vmem:[#allocation17 + $0x64] ss:$8 sps:$4 sm:$0xff]  }
 0x507   :  { %4041 = vmatpush1.bf16.msra.mxu0 %v6427_v3  ;;  %3878 = vmatprep.subr.bf16.mxu1 %v6432_v10  ;;  %v6502_v3 = vld [vmem:[#allocation17 + $0x60] ss:$8 sps:$4 sm:$0xff]   ;;  %v6507_v10 = vld [vmem:[#allocation17 + $0x74] ss:$8 sps:$4 sm:$0xff]  }
 0x508   :  { %4042 = vmatprep.subr.bf16.mxu0 %v6435_v22  ;;  %v6505_v22 = vld [vmem:[#allocation17 + $0x70] ss:$8 sps:$4 sm:$0xff]  }
 0x50a   :  { %3879 = vmatpush1.bf16.msra.mxu1 %v6430_v45  ;;  %v6510_v45 = vld [vmem:[#allocation17 + $0x84] ss:$8 sps:$4 sm:$0xff]  }
 0x50b   :  { %4043 = vmatpush1.bf16.msra.mxu0 %v6433_v34  ;;  %3880 = vmatprep.subr.bf16.mxu1 %v6438_v37  ;;  %v6508_v34 = vld [vmem:[#allocation17 + $0x80] ss:$8 sps:$4 sm:$0xff]   ;;  %v6513_v37 = vld [vmem:[#allocation17 + $0x94] ss:$8 sps:$4 sm:$0xff]  }
 0x50c   :  { %4044 = vmatprep.subr.bf16.mxu0 %v6441_v58  ;;  %v6511_v58 = vld [vmem:[#allocation17 + $0x90] ss:$8 sps:$4 sm:$0xff]  }
 0x50e   :  { %3881 = vmatpush1.bf16.msra.mxu1 %v6436_v47  ;;  %v6516_v47 = vld [vmem:[#allocation17 + $0xa4] ss:$8 sps:$4 sm:$0xff]  }
 0x50f   :  { %4045 = vmatpush1.bf16.msra.mxu0 %v6439_v44  ;;  %3882 = vmatprep.subr.bf16.mxu1 %v6444_v63  ;;  %v6514_v44 = vld [vmem:[#allocation17 + $0xa0] ss:$8 sps:$4 sm:$0xff]   ;;  %v6519_v63 = vld [vmem:[#allocation17 + $0xb4] ss:$8 sps:$4 sm:$0xff]  }
 0x510   :  { %4046 = vmatprep.subr.bf16.mxu0 %v6447_v19  ;;  %v6517_v19 = vld [vmem:[#allocation17 + $0xb0] ss:$8 sps:$4 sm:$0xff]  }
 0x512   :  { %3883 = vmatpush1.bf16.msra.mxu1 %v6442_v2  ;;  %v6522_v2 = vld [vmem:[#allocation17 + $0xc4] ss:$8 sps:$4 sm:$0xff]  }
 0x513   :  { %4047 = vmatpush1.bf16.msra.mxu0 %v6445_v21  ;;  %3884 = vmatprep.subr.bf16.mxu1 %v6450_v4  ;;  %v6520_v21 = vld [vmem:[#allocation17 + $0xc0] ss:$8 sps:$4 sm:$0xff]   ;;  %v6525_v4 = vld [vmem:[#allocation17 + $0xd4] ss:$8 sps:$4 sm:$0xff]  }
 0x514   :  { %4048 = vmatprep.subr.bf16.mxu0 %v6453_v26  ;;  %v6523_v26 = vld [vmem:[#allocation17 + $0xd0] ss:$8 sps:$4 sm:$0xff]  }
 0x516   :  { %3885 = vmatpush1.bf16.msra.mxu1 %v6448_v50  ;;  %v6526_v50 = vld [vmem:[#allocation17 + $0xe0] ss:$8 sps:$4 sm:$0xff]  }
 0x517   :  { %4049 = vmatpush1.bf16.msra.mxu0 %v6451_v42  ;;  %3886 = vmatprep.subr.bf16.mxu1 %v6456_v41  ;;  %v6528_v42 = vld [vmem:[#allocation17 + $0xe4] ss:$8 sps:$4 sm:$0xff]   ;;  %v6531_v41 = vld [vmem:[#allocation17 + $0xf4] ss:$8 sps:$4 sm:$0xff]  }
 0x518   :  { %4050 = vmatprep.subr.bf16.mxu0 %v6459_v12  ;;  %v6529_v12 = vld [vmem:[#allocation17 + $0xf0] ss:$8 sps:$4 sm:$0xff]  }
 0x51a   :  { %3887 = vmatpush1.bf16.msra.mxu1 %v6454_v33  ;;  %v6534_v33 = vld [vmem:[#allocation17 + $0x104] ss:$8 sps:$4 sm:$0xff]  }
 0x51b   :  { %4051 = vmatpush1.bf16.msra.mxu0 %v6457_v57  ;;  %3888 = vmatprep.subr.bf16.mxu1 %v6462_v16  ;;  %v4573_v57 = vld [vmem:[#allocation20 + $0x80] sm:$0xff]  ;;  %v4574_v16 = vld [vmem:[#allocation20 + $0x88] sm:$0xff] }
 0x51c   :  { %4052 = vmatprep.subr.bf16.mxu0 %v6465_v1  ;;  %v4557_v1 = vld [vmem:[#allocation20] sm:$0xff] }
 0x51e   :  { %3889 = vmatpush1.bf16.msra.mxu1 %v6460_v48  ;;  %v5957_v48 = vpack.c.bf16 %v4574_v16, %v4573_v57 }
 0x51f   :  { %4053 = vmatpush1.bf16.msra.mxu0 %v6463_v53  ;;  %3890 = vmatprep.subr.bf16.mxu1 %v6468_v52  ;;  %v4558_v53 = vld [vmem:[#allocation20 + $0x8] sm:$0xff]  ;;  %v4575_v52 = vld [vmem:[#allocation20 + $0x90] sm:$0xff] }
 0x520   :  { %4054 = vmatprep.subr.bf16.mxu0 %v6471_v8  ;;  %v4576_v8 = vld [vmem:[#allocation20 + $0x98] sm:$0xff] }
 0x522   :  { %3891 = vmatpush1.bf16.msra.mxu1 %v6466_v18  ;;  %v5959_v18 = vpack.c.bf16 %v4558_v53, %v4557_v1 }
 0x523   :  { %4055 = vmatpush1.bf16.msra.mxu0 %v6469_v43  ;;  %3892 = vmatprep.subr.bf16.mxu1 %v6474_v5  ;;  %v5961_v43 = vpack.c.bf16 %v4576_v8, %v4575_v52  ;;  %v4559_v5 = vld [vmem:[#allocation20 + $0x10] sm:$0xff] }
 0x524   :  { %4056 = vmatprep.subr.bf16.mxu0 %v6477_v0  ;;  %v4560_v0 = vld [vmem:[#allocation20 + $0x18] sm:$0xff] }
 0x526   :  { %3893 = vmatpush1.bf16.msra.mxu1 %v6472_v49  ;;  %v4577_v49 = vld [vmem:[#allocation20 + $0xa0] sm:$0xff] }
 0x527   :  { %4057 = vmatpush1.bf16.msra.mxu0 %v6475_v20  ;;  %3894 = vmatprep.subr.bf16.mxu1 %v6480_v7  ;;  %v4578_v20 = vld [vmem:[#allocation20 + $0xa8] sm:$0xff]  ;;  %v5963_v7 = vpack.c.bf16 %v4560_v0, %v4559_v5  ;;  %v6537_v0 = vld [vmem:[#allocation17 + $0x114] ss:$8 sps:$4 sm:$0xff]  }
 0x528   :  { %4058 = vmatprep.subr.bf16.mxu0 %v6483_v62  ;;  %v5965_v62 = vpack.c.bf16 %v4578_v20, %v4577_v49  ;;  %v6535_v20 = vld [vmem:[#allocation17 + $0x110] ss:$8 sps:$4 sm:$0xff]  }
 0x52a   :  { %3895 = vmatpush1.bf16.msra.mxu1 %v6478_v51  ;;  %v4561_v51 = vld [vmem:[#allocation20 + $0x20] sm:$0xff] }
 0x52b   :  { %4059 = vmatpush1.bf16.msra.mxu0 %v6481_v56  ;;  %4473 = vmatprep.subr.bf16.mxu1 %v6486_v59  ;;  %v4562_v56 = vld [vmem:[#allocation20 + $0x28] sm:$0xff]  ;;  %v4579_v59 = vld [vmem:[#allocation20 + $0xb0] sm:$0xff] }
 0x52c   :  { %5958 = vmatprep.subr.bf16.mxu0 %v5957_v48 }
 0x52d   :  { %3897 = vmatmul.mubr.bf16.vlgmr.msra.gmra.mrb[64].mxu1 %v2451_v61 }
 0x52e   :  { %4061 = vmatmul.mubr.bf16.vlgmr.msra.gmra.mrb[80].mxu0 %v2451_v61  ;;  %4474 = vmatpush1.bf16.msra.mxu1 %v6484_v46  ;;  %v4580_v46 = vld [vmem:[#allocation20 + $0xb8] sm:$0xff]  ;;  %v5967_v61 = vpack.c.bf16 %v4562_v56, %v4561_v51 }
 0x52f   :  { %4475 = vmatprep.subr.bf16.mxu1 %v6489_v36  ;;  %5960 = vmatpush3.bf16.msra.mxu0 %v5959_v18  ;;  %v5969_v36 = vpack.c.bf16 %v4580_v46, %v4579_v59  ;;  %v6543_v51 = vld [vmem:[#allocation17 + $0x134] ss:$8 sps:$4 sm:$0xff]   ;;  %v6541_v56 = vld [vmem:[#allocation17 + $0x130] ss:$8 sps:$4 sm:$0xff]   ;;  %v6546_v59 = vld [vmem:[#allocation17 + $0x144] ss:$8 sps:$4 sm:$0xff]  }
 0x530   :  { %5962 = vmatprep.subr.bf16.mxu0 %v5961_v43  ;;  %v6532_v43 = vld [vmem:[#allocation17 + $0x100] ss:$8 sps:$4 sm:$0xff]  }
 0x531   :  { %v6544_v46 = vld [vmem:[#allocation17 + $0x140] ss:$8 sps:$4 sm:$0xff]  }
 0x532   :  { %4476 = vmatpush1.bf16.msra.mxu1 %v6487_v9  ;;  %v4563_v9 = vld [vmem:[#allocation20 + $0x30] sm:$0xff] }
 0x533   :  { %4477 = vmatprep.subr.bf16.mxu1 %v6492_v55  ;;  %5964 = vmatpush3.bf16.msra.mxu0 %v5963_v7  ;;  %v4564_v55 = vld [vmem:[#allocation20 + $0x38] sm:$0xff]  ;;  %v6540_v7 = vld [vmem:[#allocation17 + $0x124] ss:$8 sps:$4 sm:$0xff]  }
 0x534   :  { %5966 = vmatprep.subr.bf16.mxu0 %v5965_v62  ;;  %v6538_v62 = vld [vmem:[#allocation17 + $0x120] ss:$8 sps:$4 sm:$0xff]  }
 0x536   :  { %4478 = vmatpush1.bf16.msra.mxu1 %v6490_v15  ;;  %v4581_v15 = vld [vmem:[#allocation20 + $0xc0] sm:$0xff] }
 0x537   :  { %4479 = vmatprep.subr.bf16.mxu1 %v6495_v11  ;;  %v4582_v11 = vld [vmem:[#allocation20 + $0xc8] sm:$0xff]  ;;  %5968 = vmatpush3.bf16.msra.mxu0 %v5967_v61  ;;  %v6549_v61 = vld [vmem:[#allocation17 + $0x154] ss:$8 sps:$4 sm:$0xff]  }
 0x538   :  { %5970 = vmatprep.subr.bf16.mxu0 %v5969_v36  ;;  %v6547_v36 = vld [vmem:[#allocation17 + $0x150] ss:$8 sps:$4 sm:$0xff]  }
 0x53a   :  { %4480 = vmatpush1.bf16.msra.mxu1 %v6493_v39  ;;  %v5971_v39 = vpack.c.bf16 %v4564_v55, %v4563_v9  ;;  %v6552_v9 = vld [vmem:[#allocation17 + $0x164] ss:$8 sps:$4 sm:$0xff]   ;;  %v6550_v55 = vld [vmem:[#allocation17 + $0x160] ss:$8 sps:$4 sm:$0xff]  }
 0x53b   :  { %4481 = vmatprep.subr.bf16.mxu1 %v6498_v14  ;;  %v5973_v14 = vpack.c.bf16 %v4582_v11, %v4581_v15  ;;  %v6555_v15 = vld [vmem:[#allocation17 + $0x174] ss:$8 sps:$4 sm:$0xff]   ;;  %v6553_v11 = vld [vmem:[#allocation17 + $0x170] ss:$8 sps:$4 sm:$0xff]  }
 0x53c   :  { %5972 = vmatpush3.bf16.msra.mxu0 %v5971_v39  ;;  %v6558_v39 = vld [vmem:[#allocation17 + $0x184] ss:$8 sps:$4 sm:$0xff]  }
 0x53d   :  { %5974 = vmatprep.subr.bf16.mxu0 %v5973_v14  ;;  %v6556_v14 = vld [vmem:[#allocation17 + $0x180] ss:$8 sps:$4 sm:$0xff]  }
 0x53e   :  { %4482 = vmatpush1.bf16.msra.mxu1 %v6496_v60  ;;  %v4565_v60 = vld [vmem:[#allocation20 + $0x40] sm:$0xff] }
 0x53f   :  { %4483 = vmatprep.subr.bf16.mxu1 %v6501_v40  ;;  %v4566_v40 = vld [vmem:[#allocation20 + $0x48] sm:$0xff] }
 0x542   :  { %4484 = vmatpush1.bf16.msra.mxu1 %v6499_v13  ;;  %v4583_v13 = vld [vmem:[#allocation20 + $0xd0] sm:$0xff] }
 0x543   :  { %4485 = vmatprep.subr.bf16.mxu1 %v6504_v6  ;;  %v4584_v6 = vld [vmem:[#allocation20 + $0xd8] sm:$0xff] }
 0x546   :  { %4486 = vmatpush1.bf16.msra.mxu1 %v6502_v3  ;;  %v5975_v3 = vpack.c.bf16 %v4566_v40, %v4565_v60  ;;  %v6561_v60 = vld [vmem:[#allocation17 + $0x194] ss:$8 sps:$4 sm:$0xff]   ;;  %v6559_v40 = vld [vmem:[#allocation17 + $0x190] ss:$8 sps:$4 sm:$0xff]  }
 0x547   :  { %4487 = vmatprep.subr.bf16.mxu1 %v6507_v10  ;;  %v5977_v10 = vpack.c.bf16 %v4584_v6, %v4583_v13  ;;  %v6564_v13 = vld [vmem:[#allocation17 + $0x1a4] ss:$8 sps:$4 sm:$0xff]   ;;  %v6562_v6 = vld [vmem:[#allocation17 + $0x1a0] ss:$8 sps:$4 sm:$0xff]  }
 0x548   :  { %5976 = vmatpush3.bf16.msra.mxu0 %v5975_v3  ;;  %v6567_v3 = vld [vmem:[#allocation17 + $0x1b4] ss:$8 sps:$4 sm:$0xff]  }
 0x549   :  { %5978 = vmatprep.subr.bf16.mxu0 %v5977_v10  ;;  %v6565_v10 = vld [vmem:[#allocation17 + $0x1b0] ss:$8 sps:$4 sm:$0xff]  }
 0x54a   :  { %4488 = vmatpush1.bf16.msra.mxu1 %v6505_v22  ;;  %v4567_v22 = vld [vmem:[#allocation20 + $0x50] sm:$0xff] }
 0x54b   :  { %4489 = vmatprep.subr.bf16.mxu1 %v6510_v45  ;;  %v4568_v45 = vld [vmem:[#allocation20 + $0x58] sm:$0xff] }
 0x54e   :  { %4490 = vmatpush1.bf16.msra.mxu1 %v6508_v34  ;;  %v4585_v34 = vld [vmem:[#allocation20 + $0xe0] sm:$0xff] }
 0x54f   :  { %4491 = vmatprep.subr.bf16.mxu1 %v6513_v37  ;;  %v4586_v37 = vld [vmem:[#allocation20 + $0xe8] sm:$0xff] }
 0x552   :  { %4492 = vmatpush1.bf16.msra.mxu1 %v6511_v58  ;;  %v5979_v58 = vpack.c.bf16 %v4568_v45, %v4567_v22  ;;  %v6570_v22 = vld [vmem:[#allocation17 + $0x1c4] ss:$8 sps:$4 sm:$0xff]   ;;  %v6568_v45 = vld [vmem:[#allocation17 + $0x1c0] ss:$8 sps:$4 sm:$0xff]  }
 0x553   :  { %4493 = vmatprep.subr.bf16.mxu1 %v6516_v47  ;;  %v5981_v47 = vpack.c.bf16 %v4586_v37, %v4585_v34  ;;  %v6573_v34 = vld [vmem:[#allocation17 + $0x1d4] ss:$8 sps:$4 sm:$0xff]   ;;  %v6571_v37 = vld [vmem:[#allocation17 + $0x1d0] ss:$8 sps:$4 sm:$0xff]  }
 0x554   :  { %5980 = vmatpush3.bf16.msra.mxu0 %v5979_v58 }
 0x555   :  { %5982 = vmatprep.subr.bf16.mxu0 %v5981_v47  ;;  %v6576_v47 = vld [vmem:[#allocation17 + $0x1e4] ss:$8 sps:$4 sm:$0xff]  }
 0x556   :  { %4494 = vmatpush1.bf16.msra.mxu1 %v6514_v44  ;;  %v8184_v44 = vld [vmem:[#allocation16] sm:$0xf] }
 0x557   :  { %4495 = vmatprep.subr.bf16.mxu1 %v6519_v63  ;;  %v2387_v63 = vrot.slane %v8184_v44, %v7512_v32  ;;  %v2395_v58 = vrot.slane %v8184_v44, %v7517_v35 }
 0x55a   :  { %4496 = vmatpush1.bf16.msra.mxu1 %v6517_v19  ;;  %v2391_v19 = vrot.slane %v8184_v44, %v7509_v31 }
 0x55b   :  { %4497 = vmatprep.subr.bf16.mxu1 %v6522_v2  ;;  %v8477_v2 = vsub.s32 3, %v7501_v28 }
 0x55e   :  { %4498 = vmatpush1.bf16.msra.mxu1 %v6520_v21  ;;  %v2399_v21 = vrot.slane %v8184_v44, %v8477_v2  ;;  %v6579_v2 = vld [vmem:[#allocation17 + $0x1f4] ss:$8 sps:$4 sm:$0xff]  }
 0x55f   :  { %4499 = vmatprep.subr.bf16.mxu1 %v6525_v4  ;;  %v4588_v44 = vld [vmem:[#allocation20 + $0xf8] sm:$0xff] }
 0x562   :  { %4500 = vmatpush1.bf16.msra.mxu1 %v6523_v26 }
 0x563   :  { %4501 = vmatprep.subr.bf16.mxu1 %v6528_v42 }
 0x566   :  { %4502 = vmatpush1.bf16.msra.mxu1 %v6526_v50 }
 0x567   :  { %4503 = vmatprep.subr.bf16.mxu1 %v6531_v41 }
 0x56a   :  { %4504 = vmatpush1.bf16.msra.mxu1 %v6529_v12 }
 0x56b   :  { %4514 = vmatprep.subr.bf16.mxu1 %v6534_v33 }
 0x600   :  { %v3898_v4 = vpop.f32.mrb[64].mxu1 }
 0x601   :  { %v5989_v26 = vadd.f32 %v3898_v4, %v2387_v63  ;;  %v8193_v50 = vpop.f32.mrb[80].mxu0  ;;  %v3900_v42 = vpop.f32.mrb[65].mxu1  ;;  %v6574_v63 = vld [vmem:[#allocation17 + $0x1e0] ss:$8 sps:$4 sm:$0xff]  }
 0x602   :  { %v5990_v41 = vadd.f32 %v3900_v42, %v2391_v19  ;;  %v4064_v12 = vpop.f32.mrb[81].mxu0  ;;  %v3902_v33 = vpop.f32.mrb[66].mxu1  ;;  %v5991_v19 = vadd.f32 %v8193_v50, %v2395_v58  ;;  %v4569_v42 = vld [vmem:[#allocation20 + $0x60] sm:$0xff]  ;;  %v4141_v50 = vld [vmem:[#allocation19] sm:$0x3] }
 0x603   :  { %v4069_v57 = vmax.f32 %v5989_v26, 0.0  ;;  %v5992_v16 = vadd.f32 %v4064_v12, %v2399_v21  ;;  %v4066_v1 = vpop.f32.mrb[82].mxu0  ;;  %v3903_v48 = vpop.f32.mrb[67].mxu1  ;;  %v6577_v21 = vld [vmem:[#allocation17 + $0x1f0] ss:$8 sps:$4 sm:$0xff]  }
 0x604   :  { %v4070_v53 = vmax.f32 %v5990_v41, 0.0  ;;  %v4067_v52 = vpop.f32.mrb[83].mxu0  ;;  %v4071_v4 = vmax.f32 %v5991_v19, 0.0  ;;  %v4570_v41 = vld [vmem:[#allocation20 + $0x68] sm:$0xff]  ;;  %v4587_v33 = vld [vmem:[#allocation20 + $0xf0] sm:$0xff]  ;;  %v4572_v1 = vld [vmem:[#allocation20 + $0x78] sm:$0xff] }
 0x605   :  { %v4072_v8 = vmax.f32 %v5992_v16, 0.0  ;;  %v4137_v5 = vpack.c.bf16 %v4069_v57, %v4069_v57  ;;  %v5983_v12 = vpack.c.bf16 %v4570_v41, %v4569_v42  ;;  %v4571_v57 = vld [vmem:[#allocation20 + $0x70] sm:$0xff]  ;;  %v5985_v16 = vpack.c.bf16 %v4588_v44, %v4587_v33 }
 0x606   :  { %v4138_v18 = vpack.c.bf16 %v4070_v53, %v4070_v53  ;;  %v4139_v26 = vpack.c.bf16 %v4071_v4, %v4071_v4  ;;  %v5987_v48 = vpack.c.bf16 %v4572_v1, %v4571_v57  ;;  %v4146_v53 = vrot.slane %v4141_v50, %v7512_v32 }
 0x607   :  { %v4140_v49 = vpack.c.bf16 %v4072_v8, %v4072_v8  ;;  %5984 = vmatpush3.bf16.msra.mxu0 %v5983_v12  ;;  %v4150_v52 = vrot.slane %v4141_v50, %v7509_v31 }
 0x608   :  { %4505 = vmatprep.mubr.bf16.mxu1 %v4138_v18  ;;  %5986 = vmatprep.subr.bf16.mxu0 %v5985_v16 }
 0x609   :  { %4506 = vmatmul.mubr.bf16.vlgmr.msra.gmra.mrb[68].mxu1 %v4137_v5 }
 0x60a   :  { %4515 = vmatpush1.bf16.msra.mxu1 %v6532_v43  ;;  %4546 = vmatprep.mubr.bf16.mxu1 %v4140_v49 }
 0x60b   :  { %4516 = vmatprep.subr.bf16.mxu1 %v6537_v0  ;;  %5988 = vmatpush3.bf16.msra.mxu0 %v5987_v48 }
 0x60e   :  { %4517 = vmatpush1.bf16.msra.mxu1 %v6535_v20 }
 0x60f   :  { %4518 = vmatprep.subr.bf16.mxu1 %v6540_v7 }
 0x612   :  { %4519 = vmatpush1.bf16.msra.mxu1 %v6538_v62 }
 0x613   :  { %4520 = vmatprep.subr.bf16.mxu1 %v6543_v51  ;;  %v5778_v51 = vld [vmem:[#allocation22] ss:$0 sm:$0xff] }
 0x616   :  { %4521 = vmatpush1.bf16.msra.mxu1 %v6541_v56 }
 0x617   :  { %4522 = vmatprep.subr.bf16.mxu1 %v6546_v59 }
 0x61a   :  { %4523 = vmatpush1.bf16.msra.mxu1 %v6544_v46 }
 0x61b   :  { %4524 = vmatprep.subr.bf16.mxu1 %v6549_v61  ;;  %v8478_v61 = vmov 2  }
 0x61e   :  { %4525 = vmatpush1.bf16.msra.mxu1 %v6547_v36  ;;  %v7084_v36 = vmov 3  }
 0x61f   :  { %4526 = vmatprep.subr.bf16.mxu1 %v6552_v9  ;;  %v7085_v9 = vmov 7  }
 0x622   :  { %4527 = vmatpush1.bf16.msra.mxu1 %v6550_v55  ;;  %v7086_v55 = vmov 4  }
 0x623   :  { %4528 = vmatprep.subr.bf16.mxu1 %v6555_v15  ;;  %v7087_v15 = vmov 5  }
 0x626   :  { %4529 = vmatpush1.bf16.msra.mxu1 %v6553_v11  ;;  %v7088_v11 = vmov 8  }
 0x627   :  { %4530 = vmatprep.subr.bf16.mxu1 %v6558_v39  ;;  %v7089_v39 = vmov 6  }
 0x62a   :  { %4531 = vmatpush1.bf16.msra.mxu1 %v6556_v14  ;;  %v6580_v14 = vld [vmem:[#allocation26] sm:$0xff]  }
 0x62b   :  { %4532 = vmatprep.subr.bf16.mxu1 %v6561_v60  ;;  %v6581_v60 = vld [vmem:[#allocation26 + $0x8] sm:$0xff]   ;;  %5901 = vmatprep.subr.bf16.mxu0 %v6580_v14 }
 0x62e   :  { %4533 = vmatpush1.bf16.msra.mxu1 %v6559_v40  ;;  %v6582_v40 = vld [vmem:[#allocation26 + $0x10] sm:$0xff]  }
 0x62f   :  { %4534 = vmatprep.subr.bf16.mxu1 %v6564_v13  ;;  %v6583_v13 = vld [vmem:[#allocation26 + $0x18] sm:$0xff]  }
 0x632   :  { %4535 = vmatpush1.bf16.msra.mxu1 %v6562_v6  ;;  %v8201_v6 = vld [vmem:[#allocation29] sm:$0xff]  }
 0x633   :  { %4536 = vmatprep.subr.bf16.mxu1 %v6567_v3  ;;  %v4666_v3 = vld [vmem:[#allocation23] sm:$0x7] }
 0x634   :  { %v4694_v19 = vrot.slane %v4666_v3, %v7517_v35 }
 0x636   :  { %4537 = vmatpush1.bf16.msra.mxu1 %v6565_v10  ;;  %v4684_v10 = vrot.slane %v4666_v3, %v7509_v31 }
 0x637   :  { %4538 = vmatprep.subr.bf16.mxu1 %v6570_v22  ;;  %v4675_v22 = vrot.slane %v4666_v3, %v7512_v32 }
 0x63a   :  { %4539 = vmatpush1.bf16.msra.mxu1 %v6568_v45  ;;  %v7090_v45 = vmov 1966171168  }
 0x63b   :  { %4540 = vmatprep.subr.bf16.mxu1 %v6573_v34  ;;  %v4733_v34 = vunpack.c.l.s4 %v7090_v45  ;;  %v8484_v45 = vld [vmem:[#allocation55_spill] sm:$0xff] }
 0x63e   :  { %4541 = vmatpush1.bf16.msra.mxu1 %v6571_v37 }
 0x63f   :  { %4542 = vmatprep.subr.bf16.mxu1 %v6576_v47 }
 0x642   :  { %4543 = vmatpush1.bf16.msra.mxu1 %v6574_v63 }
 0x643   :  { %4544 = vmatprep.subr.bf16.mxu1 %v6579_v2  ;;  %v4734_v2 = vunpack.c.0.s8 %v4733_v34 }
 0x645   :  { %v8208_v41 = vsub.s32 %v4734_v2, %v7501_v28  ;;  %v8488_v2 = vld [vmem:[#allocation65_spill] sm:$0xff] }
 0x646   :  { %4545 = vmatpush1.bf16.msra.mxu1 %v6577_v21 }
 0x649   :  { %4547 = vmatmul.mubr.bf16.vlgmr.msra.gmra.mrb[68].mxu1 %v4139_v26 }
 0x71c   :  { %v4548_v8 = vpop.f32.mrb[68].mxu1 }
 0x71d   :  { %v5993_v18 = vadd.f32 %v4548_v8, %v4146_v53  ;;  %v4550_v43 = vpop.f32.mrb[69].mxu1 }
 0x71e   :  { %v5994_v5 = vadd.f32 %v4550_v43, %v4150_v52  ;;  %v4552_v0 = vpop.f32.mrb[70].mxu1 }
 0x71f   :  { %v4553_v49 = vpop.f32.mrb[71].mxu1  ;;  %v4555_v7 = vmax.f32 %v5993_v18, 0.0 }
 0x720   :  { %v4556_v20 = vmax.f32 %v5994_v5, 0.0 }
 0x722   :  { %4660 = vmatprep.mubr.f32.mxu0 %v4556_v20 }
 0x723   :  { %4661 = vmatmul.mubr.f32.vlgmr.msra.gmra.mrb[84].mxu0 %v4555_v7 }
 0x724   :  { %5902 = vmatpush3.bf16.msra.mxu0 %v6580_v14 }
 0x725   :  { %5903 = vmatprep.subr.bf16.mxu0 %v6581_v60 }
 0x728   :  { %5904 = vmatpush3.bf16.msra.mxu0 %v6581_v60 }
 0x729   :  { %5905 = vmatprep.subr.bf16.mxu0 %v6582_v40 }
 0x72c   :  { %5906 = vmatpush3.bf16.msra.mxu0 %v6582_v40 }
 0x72d   :  { %5907 = vmatprep.subr.bf16.mxu0 %v6583_v13 }
 0x730   :  { %5908 = vmatpush3.bf16.msra.mxu0 %v6583_v13 }
 0x731   :  { %5925 = vmatprep.subr.bf16.mxu0 %v8201_v6 }
 0x7f6   :  { %v5846_v62 = vpop.f32.mrb[84].mxu0 }
 0x7f7   :  { %v5847_v56 = vpop.f32.mrb[85].mxu0 }
 0x7f8   :  { %v5848_v59 = vadd.f32 %v5847_v56, %v5846_v62 }
 0x7fa   :  { %v4663_v46 = vadd.f32 %v5848_v59, %v5778_v51 }
 0x7fc   :  { %4678 = vperm.xlu0 %6087, %v4663_v46   ;;  %4669 = vperm.xlu1 %6086, %v4663_v46  }
 0x800   :  { %6090 = vset.pattern.permute.xlu0 %v8478_v61  ;;  %6088 = vset.pattern.permute.xlu1 %v7084_v36 }
 0x801   :  { %4688 = vperm.xlu0 %6090, %v4663_v46   ;;  %4698 = vperm.xlu1 %6088, %v4663_v46  }
 0x805   :  { %6093 = vset.pattern.permute.xlu0 %v7085_v9  ;;  %6089 = vset.pattern.permute.xlu1 %v7086_v55 }
 0x806   :  { %4720 = vperm.xlu0 %6093, %v4663_v46   ;;  %4703 = vperm.xlu1 %6089, %v4663_v46  }
 0x80a   :  { %6091 = vset.pattern.permute.xlu1 %v7087_v15  ;;  %6095 = vset.pattern.permute.xlu0 %v7088_v11 }
 0x80b   :  { %4709 = vperm.xlu1 %6091, %v4663_v46  }
 0x80f   :  { %6092 = vset.pattern.permute.xlu1 %v7089_v39 }
 0x810   :  { %4715 = vperm.xlu1 %6092, %v4663_v46  }
 0x814   :  { %6094 = vset.pattern.permute.xlu1 %v7088_v11 }
 0x815   :  { %4726 = vperm.xlu1 %6094, %v4663_v46  }
 0x87b   :  { %v4679_v37 = vpop.permute.xlu0 %4678  ;;  %v4670_v58 = vpop.permute.xlu1 %4669 }
 0x87c   :  { %v4685_v47 = vmul.f32 %v4684_v10, %v4679_v37  ;;  %v4676_v63 = vmul.f32 %v4675_v22, %v4670_v58  ;;  %v8485_v37 = vld [vmem:[#allocation47_spill] sm:$0xff] }
 0x87e   :  { %v4686_v26 = vadd.f32 %v4685_v47, %v4676_v63  ;;  %v8487_v63 = vld [vmem:[#allocation63_spill] sm:$0xff] }
 0x880   :  { %v4689_v21 = vpop.permute.xlu0 %4688  ;;  %v4699_v4 = vpop.permute.xlu1 %4698 }
 0x881   :  { %v4695_v42 = vmul.f32 %v4694_v19, %v4689_v21  ;;  %v4701_v57 = vmul.f32 %v4699_v4, %v4675_v22  ;;  %v8489_v4 = vld [vmem:[#allocation66_spill] sm:$0xff] }
 0x883   :  { %v4696_v12 = vadd.f32 %v4695_v42, %v4686_v26 }
 0x885   :  { %v4704_v31 = vpop.permute.xlu1 %4703  ;;  %v4738_v33 = vrot.slane %v4696_v12, %v8208_v41  ;;  %v4721_v43 = vpop.permute.xlu0 %4720  ;;  %v8490_v12 = vld [vmem:[#allocation57_spill] sm:$0xff] }
 0x886   :  { %v4706_v44 = vmul.f32 %v4704_v31, %v4684_v10  ;;  %v4723_v7 = vmul.f32 %v4721_v43, %v4684_v10  ;;  %v8482_v10 = vld [vmem:[#allocation61_spill] sm:$0xff] }
 0x887   :  { %v4739_v16 = vcombine.high %v4738_v33, %v4738_v33  ;;  %v4746_v48 = vrot.slane %v4738_v33, %v8208_v41  ;;  %v8491_v33 = vld [vmem:[#allocation62_spill] sm:$0xff] }
 0x888   :  { %v4707_v50 = vadd.f32 %v4706_v44, %v4701_v57  ;;  %v8492_v57 = vld [vmem:[#allocation72_spill] sm:$0xff] }
 0x889   :  { %v4753_v52 = vrot.slane %v4739_v16, %v8208_v41  ;;  %v4757_v8 = vrot.slane %v4746_v48, %v7512_v32 }
 0x88a   :  { %v4710_v1 = vpop.permute.xlu1 %4709 }
 0x88b   :  { %v4712_v35 = vmul.f32 %v4710_v1, %v4694_v19  ;;  %v8217_v20 = vrot.slane %v4753_v52, %v7512_v32  ;;  %v4764_v56 = vmul.f32 %v4757_v8, %v7495_v24  ;;  %v4765_v46 = vmul.f32 %v4757_v8, %v7499_v27  ;;  %v8479_v27 = vld [vmem:[#allocation60_spill] sm:$0xff] }
 0x88c   :  { %v4766_v61 = vmul.f32 %v4757_v8, %v7504_v29  ;;  %v4767_v36 = vmul.f32 %v4757_v8, %v7506_v30  ;;  %v4768_v9 = vmul.f32 %v4757_v8, %v7594_v17  ;;  %v4769_v11 = vmul.f32 %v4757_v8, %v7580_v54  ;;  %v8480_v30 = vld [vmem:[#allocation44_spill] sm:$0xff]  ;;  %v8481_v17 = vld [vmem:[#allocation45_spill] sm:$0xff] }
 0x88d   :  { %v4713_v53 = vadd.f32 %v4712_v35, %v4707_v50  ;;  %v4770_v39 = vmul.f32 %v4757_v8, %v7592_v38  ;;  %v4771_v60 = vmul.f32 %v4757_v8, %v7596_v25  ;;  %v4772_v29 = vmul.f32 %v8217_v20, %v8479_v27  ;;  %v8500_v27 = vld [vmem:[#allocation52_spill] sm:$0xff] }
 0x88e   :  { %v4773_v54 = vmul.f32 %v8217_v20, %v8482_v10  ;;  %v8248_v21 = vmul.f32 %v8217_v20, %v8488_v2  ;;  %v8252_v26 = vmul.f32 %v8217_v20, %v8489_v4  ;;  %v8259_v16 = vmul.f32 %v8217_v20, %v8492_v57 }
 0x88f   :  { %v4787_v28 = vrot.slane %v4713_v53, %v8208_v41  ;;  %v4716_v18 = vpop.permute.xlu1 %4715 }
 0x890   :  { %v4718_v49 = vmul.f32 %v4716_v18, %v4675_v22  ;;  %v8483_v22 = vld [vmem:[#allocation46_spill] sm:$0xff] }
 0x891   :  { %v4788_v5 = vcombine.high %v4787_v28, %v4787_v28  ;;  %v4795_v0 = vrot.slane %v4787_v28, %v8208_v41 }
 0x892   :  { %v4724_v55 = vadd.f32 %v4723_v7, %v4718_v49  ;;  %v8494_v49 = vld [vmem:[#allocation68_spill] sm:$0xff] }
 0x893   :  { %v4802_v62 = vrot.slane %v4788_v5, %v8208_v41  ;;  %v4806_v51 = vrot.slane %v4795_v0, %v7512_v32  ;;  %v8493_v5 = vld [vmem:[#allocation64_spill] sm:$0xff] }
 0x894   :  { %v4727_v59 = vpop.permute.xlu1 %4726 }
 0x895   :  { %v4729_v15 = vmul.f32 %v4727_v59, %v4694_v19  ;;  %v8229_v14 = vrot.slane %v4802_v62, %v7512_v32  ;;  %v4813_v24 = vmul.f32 %v4806_v51, %v7493_v23  ;;  %v4814_v13 = vmul.f32 %v4806_v51, %v8480_v30  ;;  %v8486_v23 = vld [vmem:[#allocation49_spill] sm:$0xff]  ;;  %v8502_v30 = vld [vmem:[#allocation58_spill] sm:$0xff] }
 0x896   :  { %v4815_v3 = vmul.f32 %v4806_v51, %v8481_v17  ;;  %v4816_v38 = vmul.f32 %v4806_v51, %v8483_v22  ;;  %v4817_v34 = vmul.f32 %v4806_v51, %v8484_v45  ;;  %v4818_v58 = vmul.f32 %v4806_v51, %v8485_v37  ;;  %v8503_v17 = vld [vmem:[#allocation59_spill] sm:$0xff] }
 0x897   :  { %v4730_v40 = vadd.f32 %v4729_v15, %v4724_v55  ;;  %v4819_v47 = vmul.f32 %v4806_v51, %v8486_v23  ;;  %v4774_v19 = vmul.f32 %v8217_v20, %v8487_v63  ;;  %v4829_v42 = vadd.f32 %v4813_v24, %v4764_v56  ;;  %v8495_v56 = vld [vmem:[#allocation67_spill] sm:$0xff] }
 0x898   :  { %v4820_v31 = vmul.f32 %v4806_v51, %v8490_v12  ;;  %v4821_v44 = vmul.f32 %v8229_v14, %v8491_v33  ;;  %v4830_v50 = vadd.f32 %v4814_v13, %v4765_v46  ;;  %v4831_v35 = vadd.f32 %v4815_v3, %v4766_v61  ;;  %v8496_v46 = vld [vmem:[#allocation74_spill] sm:$0xff]  ;;  %v8498_v55 = vld [vmem:[#allocation51_spill] sm:$0xff] }
 0x899   :  { %v4852_v25 = vrot.slane %v4730_v40, %v8208_v41  ;;  %v4832_v53 = vadd.f32 %v4816_v38, %v4767_v36  ;;  %v4833_v52 = vadd.f32 %v4817_v34, %v4768_v9  ;;  %v4834_v8 = vadd.f32 %v4818_v58, %v4769_v11  ;;  %v8499_v11 = vld [vmem:[#allocation50_spill] sm:$0xff]  ;;  %v8278_v24 = vld [vmem:[#allocation25] ss:$0 sm:$0xff] }
 0x89a   :  { %v4835_v28 = vadd.f32 %v4819_v47, %v4770_v39  ;;  %v4822_v0 = vmul.f32 %v8229_v14, %v8493_v5  ;;  %v4823_v7 = vmul.f32 %v8229_v14, %v8494_v49  ;;  %v4836_v62 = vadd.f32 %v4820_v31, %v4771_v60  ;;  %v8504_v38 = vld [vmem:[#allocation54_spill] sm:$0xff]  ;;  %v8507_v5 = vld [vmem:[#allocation56_spill] sm:$0xff] }
 0x89b   :  { %v4853_v1 = vcombine.high %v4852_v25, %v4852_v25  ;;  %v4860_v48 = vrot.slane %v4852_v25, %v8208_v41  ;;  %v4837_v51 = vadd.f32 %v4821_v44, %v4772_v29  ;;  %v4824_v59 = vmul.f32 %v8229_v14, %v8495_v56  ;;  %v8501_v29 = vld [vmem:[#allocation53_spill] sm:$0xff] }
 0x89c   :  { %v4825_v61 = vmul.f32 %v8229_v14, %v8496_v46  ;;  %v4838_v31 = vadd.f32 %v4822_v0, %v4773_v54  ;;  %v4839_v49 = vadd.f32 %v4823_v7, %v4774_v19  ;;  %v8509_v46 = vld [vmem:[#allocation71_spill] sm:$0xff] }
 0x89d   :  { %v4867_v18 = vrot.slane %v4853_v1, %v8208_v41  ;;  %v4871_v43 = vrot.slane %v4860_v48, %v7512_v32  ;;  %v8497_v41 = vld [vmem:[#allocation48_spill] sm:$0xff]  ;;  %v8505_v1 = vld [vmem:[#allocation73_spill] sm:$0xff] }
 0x89e   :  { %v4826_v48 = vmul.f32 %v8229_v14, %v8505_v1  ;;  %v4841_v19 = vadd.f32 %v4825_v61, %v8252_v26 }
 0x89f   :  { %v8273_v36 = vrot.slane %v4867_v18, %v7512_v32  ;;  %v4878_v9 = vmul.f32 %v4871_v43, %v8497_v41  ;;  %v4879_v15 = vmul.f32 %v4871_v43, %v8498_v55  ;;  %v4880_v39 = vmul.f32 %v4871_v43, %v8499_v11  ;;  %v8506_v18 = vld [vmem:[#allocation69_spill] sm:$0xff]  ;;  %v8510_v11 = vld [vmem:[#allocation78_spill] sm:$0xff] }
 0x8a0   :  { %v4881_v60 = vmul.f32 %v4871_v43, %v8500_v27  ;;  %v4882_v40 = vmul.f32 %v4871_v43, %v8501_v29  ;;  %v4883_v13 = vmul.f32 %v4871_v43, %v8502_v30  ;;  %v4884_v3 = vmul.f32 %v4871_v43, %v8503_v17  ;;  %v6585_v27 = vld [vmem:[#allocation29 + $0x8] sm:$0xff]  }
 0x8a1   :  { %v4894_v10 = vadd.f32 %v4878_v9, %v4829_v42  ;;  %v4895_v22 = vadd.f32 %v4879_v15, %v4830_v50  ;;  %v4896_v32 = vadd.f32 %v4880_v39, %v4831_v35  ;;  %v4885_v45 = vmul.f32 %v4871_v43, %v8504_v38  ;;  %v8511_v29 = vld [vmem:[#allocation81_spill] sm:$0xff]  ;;  %v8513_v38 = vld [vmem:[#allocation79_spill] sm:$0xff] }
 0x8a2   :  { %v4897_v34 = vadd.f32 %v4881_v60, %v4832_v53  ;;  %v4898_v37 = vadd.f32 %v4882_v40, %v4833_v52  ;;  %v4899_v58 = vadd.f32 %v4883_v13, %v4834_v8  ;;  %v4900_v23 = vadd.f32 %v4884_v3, %v4835_v28 }
 0x8a3   :  { %v4917_v47 = vadd.f32 %v8278_v24, %v4894_v10  ;;  %v4918_v25 = vadd.f32 %v8278_v24, %v4895_v22  ;;  %v4919_v63 = vadd.f32 %v8278_v24, %v4896_v32  ;;  %v4901_v2 = vadd.f32 %v4885_v45, %v4836_v62  ;;  %v8508_v62 = vld [vmem:[#allocation70_spill] sm:$0xff]  ;;  %v8512_v22 = vld [vmem:[#allocation75_spill] sm:$0xff] }
 0x8a4   :  { %v4920_v4 = vadd.f32 %v8278_v24, %v4897_v34  ;;  %v4921_v12 = vadd.f32 %v8278_v24, %v4898_v37  ;;  %v4922_v42 = vadd.f32 %v8278_v24, %v4899_v58  ;;  %v4923_v52 = vadd.f32 %v8278_v24, %v4900_v23  ;;  %v8514_v37 = vld [vmem:[#allocation76_spill] sm:$0xff]  ;;  %v8515_v23 = vld [vmem:[#allocation77_spill] sm:$0xff] }
 0x8a5   :  { %v4933_v33 = vmax.f32 %v4917_v47, 0.0  ;;  %v4934_v44 = vmax.f32 %v4918_v25, 0.0  ;;  %v4935_v57 = vmax.f32 %v4919_v63, 0.0  ;;  %v4924_v28 = vadd.f32 %v8278_v24, %v4901_v2  ;;  %v8516_v63 = vld [vmem:[#allocation82_spill] sm:$0xff] }
 0x8a6   :  { %v4936_v50 = vmax.f32 %v4920_v4, 0.0  ;;  %v4937_v35 = vmax.f32 %v4921_v12, 0.0  ;;  %v4938_v53 = vmax.f32 %v4922_v42, 0.0  ;;  %v4886_v43 = vmul.f32 %v8273_v36, %v8506_v18  ;;  %v8517_v4 = vld [vmem:[#allocation80_spill] sm:$0xff] }
 0x8a7   :  { %v4957_v8 = vpack.c.bf16 %v4934_v44, %v4933_v33  ;;  %v4887_v54 = vmul.f32 %v8273_v36, %v8507_v5  ;;  %v4888_v56 = vmul.f32 %v8273_v36, %v8508_v62  ;;  %v4889_v41 = vmul.f32 %v8273_v36, %v8509_v46  ;;  %v6587_v33 = vld [vmem:[#allocation29 + $0x18] sm:$0xff]  }
 0x8a8   :  { %v4958_v0 = vpack.c.bf16 %v4936_v50, %v4935_v57  ;;  %v4959_v9 = vpack.c.bf16 %v4938_v53, %v4937_v35  ;;  %v4902_v55 = vadd.f32 %v4886_v43, %v4837_v51  ;;  %v4890_v39 = vmul.f32 %v8273_v36, %v8510_v11  ;;  %v6588_v53 = vld [vmem:[#allocation29 + $0x20] sm:$0xff]   ;;  %v6589_v43 = vld [vmem:[#allocation29 + $0x28] sm:$0xff]   ;;  %v6591_v62 = vld [vmem:[#allocation29 + $0x38] sm:$0xff]  }
 0x8a9   :  { %5909 = vmatprep.mubr.msk.bf16.mxu0 %vm702_vm0, %v4957_v8  ;;  %v4903_v15 = vadd.f32 %v4887_v54, %v4838_v31  ;;  %v4840_v60 = vadd.f32 %v4824_v59, %v8248_v21  ;;  %v4842_v7 = vadd.f32 %v4826_v48, %v8259_v16  ;;  %v4891_v40 = vmul.f32 %v8273_v36, %v8511_v29  ;;  %v6586_v16 = vld [vmem:[#allocation29 + $0x10] sm:$0xff]  }
 0x8aa   :  { %5910 = vmatmul.mubr.msk.bf16.vlgmr.msra.gmra.mrb[88].mxu0 %vm702_vm0, %v4958_v0  ;;  %v4939_v30 = vmax.f32 %v4923_v52, 0.0  ;;  %v4940_v51 = vmax.f32 %v4924_v28, 0.0  ;;  %v4925_v13 = vadd.f32 %v8278_v24, %v4902_v55  ;;  %v4904_v3 = vadd.f32 %v4888_v56, %v4839_v49  ;;  %v6590_v49 = vld [vmem:[#allocation29 + $0x30] sm:$0xff]  }
 0x8ab   :  { %5913 = vmatprep.mubr.msk.bf16.mxu0 %vm702_vm0, %v4959_v9  ;;  %v4926_v17 = vadd.f32 %v8278_v24, %v4903_v15  ;;  %v4905_v10 = vadd.f32 %v4889_v41, %v4840_v60  ;;  %5926 = vmatpush3.bf16.msra.mxu0 %v8201_v6  ;;  %v4906_v26 = vadd.f32 %v4890_v39, %v4841_v19 }
 0x8ac   :  { %v4941_v21 = vmax.f32 %v4925_v13, 0.0  ;;  %v4907_v61 = vadd.f32 %v4891_v40, %v4842_v7  ;;  %5927 = vmatprep.subr.bf16.mxu0 %v6585_v27  ;;  %v4827_v32 = vmul.f32 %v8229_v14, %v8512_v22  ;;  %v4828_v45 = vmul.f32 %v8229_v14, %v8513_v38 }
 0x8ad   :  { %v4942_v59 = vmax.f32 %v4926_v17, 0.0  ;;  %v4960_v34 = vpack.c.bf16 %v4940_v51, %v4939_v30  ;;  %v4778_v58 = vmul.f32 %v8217_v20, %v8514_v37  ;;  %v4779_v47 = vmul.f32 %v8217_v20, %v8515_v23 }
 0x8ae   :  { %v4927_v6 = vadd.f32 %v8278_v24, %v4904_v3  ;;  %v4928_v25 = vadd.f32 %v8278_v24, %v4905_v10  ;;  %v4892_v2 = vmul.f32 %v8273_v36, %v8516_v63  ;;  %v4893_v12 = vmul.f32 %v8273_v36, %v8517_v4 }
 0x8af   :  { %5928 = vmatpush3.bf16.msra.mxu0 %v6585_v27  ;;  %v4961_v42 = vpack.c.bf16 %v4942_v59, %v4941_v21  ;;  %v4929_v14 = vadd.f32 %v8278_v24, %v4906_v26  ;;  %v4930_v31 = vadd.f32 %v8278_v24, %v4907_v61  ;;  %v4843_v20 = vadd.f32 %v4827_v32, %v4778_v58 }
 0x8b0   :  { %5929 = vmatprep.subr.bf16.mxu0 %v6586_v16  ;;  %v4844_v44 = vadd.f32 %v4828_v45, %v4779_v47  ;;  %v4943_v57 = vmax.f32 %v4927_v6, 0.0  ;;  %v4944_v1 = vmax.f32 %v4928_v25, 0.0 }
 0x8b1   :  { %v4908_v48 = vadd.f32 %v4892_v2, %v4843_v20  ;;  %v4945_v36 = vmax.f32 %v4929_v14, 0.0  ;;  %v4946_v35 = vmax.f32 %v4930_v31, 0.0 }
 0x8b2   :  { %5914 = vmatmul.mubr.msk.bf16.gmra.mrb[92].mxu0 %vm702_vm0, %v4960_v34  ;;  %v4909_v50 = vadd.f32 %v4893_v12, %v4844_v44  ;;  %v4962_v52 = vpack.c.bf16 %v4944_v1, %v4943_v57 }
 0x8b3   :  { %5917 = vmatprep.mubr.msk.bf16.mxu0 %vm702_vm0, %v4961_v42  ;;  %5930 = vmatpush3.bf16.msra.mxu0 %v6586_v16  ;;  %v4931_v8 = vadd.f32 %v8278_v24, %v4908_v48  ;;  %v4963_v18 = vpack.c.bf16 %v4946_v35, %v4945_v36 }
 0x8b4   :  { %5931 = vmatprep.subr.bf16.mxu0 %v6587_v33  ;;  %v4932_v28 = vadd.f32 %v8278_v24, %v4909_v50  ;;  %v5780_v24 = vld [vmem:[#allocation28] ss:$0 sm:$0xff] }
 0x8b5   :  { %v4947_v5 = vmax.f32 %v4931_v8, 0.0 }
 0x8b6   :  { %v4948_v54 = vmax.f32 %v4932_v28, 0.0 }
 0x8b7   :  { %5932 = vmatpush3.bf16.msra.mxu0 %v6587_v33 }
 0x8b8   :  { %5933 = vmatprep.subr.bf16.mxu0 %v6588_v53  ;;  %v4964_v0 = vpack.c.bf16 %v4948_v54, %v4947_v5 }
 0x8ba   :  { %5918 = vmatmul.mubr.msk.bf16.gmra.mrb[96].mxu0 %vm702_vm0, %v4962_v52 }
 0x8bb   :  { %5921 = vmatprep.mubr.msk.bf16.mxu0 %vm702_vm0, %v4963_v18  ;;  %5934 = vmatpush3.bf16.msra.mxu0 %v6588_v53  ;;  %v5793_v18 = vld [vmem:[#allocation31] ss:$0 sm:$0xff] }
 0x8bc   :  { %5935 = vmatprep.subr.bf16.mxu0 %v6589_v43 }
 0x8bf   :  { %5936 = vmatpush3.bf16.msra.mxu0 %v6589_v43 }
 0x8c0   :  { %5937 = vmatprep.subr.bf16.mxu0 %v6590_v49 }
 0x8c2   :  { %5922 = vmatmul.mubr.msk.bf16.gmra.mrb[100].mxu0 %vm702_vm0, %v4964_v0 }
 0x8c3   :  { %5938 = vmatpush3.bf16.msra.mxu0 %v6590_v49 }
 0x8c4   :  { %5939 = vmatprep.subr.bf16.mxu0 %v6591_v62 }
 0x8c7   :  { %5940 = vmatpush3.bf16.msra.mxu0 %v6591_v62 }
 0x97d   :  { %v5911_v56 = vpop.f32.mrb[88].mxu0 }
 0x97e   :  { %v5063_v46 = vadd.f32 %v5911_v56, %v5780_v24  ;;  %v5054_v41 = vpop.f32.mrb[89].mxu0 }
 0x97f   :  { %v5055_v9 = vadd.f32 %v5780_v24, %v5054_v41  ;;  %v5912_v55 = vpop.f32.mrb[90].mxu0 }
 0x980   :  { %v5066_v15 = vadd.f32 %v5912_v55, %v5780_v24  ;;  %v5057_v11 = vpop.f32.mrb[91].mxu0  ;;  %v5119_v27 = vmax.f32 %v5063_v46, 0.0 }
 0x981   :  { %v5058_v39 = vadd.f32 %v5780_v24, %v5057_v11  ;;  %v5117_v19 = vmax.f32 %v5055_v9, 0.0 }
 0x982   :  { %v5120_v60 = vmax.f32 %v5066_v15, 0.0 }
 0x983   :  { %v5118_v7 = vmax.f32 %v5058_v39, 0.0 }
 0x984   :  { %v5150_v29 = vpack.c.bf16 %v5120_v60, %v5119_v27 }
 0x985   :  { %v5149_v40 = vpack.c.bf16 %v5118_v7, %v5117_v19  ;;  %v5915_v30 = vpop.f32.mrb[92].mxu0 }
 0x986   :  { %v5079_v51 = vadd.f32 %v5915_v30, %v5780_v24  ;;  %v5070_v13 = vpop.f32.mrb[93].mxu0 }
 0x987   :  { %v5071_v17 = vadd.f32 %v5780_v24, %v5070_v13  ;;  %v5916_v3 = vpop.f32.mrb[94].mxu0  ;;  %5941 = vmatprep.mubr.bf16.mxu0 %v5149_v40 }
 0x988   :  { %v5082_v10 = vadd.f32 %v5916_v3, %v5780_v24  ;;  %v5073_v21 = vpop.f32.mrb[95].mxu0  ;;  %5942 = vmatmul.mubr.bf16.vlgmr.msra.gmra.mrb[104].mxu0 %v5150_v29  ;;  %v5123_v26 = vmax.f32 %v5079_v51, 0.0 }
 0x989   :  { %v5074_v59 = vadd.f32 %v5780_v24, %v5073_v21  ;;  %v5121_v16 = vmax.f32 %v5071_v17, 0.0 }
 0x98a   :  { %v5124_v61 = vmax.f32 %v5082_v10, 0.0 }
 0x98b   :  { %v5122_v22 = vmax.f32 %v5074_v59, 0.0 }
 0x98c   :  { %v5152_v32 = vpack.c.bf16 %v5124_v61, %v5123_v26 }
 0x98d   :  { %v5151_v38 = vpack.c.bf16 %v5122_v22, %v5121_v16  ;;  %v5919_v45 = vpop.f32.mrb[96].mxu0 }
 0x98e   :  { %v5095_v34 = vadd.f32 %v5919_v45, %v5780_v24  ;;  %v5086_v37 = vpop.f32.mrb[97].mxu0 }
 0x98f   :  { %v5087_v58 = vadd.f32 %v5780_v24, %v5086_v37  ;;  %v5920_v23 = vpop.f32.mrb[98].mxu0  ;;  %5945 = vmatprep.mubr.bf16.mxu0 %v5151_v38 }
 0x990   :  { %v5098_v47 = vadd.f32 %v5920_v23, %v5780_v24  ;;  %v5089_v6 = vpop.f32.mrb[99].mxu0  ;;  %5946 = vmatmul.mubr.bf16.gmra.mrb[108].mxu0 %v5152_v32  ;;  %v5127_v63 = vmax.f32 %v5095_v34, 0.0 }
 0x991   :  { %v5090_v25 = vadd.f32 %v5780_v24, %v5089_v6  ;;  %v5125_v4 = vmax.f32 %v5087_v58, 0.0 }
 0x992   :  { %v5128_v2 = vmax.f32 %v5098_v47, 0.0 }
 0x993   :  { %v5126_v12 = vmax.f32 %v5090_v25, 0.0 }
 0x994   :  { %v5154_v42 = vpack.c.bf16 %v5128_v2, %v5127_v63 }
 0x995   :  { %v5153_v14 = vpack.c.bf16 %v5126_v12, %v5125_v4  ;;  %v5923_v31 = vpop.f32.mrb[100].mxu0 }
 0x996   :  { %v5111_v33 = vadd.f32 %v5923_v31, %v5780_v24  ;;  %v5102_v20 = vpop.f32.mrb[101].mxu0 }
 0x997   :  { %v5103_v44 = vadd.f32 %v5780_v24, %v5102_v20  ;;  %v5924_v57 = vpop.f32.mrb[102].mxu0  ;;  %5949 = vmatprep.mubr.bf16.mxu0 %v5153_v14 }
 0x998   :  { %v5114_v1 = vadd.f32 %v5924_v57, %v5780_v24  ;;  %v5105_v48 = vpop.f32.mrb[103].mxu0  ;;  %5950 = vmatmul.mubr.bf16.gmra.mrb[112].mxu0 %v5154_v42  ;;  %v5131_v36 = vmax.f32 %v5111_v33, 0.0 }
 0x999   :  { %v5106_v50 = vadd.f32 %v5780_v24, %v5105_v48  ;;  %v5129_v53 = vmax.f32 %v5103_v44, 0.0 }
 0x99a   :  { %v5132_v35 = vmax.f32 %v5114_v1, 0.0 }
 0x99b   :  { %v5130_v52 = vmax.f32 %v5106_v50, 0.0 }
 0x99c   :  { %v5156_v8 = vpack.c.bf16 %v5132_v35, %v5131_v36 }
 0x99d   :  { %v5155_v28 = vpack.c.bf16 %v5130_v52, %v5129_v53 }
 0x99f   :  { %5953 = vmatprep.mubr.bf16.mxu0 %v5155_v28 }
 0x9a0   :  { %5954 = vmatmul.mubr.bf16.gmra.mrb[116].mxu0 %v5156_v8 }
 0xa5b   :  { %v5943_v43 = vpop.f32.mrb[104].mxu0 }
 0xa5c   :  { %v5255_v5 = vadd.f32 %v5943_v43, %v5793_v18  ;;  %v5246_v54 = vpop.f32.mrb[105].mxu0 }
 0xa5d   :  { %v5247_v0 = vadd.f32 %v5793_v18, %v5246_v54  ;;  %v5944_v49 = vpop.f32.mrb[106].mxu0 }
 0xa5e   :  { %v5311_v62 = vmax.f32 %v5255_v5, 0.0  ;;  %v5258_v56 = vadd.f32 %v5944_v49, %v5793_v18  ;;  %v5249_v46 = vpop.f32.mrb[107].mxu0 }
 0xa5f   :  { %v5309_v41 = vmax.f32 %v5247_v0, 0.0  ;;  %v5250_v9 = vadd.f32 %v5793_v18, %v5249_v46 }
 0xa60   :  { %v5312_v24 = vmax.f32 %v5258_v56, 0.0 }
 0xa61   :  { %v5325_v55 = vmax.f32 %v5309_v41, %v5311_v62  ;;  %v5310_v15 = vmax.f32 %v5250_v9, 0.0 }
 0xa63   :  { %v5326_v11 = vmax.f32 %v5310_v15, %v5312_v24  ;;  %v5947_v39 = vpop.f32.mrb[108].mxu0 }
 0xa64   :  { %v5262_v27 = vpop.f32.mrb[109].mxu0  ;;  %v5271_v60 = vadd.f32 %v5947_v39, %v5793_v18 }
 0xa65   :  { %v5263_v19 = vadd.f32 %v5793_v18, %v5262_v27  ;;  %v5948_v7 = vpop.f32.mrb[110].mxu0 }
 0xa66   :  { %v5265_v29 = vpop.f32.mrb[111].mxu0  ;;  %v5274_v30 = vadd.f32 %v5948_v7, %v5793_v18  ;;  %v5315_v13 = vmax.f32 %v5271_v60, 0.0 }
 0xa67   :  { %v5313_v40 = vmax.f32 %v5263_v19, 0.0  ;;  %v5266_v51 = vadd.f32 %v5793_v18, %v5265_v29 }
 0xa68   :  { %v5316_v21 = vmax.f32 %v5274_v30, 0.0 }
 0xa69   :  { %v5327_v17 = vmax.f32 %v5325_v55, %v5313_v40  ;;  %v5314_v3 = vmax.f32 %v5266_v51, 0.0 }
 0xa6b   :  { %v5329_v10 = vmax.f32 %v5327_v17, %v5315_v13  ;;  %v5328_v59 = vmax.f32 %v5326_v11, %v5314_v3  ;;  %v5951_v26 = vpop.f32.mrb[112].mxu0 }
 0xa6c   :  { %v5287_v61 = vadd.f32 %v5951_v26, %v5793_v18  ;;  %v5278_v16 = vpop.f32.mrb[113].mxu0 }
 0xa6d   :  { %v5330_v22 = vmax.f32 %v5328_v59, %v5316_v21  ;;  %v5279_v32 = vadd.f32 %v5793_v18, %v5278_v16  ;;  %v5952_v38 = vpop.f32.mrb[114].mxu0 }
 0xa6e   :  { %v5319_v45 = vmax.f32 %v5287_v61, 0.0  ;;  %v5290_v34 = vadd.f32 %v5952_v38, %v5793_v18  ;;  %v5281_v37 = vpop.f32.mrb[115].mxu0 }
 0xa6f   :  { %v5331_v58 = vmax.f32 %v5329_v10, %v5330_v22  ;;  %v5317_v23 = vmax.f32 %v5279_v32, 0.0  ;;  %v5282_v47 = vadd.f32 %v5793_v18, %v5281_v37 }
 0xa70   :  { %v5320_v6 = vmax.f32 %v5290_v34, 0.0 }
 0xa71   :  { %v5338_v25 = vmax.f32 %v5317_v23, %v5319_v45  ;;  %v5318_v63 = vmax.f32 %v5282_v47, 0.0  ;;  %v5332_v20 = vrot.slane %v5331_v58, 4 }
 0xa73   :  { %v5339_v2 = vmax.f32 %v5318_v63, %v5320_v6  ;;  %v5955_v4 = vpop.f32.mrb[116].mxu0  ;;  %v5333_v35 = vmax.f32 %v5331_v58, %v5332_v20 }
 0xa74   :  { %v5294_v12 = vpop.f32.mrb[117].mxu0  ;;  %v5303_v42 = vadd.f32 %v5955_v4, %v5793_v18 }
 0xa75   :  { %v5295_v14 = vadd.f32 %v5793_v18, %v5294_v12  ;;  %v5956_v31 = vpop.f32.mrb[118].mxu0  ;;  %v5334_v43 = vrot.slane %v5333_v35, 2 }
 0xa76   :  { %v5297_v33 = vpop.f32.mrb[119].mxu0  ;;  %v5306_v57 = vadd.f32 %v5956_v31, %v5793_v18  ;;  %v5323_v48 = vmax.f32 %v5303_v42, 0.0 }
 0xa77   :  { %v5321_v44 = vmax.f32 %v5295_v14, 0.0  ;;  %v5298_v1 = vadd.f32 %v5793_v18, %v5297_v33  ;;  %v5335_v49 = vmax.f32 %v5333_v35, %v5334_v43 }
 0xa78   :  { %v5324_v52 = vmax.f32 %v5306_v57, 0.0 }
 0xa79   :  { %v5340_v50 = vmax.f32 %v5338_v25, %v5321_v44  ;;  %v5322_v36 = vmax.f32 %v5298_v1, 0.0  ;;  %v5336_v56 = vrot.slane %v5335_v49, 1 }
 0xa7b   :  { %v5342_v53 = vmax.f32 %v5340_v50, %v5323_v48  ;;  %v5341_v8 = vmax.f32 %v5339_v2, %v5322_v36  ;;  %v5337_v18 = vmax.f32 %v5335_v49, %v5336_v56 }
 0xa7d   :  { %v5343_v28 = vmax.f32 %v5341_v8, %v5324_v52 }
 0xa7f   :  { %v5344_v5 = vmax.f32 %v5342_v53, %v5343_v28 }
 0xa81   :  { %v5345_v54 = vrot.slane %v5344_v5, 4 }
 0xa83   :  { %v5346_v0 = vmax.f32 %v5344_v5, %v5345_v54 }
 0xa85   :  { %v5347_v62 = vrot.slane %v5346_v0, 2 }
 0xa87   :  { %v5348_v46 = vmax.f32 %v5346_v0, %v5347_v62 }
 0xa89   :  { %v5349_v41 = vrot.slane %v5348_v46, 1 }
 0xa8b   :  { %v5350_v9 = vmax.f32 %v5348_v46, %v5349_v41 }
 0xa8d   :  { %v5353_v24 = vsel %vm2436_vm1, %v5350_v9, %v5337_v18 }
 0xa8e   :  { %5355 = vst [vmem:[#allocation32] sm:$0x3] %v5353_v24 }
 0xa8f   :  { %7021 = shalt.err (!%p7018_p2)
}
 0xa90   :  { %s8518_s26 = sld [smem:[#allocation87_spill]] }
 0xa96   :  { %s7022_s8 = scalar_lea.hbm %s8518_s26, 32 }
 0xa97   :  { %p7023_p3 = scmp.ne.s32.totalorder %s8518_s26, %s7022_s8  ;;  %p7026_p4 = scmp.lt.u32.totalorder %s7022_s8, %s8518_s26 }
 0xa99   :  { %p7028_p5 = pnand %p7026_p4, %p7023_p3 }
 0xa9b   :  { %7031 = shalt.err (!%p7028_p5)
}
 0xa9c   :  { %5365 = dma.vmem_to_hbm [thread:$0]  %s5363_s5, 32, %s8518_s26, [#allocation4]  }
 0xa9d   :  { %7052 = dma.done.wait [#allocation4], 32  }
 0xa9e   :  { %7053 = vsyncadd [#allocation4], 4294967264 }
 0xa9f   :  { %5369 = vsyncpa [#allocation3], 1 }
 0xaa0   :  { %5370 = vsyncpa [#allocation6], 1 }
 0xaa1   :  { %5371 = vsyncpa [#allocation9], 1 }
 0xaa2   :  { %5372 = vsyncpa [#allocation12], 1 }
 0xaa3   :  { %5373 = vsyncpa [#allocation15], 1 }
 0xaa4   :  { %5374 = vsyncpa [#allocation18], 1 }
 0xaa5   :  { %5375 = vsyncpa [#allocation21], 1 }
 0xaa6   :  { %5376 = vsyncpa [#allocation24], 1 }
 0xaa7   :  { %5377 = vsyncpa [#allocation27], 1 }
 0xaa8   :  { %5378 = vsyncpa [#allocation30], 1 }
 0xaa9   :  { %5379 = vsyncpa [#allocation4], 1 }

</bundles_post_ra>
